<compile_context>
chip_gen: v7x
topology: tpu7x:2x2x1
jax: 0.10.0
libtpu: 0.0.40
codegen_flags: <defaults>
</compile_context>

<pallas_src>
import functools

import jax
import jax.numpy as jnp
from jax.experimental import pallas as pl
from jax.experimental.pallas import tpu as pltpu


# ----------------------------------------------------------------------------- kernels


def _dw_conv_stats_kernel(x_ref, h_ref, w_ref, y_ref, sum_ref, sq_ref, xpad_ref, *, C):
    """Pass 1: depthwise 3x3x3 conv (pad=1) on one (batch, D-tile) block, lane-dense.

    Emits the conv tile plus per-(n, d-tile) per-(w, c) sum / sum-of-square partials
    (f32) for training-mode BatchNorm; no cross-grid-step accumulation.
    """
    _, td, H, WC = x_ref.shape          # x block is (1, td, H, W*C)

    # Build the zero-padded slab (td+2, H+2, (W+2)*C) in VMEM scratch: zero the whole
    # buffer (borders stay zero), then store the tile and its two D-halo planes into
    # the interior window.  Plain vector stores -> no DMA-ordering hazards.
    xpad_ref[...] = jnp.zeros(xpad_ref.shape, xpad_ref.dtype)
    xt = x_ref[...].reshape(td, H, WC)
    halo = h_ref[...]                   # (1, 1, 2, H, WC)
    xpad_ref[pl.ds(1, td), pl.ds(1, H), pl.ds(C, WC)] = xt
    xpad_ref[pl.ds(0, 1), pl.ds(1, H), pl.ds(C, WC)] = halo[0, 0, 0][None]
    xpad_ref[pl.ds(td + 1, 1), pl.ds(1, H), pl.ds(C, WC)] = halo[0, 0, 1][None]

    wv = w_ref[...]                     # (27, W*C) f32 weight table, loaded once

    acc = None
    for kh in range(3):
        for kw in range(3):
            # One shifted window load covers all three kd taps of this (kh, kw):
            # sublane offset kh, lane offset kw*C; kd is a free leading-dim slice.
            win = xpad_ref[pl.ds(0, td + 2), pl.ds(kh, H), pl.ds(kw * C, WC)]
            win = win.astype(jnp.float32)
            p = None
            for kd in range(3):
                t = kd * 9 + kh * 3 + kw
                term = win[kd:kd + td] * wv[t]
                p = term if p is None else p + term
            acc = p if acc is None else acc + p

    # Conv bias intentionally omitted: it cancels exactly under training-mode BN.
    y_ref[...] = acc.astype(y_ref.dtype).reshape(y_ref.shape)

    # Per-(w, c) partials (lane axis untouched); W-sum + cross-tile sum happen outside.
    sum_ref[...] = jnp.sum(acc, axis=(0, 1)).reshape(sum_ref.shape)
    sq_ref[...] = jnp.sum(acc * acc, axis=(0, 1)).reshape(sq_ref.shape)


def _bn_act_kernel(y_ref, sc_ref, sh_ref, o_ref):
    """Pass 2: folded BatchNorm affine (scale/shift) + LeakyReLU(0.01), lane-dense."""
    z = y_ref[...].astype(jnp.float32) * sc_ref[...] + sh_ref[...]
    o_ref[...] = jnp.maximum(z, 0.01 * z).astype(o_ref.dtype)


# ----------------------------------------------------------------------------- tiling


def _pick_d_tile(D, plane_bytes, cap=1 << 20):
    """Largest divisor of D whose f32 tile (td * plane_bytes) stays under `cap`."""
    td = 1
    for cand in range(1, D + 1):
        if D % cand == 0 and cand * plane_bytes <= cap:
            td = cand
    return td


def _pick_tile(extent, unit_bytes, align, cap):
    """Largest `align`-multiple divisor of `extent` with tile bytes <= cap.

    Falls back to the smallest aligned divisor, then to the full extent (always a
    legal Pallas block for the minor dims).
    """
    divs = [t for t in range(align, extent + 1, align) if extent % t == 0]
    fitting = [t for t in divs if t * unit_bytes <= cap]
    if fitting:
        return max(fitting)
    if divs:
        return min(divs)
    return extent


# ----------------------------------------------------------------------------- wrappers


def dwise_forward_ndhwc(x, weight, bias, gamma, beta, eps=1e-5):
    """Forward pass of `dwise` on a channels-last (N, D, H, W, C) activation."""
    N, D, H, W, C = x.shape
    assert weight.shape == (C, 1, 3, 3, 3), weight.shape
    del bias  # cancels exactly under training-mode BatchNorm (see kernel note)

    WC = W * C
    x2 = x.reshape(N, D, H, WC)                      # lane axis = (w, c); free reshape

    td = _pick_d_tile(D, H * WC * 4, cap=1 << 20)
    n_dt = D // td

    # Per-tile D-halo planes (left/right neighbours, zeros at the volume edges),
    # gathered once in the wrapper: ~2/td of the input instead of a full padded copy.
    zplane = jnp.zeros((N, 1, H, WC), x.dtype)
    left = jnp.concatenate([zplane, x2[:, td - 1:D - 1:td]], axis=1)
    right = jnp.concatenate([x2[:, td::td], zplane], axis=1)
    xh = jnp.stack([left, right], axis=2)            # (N, n_dt, 2, H, WC)

    # (27, W*C) tap-major weight table: row t repeats the per-channel tap weights W times,
    # matching the (w, c) lane interleave of x2.
    w_tab = jnp.tile(weight.reshape(C, 27).T.astype(jnp.float32), (1, W))

    y_dtype = x.dtype   # bf16 inputs -> bf16 intermediate (stats are reduced in f32)

    kernel = functools.partial(_dw_conv_stats_kernel, C=C)
    y, ysum, ysq = pl.pallas_call(
        kernel,
        out_shape=(
            jax.ShapeDtypeStruct((N, D, H, WC), y_dtype),          # conv output
            jax.ShapeDtypeStruct((N * n_dt, 1, WC), jnp.float32),  # per-tile (w,c) sum
            jax.ShapeDtypeStruct((N * n_dt, 1, WC), jnp.float32),  # per-tile (w,c) sumsq
        ),
        grid=(N, n_dt),
        in_specs=[
            pl.BlockSpec((1, td, H, WC), lambda n, d: (n, d, 0, 0)),
            pl.BlockSpec((1, 1, 2, H, WC), lambda n, d: (n, d, 0, 0, 0)),
            pl.BlockSpec((27, WC), lambda n, d: (0, 0)),
        ],
        out_specs=(
            pl.BlockSpec((1, td, H, WC), lambda n, d: (n, d, 0, 0)),
            pl.BlockSpec((1, 1, WC), lambda n, d: (n * n_dt + d, 0, 0)),
            pl.BlockSpec((1, 1, WC), lambda n, d: (n * n_dt + d, 0, 0)),
        ),
        scratch_shapes=[pltpu.VMEM((td + 2, H + 2, WC + 2 * C), x.dtype)],
        compiler_params=pltpu.CompilerParams(
            dimension_semantics=("parallel", "parallel"),
            vmem_limit_bytes=32 * 1024 * 1024,
        ),
    )(x2, xh, w_tab)

    # Fold training-mode BatchNorm (biased variance over N*D*H*W, eps) into a single
    # per-channel scale/shift (tiny f32 math outside the kernels).
    count = jnp.float32(N * D * H * W)
    s = jnp.sum(ysum.reshape(N * n_dt, W, C), axis=(0, 1))
    ss = jnp.sum(ysq.reshape(N * n_dt, W, C), axis=(0, 1))
    mean = s / count
    var = jnp.maximum(ss / count - mean * mean, 0.0)
    scale = gamma.astype(jnp.float32) * jax.lax.rsqrt(var + eps)
    shift = beta.astype(jnp.float32) - mean * scale

    # Pass 2: lane-dense elementwise scale/shift + LeakyReLU on a (N*D, H*W*C) view
    # of y (free reshape of a contiguous array -> unmasked full-lane vld/vst).
    R, L = N * D, H * WC
    y2 = y.reshape(R, L)
    sc2 = jnp.tile(scale, H * W).reshape(1, L)
    sh2 = jnp.tile(shift, H * W).reshape(1, L)

    tl = _pick_tile(L, 4, 128, cap=512 * 1024)          # lane tile, capped by bytes
    tr = _pick_tile(R, tl * 4, 8, cap=2 * 1024 * 1024)  # row tile, capped by block bytes

    out2 = pl.pallas_call(
        _bn_act_kernel,
        out_shape=jax.ShapeDtypeStruct((R, L), x.dtype),
        grid=(R // tr, L // tl),
        in_specs=[
            pl.BlockSpec((tr, tl), lambda i, j: (i, j)),
            pl.BlockSpec((1, tl), lambda i, j: (0, j)),
            pl.BlockSpec((1, tl), lambda i, j: (0, j)),
        ],
        out_specs=pl.BlockSpec((tr, tl), lambda i, j: (i, j)),
        compiler_params=pltpu.CompilerParams(
            dimension_semantics=("parallel", "parallel"),
            vmem_limit_bytes=32 * 1024 * 1024,
        ),
    )(y2, sc2, sh2)

    return out2.reshape(N, D, H, W, C)


def dwise_forward(x_ncdhw, weight, bias, gamma, beta, eps=1e-5):
    """PyTorch-layout entry point: x is (N, C, D, H, W); returns (N, C, D, H, W).

    Exactly one NCDHW->NDHWC transpose in and one out; call dwise_forward_ndhwc
    directly from a channels-last model to skip both.
    """
    x = jnp.transpose(x_ncdhw, (0, 2, 3, 4, 1))
    out = dwise_forward_ndhwc(x, weight, bias, gamma, beta, eps)
    return jnp.transpose(out, (0, 4, 1, 2, 3))


# ----------------------------------------------------------------------------- reference


def _dwise_reference(x, weight, bias, gamma, beta, eps=1e-5):
    """Pure-JAX reference for the PyTorch module (training-mode BatchNorm forward)."""
    C = x.shape[1]
    y = jax.lax.conv_general_dilated(
        x, weight,
        window_strides=(1, 1, 1),
        padding=((1, 1), (1, 1), (1, 1)),
        dimension_numbers=("NCDHW", "OIDHW", "NCDHW"),
        feature_group_count=C,
        precision=jax.lax.Precision.HIGHEST,
    )
    y = y + bias[None, :, None, None, None]
    mean = jnp.mean(y, axis=(0, 2, 3, 4), keepdims=True)
    var = jnp.mean((y - mean) ** 2, axis=(0, 2, 3, 4), keepdims=True)
    z = (y - mean) * jax.lax.rsqrt(var + eps)
    z = gamma[None, :, None, None, None] * z + beta[None, :, None, None, None]
    return jnp.where(z >= 0, z, 0.01 * z)


# ----------------------------------------------------------------------------- main


if __name__ == "__main__":
    key = jax.random.PRNGKey(0)
    kx, kw, kb, kg, kbt = jax.random.split(key, 5)

    N, C, D, H, W = 2, 4, 16, 16, 16
    x = jax.random.normal(kx, (N, C, D, H, W), dtype=jnp.float32)
    weight = 0.3 * jax.random.normal(kw, (C, 1, 3, 3, 3), dtype=jnp.float32)
    bias = 0.1 * jax.random.normal(kb, (C,), dtype=jnp.float32)
    gamma = 1.0 + 0.1 * jax.random.normal(kg, (C,), dtype=jnp.float32)
    beta = 0.1 * jax.random.normal(kbt, (C,), dtype=jnp.float32)

    out = jax.block_until_ready(jax.jit(dwise_forward)(x, weight, bias, gamma, beta))

    ref = jax.block_until_ready(_dwise_reference(x, weight, bias, gamma, beta))
    max_err = float(jnp.max(jnp.abs(out - ref)))
    if not (max_err < 2e-3):
        raise SystemExit(f"numerical mismatch vs reference: max abs err = {max_err}")

    print("KERNEL_OK")
</pallas_src>

<mosaic_0001>
module attributes {stable_mosaic.version = 11 : i64} {
  func.func @_dw_conv_stats_kernel(%arg0: i32, %arg1: i32, %arg2: memref<1x16x16x64xf32, #tpu.memory_space<vmem>>, %arg3: memref<1x1x2x16x64xf32, #tpu.memory_space<vmem>>, %arg4: memref<27x64xf32, #tpu.memory_space<vmem>>, %arg5: memref<1x16x16x64xf32, #tpu.memory_space<vmem>>, %arg6: memref<1x1x64xf32, #tpu.memory_space<vmem>>, %arg7: memref<1x1x64xf32, #tpu.memory_space<vmem>>, %arg8: memref<18x18x72xf32, #tpu.memory_space<vmem>>) attributes {dimension_semantics = [#tpu.dimension_semantics<parallel>, #tpu.dimension_semantics<parallel>], iteration_bounds = array<i64: 2, 1>, scalar_prefetch = 0 : i64, scratch_operands = 1 : i64, tpu.core_type = #tpu.core_type<tc>, window_params = [{transform_indices = @transform_0, window_bounds = array<i64: 1, 16, 16, 64>}, {transform_indices = @transform_1, window_bounds = array<i64: 1, 1, 2, 16, 64>}, {pipeline_mode = #tpu.pipeline_mode<synchronous>, transform_indices = @transform_2, window_bounds = array<i64: 27, 64>}, {transform_indices = @transform_3, window_bounds = array<i64: 1, 16, 16, 64>}, {transform_indices = @transform_4, window_bounds = array<i64: 1, 1, 64>}, {transform_indices = @transform_5, window_bounds = array<i64: 1, 1, 64>}]} {
    %cst = arith.constant 0.000000e+00 : f32
    %0 = vector.broadcast %cst : f32 to vector<18x18x72xf32>
    %c0 = arith.constant 0 : index
    %c0_0 = arith.constant 0 : index
    %c0_1 = arith.constant 0 : index
    %1 = vector.load %arg8[%c0, %c0_0, %c0_1] : memref<18x18x72xf32, #tpu.memory_space<vmem>>, vector<18x18x72xf32>
    tpu.vector_store %arg8[%c0, %c0_0, %c0_1], %0 {strides = array<i32>} : memref<18x18x72xf32, #tpu.memory_space<vmem>>, vector<18x18x72xf32>,
    %c0_2 = arith.constant 0 : index
    %c0_3 = arith.constant 0 : index
    %c0_4 = arith.constant 0 : index
    %c0_5 = arith.constant 0 : index
    %2 = vector.load %arg2[%c0_2, %c0_3, %c0_4, %c0_5] : memref<1x16x16x64xf32, #tpu.memory_space<vmem>>, vector<1x16x16x64xf32>
    %3 = vector.shape_cast %2 : vector<1x16x16x64xf32> to vector<16x16x64xf32>
    %c0_6 = arith.constant 0 : index
    %c0_7 = arith.constant 0 : index
    %c0_8 = arith.constant 0 : index
    %c0_9 = arith.constant 0 : index
    %c0_10 = arith.constant 0 : index
    %4 = vector.load %arg3[%c0_6, %c0_7, %c0_8, %c0_9, %c0_10] : memref<1x1x2x16x64xf32, #tpu.memory_space<vmem>>, vector<1x1x2x16x64xf32>
    %c1 = arith.constant 1 : index
    %c1_11 = arith.constant 1 : index
    %c4 = arith.constant 4 : index
    %5 = vector.load %arg8[%c1, %c1_11, %c4] : memref<18x18x72xf32, #tpu.memory_space<vmem>>, vector<16x16x64xf32>
    tpu.vector_store %arg8[%c1, %c1_11, %c4], %3 {strides = array<i32>} : memref<18x18x72xf32, #tpu.memory_space<vmem>>, vector<16x16x64xf32>,
    %6 = vector.extract_strided_slice %4 {offsets = [0, 0, 0, 0, 0], sizes = [1, 1, 1, 16, 64], strides = [1, 1, 1, 1, 1]} : vector<1x1x2x16x64xf32> to vector<1x1x1x16x64xf32>
    %7 = vector.shape_cast %6 : vector<1x1x1x16x64xf32> to vector<16x64xf32>
    %8 = vector.shape_cast %7 : vector<16x64xf32> to vector<1x16x64xf32>
    %c0_12 = arith.constant 0 : index
    %c1_13 = arith.constant 1 : index
    %c4_14 = arith.constant 4 : index
    %9 = vector.load %arg8[%c0_12, %c1_13, %c4_14] : memref<18x18x72xf32, #tpu.memory_space<vmem>>, vector<1x16x64xf32>
    tpu.vector_store %arg8[%c0_12, %c1_13, %c4_14], %8 {strides = array<i32>} : memref<18x18x72xf32, #tpu.memory_space<vmem>>, vector<1x16x64xf32>,
    %10 = vector.extract_strided_slice %4 {offsets = [0, 0, 1, 0, 0], sizes = [1, 1, 1, 16, 64], strides = [1, 1, 1, 1, 1]} : vector<1x1x2x16x64xf32> to vector<1x1x1x16x64xf32>
    %11 = vector.shape_cast %10 : vector<1x1x1x16x64xf32> to vector<16x64xf32>
    %12 = vector.shape_cast %11 : vector<16x64xf32> to vector<1x16x64xf32>
    %c17 = arith.constant 17 : index
    %c1_15 = arith.constant 1 : index
    %c4_16 = arith.constant 4 : index
    %13 = vector.load %arg8[%c17, %c1_15, %c4_16] : memref<18x18x72xf32, #tpu.memory_space<vmem>>, vector<1x16x64xf32>
    tpu.vector_store %arg8[%c17, %c1_15, %c4_16], %12 {strides = array<i32>} : memref<18x18x72xf32, #tpu.memory_space<vmem>>, vector<1x16x64xf32>,
    %c0_17 = arith.constant 0 : index
    %c0_18 = arith.constant 0 : index
    %14 = vector.load %arg4[%c0_17, %c0_18] : memref<27x64xf32, #tpu.memory_space<vmem>>, vector<27x64xf32>
    %c0_19 = arith.constant 0 : index
    %c0_20 = arith.constant 0 : index
    %c0_21 = arith.constant 0 : index
    %15 = vector.load %arg8[%c0_19, %c0_20, %c0_21] : memref<18x18x72xf32, #tpu.memory_space<vmem>>, vector<18x16x64xf32>
    %16 = vector.extract_strided_slice %15 {offsets = [0, 0, 0], sizes = [16, 16, 64], strides = [1, 1, 1]} : vector<18x16x64xf32> to vector<16x16x64xf32>
    %17 = vector.extract_strided_slice %14 {offsets = [0, 0], sizes = [1, 64], strides = [1, 1]} : vector<27x64xf32> to vector<1x64xf32>
    %18 = vector.shape_cast %17 : vector<1x64xf32> to vector<64xf32>
    %19 = vector.shape_cast %18 : vector<64xf32> to vector<1x1x64xf32>
    %20 = vector.broadcast %19 : vector<1x1x64xf32> to vector<16x16x64xf32>
    %21 = arith.mulf %16, %20 : vector<16x16x64xf32>
    %22 = vector.extract_strided_slice %15 {offsets = [1, 0, 0], sizes = [16, 16, 64], strides = [1, 1, 1]} : vector<18x16x64xf32> to vector<16x16x64xf32>
    %23 = vector.extract_strided_slice %14 {offsets = [9, 0], sizes = [1, 64], strides = [1, 1]} : vector<27x64xf32> to vector<1x64xf32>
    %24 = vector.shape_cast %23 : vector<1x64xf32> to vector<64xf32>
    %25 = vector.shape_cast %24 : vector<64xf32> to vector<1x1x64xf32>
    %26 = vector.broadcast %25 : vector<1x1x64xf32> to vector<16x16x64xf32>
    %27 = arith.mulf %22, %26 : vector<16x16x64xf32>
    %28 = arith.addf %21, %27 : vector<16x16x64xf32>
    %29 = vector.extract_strided_slice %15 {offsets = [2, 0, 0], sizes = [16, 16, 64], strides = [1, 1, 1]} : vector<18x16x64xf32> to vector<16x16x64xf32>
    %30 = vector.extract_strided_slice %14 {offsets = [18, 0], sizes = [1, 64], strides = [1, 1]} : vector<27x64xf32> to vector<1x64xf32>
    %31 = vector.shape_cast %30 : vector<1x64xf32> to vector<64xf32>
    %32 = vector.shape_cast %31 : vector<64xf32> to vector<1x1x64xf32>
    %33 = vector.broadcast %32 : vector<1x1x64xf32> to vector<16x16x64xf32>
    %34 = arith.mulf %29, %33 : vector<16x16x64xf32>
    %35 = arith.addf %28, %34 : vector<16x16x64xf32>
    %c0_22 = arith.constant 0 : index
    %c0_23 = arith.constant 0 : index
    %c4_24 = arith.constant 4 : index
    %36 = vector.load %arg8[%c0_22, %c0_23, %c4_24] : memref<18x18x72xf32, #tpu.memory_space<vmem>>, vector<18x16x64xf32>
    %37 = vector.extract_strided_slice %36 {offsets = [0, 0, 0], sizes = [16, 16, 64], strides = [1, 1, 1]} : vector<18x16x64xf32> to vector<16x16x64xf32>
    %38 = vector.extract_strided_slice %14 {offsets = [1, 0], sizes = [1, 64], strides = [1, 1]} : vector<27x64xf32> to vector<1x64xf32>
    %39 = vector.shape_cast %38 : vector<1x64xf32> to vector<64xf32>
    %40 = vector.shape_cast %39 : vector<64xf32> to vector<1x1x64xf32>
    %41 = vector.broadcast %40 : vector<1x1x64xf32> to vector<16x16x64xf32>
    %42 = arith.mulf %37, %41 : vector<16x16x64xf32>
    %43 = vector.extract_strided_slice %36 {offsets = [1, 0, 0], sizes = [16, 16, 64], strides = [1, 1, 1]} : vector<18x16x64xf32> to vector<16x16x64xf32>
    %44 = vector.extract_strided_slice %14 {offsets = [10, 0], sizes = [1, 64], strides = [1, 1]} : vector<27x64xf32> to vector<1x64xf32>
    %45 = vector.shape_cast %44 : vector<1x64xf32> to vector<64xf32>
    %46 = vector.shape_cast %45 : vector<64xf32> to vector<1x1x64xf32>
    %47 = vector.broadcast %46 : vector<1x1x64xf32> to vector<16x16x64xf32>
    %48 = arith.mulf %43, %47 : vector<16x16x64xf32>
    %49 = arith.addf %42, %48 : vector<16x16x64xf32>
    %50 = vector.extract_strided_slice %36 {offsets = [2, 0, 0], sizes = [16, 16, 64], strides = [1, 1, 1]} : vector<18x16x64xf32> to vector<16x16x64xf32>
    %51 = vector.extract_strided_slice %14 {offsets = [19, 0], sizes = [1, 64], strides = [1, 1]} : vector<27x64xf32> to vector<1x64xf32>
    %52 = vector.shape_cast %51 : vector<1x64xf32> to vector<64xf32>
    %53 = vector.shape_cast %52 : vector<64xf32> to vector<1x1x64xf32>
    %54 = vector.broadcast %53 : vector<1x1x64xf32> to vector<16x16x64xf32>
    %55 = arith.mulf %50, %54 : vector<16x16x64xf32>
    %56 = arith.addf %49, %55 : vector<16x16x64xf32>
    %57 = arith.addf %35, %56 : vector<16x16x64xf32>
    %c0_25 = arith.constant 0 : index
    %c0_26 = arith.constant 0 : index
    %c8 = arith.constant 8 : index
    %58 = vector.load %arg8[%c0_25, %c0_26, %c8] : memref<18x18x72xf32, #tpu.memory_space<vmem>>, vector<18x16x64xf32>
    %59 = vector.extract_strided_slice %58 {offsets = [0, 0, 0], sizes = [16, 16, 64], strides = [1, 1, 1]} : vector<18x16x64xf32> to vector<16x16x64xf32>
    %60 = vector.extract_strided_slice %14 {offsets = [2, 0], sizes = [1, 64], strides = [1, 1]} : vector<27x64xf32> to vector<1x64xf32>
    %61 = vector.shape_cast %60 : vector<1x64xf32> to vector<64xf32>
    %62 = vector.shape_cast %61 : vector<64xf32> to vector<1x1x64xf32>
    %63 = vector.broadcast %62 : vector<1x1x64xf32> to vector<16x16x64xf32>
    %64 = arith.mulf %59, %63 : vector<16x16x64xf32>
    %65 = vector.extract_strided_slice %58 {offsets = [1, 0, 0], sizes = [16, 16, 64], strides = [1, 1, 1]} : vector<18x16x64xf32> to vector<16x16x64xf32>
    %66 = vector.extract_strided_slice %14 {offsets = [11, 0], sizes = [1, 64], strides = [1, 1]} : vector<27x64xf32> to vector<1x64xf32>
    %67 = vector.shape_cast %66 : vector<1x64xf32> to vector<64xf32>
    %68 = vector.shape_cast %67 : vector<64xf32> to vector<1x1x64xf32>
    %69 = vector.broadcast %68 : vector<1x1x64xf32> to vector<16x16x64xf32>
    %70 = arith.mulf %65, %69 : vector<16x16x64xf32>
    %71 = arith.addf %64, %70 : vector<16x16x64xf32>
    %72 = vector.extract_strided_slice %58 {offsets = [2, 0, 0], sizes = [16, 16, 64], strides = [1, 1, 1]} : vector<18x16x64xf32> to vector<16x16x64xf32>
    %73 = vector.extract_strided_slice %14 {offsets = [20, 0], sizes = [1, 64], strides = [1, 1]} : vector<27x64xf32> to vector<1x64xf32>
    %74 = vector.shape_cast %73 : vector<1x64xf32> to vector<64xf32>
    %75 = vector.shape_cast %74 : vector<64xf32> to vector<1x1x64xf32>
    %76 = vector.broadcast %75 : vector<1x1x64xf32> to vector<16x16x64xf32>
    %77 = arith.mulf %72, %76 : vector<16x16x64xf32>
    %78 = arith.addf %71, %77 : vector<16x16x64xf32>
    %79 = arith.addf %57, %78 : vector<16x16x64xf32>
    %c0_27 = arith.constant 0 : index
    %c1_28 = arith.constant 1 : index
    %c0_29 = arith.constant 0 : index
    %80 = vector.load %arg8[%c0_27, %c1_28, %c0_29] : memref<18x18x72xf32, #tpu.memory_space<vmem>>, vector<18x16x64xf32>
    %81 = vector.extract_strided_slice %80 {offsets = [0, 0, 0], sizes = [16, 16, 64], strides = [1, 1, 1]} : vector<18x16x64xf32> to vector<16x16x64xf32>
    %82 = vector.extract_strided_slice %14 {offsets = [3, 0], sizes = [1, 64], strides = [1, 1]} : vector<27x64xf32> to vector<1x64xf32>
    %83 = vector.shape_cast %82 : vector<1x64xf32> to vector<64xf32>
    %84 = vector.shape_cast %83 : vector<64xf32> to vector<1x1x64xf32>
    %85 = vector.broadcast %84 : vector<1x1x64xf32> to vector<16x16x64xf32>
    %86 = arith.mulf %81, %85 : vector<16x16x64xf32>
    %87 = vector.extract_strided_slice %80 {offsets = [1, 0, 0], sizes = [16, 16, 64], strides = [1, 1, 1]} : vector<18x16x64xf32> to vector<16x16x64xf32>
    %88 = vector.extract_strided_slice %14 {offsets = [12, 0], sizes = [1, 64], strides = [1, 1]} : vector<27x64xf32> to vector<1x64xf32>
    %89 = vector.shape_cast %88 : vector<1x64xf32> to vector<64xf32>
    %90 = vector.shape_cast %89 : vector<64xf32> to vector<1x1x64xf32>
    %91 = vector.broadcast %90 : vector<1x1x64xf32> to vector<16x16x64xf32>
    %92 = arith.mulf %87, %91 : vector<16x16x64xf32>
    %93 = arith.addf %86, %92 : vector<16x16x64xf32>
    %94 = vector.extract_strided_slice %80 {offsets = [2, 0, 0], sizes = [16, 16, 64], strides = [1, 1, 1]} : vector<18x16x64xf32> to vector<16x16x64xf32>
    %95 = vector.extract_strided_slice %14 {offsets = [21, 0], sizes = [1, 64], strides = [1, 1]} : vector<27x64xf32> to vector<1x64xf32>
    %96 = vector.shape_cast %95 : vector<1x64xf32> to vector<64xf32>
    %97 = vector.shape_cast %96 : vector<64xf32> to vector<1x1x64xf32>
    %98 = vector.broadcast %97 : vector<1x1x64xf32> to vector<16x16x64xf32>
    %99 = arith.mulf %94, %98 : vector<16x16x64xf32>
    %100 = arith.addf %93, %99 : vector<16x16x64xf32>
    %101 = arith.addf %79, %100 : vector<16x16x64xf32>
    %c0_30 = arith.constant 0 : index
    %c1_31 = arith.constant 1 : index
    %c4_32 = arith.constant 4 : index
    %102 = vector.load %arg8[%c0_30, %c1_31, %c4_32] : memref<18x18x72xf32, #tpu.memory_space<vmem>>, vector<18x16x64xf32>
    %103 = vector.extract_strided_slice %102 {offsets = [0, 0, 0], sizes = [16, 16, 64], strides = [1, 1, 1]} : vector<18x16x64xf32> to vector<16x16x64xf32>
    %104 = vector.extract_strided_slice %14 {offsets = [4, 0], sizes = [1, 64], strides = [1, 1]} : vector<27x64xf32> to vector<1x64xf32>
    %105 = vector.shape_cast %104 : vector<1x64xf32> to vector<64xf32>
    %106 = vector.shape_cast %105 : vector<64xf32> to vector<1x1x64xf32>
    %107 = vector.broadcast %106 : vector<1x1x64xf32> to vector<16x16x64xf32>
    %108 = arith.mulf %103, %107 : vector<16x16x64xf32>
    %109 = vector.extract_strided_slice %102 {offsets = [1, 0, 0], sizes = [16, 16, 64], strides = [1, 1, 1]} : vector<18x16x64xf32> to vector<16x16x64xf32>
    %110 = vector.extract_strided_slice %14 {offsets = [13, 0], sizes = [1, 64], strides = [1, 1]} : vector<27x64xf32> to vector<1x64xf32>
    %111 = vector.shape_cast %110 : vector<1x64xf32> to vector<64xf32>
    %112 = vector.shape_cast %111 : vector<64xf32> to vector<1x1x64xf32>
    %113 = vector.broadcast %112 : vector<1x1x64xf32> to vector<16x16x64xf32>
    %114 = arith.mulf %109, %113 : vector<16x16x64xf32>
    %115 = arith.addf %108, %114 : vector<16x16x64xf32>
    %116 = vector.extract_strided_slice %102 {offsets = [2, 0, 0], sizes = [16, 16, 64], strides = [1, 1, 1]} : vector<18x16x64xf32> to vector<16x16x64xf32>
    %117 = vector.extract_strided_slice %14 {offsets = [22, 0], sizes = [1, 64], strides = [1, 1]} : vector<27x64xf32> to vector<1x64xf32>
    %118 = vector.shape_cast %117 : vector<1x64xf32> to vector<64xf32>
    %119 = vector.shape_cast %118 : vector<64xf32> to vector<1x1x64xf32>
    %120 = vector.broadcast %119 : vector<1x1x64xf32> to vector<16x16x64xf32>
    %121 = arith.mulf %116, %120 : vector<16x16x64xf32>
    %122 = arith.addf %115, %121 : vector<16x16x64xf32>
    %123 = arith.addf %101, %122 : vector<16x16x64xf32>
    %c0_33 = arith.constant 0 : index
    %c1_34 = arith.constant 1 : index
    %c8_35 = arith.constant 8 : index
    %124 = vector.load %arg8[%c0_33, %c1_34, %c8_35] : memref<18x18x72xf32, #tpu.memory_space<vmem>>, vector<18x16x64xf32>
    %125 = vector.extract_strided_slice %124 {offsets = [0, 0, 0], sizes = [16, 16, 64], strides = [1, 1, 1]} : vector<18x16x64xf32> to vector<16x16x64xf32>
    %126 = vector.extract_strided_slice %14 {offsets = [5, 0], sizes = [1, 64], strides = [1, 1]} : vector<27x64xf32> to vector<1x64xf32>
    %127 = vector.shape_cast %126 : vector<1x64xf32> to vector<64xf32>
    %128 = vector.shape_cast %127 : vector<64xf32> to vector<1x1x64xf32>
    %129 = vector.broadcast %128 : vector<1x1x64xf32> to vector<16x16x64xf32>
    %130 = arith.mulf %125, %129 : vector<16x16x64xf32>
    %131 = vector.extract_strided_slice %124 {offsets = [1, 0, 0], sizes = [16, 16, 64], strides = [1, 1, 1]} : vector<18x16x64xf32> to vector<16x16x64xf32>
    %132 = vector.extract_strided_slice %14 {offsets = [14, 0], sizes = [1, 64], strides = [1, 1]} : vector<27x64xf32> to vector<1x64xf32>
    %133 = vector.shape_cast %132 : vector<1x64xf32> to vector<64xf32>
    %134 = vector.shape_cast %133 : vector<64xf32> to vector<1x1x64xf32>
    %135 = vector.broadcast %134 : vector<1x1x64xf32> to vector<16x16x64xf32>
    %136 = arith.mulf %131, %135 : vector<16x16x64xf32>
    %137 = arith.addf %130, %136 : vector<16x16x64xf32>
    %138 = vector.extract_strided_slice %124 {offsets = [2, 0, 0], sizes = [16, 16, 64], strides = [1, 1, 1]} : vector<18x16x64xf32> to vector<16x16x64xf32>
    %139 = vector.extract_strided_slice %14 {offsets = [23, 0], sizes = [1, 64], strides = [1, 1]} : vector<27x64xf32> to vector<1x64xf32>
    %140 = vector.shape_cast %139 : vector<1x64xf32> to vector<64xf32>
    %141 = vector.shape_cast %140 : vector<64xf32> to vector<1x1x64xf32>
    %142 = vector.broadcast %141 : vector<1x1x64xf32> to vector<16x16x64xf32>
    %143 = arith.mulf %138, %142 : vector<16x16x64xf32>
    %144 = arith.addf %137, %143 : vector<16x16x64xf32>
    %145 = arith.addf %123, %144 : vector<16x16x64xf32>
    %c0_36 = arith.constant 0 : index
    %c2 = arith.constant 2 : index
    %c0_37 = arith.constant 0 : index
    %146 = vector.load %arg8[%c0_36, %c2, %c0_37] : memref<18x18x72xf32, #tpu.memory_space<vmem>>, vector<18x16x64xf32>
    %147 = vector.extract_strided_slice %146 {offsets = [0, 0, 0], sizes = [16, 16, 64], strides = [1, 1, 1]} : vector<18x16x64xf32> to vector<16x16x64xf32>
    %148 = vector.extract_strided_slice %14 {offsets = [6, 0], sizes = [1, 64], strides = [1, 1]} : vector<27x64xf32> to vector<1x64xf32>
    %149 = vector.shape_cast %148 : vector<1x64xf32> to vector<64xf32>
    %150 = vector.shape_cast %149 : vector<64xf32> to vector<1x1x64xf32>
    %151 = vector.broadcast %150 : vector<1x1x64xf32> to vector<16x16x64xf32>
    %152 = arith.mulf %147, %151 : vector<16x16x64xf32>
    %153 = vector.extract_strided_slice %146 {offsets = [1, 0, 0], sizes = [16, 16, 64], strides = [1, 1, 1]} : vector<18x16x64xf32> to vector<16x16x64xf32>
    %154 = vector.extract_strided_slice %14 {offsets = [15, 0], sizes = [1, 64], strides = [1, 1]} : vector<27x64xf32> to vector<1x64xf32>
    %155 = vector.shape_cast %154 : vector<1x64xf32> to vector<64xf32>
    %156 = vector.shape_cast %155 : vector<64xf32> to vector<1x1x64xf32>
    %157 = vector.broadcast %156 : vector<1x1x64xf32> to vector<16x16x64xf32>
    %158 = arith.mulf %153, %157 : vector<16x16x64xf32>
    %159 = arith.addf %152, %158 : vector<16x16x64xf32>
    %160 = vector.extract_strided_slice %146 {offsets = [2, 0, 0], sizes = [16, 16, 64], strides = [1, 1, 1]} : vector<18x16x64xf32> to vector<16x16x64xf32>
    %161 = vector.extract_strided_slice %14 {offsets = [24, 0], sizes = [1, 64], strides = [1, 1]} : vector<27x64xf32> to vector<1x64xf32>
    %162 = vector.shape_cast %161 : vector<1x64xf32> to vector<64xf32>
    %163 = vector.shape_cast %162 : vector<64xf32> to vector<1x1x64xf32>
    %164 = vector.broadcast %163 : vector<1x1x64xf32> to vector<16x16x64xf32>
    %165 = arith.mulf %160, %164 : vector<16x16x64xf32>
    %166 = arith.addf %159, %165 : vector<16x16x64xf32>
    %167 = arith.addf %145, %166 : vector<16x16x64xf32>
    %c0_38 = arith.constant 0 : index
    %c2_39 = arith.constant 2 : index
    %c4_40 = arith.constant 4 : index
    %168 = vector.load %arg8[%c0_38, %c2_39, %c4_40] : memref<18x18x72xf32, #tpu.memory_space<vmem>>, vector<18x16x64xf32>
    %169 = vector.extract_strided_slice %168 {offsets = [0, 0, 0], sizes = [16, 16, 64], strides = [1, 1, 1]} : vector<18x16x64xf32> to vector<16x16x64xf32>
    %170 = vector.extract_strided_slice %14 {offsets = [7, 0], sizes = [1, 64], strides = [1, 1]} : vector<27x64xf32> to vector<1x64xf32>
    %171 = vector.shape_cast %170 : vector<1x64xf32> to vector<64xf32>
    %172 = vector.shape_cast %171 : vector<64xf32> to vector<1x1x64xf32>
    %173 = vector.broadcast %172 : vector<1x1x64xf32> to vector<16x16x64xf32>
    %174 = arith.mulf %169, %173 : vector<16x16x64xf32>
    %175 = vector.extract_strided_slice %168 {offsets = [1, 0, 0], sizes = [16, 16, 64], strides = [1, 1, 1]} : vector<18x16x64xf32> to vector<16x16x64xf32>
    %176 = vector.extract_strided_slice %14 {offsets = [16, 0], sizes = [1, 64], strides = [1, 1]} : vector<27x64xf32> to vector<1x64xf32>
    %177 = vector.shape_cast %176 : vector<1x64xf32> to vector<64xf32>
    %178 = vector.shape_cast %177 : vector<64xf32> to vector<1x1x64xf32>
    %179 = vector.broadcast %178 : vector<1x1x64xf32> to vector<16x16x64xf32>
    %180 = arith.mulf %175, %179 : vector<16x16x64xf32>
    %181 = arith.addf %174, %180 : vector<16x16x64xf32>
    %182 = vector.extract_strided_slice %168 {offsets = [2, 0, 0], sizes = [16, 16, 64], strides = [1, 1, 1]} : vector<18x16x64xf32> to vector<16x16x64xf32>
    %183 = vector.extract_strided_slice %14 {offsets = [25, 0], sizes = [1, 64], strides = [1, 1]} : vector<27x64xf32> to vector<1x64xf32>
    %184 = vector.shape_cast %183 : vector<1x64xf32> to vector<64xf32>
    %185 = vector.shape_cast %184 : vector<64xf32> to vector<1x1x64xf32>
    %186 = vector.broadcast %185 : vector<1x1x64xf32> to vector<16x16x64xf32>
    %187 = arith.mulf %182, %186 : vector<16x16x64xf32>
    %188 = arith.addf %181, %187 : vector<16x16x64xf32>
    %189 = arith.addf %167, %188 : vector<16x16x64xf32>
    %c0_41 = arith.constant 0 : index
    %c2_42 = arith.constant 2 : index
    %c8_43 = arith.constant 8 : index
    %190 = vector.load %arg8[%c0_41, %c2_42, %c8_43] : memref<18x18x72xf32, #tpu.memory_space<vmem>>, vector<18x16x64xf32>
    %191 = vector.extract_strided_slice %190 {offsets = [0, 0, 0], sizes = [16, 16, 64], strides = [1, 1, 1]} : vector<18x16x64xf32> to vector<16x16x64xf32>
    %192 = vector.extract_strided_slice %14 {offsets = [8, 0], sizes = [1, 64], strides = [1, 1]} : vector<27x64xf32> to vector<1x64xf32>
    %193 = vector.shape_cast %192 : vector<1x64xf32> to vector<64xf32>
    %194 = vector.shape_cast %193 : vector<64xf32> to vector<1x1x64xf32>
    %195 = vector.broadcast %194 : vector<1x1x64xf32> to vector<16x16x64xf32>
    %196 = arith.mulf %191, %195 : vector<16x16x64xf32>
    %197 = vector.extract_strided_slice %190 {offsets = [1, 0, 0], sizes = [16, 16, 64], strides = [1, 1, 1]} : vector<18x16x64xf32> to vector<16x16x64xf32>
    %198 = vector.extract_strided_slice %14 {offsets = [17, 0], sizes = [1, 64], strides = [1, 1]} : vector<27x64xf32> to vector<1x64xf32>
    %199 = vector.shape_cast %198 : vector<1x64xf32> to vector<64xf32>
    %200 = vector.shape_cast %199 : vector<64xf32> to vector<1x1x64xf32>
    %201 = vector.broadcast %200 : vector<1x1x64xf32> to vector<16x16x64xf32>
    %202 = arith.mulf %197, %201 : vector<16x16x64xf32>
    %203 = arith.addf %196, %202 : vector<16x16x64xf32>
    %204 = vector.extract_strided_slice %190 {offsets = [2, 0, 0], sizes = [16, 16, 64], strides = [1, 1, 1]} : vector<18x16x64xf32> to vector<16x16x64xf32>
    %205 = vector.extract_strided_slice %14 {offsets = [26, 0], sizes = [1, 64], strides = [1, 1]} : vector<27x64xf32> to vector<1x64xf32>
    %206 = vector.shape_cast %205 : vector<1x64xf32> to vector<64xf32>
    %207 = vector.shape_cast %206 : vector<64xf32> to vector<1x1x64xf32>
    %208 = vector.broadcast %207 : vector<1x1x64xf32> to vector<16x16x64xf32>
    %209 = arith.mulf %204, %208 : vector<16x16x64xf32>
    %210 = arith.addf %203, %209 : vector<16x16x64xf32>
    %211 = arith.addf %189, %210 : vector<16x16x64xf32>
    %212 = vector.shape_cast %211 : vector<16x16x64xf32> to vector<1x16x16x64xf32>
    %c0_44 = arith.constant 0 : index
    %c0_45 = arith.constant 0 : index
    %c0_46 = arith.constant 0 : index
    %c0_47 = arith.constant 0 : index
    %213 = vector.load %arg5[%c0_44, %c0_45, %c0_46, %c0_47] : memref<1x16x16x64xf32, #tpu.memory_space<vmem>>, vector<1x16x16x64xf32>
    tpu.vector_store %arg5[%c0_44, %c0_45, %c0_46, %c0_47], %212 {strides = array<i32>} : memref<1x16x16x64xf32, #tpu.memory_space<vmem>>, vector<1x16x16x64xf32>,
    %cst_48 = arith.constant dense<0.000000e+00> : vector<64xf32>
    %214 = vector.multi_reduction <add>, %211, %cst_48 [0, 1] : vector<16x16x64xf32> to vector<64xf32>
    %215 = vector.shape_cast %214 : vector<64xf32> to vector<1x1x64xf32>
    %c0_49 = arith.constant 0 : index
    %c0_50 = arith.constant 0 : index
    %c0_51 = arith.constant 0 : index
    %216 = vector.load %arg6[%c0_49, %c0_50, %c0_51] : memref<1x1x64xf32, #tpu.memory_space<vmem>>, vector<1x1x64xf32>
    tpu.vector_store %arg6[%c0_49, %c0_50, %c0_51], %215 {strides = array<i32>} : memref<1x1x64xf32, #tpu.memory_space<vmem>>, vector<1x1x64xf32>,
    %217 = arith.mulf %211, %211 : vector<16x16x64xf32>
    %cst_52 = arith.constant dense<0.000000e+00> : vector<64xf32>
    %218 = vector.multi_reduction <add>, %217, %cst_52 [0, 1] : vector<16x16x64xf32> to vector<64xf32>
    %219 = vector.shape_cast %218 : vector<64xf32> to vector<1x1x64xf32>
    %c0_53 = arith.constant 0 : index
    %c0_54 = arith.constant 0 : index
    %c0_55 = arith.constant 0 : index
    %220 = vector.load %arg7[%c0_53, %c0_54, %c0_55] : memref<1x1x64xf32, #tpu.memory_space<vmem>>, vector<1x1x64xf32>
    tpu.vector_store %arg7[%c0_53, %c0_54, %c0_55], %219 {strides = array<i32>} : memref<1x1x64xf32, #tpu.memory_space<vmem>>, vector<1x1x64xf32>,
    return
  }
  func.func @transform_0(%arg0: i32, %arg1: i32) -> (i32, i32, i32, i32) {
    %c0_i32 = arith.constant 0 : i32
    %c0_i32_0 = arith.constant 0 : i32
    %c0_i32_1 = arith.constant 0 : i32
    return %arg0, %arg1, %c0_i32, %c0_i32_0 : i32, i32, i32, i32
  }
  func.func @transform_1(%arg0: i32, %arg1: i32) -> (i32, i32, i32, i32, i32) {
    %c0_i32 = arith.constant 0 : i32
    %c0_i32_0 = arith.constant 0 : i32
    %c0_i32_1 = arith.constant 0 : i32
    %c0_i32_2 = arith.constant 0 : i32
    return %arg0, %arg1, %c0_i32, %c0_i32_0, %c0_i32_1 : i32, i32, i32, i32, i32
  }
  func.func @transform_2(%arg0: i32, %arg1: i32) -> (i32, i32) {
    %c0_i32 = arith.constant 0 : i32
    %c0_i32_0 = arith.constant 0 : i32
    %c0_i32_1 = arith.constant 0 : i32
    return %c0_i32, %c0_i32_0 : i32, i32
  }
  func.func @transform_3(%arg0: i32, %arg1: i32) -> (i32, i32, i32, i32) {
    %c0_i32 = arith.constant 0 : i32
    %c0_i32_0 = arith.constant 0 : i32
    %c0_i32_1 = arith.constant 0 : i32
    return %arg0, %arg1, %c0_i32, %c0_i32_0 : i32, i32, i32, i32
  }
  func.func @transform_4(%arg0: i32, %arg1: i32) -> (i32, i32, i32) {
    %c1_i32 = arith.constant 1 : i32
    %0 = arith.muli %arg0, %c1_i32 : i32
    %1 = arith.addi %0, %arg1 : i32
    %c0_i32 = arith.constant 0 : i32
    %c0_i32_0 = arith.constant 0 : i32
    %c0_i32_1 = arith.constant 0 : i32
    return %1, %c0_i32, %c0_i32_0 : i32, i32, i32
  }
  func.func @transform_5(%arg0: i32, %arg1: i32) -> (i32, i32, i32) {
    %c1_i32 = arith.constant 1 : i32
    %0 = arith.muli %arg0, %c1_i32 : i32
    %1 = arith.addi %0, %arg1 : i32
    %c0_i32 = arith.constant 0 : i32
    %c0_i32_0 = arith.constant 0 : i32
    %c0_i32_1 = arith.constant 0 : i32
    return %1, %c0_i32, %c0_i32_0 : i32, i32, i32
  }
}

module attributes {stable_mosaic.version = 11 : i64} {
  func.func @_bn_act_kernel(%arg0: i32, %arg1: i32, %arg2: memref<32x1024xf32, #tpu.memory_space<vmem>>, %arg3: memref<1x1024xf32, #tpu.memory_space<vmem>>, %arg4: memref<1x1024xf32, #tpu.memory_space<vmem>>, %arg5: memref<32x1024xf32, #tpu.memory_space<vmem>>) attributes {dimension_semantics = [#tpu.dimension_semantics<parallel>, #tpu.dimension_semantics<parallel>], iteration_bounds = array<i64: 1, 1>, scalar_prefetch = 0 : i64, scratch_operands = 0 : i64, tpu.core_type = #tpu.core_type<tc>, window_params = [{transform_indices = @transform_0, window_bounds = array<i64: 32, 1024>}, {transform_indices = @transform_1, window_bounds = array<i64: 1, 1024>}, {transform_indices = @transform_2, window_bounds = array<i64: 1, 1024>}, {transform_indices = @transform_3, window_bounds = array<i64: 32, 1024>}]} {
    %c0 = arith.constant 0 : index
    %c0_0 = arith.constant 0 : index
    %0 = vector.load %arg2[%c0, %c0_0] : memref<32x1024xf32, #tpu.memory_space<vmem>>, vector<32x1024xf32>
    %c0_1 = arith.constant 0 : index
    %c0_2 = arith.constant 0 : index
    %1 = vector.load %arg3[%c0_1, %c0_2] : memref<1x1024xf32, #tpu.memory_space<vmem>>, vector<1x1024xf32>
    %2 = vector.broadcast %1 : vector<1x1024xf32> to vector<32x1024xf32>
    %3 = arith.mulf %0, %2 : vector<32x1024xf32>
    %c0_3 = arith.constant 0 : index
    %c0_4 = arith.constant 0 : index
    %4 = vector.load %arg4[%c0_3, %c0_4] : memref<1x1024xf32, #tpu.memory_space<vmem>>, vector<1x1024xf32>
    %5 = vector.broadcast %4 : vector<1x1024xf32> to vector<32x1024xf32>
    %6 = arith.addf %3, %5 : vector<32x1024xf32>
    %cst = arith.constant 0.00999999977 : f32
    %7 = vector.broadcast %cst : f32 to vector<32x1024xf32>
    %8 = arith.mulf %7, %6 : vector<32x1024xf32>
    %9 = arith.maximumf %6, %8 : vector<32x1024xf32>
    %c0_5 = arith.constant 0 : index
    %c0_6 = arith.constant 0 : index
    %10 = vector.load %arg5[%c0_5, %c0_6] : memref<32x1024xf32, #tpu.memory_space<vmem>>, vector<32x1024xf32>
    tpu.vector_store %arg5[%c0_5, %c0_6], %9 {strides = array<i32>} : memref<32x1024xf32, #tpu.memory_space<vmem>>, vector<32x1024xf32>,
    return
  }
  func.func @transform_0(%arg0: i32, %arg1: i32) -> (i32, i32) {
    %c0_i32 = arith.constant 0 : i32
    return %arg0, %arg1 : i32, i32
  }
  func.func @transform_1(%arg0: i32, %arg1: i32) -> (i32, i32) {
    %c0_i32 = arith.constant 0 : i32
    %c0_i32_0 = arith.constant 0 : i32
    return %c0_i32, %arg1 : i32, i32
  }
  func.func @transform_2(%arg0: i32, %arg1: i32) -> (i32, i32) {
    %c0_i32 = arith.constant 0 : i32
    %c0_i32_0 = arith.constant 0 : i32
    return %c0_i32, %arg1 : i32, i32
  }
  func.func @transform_3(%arg0: i32, %arg1: i32) -> (i32, i32) {
    %c0_i32 = arith.constant 0 : i32
    return %arg0, %arg1 : i32, i32
  }
}

</mosaic_0001>

<bundles_post_ra>
// kernel: tile.28
= control target key start
LH: loop header
LB: loop body
LE: loop exit
PB: predicated region body
PF: predicated region fallthrough
CT: control target
= control target key end

     0   :  { %s208_s0 = inlined_call_operand.vmem [shape: f32[4], index: 0, kind: input, shape index: {}]   ;;  %s209_s1 = inlined_call_operand.vmem [shape: f32[256,4], index: 1, kind: output, shape index: {}]  }
   0x1   :  { %v4_v0 = vld [vmem:[%s208_s0] ss:$0 sm:$0xff] }
   0x2   :  { %5 = vst [vmem:[%s209_s1] sm:$0xff] %v4_v0  ;;  %68 = vst [vmem:[%s209_s1 + $0x8] sm:$0xff] %v4_v0 }
   0x3   :  { %69 = vst [vmem:[%s209_s1 + $0x10] sm:$0xff] %v4_v0  ;;  %70 = vst [vmem:[%s209_s1 + $0x18] sm:$0xff] %v4_v0 }
   0x4   :  { %71 = vst [vmem:[%s209_s1 + $0x20] sm:$0xff] %v4_v0  ;;  %72 = vst [vmem:[%s209_s1 + $0x28] sm:$0xff] %v4_v0 }
   0x5   :  { %73 = vst [vmem:[%s209_s1 + $0x30] sm:$0xff] %v4_v0  ;;  %74 = vst [vmem:[%s209_s1 + $0x38] sm:$0xff] %v4_v0 }
   0x6   :  { %75 = vst [vmem:[%s209_s1 + $0x40] sm:$0xff] %v4_v0  ;;  %76 = vst [vmem:[%s209_s1 + $0x48] sm:$0xff] %v4_v0 }
   0x7   :  { %77 = vst [vmem:[%s209_s1 + $0x50] sm:$0xff] %v4_v0  ;;  %78 = vst [vmem:[%s209_s1 + $0x58] sm:$0xff] %v4_v0 }
   0x8   :  { %79 = vst [vmem:[%s209_s1 + $0x60] sm:$0xff] %v4_v0  ;;  %80 = vst [vmem:[%s209_s1 + $0x68] sm:$0xff] %v4_v0 }
   0x9   :  { %81 = vst [vmem:[%s209_s1 + $0x70] sm:$0xff] %v4_v0  ;;  %82 = vst [vmem:[%s209_s1 + $0x78] sm:$0xff] %v4_v0 }
   0xa   :  { %83 = vst [vmem:[%s209_s1 + $0x80] sm:$0xff] %v4_v0  ;;  %84 = vst [vmem:[%s209_s1 + $0x88] sm:$0xff] %v4_v0 }
   0xb   :  { %85 = vst [vmem:[%s209_s1 + $0x90] sm:$0xff] %v4_v0  ;;  %86 = vst [vmem:[%s209_s1 + $0x98] sm:$0xff] %v4_v0 }
   0xc   :  { %87 = vst [vmem:[%s209_s1 + $0xa0] sm:$0xff] %v4_v0  ;;  %88 = vst [vmem:[%s209_s1 + $0xa8] sm:$0xff] %v4_v0 }
   0xd   :  { %89 = vst [vmem:[%s209_s1 + $0xb0] sm:$0xff] %v4_v0  ;;  %90 = vst [vmem:[%s209_s1 + $0xb8] sm:$0xff] %v4_v0 }
   0xe   :  { %91 = vst [vmem:[%s209_s1 + $0xc0] sm:$0xff] %v4_v0  ;;  %92 = vst [vmem:[%s209_s1 + $0xc8] sm:$0xff] %v4_v0 }
   0xf   :  { %93 = vst [vmem:[%s209_s1 + $0xd0] sm:$0xff] %v4_v0  ;;  %94 = vst [vmem:[%s209_s1 + $0xd8] sm:$0xff] %v4_v0 }
  0x10   :  { %95 = vst [vmem:[%s209_s1 + $0xe0] sm:$0xff] %v4_v0  ;;  %96 = vst [vmem:[%s209_s1 + $0xe8] sm:$0xff] %v4_v0 }
  0x11   :  { %97 = vst [vmem:[%s209_s1 + $0xf0] sm:$0xff] %v4_v0  ;;  %98 = vst [vmem:[%s209_s1 + $0xf8] sm:$0xff] %v4_v0 }

// kernel: tile.29
= control target key start
LH: loop header
LB: loop body
LE: loop exit
PB: predicated region body
PF: predicated region fallthrough
CT: control target
= control target key end

     0   :  { %vm5_vm0 = vcmask 1041409   ;;  %vm9_vm1 = vcmask 1042434   ;;  %vm13_vm2 = vcmask 1043459   ;;  %vm17_vm3 = vcmask 1044484   ;;  %s1465_s19 = smov 124   ;;  %s1466_s9 = smov 116   ;;  %s2522_s0 = inlined_call_operand.vmem [shape: f32[256,4], index: 0, kind: input, shape index: {}]   ;;  %s2523_s1 = inlined_call_operand.vmem [shape: f32[1,1024], index: 1, kind: output, shape index: {}]  }
   0x1   :  { %v1179_v0 = vld [vmem:[%s2522_s0 + $0x1f] sm:$0x1]   ;;  %vm21_vm4 = vcmask 1045509   ;;  %vm25_vm5 = vcmask 1046534   ;;  %vm29_vm6 = vcmask 1047559   ;;  %s1467_s26 = smov 120  }
   0x2   :  { %v1180_v1 = vld [vmem:[%s2522_s0 + $0x3e] sm:$0x2]   ;;  %v1195_v10 = vld [vmem:[%s2522_s0 + $0x1d] sm:$0x1]   ;;  %v1187_v25 = vld [vmem:[%s2522_s0 + $0x1e] sm:$0x1]  }
   0x3   :  { %v39_v2 = vsel %vm5_vm0, %v1180_v1, %v1179_v0  ;;  %v1181_v3 = vld [vmem:[%s2522_s0 + $0x5d] sm:$0x4]   ;;  %v1196_v11 = vld [vmem:[%s2522_s0 + $0x3c] sm:$0x2]   ;;  %v1188_v26 = vld [vmem:[%s2522_s0 + $0x3d] sm:$0x2]  }
   0x4   :  { %v1182_v4 = vld [vmem:[%s2522_s0 + $0x7c] sm:$0x8]   ;;  %v43_v6 = vsel %vm9_vm1, %v1181_v3, %v39_v2  ;;  %v1197_v12 = vld [vmem:[%s2522_s0 + $0x5b] sm:$0x4]   ;;  %v109_v15 = vsel %vm5_vm0, %v1196_v11, %v1195_v10  ;;  %v1189_v27 = vld [vmem:[%s2522_s0 + $0x5c] sm:$0x4]   ;;  %v74_v30 = vsel %vm5_vm0, %v1188_v26, %v1187_v25 }
   0x5   :  { %v1183_v5 = vld [vmem:[%s2522_s0 + $0x9b] sm:$0x10]   ;;  %v47_v9 = vsel %vm13_vm2, %v1182_v4, %v43_v6  ;;  %v1198_v16 = vld [vmem:[%s2522_s0 + $0x7a] sm:$0x8]   ;;  %v113_v19 = vsel %vm9_vm1, %v1197_v12, %v109_v15  ;;  %v1190_v31 = vld [vmem:[%s2522_s0 + $0x7b] sm:$0x8]   ;;  %v78_v34 = vsel %vm9_vm1, %v1189_v27, %v74_v30 }
   0x6   :  { %v1184_v7 = vld [vmem:[%s2522_s0 + $0xba] sm:$0x20]   ;;  %v51_v13 = vsel %vm17_vm3, %v1183_v5, %v47_v9  ;;  %v1199_v17 = vld [vmem:[%s2522_s0 + $0x99] sm:$0x10]   ;;  %v117_v24 = vsel %vm13_vm2, %v1198_v16, %v113_v19  ;;  %v1191_v32 = vld [vmem:[%s2522_s0 + $0x9a] sm:$0x10]   ;;  %v82_v39 = vsel %vm13_vm2, %v1190_v31, %v78_v34 }
   0x7   :  { %v1185_v8 = vld [vmem:[%s2522_s0 + $0xd9] sm:$0x40]   ;;  %v55_v18 = vsel %vm21_vm4, %v1184_v7, %v51_v13  ;;  %v1200_v20 = vld [vmem:[%s2522_s0 + $0xb8] sm:$0x20]   ;;  %v121_v29 = vsel %vm17_vm3, %v1199_v17, %v117_v24  ;;  %v1192_v35 = vld [vmem:[%s2522_s0 + $0xb9] sm:$0x20]   ;;  %v86_v44 = vsel %vm17_vm3, %v1191_v32, %v82_v39 }
   0x8   :  { %v1186_v14 = vld [vmem:[%s2522_s0 + $0xf8] sm:$0x80]   ;;  %v1201_v21 = vld [vmem:[%s2522_s0 + $0xd7] sm:$0x40]   ;;  %v59_v23 = vsel %vm25_vm5, %v1185_v8, %v55_v18  ;;  %v125_v33 = vsel %vm21_vm4, %v1200_v20, %v121_v29  ;;  %v1193_v36 = vld [vmem:[%s2522_s0 + $0xd8] sm:$0x40]   ;;  %v90_v49 = vsel %vm21_vm4, %v1192_v35, %v86_v44 }
   0x9   :  { %v1202_v22 = vld [vmem:[%s2522_s0 + $0xf6] sm:$0x80]   ;;  %v63_v28 = vsel %vm29_vm6, %v1186_v14, %v59_v23  ;;  %v1203_v37 = vld [vmem:[%s2522_s0 + $0x1c] sm:$0x1]   ;;  %v129_v38 = vsel %vm25_vm5, %v1201_v21, %v125_v33  ;;  %v1194_v45 = vld [vmem:[%s2522_s0 + $0xf7] sm:$0x80]   ;;  %v94_v54 = vsel %vm25_vm5, %v1193_v36, %v90_v49 }
   0xa   :  { %64 = vrot.lane.b32.xlu0 %v63_v28, %s1465_s19  ;;  %v1204_v40 = vld [vmem:[%s2522_s0 + $0x3b] sm:$0x2]   ;;  %v133_v43 = vsel %vm29_vm6, %v1202_v22, %v129_v38  ;;  %v1211_v53 = vld [vmem:[%s2522_s0 + $0x1b] sm:$0x1]   ;;  %v98_v59 = vsel %vm29_vm6, %v1194_v45, %v94_v54  ;;  %v1219_v3 = vld [vmem:[%s2522_s0 + $0x1a] sm:$0x1]  }
   0xb   :  { %v1205_v41 = vld [vmem:[%s2522_s0 + $0x5a] sm:$0x4]   ;;  %v144_v46 = vsel %vm5_vm0, %v1204_v40, %v1203_v37  ;;  %134 = vrot.lane.b32.xlu1 %v133_v43, %s1466_s9  ;;  %v1212_v56 = vld [vmem:[%s2522_s0 + $0x3a] sm:$0x2]   ;;  %v1220_v4 = vld [vmem:[%s2522_s0 + $0x39] sm:$0x2]  }
   0xc   :  { %v1206_v42 = vld [vmem:[%s2522_s0 + $0x79] sm:$0x8]   ;;  %v148_v50 = vsel %vm9_vm1, %v1205_v41, %v144_v46  ;;  %v1213_v57 = vld [vmem:[%s2522_s0 + $0x59] sm:$0x4]   ;;  %v179_v61 = vsel %vm5_vm0, %v1212_v56, %v1211_v53  ;;  %v214_v7 = vsel %vm5_vm0, %v1220_v4, %v1219_v3  ;;  %v1221_v8 = vld [vmem:[%s2522_s0 + $0x58] sm:$0x4]  }
   0xd   :  { %v1207_v47 = vld [vmem:[%s2522_s0 + $0x98] sm:$0x10]   ;;  %v152_v55 = vsel %vm13_vm2, %v1206_v42, %v148_v50  ;;  %v1214_v58 = vld [vmem:[%s2522_s0 + $0x78] sm:$0x8]   ;;  %v183_v1 = vsel %vm9_vm1, %v1213_v57, %v179_v61  ;;  %v1222_v9 = vld [vmem:[%s2522_s0 + $0x77] sm:$0x8]   ;;  %v218_v14 = vsel %vm9_vm1, %v1221_v8, %v214_v7 }
   0xe   :  { %v1208_v48 = vld [vmem:[%s2522_s0 + $0xb7] sm:$0x20]   ;;  %v156_v60 = vsel %vm17_vm3, %v1207_v47, %v152_v55  ;;  %v1215_v62 = vld [vmem:[%s2522_s0 + $0x97] sm:$0x10]   ;;  %99 = vrot.lane.b32.xlu0 %v98_v59, %s1467_s26  ;;  %v187_v6 = vsel %vm13_vm2, %v1214_v58, %v183_v1  ;;  %v1223_v10 = vld [vmem:[%s2522_s0 + $0x96] sm:$0x10]   ;;  %v222_v18 = vsel %vm13_vm2, %v1222_v9, %v218_v14 }
   0xf   :  { %v1209_v51 = vld [vmem:[%s2522_s0 + $0xd6] sm:$0x40]   ;;  %v1216_v63 = vld [vmem:[%s2522_s0 + $0xb6] sm:$0x20]   ;;  %v160_v0 = vsel %vm21_vm4, %v1208_v48, %v156_v60  ;;  %v191_v12 = vsel %vm17_vm3, %v1215_v62, %v187_v6  ;;  %v1224_v15 = vld [vmem:[%s2522_s0 + $0xb5] sm:$0x20]   ;;  %v226_v23 = vsel %vm17_vm3, %v1223_v10, %v222_v18 }
  0x10   :  { %v1210_v52 = vld [vmem:[%s2522_s0 + $0xf5] sm:$0x80]   ;;  %v1217_v2 = vld [vmem:[%s2522_s0 + $0xd5] sm:$0x40]   ;;  %v164_v5 = vsel %vm25_vm5, %v1209_v51, %v160_v0  ;;  %v1225_v16 = vld [vmem:[%s2522_s0 + $0xd4] sm:$0x40]   ;;  %v195_v17 = vsel %vm21_vm4, %v1216_v63, %v191_v12  ;;  %v230_v29 = vsel %vm21_vm4, %v1224_v15, %v226_v23 }
  0x11   :  { %v168_v11 = vsel %vm29_vm6, %v1210_v52, %v164_v5  ;;  %v1218_v13 = vld [vmem:[%s2522_s0 + $0xf4] sm:$0x80]   ;;  %s1468_s16 = smov 112   ;;  %v1226_v19 = vld [vmem:[%s2522_s0 + $0xf3] sm:$0x80]   ;;  %v199_v22 = vsel %vm25_vm5, %v1217_v2, %v195_v17  ;;  %s1469_s4 = smov 108   ;;  %v234_v33 = vsel %vm25_vm5, %v1225_v16, %v230_v29 }
  0x12   :  { %169 = vrot.lane.b32.xlu1 %v168_v11, %s1468_s16  ;;  %v1227_v20 = vld [vmem:[%s2522_s0 + $0x19] sm:$0x1]   ;;  %v203_v28 = vsel %vm29_vm6, %v1218_v13, %v199_v22  ;;  %v1235_v35 = vld [vmem:[%s2522_s0 + $0x18] sm:$0x1]   ;;  %v238_v38 = vsel %vm29_vm6, %v1226_v19, %v234_v33  ;;  %s1470_s17 = smov 104   ;;  %s1471_s5 = smov 100  }
  0x13   :  { %v1228_v21 = vld [vmem:[%s2522_s0 + $0x38] sm:$0x2]   ;;  %204 = vrot.lane.b32.xlu0 %v203_v28, %s1469_s4  ;;  %v1236_v36 = vld [vmem:[%s2522_s0 + $0x37] sm:$0x2]   ;;  %v1243_v51 = vld [vmem:[%s2522_s0 + $0x17] sm:$0x1]  }
  0x14   :  { %v249_v24 = vsel %vm5_vm0, %v1228_v21, %v1227_v20  ;;  %v1229_v25 = vld [vmem:[%s2522_s0 + $0x57] sm:$0x4]   ;;  %v1237_v37 = vld [vmem:[%s2522_s0 + $0x56] sm:$0x4]   ;;  %v284_v41 = vsel %vm5_vm0, %v1236_v36, %v1235_v35  ;;  %v1244_v52 = vld [vmem:[%s2522_s0 + $0x36] sm:$0x2]  }
  0x15   :  { %v1230_v26 = vld [vmem:[%s2522_s0 + $0x76] sm:$0x8]   ;;  %v253_v30 = vsel %vm9_vm1, %v1229_v25, %v249_v24  ;;  %v1238_v42 = vld [vmem:[%s2522_s0 + $0x75] sm:$0x8]   ;;  %v288_v45 = vsel %vm9_vm1, %v1237_v37, %v284_v41  ;;  %v1245_v53 = vld [vmem:[%s2522_s0 + $0x55] sm:$0x4]   ;;  %v319_v56 = vsel %vm5_vm0, %v1244_v52, %v1243_v51 }
  0x16   :  { %v1231_v27 = vld [vmem:[%s2522_s0 + $0x95] sm:$0x10]   ;;  %v257_v34 = vsel %vm13_vm2, %v1230_v26, %v253_v30  ;;  %v1239_v43 = vld [vmem:[%s2522_s0 + $0x94] sm:$0x10]   ;;  %239 = vrot.lane.b32.xlu1 %v238_v38, %s1470_s17  ;;  %v292_v50 = vsel %vm13_vm2, %v1238_v42, %v288_v45  ;;  %v1246_v57 = vld [vmem:[%s2522_s0 + $0x74] sm:$0x8]   ;;  %v323_v60 = vsel %vm9_vm1, %v1245_v53, %v319_v56 }
  0x17   :  { %v1232_v31 = vld [vmem:[%s2522_s0 + $0xb4] sm:$0x20]   ;;  %v261_v39 = vsel %vm17_vm3, %v1231_v27, %v257_v34  ;;  %v1240_v46 = vld [vmem:[%s2522_s0 + $0xb3] sm:$0x20]   ;;  %v296_v55 = vsel %vm17_vm3, %v1239_v43, %v292_v50  ;;  %v1247_v58 = vld [vmem:[%s2522_s0 + $0x93] sm:$0x10]   ;;  %v327_v1 = vsel %vm13_vm2, %v1246_v57, %v323_v60 }
  0x18   :  { %v1233_v32 = vld [vmem:[%s2522_s0 + $0xd3] sm:$0x40]   ;;  %v265_v44 = vsel %vm21_vm4, %v1232_v31, %v261_v39  ;;  %v1241_v47 = vld [vmem:[%s2522_s0 + $0xd2] sm:$0x40]   ;;  %v300_v59 = vsel %vm21_vm4, %v1240_v46, %v296_v55  ;;  %v1248_v61 = vld [vmem:[%s2522_s0 + $0xb2] sm:$0x20]   ;;  %v331_v6 = vsel %vm17_vm3, %v1247_v58, %v327_v1 }
  0x19   :  { %v1234_v40 = vld [vmem:[%s2522_s0 + $0xf2] sm:$0x80]   ;;  %v1242_v48 = vld [vmem:[%s2522_s0 + $0xf1] sm:$0x80]   ;;  %v269_v49 = vsel %vm25_vm5, %v1233_v32, %v265_v44  ;;  %v1249_v62 = vld [vmem:[%s2522_s0 + $0xd1] sm:$0x40]   ;;  %v304_v0 = vsel %vm25_vm5, %v1241_v47, %v300_v59  ;;  %v335_v11 = vsel %vm21_vm4, %v1248_v61, %v331_v6 }
  0x1a   :  { %v273_v54 = vsel %vm29_vm6, %v1234_v40, %v269_v49  ;;  %v1251_v63 = vld [vmem:[%s2522_s0 + $0x16] sm:$0x1]   ;;  %v308_v5 = vsel %vm29_vm6, %v1242_v48, %v304_v0  ;;  %v1250_v7 = vld [vmem:[%s2522_s0 + $0xf0] sm:$0x80]   ;;  %s1472_s24 = smov 96   ;;  %v339_v16 = vsel %vm25_vm5, %v1249_v62, %v335_v11  ;;  %s1473_s12 = smov 92  }
  0x1b   :  { %274 = vrot.lane.b32.xlu0 %v273_v54, %s1471_s5  ;;  %v1252_v2 = vld [vmem:[%s2522_s0 + $0x35] sm:$0x2]   ;;  %309 = vrot.lane.b32.xlu1 %v308_v5, %s1472_s24  ;;  %v1259_v15 = vld [vmem:[%s2522_s0 + $0x15] sm:$0x1]   ;;  %v343_v21 = vsel %vm29_vm6, %v1250_v7, %v339_v16  ;;  %s1474_s2 = smov 88   ;;  %s1475_s19 = smov 84  }
  0x1c   :  { %v1253_v3 = vld [vmem:[%s2522_s0 + $0x54] sm:$0x4]   ;;  %v354_v8 = vsel %vm5_vm0, %v1252_v2, %v1251_v63  ;;  %v1260_v18 = vld [vmem:[%s2522_s0 + $0x34] sm:$0x2]   ;;  %v1267_v29 = vld [vmem:[%s2522_s0 + $0x14] sm:$0x1]  }
  0x1d   :  { %v1254_v4 = vld [vmem:[%s2522_s0 + $0x73] sm:$0x8]   ;;  %v358_v12 = vsel %vm9_vm1, %v1253_v3, %v354_v8  ;;  %v1261_v19 = vld [vmem:[%s2522_s0 + $0x53] sm:$0x4]   ;;  %v389_v23 = vsel %vm5_vm0, %v1260_v18, %v1259_v15  ;;  %v1268_v30 = vld [vmem:[%s2522_s0 + $0x33] sm:$0x2]  }
  0x1e   :  { %v1255_v9 = vld [vmem:[%s2522_s0 + $0x92] sm:$0x10]   ;;  %v362_v17 = vsel %vm13_vm2, %v1254_v4, %v358_v12  ;;  %v1262_v20 = vld [vmem:[%s2522_s0 + $0x72] sm:$0x8]   ;;  %v393_v27 = vsel %vm9_vm1, %v1261_v19, %v389_v23  ;;  %v424_v33 = vsel %vm5_vm0, %v1268_v30, %v1267_v29  ;;  %v1269_v34 = vld [vmem:[%s2522_s0 + $0x52] sm:$0x4]  }
  0x1f   :  { %v1256_v10 = vld [vmem:[%s2522_s0 + $0xb1] sm:$0x20]   ;;  %v366_v22 = vsel %vm17_vm3, %v1255_v9, %v362_v17  ;;  %v1263_v24 = vld [vmem:[%s2522_s0 + $0x91] sm:$0x10]   ;;  %344 = vrot.lane.b32.xlu0 %v343_v21, %s1473_s12  ;;  %v397_v32 = vsel %vm13_vm2, %v1262_v20, %v393_v27  ;;  %v1270_v35 = vld [vmem:[%s2522_s0 + $0x71] sm:$0x8]   ;;  %v428_v40 = vsel %vm9_vm1, %v1269_v34, %v424_v33 }
  0x20   :  { %v1257_v13 = vld [vmem:[%s2522_s0 + $0xd0] sm:$0x40]   ;;  %v1264_v25 = vld [vmem:[%s2522_s0 + $0xb0] sm:$0x20]   ;;  %v370_v26 = vsel %vm21_vm4, %v1256_v10, %v366_v22  ;;  %v1271_v36 = vld [vmem:[%s2522_s0 + $0x90] sm:$0x10]   ;;  %v401_v38 = vsel %vm17_vm3, %v1263_v24, %v397_v32  ;;  %v432_v44 = vsel %vm13_vm2, %v1270_v35, %v428_v40 }
  0x21   :  { %v1258_v14 = vld [vmem:[%s2522_s0 + $0xef] sm:$0x80]   ;;  %v1265_v28 = vld [vmem:[%s2522_s0 + $0xcf] sm:$0x40]   ;;  %v374_v31 = vsel %vm25_vm5, %v1257_v13, %v370_v26  ;;  %v1272_v41 = vld [vmem:[%s2522_s0 + $0xaf] sm:$0x20]   ;;  %v405_v43 = vsel %vm21_vm4, %v1264_v25, %v401_v38  ;;  %v436_v49 = vsel %vm17_vm3, %v1271_v36, %v432_v44 }
  0x22   :  { %v378_v37 = vsel %vm29_vm6, %v1258_v14, %v374_v31  ;;  %v1266_v39 = vld [vmem:[%s2522_s0 + $0xee] sm:$0x80]   ;;  %v1273_v42 = vld [vmem:[%s2522_s0 + $0xce] sm:$0x40]   ;;  %v1275_v46 = vld [vmem:[%s2522_s0 + $0x13] sm:$0x1]   ;;  %v409_v48 = vsel %vm25_vm5, %v1265_v28, %v405_v43  ;;  %v440_v55 = vsel %vm21_vm4, %v1272_v41, %v436_v49 }
  0x23   :  { %379 = vrot.lane.b32.xlu1 %v378_v37, %s1474_s2  ;;  %v1274_v45 = vld [vmem:[%s2522_s0 + $0xed] sm:$0x80]   ;;  %v1276_v47 = vld [vmem:[%s2522_s0 + $0x32] sm:$0x2]   ;;  %v413_v54 = vsel %vm29_vm6, %v1266_v39, %v409_v48  ;;  %v444_v59 = vsel %vm25_vm5, %v1273_v42, %v440_v55  ;;  %v1283_v61 = vld [vmem:[%s2522_s0 + $0x12] sm:$0x1]  }
  0x24   :  { %v459_v50 = vsel %vm5_vm0, %v1276_v47, %v1275_v46  ;;  %v1277_v51 = vld [vmem:[%s2522_s0 + $0x51] sm:$0x4]   ;;  %414 = vrot.lane.b32.xlu0 %v413_v54, %s1475_s19  ;;  %v1284_v62 = vld [vmem:[%s2522_s0 + $0x31] sm:$0x2]   ;;  %v448_v0 = vsel %vm29_vm6, %v1274_v45, %v444_v59  ;;  %s1476_s3 = smov 80   ;;  %s1477_s20 = smov 76  }
  0x25   :  { %v1278_v52 = vld [vmem:[%s2522_s0 + $0x70] sm:$0x8]   ;;  %v463_v56 = vsel %vm9_vm1, %v1277_v51, %v459_v50  ;;  %v1285_v63 = vld [vmem:[%s2522_s0 + $0x50] sm:$0x4]   ;;  %v494_v3 = vsel %vm5_vm0, %v1284_v62, %v1283_v61  ;;  %v1291_v13 = vld [vmem:[%s2522_s0 + $0x11] sm:$0x1]  }
  0x26   :  { %v1279_v53 = vld [vmem:[%s2522_s0 + $0x8f] sm:$0x10]   ;;  %v467_v60 = vsel %vm13_vm2, %v1278_v52, %v463_v56  ;;  %v1286_v4 = vld [vmem:[%s2522_s0 + $0x6f] sm:$0x8]   ;;  %v498_v7 = vsel %vm9_vm1, %v1285_v63, %v494_v3  ;;  %v1292_v14 = vld [vmem:[%s2522_s0 + $0x30] sm:$0x2]  }
  0x27   :  { %v1280_v57 = vld [vmem:[%s2522_s0 + $0xae] sm:$0x20]   ;;  %v471_v1 = vsel %vm17_vm3, %v1279_v53, %v467_v60  ;;  %v1287_v5 = vld [vmem:[%s2522_s0 + $0x8e] sm:$0x10]   ;;  %449 = vrot.lane.b32.xlu1 %v448_v0, %s1476_s3  ;;  %v502_v12 = vsel %vm13_vm2, %v1286_v4, %v498_v7  ;;  %v1293_v15 = vld [vmem:[%s2522_s0 + $0x4f] sm:$0x4]   ;;  %v529_v18 = vsel %vm5_vm0, %v1292_v14, %v1291_v13 }
  0x28   :  { %v1281_v58 = vld [vmem:[%s2522_s0 + $0xcd] sm:$0x40]   ;;  %v475_v6 = vsel %vm21_vm4, %v1280_v57, %v471_v1  ;;  %v1288_v8 = vld [vmem:[%s2522_s0 + $0xad] sm:$0x20]   ;;  %v506_v17 = vsel %vm17_vm3, %v1287_v5, %v502_v12  ;;  %v1294_v19 = vld [vmem:[%s2522_s0 + $0x6e] sm:$0x8]   ;;  %v533_v22 = vsel %vm9_vm1, %v1293_v15, %v529_v18 }
  0x29   :  { %v1282_v2 = vld [vmem:[%s2522_s0 + $0xec] sm:$0x80]   ;;  %v1289_v9 = vld [vmem:[%s2522_s0 + $0xcc] sm:$0x40]   ;;  %v479_v11 = vsel %vm25_vm5, %v1281_v58, %v475_v6  ;;  %v1295_v20 = vld [vmem:[%s2522_s0 + $0x8d] sm:$0x10]   ;;  %v510_v21 = vsel %vm21_vm4, %v1288_v8, %v506_v17  ;;  %v537_v27 = vsel %vm13_vm2, %v1294_v19, %v533_v22 }
  0x2a   :  { %v1290_v10 = vld [vmem:[%s2522_s0 + $0xeb] sm:$0x80]   ;;  %v483_v16 = vsel %vm29_vm6, %v1282_v2, %v479_v11  ;;  %v1296_v23 = vld [vmem:[%s2522_s0 + $0xac] sm:$0x20]   ;;  %v1299_v25 = vld [vmem:[%s2522_s0 + $0x10] sm:$0x1]   ;;  %v514_v26 = vsel %vm25_vm5, %v1289_v9, %v510_v21  ;;  %v541_v32 = vsel %vm17_vm3, %v1295_v20, %v537_v27 }
  0x2b   :  { %484 = vrot.lane.b32.xlu0 %v483_v16, %s1477_s20  ;;  %v1297_v24 = vld [vmem:[%s2522_s0 + $0xcb] sm:$0x40]   ;;  %v1300_v28 = vld [vmem:[%s2522_s0 + $0x2f] sm:$0x2]   ;;  %v518_v31 = vsel %vm29_vm6, %v1290_v10, %v514_v26  ;;  %s1478_s10 = smov 72   ;;  %v545_v37 = vsel %vm21_vm4, %v1296_v23, %v541_v32  ;;  %s1479_s27 = smov 68  }
  0x2c   :  { %v1301_v29 = vld [vmem:[%s2522_s0 + $0x4e] sm:$0x4]   ;;  %v1298_v33 = vld [vmem:[%s2522_s0 + $0xea] sm:$0x80]   ;;  %v564_v34 = vsel %vm5_vm0, %v1300_v28, %v1299_v25  ;;  %519 = vrot.lane.b32.xlu1 %v518_v31, %s1478_s10  ;;  %v1307_v41 = vld [vmem:[%s2522_s0 + $0xf] sm:$0x1]   ;;  %v549_v42 = vsel %vm25_vm5, %v1297_v24, %v545_v37 }
  0x2d   :  { %v1302_v30 = vld [vmem:[%s2522_s0 + $0x6d] sm:$0x8]   ;;  %v568_v38 = vsel %vm9_vm1, %v1301_v29, %v564_v34  ;;  %v1308_v44 = vld [vmem:[%s2522_s0 + $0x2e] sm:$0x2]   ;;  %v553_v47 = vsel %vm29_vm6, %v1298_v33, %v549_v42  ;;  %v1315_v55 = vld [vmem:[%s2522_s0 + $0xe] sm:$0x1]  }
  0x2e   :  { %v1303_v35 = vld [vmem:[%s2522_s0 + $0x8c] sm:$0x10]   ;;  %v572_v43 = vsel %vm13_vm2, %v1302_v30, %v568_v38  ;;  %v1309_v45 = vld [vmem:[%s2522_s0 + $0x4d] sm:$0x4]   ;;  %v599_v49 = vsel %vm5_vm0, %v1308_v44, %v1307_v41  ;;  %v1316_v56 = vld [vmem:[%s2522_s0 + $0x2d] sm:$0x2]  }
  0x2f   :  { %v1304_v36 = vld [vmem:[%s2522_s0 + $0xab] sm:$0x20]   ;;  %v1310_v46 = vld [vmem:[%s2522_s0 + $0x6c] sm:$0x8]   ;;  %v576_v48 = vsel %vm17_vm3, %v1303_v35, %v572_v43  ;;  %554 = vrot.lane.b32.xlu0 %v553_v47, %s1479_s27  ;;  %v603_v53 = vsel %vm9_vm1, %v1309_v45, %v599_v49  ;;  %v634_v59 = vsel %vm5_vm0, %v1316_v56, %v1315_v55  ;;  %v1317_v60 = vld [vmem:[%s2522_s0 + $0x4c] sm:$0x4]  }
  0x30   :  { %v1305_v39 = vld [vmem:[%s2522_s0 + $0xca] sm:$0x40]   ;;  %v1311_v50 = vld [vmem:[%s2522_s0 + $0x8b] sm:$0x10]   ;;  %v580_v52 = vsel %vm21_vm4, %v1304_v36, %v576_v48  ;;  %v607_v58 = vsel %vm13_vm2, %v1310_v46, %v603_v53  ;;  %v1318_v61 = vld [vmem:[%s2522_s0 + $0x6b] sm:$0x8]   ;;  %v638_v2 = vsel %vm9_vm1, %v1317_v60, %v634_v59 }
  0x31   :  { %v1306_v40 = vld [vmem:[%s2522_s0 + $0xe9] sm:$0x80]   ;;  %v1312_v51 = vld [vmem:[%s2522_s0 + $0xaa] sm:$0x20]   ;;  %v584_v57 = vsel %vm25_vm5, %v1305_v39, %v580_v52  ;;  %v1319_v62 = vld [vmem:[%s2522_s0 + $0x8a] sm:$0x10]   ;;  %v611_v0 = vsel %vm17_vm3, %v1311_v50, %v607_v58  ;;  %v642_v6 = vsel %vm13_vm2, %v1318_v61, %v638_v2 }
  0x32   :  { %v1313_v54 = vld [vmem:[%s2522_s0 + $0xc9] sm:$0x40]   ;;  %v588_v63 = vsel %vm29_vm6, %v1306_v40, %v584_v57  ;;  %v1320_v3 = vld [vmem:[%s2522_s0 + $0xa9] sm:$0x20]   ;;  %s1480_s17 = smov 64   ;;  %v615_v5 = vsel %vm21_vm4, %v1312_v51, %v611_v0  ;;  %v646_v11 = vsel %vm17_vm3, %v1319_v62, %v642_v6  ;;  %s1481_s5 = smov 60  }
  0x33   :  { %v1314_v1 = vld [vmem:[%s2522_s0 + $0xe8] sm:$0x80]   ;;  %v1321_v4 = vld [vmem:[%s2522_s0 + $0xc8] sm:$0x40]   ;;  %589 = vrot.lane.b32.xlu1 %v588_v63, %s1480_s17  ;;  %v1323_v8 = vld [vmem:[%s2522_s0 + $0xd] sm:$0x1]   ;;  %v619_v10 = vsel %vm25_vm5, %v1313_v54, %v615_v5  ;;  %v650_v17 = vsel %vm21_vm4, %v1320_v3, %v646_v11 }
  0x34   :  { %v1322_v7 = vld [vmem:[%s2522_s0 + $0xe7] sm:$0x80]   ;;  %v1324_v9 = vld [vmem:[%s2522_s0 + $0x2c] sm:$0x2]   ;;  %v623_v16 = vsel %vm29_vm6, %v1314_v1, %v619_v10  ;;  %v654_v21 = vsel %vm25_vm5, %v1321_v4, %v650_v17  ;;  %v1331_v23 = vld [vmem:[%s2522_s0 + $0xc] sm:$0x1]  }
  0x35   :  { %v669_v12 = vsel %vm5_vm0, %v1324_v9, %v1323_v8  ;;  %v1325_v13 = vld [vmem:[%s2522_s0 + $0x4b] sm:$0x4]   ;;  %624 = vrot.lane.b32.xlu0 %v623_v16, %s1481_s5  ;;  %v1332_v24 = vld [vmem:[%s2522_s0 + $0x2b] sm:$0x2]   ;;  %v658_v26 = vsel %vm29_vm6, %v1322_v7, %v654_v21  ;;  %s1482_s18 = smov 56   ;;  %s1483_s6 = smov 52  }
  0x36   :  { %v1326_v14 = vld [vmem:[%s2522_s0 + $0x6a] sm:$0x8]   ;;  %v673_v18 = vsel %vm9_vm1, %v1325_v13, %v669_v12  ;;  %v1333_v25 = vld [vmem:[%s2522_s0 + $0x4a] sm:$0x4]   ;;  %v704_v29 = vsel %vm5_vm0, %v1332_v24, %v1331_v23  ;;  %v1339_v39 = vld [vmem:[%s2522_s0 + $0xb] sm:$0x1]  }
  0x37   :  { %v1327_v15 = vld [vmem:[%s2522_s0 + $0x89] sm:$0x10]   ;;  %v677_v22 = vsel %vm13_vm2, %v1326_v14, %v673_v18  ;;  %v1334_v30 = vld [vmem:[%s2522_s0 + $0x69] sm:$0x8]   ;;  %659 = vrot.lane.b32.xlu1 %v658_v26, %s1482_s18  ;;  %v708_v33 = vsel %vm9_vm1, %v1333_v25, %v704_v29  ;;  %v1340_v40 = vld [vmem:[%s2522_s0 + $0x2a] sm:$0x2]  }
  0x38   :  { %v1328_v19 = vld [vmem:[%s2522_s0 + $0xa8] sm:$0x20]   ;;  %v681_v27 = vsel %vm17_vm3, %v1327_v15, %v677_v22  ;;  %v1335_v31 = vld [vmem:[%s2522_s0 + $0x88] sm:$0x10]   ;;  %v712_v38 = vsel %vm13_vm2, %v1334_v30, %v708_v33  ;;  %v1341_v41 = vld [vmem:[%s2522_s0 + $0x49] sm:$0x4]   ;;  %v739_v44 = vsel %vm5_vm0, %v1340_v40, %v1339_v39 }
  0x39   :  { %v1329_v20 = vld [vmem:[%s2522_s0 + $0xc7] sm:$0x40]   ;;  %v685_v32 = vsel %vm21_vm4, %v1328_v19, %v681_v27  ;;  %v1336_v34 = vld [vmem:[%s2522_s0 + $0xa7] sm:$0x20]   ;;  %v716_v43 = vsel %vm17_vm3, %v1335_v31, %v712_v38  ;;  %v1342_v45 = vld [vmem:[%s2522_s0 + $0x68] sm:$0x8]   ;;  %v743_v48 = vsel %vm9_vm1, %v1341_v41, %v739_v44 }
  0x3a   :  { %v1330_v28 = vld [vmem:[%s2522_s0 + $0xe6] sm:$0x80]   ;;  %v1337_v35 = vld [vmem:[%s2522_s0 + $0xc6] sm:$0x40]   ;;  %v689_v37 = vsel %vm25_vm5, %v1329_v20, %v685_v32  ;;  %v1343_v46 = vld [vmem:[%s2522_s0 + $0x87] sm:$0x10]   ;;  %v720_v47 = vsel %vm21_vm4, %v1336_v34, %v716_v43  ;;  %v747_v53 = vsel %vm13_vm2, %v1342_v45, %v743_v48 }
  0x3b   :  { %v1338_v36 = vld [vmem:[%s2522_s0 + $0xe5] sm:$0x80]   ;;  %v693_v42 = vsel %vm29_vm6, %v1330_v28, %v689_v37  ;;  %v1344_v49 = vld [vmem:[%s2522_s0 + $0xa6] sm:$0x20]   ;;  %v1347_v51 = vld [vmem:[%s2522_s0 + $0xa] sm:$0x1]   ;;  %v724_v52 = vsel %vm25_vm5, %v1337_v35, %v720_v47  ;;  %v751_v58 = vsel %vm17_vm3, %v1343_v46, %v747_v53 }
  0x3c   :  { %694 = vrot.lane.b32.xlu0 %v693_v42, %s1483_s6  ;;  %v1345_v50 = vld [vmem:[%s2522_s0 + $0xc5] sm:$0x40]   ;;  %v1348_v54 = vld [vmem:[%s2522_s0 + $0x29] sm:$0x2]   ;;  %v728_v57 = vsel %vm29_vm6, %v1338_v36, %v724_v52  ;;  %s1484_s25 = smov 48   ;;  %v755_v63 = vsel %vm21_vm4, %v1344_v49, %v751_v58  ;;  %s1485_s13 = smov 44  }
  0x3d   :  { %v1349_v55 = vld [vmem:[%s2522_s0 + $0x48] sm:$0x4]   ;;  %v1346_v59 = vld [vmem:[%s2522_s0 + $0xe4] sm:$0x80]   ;;  %v774_v60 = vsel %vm5_vm0, %v1348_v54, %v1347_v51  ;;  %729 = vrot.lane.b32.xlu1 %v728_v57, %s1484_s25  ;;  %v1355_v3 = vld [vmem:[%s2522_s0 + $0x9] sm:$0x1]   ;;  %v759_v4 = vsel %vm25_vm5, %v1345_v50, %v755_v63 }
  0x3e   :  { %v1350_v56 = vld [vmem:[%s2522_s0 + $0x67] sm:$0x8]   ;;  %v778_v0 = vsel %vm9_vm1, %v1349_v55, %v774_v60  ;;  %v1356_v6 = vld [vmem:[%s2522_s0 + $0x28] sm:$0x2]   ;;  %v763_v9 = vsel %vm29_vm6, %v1346_v59, %v759_v4  ;;  %v1363_v17 = vld [vmem:[%s2522_s0 + $0x8] sm:$0x1]  }
  0x3f   :  { %v1351_v61 = vld [vmem:[%s2522_s0 + $0x86] sm:$0x10]   ;;  %v782_v5 = vsel %vm13_vm2, %v1350_v56, %v778_v0  ;;  %v1357_v7 = vld [vmem:[%s2522_s0 + $0x47] sm:$0x4]   ;;  %v809_v11 = vsel %vm5_vm0, %v1356_v6, %v1355_v3  ;;  %v1364_v18 = vld [vmem:[%s2522_s0 + $0x27] sm:$0x2]  }
  0x40   :  { %v1352_v62 = vld [vmem:[%s2522_s0 + $0xa5] sm:$0x20]   ;;  %v1358_v8 = vld [vmem:[%s2522_s0 + $0x66] sm:$0x8]   ;;  %v786_v10 = vsel %vm17_vm3, %v1351_v61, %v782_v5  ;;  %764 = vrot.lane.b32.xlu0 %v763_v9, %s1485_s13  ;;  %v813_v15 = vsel %vm9_vm1, %v1357_v7, %v809_v11  ;;  %v844_v21 = vsel %vm5_vm0, %v1364_v18, %v1363_v17  ;;  %v1365_v22 = vld [vmem:[%s2522_s0 + $0x46] sm:$0x4]  }
  0x41   :  { %v1353_v1 = vld [vmem:[%s2522_s0 + $0xc4] sm:$0x40]   ;;  %v1359_v12 = vld [vmem:[%s2522_s0 + $0x85] sm:$0x10]   ;;  %v790_v14 = vsel %vm21_vm4, %v1352_v62, %v786_v10  ;;  %v817_v20 = vsel %vm13_vm2, %v1358_v8, %v813_v15  ;;  %v1366_v23 = vld [vmem:[%s2522_s0 + $0x65] sm:$0x8]   ;;  %v848_v28 = vsel %vm9_vm1, %v1365_v22, %v844_v21 }
  0x42   :  { %v1354_v2 = vld [vmem:[%s2522_s0 + $0xe3] sm:$0x80]   ;;  %v1360_v13 = vld [vmem:[%s2522_s0 + $0xa4] sm:$0x20]   ;;  %v794_v19 = vsel %vm25_vm5, %v1353_v1, %v790_v14  ;;  %v1367_v24 = vld [vmem:[%s2522_s0 + $0x84] sm:$0x10]   ;;  %v821_v26 = vsel %vm17_vm3, %v1359_v12, %v817_v20  ;;  %v852_v32 = vsel %vm13_vm2, %v1366_v23, %v848_v28 }
  0x43   :  { %v1361_v16 = vld [vmem:[%s2522_s0 + $0xc3] sm:$0x40]   ;;  %v798_v25 = vsel %vm29_vm6, %v1354_v2, %v794_v19  ;;  %v1368_v29 = vld [vmem:[%s2522_s0 + $0xa3] sm:$0x20]   ;;  %s1486_s3 = smov 40   ;;  %v825_v31 = vsel %vm21_vm4, %v1360_v13, %v821_v26  ;;  %v856_v37 = vsel %vm17_vm3, %v1367_v24, %v852_v32  ;;  %s1487_s20 = smov 36  }
  0x44   :  { %v1362_v27 = vld [vmem:[%s2522_s0 + $0xe2] sm:$0x80]   ;;  %v1369_v30 = vld [vmem:[%s2522_s0 + $0xc2] sm:$0x40]   ;;  %799 = vrot.lane.b32.xlu1 %v798_v25, %s1486_s3  ;;  %v1371_v34 = vld [vmem:[%s2522_s0 + $0x7] sm:$0x1]   ;;  %v829_v36 = vsel %vm25_vm5, %v1361_v16, %v825_v31  ;;  %v860_v43 = vsel %vm21_vm4, %v1368_v29, %v856_v37 }
  0x45   :  { %v1370_v33 = vld [vmem:[%s2522_s0 + $0xe1] sm:$0x80]   ;;  %v1372_v35 = vld [vmem:[%s2522_s0 + $0x26] sm:$0x2]   ;;  %v833_v42 = vsel %vm29_vm6, %v1362_v27, %v829_v36  ;;  %v864_v47 = vsel %vm25_vm5, %v1369_v30, %v860_v43  ;;  %v1379_v49 = vld [vmem:[%s2522_s0 + $0x6] sm:$0x1]  }
  0x46   :  { %v879_v38 = vsel %vm5_vm0, %v1372_v35, %v1371_v34  ;;  %v1373_v39 = vld [vmem:[%s2522_s0 + $0x45] sm:$0x4]   ;;  %834 = vrot.lane.b32.xlu0 %v833_v42, %s1487_s20  ;;  %v1380_v50 = vld [vmem:[%s2522_s0 + $0x25] sm:$0x2]   ;;  %v868_v52 = vsel %vm29_vm6, %v1370_v33, %v864_v47  ;;  %s1488_s4 = smov 32   ;;  %s1489_s21 = smov 28  }
  0x47   :  { %v1374_v40 = vld [vmem:[%s2522_s0 + $0x64] sm:$0x8]   ;;  %v883_v44 = vsel %vm9_vm1, %v1373_v39, %v879_v38  ;;  %v1381_v51 = vld [vmem:[%s2522_s0 + $0x44] sm:$0x4]   ;;  %v914_v55 = vsel %vm5_vm0, %v1380_v50, %v1379_v49  ;;  %v1387_v1 = vld [vmem:[%s2522_s0 + $0x5] sm:$0x1]  }
  0x48   :  { %v1375_v41 = vld [vmem:[%s2522_s0 + $0x83] sm:$0x10]   ;;  %v887_v48 = vsel %vm13_vm2, %v1374_v40, %v883_v44  ;;  %v1382_v56 = vld [vmem:[%s2522_s0 + $0x63] sm:$0x8]   ;;  %869 = vrot.lane.b32.xlu1 %v868_v52, %s1488_s4  ;;  %v918_v59 = vsel %vm9_vm1, %v1381_v51, %v914_v55  ;;  %v1388_v2 = vld [vmem:[%s2522_s0 + $0x24] sm:$0x2]  }
  0x49   :  { %v1376_v45 = vld [vmem:[%s2522_s0 + $0xa2] sm:$0x20]   ;;  %v891_v53 = vsel %vm17_vm3, %v1375_v41, %v887_v48  ;;  %v1383_v57 = vld [vmem:[%s2522_s0 + $0x82] sm:$0x10]   ;;  %v922_v0 = vsel %vm13_vm2, %v1382_v56, %v918_v59  ;;  %v1389_v3 = vld [vmem:[%s2522_s0 + $0x43] sm:$0x4]   ;;  %v949_v6 = vsel %vm5_vm0, %v1388_v2, %v1387_v1 }
  0x4a   :  { %v1377_v46 = vld [vmem:[%s2522_s0 + $0xc1] sm:$0x40]   ;;  %v895_v58 = vsel %vm21_vm4, %v1376_v45, %v891_v53  ;;  %v1384_v60 = vld [vmem:[%s2522_s0 + $0xa1] sm:$0x20]   ;;  %v926_v5 = vsel %vm17_vm3, %v1383_v57, %v922_v0  ;;  %v1390_v7 = vld [vmem:[%s2522_s0 + $0x62] sm:$0x8]   ;;  %v953_v10 = vsel %vm9_vm1, %v1389_v3, %v949_v6 }
  0x4b   :  { %v1378_v54 = vld [vmem:[%s2522_s0 + $0xe0] sm:$0x80]   ;;  %v1385_v61 = vld [vmem:[%s2522_s0 + $0xc0] sm:$0x40]   ;;  %v899_v63 = vsel %vm25_vm5, %v1377_v46, %v895_v58  ;;  %v1391_v8 = vld [vmem:[%s2522_s0 + $0x81] sm:$0x10]   ;;  %v930_v9 = vsel %vm21_vm4, %v1384_v60, %v926_v5  ;;  %v957_v15 = vsel %vm13_vm2, %v1390_v7, %v953_v10 }
  0x4c   :  { %v1386_v62 = vld [vmem:[%s2522_s0 + $0xdf] sm:$0x80]   ;;  %v903_v4 = vsel %vm29_vm6, %v1378_v54, %v899_v63  ;;  %v1392_v11 = vld [vmem:[%s2522_s0 + $0xa0] sm:$0x20]   ;;  %v1395_v13 = vld [vmem:[%s2522_s0 + $0x4] sm:$0x1]   ;;  %v934_v14 = vsel %vm25_vm5, %v1385_v61, %v930_v9  ;;  %v961_v20 = vsel %vm17_vm3, %v1391_v8, %v957_v15 }
  0x4d   :  { %904 = vrot.lane.b32.xlu0 %v903_v4, %s1489_s21  ;;  %v1393_v12 = vld [vmem:[%s2522_s0 + $0xbf] sm:$0x40]   ;;  %v1396_v16 = vld [vmem:[%s2522_s0 + $0x23] sm:$0x2]   ;;  %v938_v19 = vsel %vm29_vm6, %v1386_v62, %v934_v14  ;;  %s1490_s11 = smov 24   ;;  %v965_v25 = vsel %vm21_vm4, %v1392_v11, %v961_v20  ;;  %s1491_s28 = smov 20  }
  0x4e   :  { %v1397_v17 = vld [vmem:[%s2522_s0 + $0x42] sm:$0x4]   ;;  %v1394_v21 = vld [vmem:[%s2522_s0 + $0xde] sm:$0x80]   ;;  %v984_v22 = vsel %vm5_vm0, %v1396_v16, %v1395_v13  ;;  %939 = vrot.lane.b32.xlu1 %v938_v19, %s1490_s11  ;;  %v1403_v29 = vld [vmem:[%s2522_s0 + $0x3] sm:$0x1]   ;;  %v969_v30 = vsel %vm25_vm5, %v1393_v12, %v965_v25 }
  0x4f   :  { %v1398_v18 = vld [vmem:[%s2522_s0 + $0x61] sm:$0x8]   ;;  %v988_v26 = vsel %vm9_vm1, %v1397_v17, %v984_v22  ;;  %v1404_v32 = vld [vmem:[%s2522_s0 + $0x22] sm:$0x2]   ;;  %v973_v35 = vsel %vm29_vm6, %v1394_v21, %v969_v30  ;;  %v1411_v43 = vld [vmem:[%s2522_s0 + $0x2] sm:$0x1]  }
  0x50   :  { %v1399_v23 = vld [vmem:[%s2522_s0 + $0x80] sm:$0x10]   ;;  %v992_v31 = vsel %vm13_vm2, %v1398_v18, %v988_v26  ;;  %v1405_v33 = vld [vmem:[%s2522_s0 + $0x41] sm:$0x4]   ;;  %v1019_v37 = vsel %vm5_vm0, %v1404_v32, %v1403_v29  ;;  %v1412_v44 = vld [vmem:[%s2522_s0 + $0x21] sm:$0x2]  }
  0x51   :  { %v1400_v24 = vld [vmem:[%s2522_s0 + $0x9f] sm:$0x20]   ;;  %v1406_v34 = vld [vmem:[%s2522_s0 + $0x60] sm:$0x8]   ;;  %v996_v36 = vsel %vm17_vm3, %v1399_v23, %v992_v31  ;;  %974 = vrot.lane.b32.xlu0 %v973_v35, %s1491_s28  ;;  %v1023_v41 = vsel %vm9_vm1, %v1405_v33, %v1019_v37  ;;  %v1054_v47 = vsel %vm5_vm0, %v1412_v44, %v1411_v43  ;;  %v1413_v48 = vld [vmem:[%s2522_s0 + $0x40] sm:$0x4]  }
  0x52   :  { %v1401_v27 = vld [vmem:[%s2522_s0 + $0xbe] sm:$0x40]   ;;  %v1407_v38 = vld [vmem:[%s2522_s0 + $0x7f] sm:$0x10]   ;;  %v1000_v40 = vsel %vm21_vm4, %v1400_v24, %v996_v36  ;;  %v1027_v46 = vsel %vm13_vm2, %v1406_v34, %v1023_v41  ;;  %v1414_v49 = vld [vmem:[%s2522_s0 + $0x5f] sm:$0x8]   ;;  %v1058_v54 = vsel %vm9_vm1, %v1413_v48, %v1054_v47 }
  0x53   :  { %v1402_v28 = vld [vmem:[%s2522_s0 + $0xdd] sm:$0x80]   ;;  %v1408_v39 = vld [vmem:[%s2522_s0 + $0x9e] sm:$0x20]   ;;  %v1004_v45 = vsel %vm25_vm5, %v1401_v27, %v1000_v40  ;;  %v1415_v50 = vld [vmem:[%s2522_s0 + $0x7e] sm:$0x10]   ;;  %v1031_v52 = vsel %vm17_vm3, %v1407_v38, %v1027_v46  ;;  %v1062_v58 = vsel %vm13_vm2, %v1414_v49, %v1058_v54 }
  0x54   :  { %v1409_v42 = vld [vmem:[%s2522_s0 + $0xbd] sm:$0x40]   ;;  %v1008_v51 = vsel %vm29_vm6, %v1402_v28, %v1004_v45  ;;  %v1416_v55 = vld [vmem:[%s2522_s0 + $0x9d] sm:$0x20]   ;;  %s1492_s18 = smov 16   ;;  %v1035_v57 = vsel %vm21_vm4, %v1408_v39, %v1031_v52  ;;  %v1066_v63 = vsel %vm17_vm3, %v1415_v50, %v1062_v58  ;;  %s1493_s4 = smov 12  }
  0x55   :  { %v1410_v53 = vld [vmem:[%s2522_s0 + $0xdc] sm:$0x80]   ;;  %v1417_v56 = vld [vmem:[%s2522_s0 + $0xbc] sm:$0x40]   ;;  %1009 = vrot.lane.b32.xlu1 %v1008_v51, %s1492_s18  ;;  %v1419_v60 = vld [vmem:[%s2522_s0 + $0x1] sm:$0x1]   ;;  %v1039_v62 = vsel %vm25_vm5, %v1409_v42, %v1035_v57  ;;  %v1070_v5 = vsel %vm21_vm4, %v1416_v55, %v1066_v63 }
  0x56   :  { %v1418_v59 = vld [vmem:[%s2522_s0 + $0xdb] sm:$0x80]   ;;  %v1420_v61 = vld [vmem:[%s2522_s0 + $0x20] sm:$0x2]   ;;  %v1043_v4 = vsel %vm29_vm6, %v1410_v53, %v1039_v62  ;;  %v1074_v8 = vsel %vm25_vm5, %v1417_v56, %v1070_v5  ;;  %v1173_v14 = vld [vmem:[%s2522_s0 + $0x3e] sm:$0x4]  }
  0x57   :  { %v1089_v0 = vsel %vm5_vm0, %v1420_v61, %v1419_v60  ;;  %v1421_v1 = vld [vmem:[%s2522_s0 + $0x3f] sm:$0x4]   ;;  %1044 = vrot.lane.b32.xlu0 %v1043_v4, %s1493_s4  ;;  %v1078_v11 = vsel %vm29_vm6, %v1418_v59, %v1074_v8  ;;  %s1494_s11 = smov 8   ;;  %v1174_v16 = vld [vmem:[%s2522_s0 + $0x5d] sm:$0x8]   ;;  %s1495_s22 = smov 4  }
  0x58   :  { %v1422_v2 = vld [vmem:[%s2522_s0 + $0x5e] sm:$0x8]   ;;  %v1093_v6 = vsel %vm9_vm1, %v1421_v1, %v1089_v0  ;;  %v2_v17 = vld [vmem:[%s2522_s0] sm:$0x1]   ;;  %vm31_vm7 = vcmask 31744   ;;  %vm66_vm8 = vcmask 1048544  }
  0x59   :  { %v1423_v3 = vld [vmem:[%s2522_s0 + $0x7d] sm:$0x10]   ;;  %v1097_v9 = vsel %vm13_vm2, %v1422_v2, %v1093_v6  ;;  %1079 = vrot.lane.b32.xlu1 %v1078_v11, %s1494_s11  ;;  %v1172_v18 = vld [vmem:[%s2522_s0 + $0x1f] sm:$0x2]   ;;  %vm101_vm9 = vcmask 1015744   ;;  %vm136_vm10 = vcmask 982944  }
  0x5a   :  { %v1424_v7 = vld [vmem:[%s2522_s0 + $0x9c] sm:$0x20]   ;;  %v1101_v12 = vsel %vm17_vm3, %v1423_v3, %v1097_v9  ;;  %v1175_v20 = vld [vmem:[%s2522_s0 + $0x7c] sm:$0x10]   ;;  %v6_v21 = vsel %vm5_vm0, %v1172_v18, %v2_v17  ;;  %vm171_vm11 = vcmask 950144   ;;  %vm206_vm12 = vcmask 917344  }
  0x5b   :  { %v1425_v10 = vld [vmem:[%s2522_s0 + $0xbb] sm:$0x40]   ;;  %v1105_v15 = vsel %vm21_vm4, %v1424_v7, %v1101_v12  ;;  %v1176_v23 = vld [vmem:[%s2522_s0 + $0x9b] sm:$0x20]   ;;  %v10_v24 = vsel %vm9_vm1, %v1173_v14, %v6_v21  ;;  %vm241_vm13 = vcmask 884544   ;;  %vm276_vm14 = vcmask 851744  }
  0x5c   :  { %v1426_v13 = vld [vmem:[%s2522_s0 + $0xda] sm:$0x80]   ;;  %v1109_v19 = vsel %vm25_vm5, %v1425_v10, %v1105_v15  ;;  %v1177_v25 = vld [vmem:[%s2522_s0 + $0xba] sm:$0x40]   ;;  %v14_v26 = vsel %vm13_vm2, %v1174_v16, %v10_v24  ;;  %vm311_vm15 = vcmask 818944   ;;  %vm346_vm0 = vcmask 786144  }
  0x5d   :  { %v1113_v22 = vsel %vm29_vm6, %v1426_v13, %v1109_v19  ;;  %v1178_v27 = vld [vmem:[%s2522_s0 + $0xd9] sm:$0x80]   ;;  %v18_v28 = vsel %vm17_vm3, %v1175_v20, %v14_v26  ;;  %vm381_vm1 = vcmask 753344   ;;  %vm416_vm2 = vcmask 720544  }
  0x5e   :  { %1114 = vrot.lane.b32.xlu0 %v1113_v22, %s1495_s22  ;;  %v22_v29 = vsel %vm21_vm4, %v1176_v23, %v18_v28  ;;  %vm451_vm3 = vcmask 687744   ;;  %vm486_vm4 = vcmask 654944  }
  0x5f   :  { %v26_v30 = vsel %vm25_vm5, %v1177_v25, %v22_v29  ;;  %vm521_vm5 = vcmask 622144  }
  0x60   :  { %v30_v31 = vsel %vm29_vm6, %v1178_v27, %v26_v30  ;;  %vm556_vm6 = vcmask 589344  }
  0x61   :  { %32 = vst.msk [vmem:[#allocation0] ss:$8 sm:$0xf] %vm31_vm7, %v30_v31   ;;  %33 = vst.msk [vmem:[#allocation0] ss:$8 sm:$0xf0] %vm31_vm7, %v30_v31  }
  0x62   :  { %vm591_vm7 = vcmask 556544  }
  0x7c   :  { %v65_v32 = vpop.permute.xlu0 %64  }
  0x7d   :  { %67 = vst.msk [vmem:[#allocation0] ss:$8 sm:$0xf] %vm66_vm8, %v65_v32   ;;  %68 = vst.msk [vmem:[#allocation0] ss:$8 sm:$0xf0] %vm66_vm8, %v65_v32   ;;  %v135_v33 = vpop.permute.xlu1 %134  }
  0x7e   :  { %vm626_vm8 = vcmask 523744  }
  0x80   :  { %v100_v34 = vpop.permute.xlu0 %99  }
  0x81   :  { %102 = vst.msk [vmem:[#allocation0] ss:$8 sm:$0xf] %vm101_vm9, %v100_v34   ;;  %103 = vst.msk [vmem:[#allocation0] ss:$8 sm:$0xf0] %vm101_vm9, %v100_v34  }
  0x82   :  { %137 = vst.msk [vmem:[#allocation0] ss:$8 sm:$0xf] %vm136_vm10, %v135_v33   ;;  %138 = vst.msk [vmem:[#allocation0] ss:$8 sm:$0xf0] %vm136_vm10, %v135_v33  }
  0x83   :  { %vm661_vm9 = vcmask 490944   ;;  %vm696_vm10 = vcmask 458144  }
  0x84   :  { %v170_v35 = vpop.permute.xlu1 %169  }
  0x85   :  { %172 = vst.msk [vmem:[#allocation0] ss:$8 sm:$0xf] %vm171_vm11, %v170_v35   ;;  %173 = vst.msk [vmem:[#allocation0] ss:$8 sm:$0xf0] %vm171_vm11, %v170_v35   ;;  %v205_v36 = vpop.permute.xlu0 %204  }
  0x86   :  { %207 = vst.msk [vmem:[#allocation0] ss:$8 sm:$0xf] %vm206_vm12, %v205_v36   ;;  %208 = vst.msk [vmem:[#allocation0] ss:$8 sm:$0xf0] %vm206_vm12, %v205_v36  }
  0x87   :  { %vm731_vm11 = vcmask 425344   ;;  %vm766_vm12 = vcmask 392544  }
  0x88   :  { %v240_v37 = vpop.permute.xlu1 %239  }
  0x89   :  { %242 = vst.msk [vmem:[#allocation0] ss:$8 sm:$0xf] %vm241_vm13, %v240_v37   ;;  %243 = vst.msk [vmem:[#allocation0] ss:$8 sm:$0xf0] %vm241_vm13, %v240_v37  }
  0x8a   :  { %vm801_vm13 = vcmask 359744  }
  0x8d   :  { %v275_v38 = vpop.permute.xlu0 %274   ;;  %v310_v39 = vpop.permute.xlu1 %309  }
  0x8e   :  { %277 = vst.msk [vmem:[#allocation0] ss:$8 sm:$0xf] %vm276_vm14, %v275_v38   ;;  %278 = vst.msk [vmem:[#allocation0] ss:$8 sm:$0xf0] %vm276_vm14, %v275_v38  }
  0x8f   :  { %312 = vst.msk [vmem:[#allocation0] ss:$8 sm:$0xf] %vm311_vm15, %v310_v39   ;;  %313 = vst.msk [vmem:[#allocation0] ss:$8 sm:$0xf0] %vm311_vm15, %v310_v39  }
  0x90   :  { %vm836_vm14 = vcmask 326944   ;;  %vm871_vm15 = vcmask 294144  }
  0x91   :  { %v345_v40 = vpop.permute.xlu0 %344  }
  0x92   :  { %347 = vst.msk [vmem:[#allocation0] ss:$8 sm:$0xf] %vm346_vm0, %v345_v40   ;;  %348 = vst.msk [vmem:[#allocation0] ss:$8 sm:$0xf0] %vm346_vm0, %v345_v40  }
  0x93   :  { %vm906_vm0 = vcmask 261344  }
  0x95   :  { %v380_v41 = vpop.permute.xlu1 %379  }
  0x96   :  { %382 = vst.msk [vmem:[#allocation0] ss:$8 sm:$0xf] %vm381_vm1, %v380_v41   ;;  %383 = vst.msk [vmem:[#allocation0] ss:$8 sm:$0xf0] %vm381_vm1, %v380_v41   ;;  %v415_v42 = vpop.permute.xlu0 %414  }
  0x97   :  { %417 = vst.msk [vmem:[#allocation0] ss:$8 sm:$0xf] %vm416_vm2, %v415_v42   ;;  %418 = vst.msk [vmem:[#allocation0] ss:$8 sm:$0xf0] %vm416_vm2, %v415_v42  }
  0x98   :  { %vm941_vm1 = vcmask 228544   ;;  %vm976_vm2 = vcmask 195744  }
  0x99   :  { %v450_v43 = vpop.permute.xlu1 %449  }
  0x9a   :  { %452 = vst.msk [vmem:[#allocation0] ss:$8 sm:$0xf] %vm451_vm3, %v450_v43   ;;  %453 = vst.msk [vmem:[#allocation0] ss:$8 sm:$0xf0] %vm451_vm3, %v450_v43  }
  0x9b   :  { %vm1011_vm3 = vcmask 162944  }
  0x9d   :  { %v485_v44 = vpop.permute.xlu0 %484  }
  0x9e   :  { %487 = vst.msk [vmem:[#allocation0] ss:$8 sm:$0xf] %vm486_vm4, %v485_v44   ;;  %488 = vst.msk [vmem:[#allocation0] ss:$8 sm:$0xf0] %vm486_vm4, %v485_v44   ;;  %v520_v45 = vpop.permute.xlu1 %519  }
  0x9f   :  { %522 = vst.msk [vmem:[#allocation0] ss:$8 sm:$0xf] %vm521_vm5, %v520_v45   ;;  %523 = vst.msk [vmem:[#allocation0] ss:$8 sm:$0xf0] %vm521_vm5, %v520_v45  }
  0xa0   :  { %vm1046_vm4 = vcmask 130144   ;;  %vm1081_vm5 = vcmask 97344  }
  0xa1   :  { %v555_v46 = vpop.permute.xlu0 %554  }
  0xa2   :  { %557 = vst.msk [vmem:[#allocation0] ss:$8 sm:$0xf] %vm556_vm6, %v555_v46   ;;  %558 = vst.msk [vmem:[#allocation0] ss:$8 sm:$0xf0] %vm556_vm6, %v555_v46  }
  0xa3   :  { %vm1116_vm6 = vcmask 64544  }
  0xa5   :  { %v590_v47 = vpop.permute.xlu1 %589  }
  0xa6   :  { %592 = vst.msk [vmem:[#allocation0] ss:$8 sm:$0xf] %vm591_vm7, %v590_v47   ;;  %593 = vst.msk [vmem:[#allocation0] ss:$8 sm:$0xf0] %vm591_vm7, %v590_v47  }
  0xa7   :  { %v625_v48 = vpop.permute.xlu0 %624  }
  0xa8   :  { %627 = vst.msk [vmem:[#allocation0] ss:$8 sm:$0xf] %vm626_vm8, %v625_v48   ;;  %628 = vst.msk [vmem:[#allocation0] ss:$8 sm:$0xf0] %vm626_vm8, %v625_v48  }
  0xa9   :  { %v660_v49 = vpop.permute.xlu1 %659  }
  0xaa   :  { %662 = vst.msk [vmem:[#allocation0] ss:$8 sm:$0xf] %vm661_vm9, %v660_v49   ;;  %663 = vst.msk [vmem:[#allocation0] ss:$8 sm:$0xf0] %vm661_vm9, %v660_v49  }
  0xae   :  { %v695_v50 = vpop.permute.xlu0 %694  }
  0xaf   :  { %697 = vst.msk [vmem:[#allocation0] ss:$8 sm:$0xf] %vm696_vm10, %v695_v50   ;;  %698 = vst.msk [vmem:[#allocation0] ss:$8 sm:$0xf0] %vm696_vm10, %v695_v50   ;;  %v730_v51 = vpop.permute.xlu1 %729  }
  0xb0   :  { %732 = vst.msk [vmem:[#allocation0] ss:$8 sm:$0xf] %vm731_vm11, %v730_v51   ;;  %733 = vst.msk [vmem:[#allocation0] ss:$8 sm:$0xf0] %vm731_vm11, %v730_v51  }
  0xb2   :  { %v765_v52 = vpop.permute.xlu0 %764  }
  0xb3   :  { %767 = vst.msk [vmem:[#allocation0] ss:$8 sm:$0xf] %vm766_vm12, %v765_v52   ;;  %768 = vst.msk [vmem:[#allocation0] ss:$8 sm:$0xf0] %vm766_vm12, %v765_v52  }
  0xb6   :  { %v800_v53 = vpop.permute.xlu1 %799  }
  0xb7   :  { %802 = vst.msk [vmem:[#allocation0] ss:$8 sm:$0xf] %vm801_vm13, %v800_v53   ;;  %803 = vst.msk [vmem:[#allocation0] ss:$8 sm:$0xf0] %vm801_vm13, %v800_v53  }
  0xb8   :  { %v835_v54 = vpop.permute.xlu0 %834  }
  0xb9   :  { %837 = vst.msk [vmem:[#allocation0] ss:$8 sm:$0xf] %vm836_vm14, %v835_v54   ;;  %838 = vst.msk [vmem:[#allocation0] ss:$8 sm:$0xf0] %vm836_vm14, %v835_v54  }
  0xba   :  { %v870_v55 = vpop.permute.xlu1 %869  }
  0xbb   :  { %872 = vst.msk [vmem:[#allocation0] ss:$8 sm:$0xf] %vm871_vm15, %v870_v55   ;;  %873 = vst.msk [vmem:[#allocation0] ss:$8 sm:$0xf0] %vm871_vm15, %v870_v55  }
  0xbf   :  { %v905_v56 = vpop.permute.xlu0 %904  }
  0xc0   :  { %907 = vst.msk [vmem:[#allocation0] ss:$8 sm:$0xf] %vm906_vm0, %v905_v56   ;;  %908 = vst.msk [vmem:[#allocation0] ss:$8 sm:$0xf0] %vm906_vm0, %v905_v56   ;;  %v940_v57 = vpop.permute.xlu1 %939  }
  0xc1   :  { %942 = vst.msk [vmem:[#allocation0] ss:$8 sm:$0xf] %vm941_vm1, %v940_v57   ;;  %943 = vst.msk [vmem:[#allocation0] ss:$8 sm:$0xf0] %vm941_vm1, %v940_v57  }
  0xc3   :  { %v975_v58 = vpop.permute.xlu0 %974  }
  0xc4   :  { %977 = vst.msk [vmem:[#allocation0] ss:$8 sm:$0xf] %vm976_vm2, %v975_v58   ;;  %978 = vst.msk [vmem:[#allocation0] ss:$8 sm:$0xf0] %vm976_vm2, %v975_v58  }
  0xc7   :  { %v1010_v59 = vpop.permute.xlu1 %1009  }
  0xc8   :  { %1012 = vst.msk [vmem:[#allocation0] ss:$8 sm:$0xf] %vm1011_vm3, %v1010_v59   ;;  %1013 = vst.msk [vmem:[#allocation0] ss:$8 sm:$0xf0] %vm1011_vm3, %v1010_v59  }
  0xc9   :  { %v1045_v60 = vpop.permute.xlu0 %1044  }
  0xca   :  { %1047 = vst.msk [vmem:[#allocation0] ss:$8 sm:$0xf] %vm1046_vm4, %v1045_v60   ;;  %1048 = vst.msk [vmem:[#allocation0] ss:$8 sm:$0xf0] %vm1046_vm4, %v1045_v60  }
  0xcb   :  { %v1080_v61 = vpop.permute.xlu1 %1079  }
  0xcc   :  { %1082 = vst.msk [vmem:[#allocation0] ss:$8 sm:$0xf] %vm1081_vm5, %v1080_v61   ;;  %1083 = vst.msk [vmem:[#allocation0] ss:$8 sm:$0xf0] %vm1081_vm5, %v1080_v61  }
  0xd0   :  { %v1115_v62 = vpop.permute.xlu0 %1114  }
  0xd1   :  { %1117 = vst.msk [vmem:[#allocation0] ss:$8 sm:$0xf] %vm1116_vm6, %v1115_v62   ;;  %1118 = vst.msk [vmem:[#allocation0] ss:$8 sm:$0xf0] %vm1116_vm6, %v1115_v62  }
  0xd8   :  { %v1122_v63 = vld [vmem:[#allocation0] sm:$0x1]  ;;  %v1126_v0 = vld [vmem:[#allocation0 + $0x8] sm:$0x1]  ;;  %v1131_v1 = vld [vmem:[#allocation0 + $0x10] sm:$0x1] }
  0xd9   :  { %1124 = vst [vmem:[%s2523_s1] sm:$0x1] %v1122_v63  ;;  %1427 = vst [vmem:[%s2523_s1 + $0x1] sm:$0x1] %v1126_v0  ;;  %v1137_v2 = vld [vmem:[#allocation0 + $0x18] sm:$0x1] }
  0xda   :  { %1428 = vst [vmem:[%s2523_s1 + $0x2] sm:$0x1] %v1131_v1  ;;  %v1143_v3 = vld [vmem:[#allocation0 + $0x20] sm:$0x1]  ;;  %v1149_v4 = vld [vmem:[#allocation0 + $0x28] sm:$0x1] }
  0xdb   :  { %1429 = vst [vmem:[%s2523_s1 + $0x3] sm:$0x1] %v1137_v2  ;;  %1430 = vst [vmem:[%s2523_s1 + $0x4] sm:$0x1] %v1143_v3  ;;  %v1155_v5 = vld [vmem:[#allocation0 + $0x30] sm:$0x1] }
  0xdc   :  { %1431 = vst [vmem:[%s2523_s1 + $0x5] sm:$0x1] %v1149_v4  ;;  %v1161_v6 = vld [vmem:[#allocation0 + $0x38] sm:$0x1]  ;;  %1432 = vst [vmem:[%s2523_s1 + $0x6] sm:$0x1] %v1155_v5 }
  0xdd   :  { %1433 = vst [vmem:[%s2523_s1 + $0x7] sm:$0x1] %v1161_v6 }

// kernel: dwise_forward.3
= control target key start
LH: loop header
LB: loop body
LE: loop exit
PB: predicated region body
PF: predicated region fallthrough
CT: control target
= control target key end

     0   :  { %v48_v0 = vlaneseq  ;;  %s628_s1 = inlined_call_operand.vmem [shape: f32[1,1024], index: 1, kind: input, shape index: {}]   ;;  %s629_s2 = inlined_call_operand.vmem [shape: f32[1,1024], index: 2, kind: input, shape index: {}]   ;;  %s630_s0 = inlined_call_operand.vmem [shape: f32[32,1024], index: 0, kind: input, shape index: {}]   ;;  %s631_s3 = inlined_call_operand.vmem [shape: f32[32,1024], index: 3, kind: output, shape index: {}]  }
   0x1   :  { %v46_v2 = vld [vmem:[%s628_s1] sm:$0xff]  ;;  %v15_v9 = vld [vmem:[%s630_s0 + $0x8] sm:$0xff]  ;;  %v16_v18 = vld [vmem:[%s630_s0 + $0x10] sm:$0xff] }
   0x2   :  { %v314_v1 = vshrl.u32 %v48_v0, 7  ;;  %v322_v3 = vld [vmem:[%s629_s2] sm:$0xff]  ;;  %v17_v19 = vld [vmem:[%s630_s0 + $0x18] sm:$0xff]  ;;  %v19_v29 = vld [vmem:[%s630_s0 + $0x28] sm:$0xff] }
   0x3   :  { %v14_v8 = vld [vmem:[%s630_s0] sm:$0xff]  ;;  %v20_v34 = vld [vmem:[%s630_s0 + $0x30] sm:$0xff]  ;;  %v21_v47 = vld [vmem:[%s630_s0 + $0x38] sm:$0xff] }
   0x4   :  { %v50_v4 = vsub.s32 0, %v314_v1  ;;  %v54_v5 = vsub.s32 1, %v314_v1  ;;  %v58_v6 = vsub.s32 2, %v314_v1  ;;  %v62_v7 = vsub.s32 3, %v314_v1  ;;  %v18_v24 = vld [vmem:[%s630_s0 + $0x20] sm:$0xff]  ;;  %v23_v57 = vld [vmem:[%s630_s0 + $0x48] sm:$0xff] }
   0x5   :  { %v66_v10 = vsub.s32 4, %v314_v1  ;;  %v70_v11 = vsub.s32 5, %v314_v1  ;;  %v74_v12 = vsub.s32 6, %v314_v1  ;;  %v78_v13 = vsub.s32 7, %v314_v1  ;;  %v22_v52 = vld [vmem:[%s630_s0 + $0x40] sm:$0xff]  ;;  %v24_v58 = vld [vmem:[%s630_s0 + $0x50] sm:$0xff] }
   0x6   :  { %v338_v14 = vrot.slane %v46_v2, %v50_v4  ;;  %v341_v15 = vrot.slane %v322_v3, %v50_v4  ;;  %v343_v16 = vrot.slane %v46_v2, %v54_v5  ;;  %v346_v17 = vrot.slane %v322_v3, %v54_v5  ;;  %v25_v59 = vld [vmem:[%s630_s0 + $0x58] sm:$0xff]  ;;  %v26_v0 = vld [vmem:[%s630_s0 + $0x60] sm:$0xff] }
   0x7   :  { %v354_v20 = vrot.slane %v46_v2, %v58_v6  ;;  %v357_v21 = vrot.slane %v322_v3, %v58_v6  ;;  %v359_v22 = vrot.slane %v46_v2, %v62_v7  ;;  %v362_v23 = vrot.slane %v322_v3, %v62_v7  ;;  %v27_v6 = vld [vmem:[%s630_s0 + $0x68] sm:$0xff] }
   0x8   :  { %v88_v25 = vmul.f32 %v338_v14, %v14_v8  ;;  %v89_v26 = vmul.f32 %v343_v16, %v15_v9  ;;  %v369_v27 = vrot.slane %v46_v2, %v66_v10  ;;  %v372_v28 = vrot.slane %v322_v3, %v66_v10  ;;  %v28_v10 = vld [vmem:[%s630_s0 + $0x70] sm:$0xff] }
   0x9   :  { %v90_v30 = vmul.f32 %v354_v20, %v16_v18  ;;  %v91_v31 = vmul.f32 %v359_v22, %v17_v19  ;;  %v379_v32 = vrot.slane %v46_v2, %v70_v11  ;;  %v382_v33 = vrot.slane %v322_v3, %v70_v11 }
   0xa   :  { %v162_v35 = vadd.f32 %v341_v15, %v88_v25  ;;  %v163_v36 = vadd.f32 %v346_v17, %v89_v26  ;;  %v92_v37 = vmul.f32 %v369_v27, %v18_v24  ;;  %v390_v38 = vrot.slane %v46_v2, %v74_v12 }
   0xb   :  { %v164_v39 = vadd.f32 %v357_v21, %v90_v30  ;;  %v165_v40 = vadd.f32 %v362_v23, %v91_v31  ;;  %v93_v41 = vmul.f32 %v379_v32, %v19_v29  ;;  %v396_v42 = vrot.slane %v322_v3, %v74_v12 }
   0xc   :  { %v194_v43 = vmul.f32 0.01, %v162_v35  ;;  %v195_v44 = vmul.f32 0.01, %v163_v36  ;;  %v166_v45 = vadd.f32 %v372_v28, %v92_v37  ;;  %v94_v46 = vmul.f32 %v390_v38, %v20_v34 }
   0xd   :  { %v196_v48 = vmul.f32 0.01, %v164_v39  ;;  %v197_v49 = vmul.f32 0.01, %v165_v40  ;;  %v167_v50 = vadd.f32 %v382_v33, %v93_v41  ;;  %v404_v51 = vrot.slane %v46_v2, %v78_v13 }
   0xe   :  { %v226_v53 = vmax.f32 %v162_v35, %v194_v43  ;;  %v227_v54 = vmax.f32 %v163_v36, %v195_v44  ;;  %v198_v55 = vmul.f32 0.01, %v166_v45  ;;  %v168_v56 = vadd.f32 %v396_v42, %v94_v46  ;;  %v29_v35 = vld [vmem:[%s630_s0 + $0x78] sm:$0xff]  ;;  %v30_v36 = vld [vmem:[%s630_s0 + $0x80] sm:$0xff] }
   0xf   :  { %v228_v60 = vmax.f32 %v164_v39, %v196_v48  ;;  %v229_v61 = vmax.f32 %v165_v40, %v197_v49  ;;  %v199_v62 = vmul.f32 0.01, %v167_v50  ;;  %v95_v63 = vmul.f32 %v404_v51, %v21_v47  ;;  %v31_v47 = vld [vmem:[%s630_s0 + $0x88] sm:$0xff]  ;;  %v32_v48 = vld [vmem:[%s630_s0 + $0x90] sm:$0xff]  ;;  %v33_v49 = vld [vmem:[%s630_s0 + $0x98] sm:$0xff] }
  0x10   :  { %258 = vst [vmem:[%s631_s3] sm:$0xff] %v226_v53  ;;  %259 = vst [vmem:[%s631_s3 + $0x8] sm:$0xff] %v227_v54  ;;  %v230_v1 = vmax.f32 %v166_v45, %v198_v55  ;;  %v200_v2 = vmul.f32 0.01, %v168_v56  ;;  %v430_v4 = vrot.slane %v322_v3, %v78_v13  ;;  %v96_v5 = vmul.f32 %v338_v14, %v22_v52  ;;  %v34_v55 = vld [vmem:[%s630_s0 + $0xa0] sm:$0xff] }
  0x11   :  { %260 = vst [vmem:[%s631_s3 + $0x10] sm:$0xff] %v228_v60  ;;  %261 = vst [vmem:[%s631_s3 + $0x18] sm:$0xff] %v229_v61  ;;  %v231_v7 = vmax.f32 %v167_v50, %v199_v62  ;;  %v97_v8 = vmul.f32 %v343_v16, %v23_v57  ;;  %v98_v3 = vmul.f32 %v354_v20, %v24_v58  ;;  %v35_v60 = vld [vmem:[%s630_s0 + $0xa8] sm:$0xff] }
  0x12   :  { %v99_v9 = vmul.f32 %v359_v22, %v25_v59  ;;  %262 = vst [vmem:[%s631_s3 + $0x20] sm:$0xff] %v230_v1  ;;  %v232_v11 = vmax.f32 %v168_v56, %v200_v2  ;;  %v169_v12 = vadd.f32 %v430_v4, %v95_v63  ;;  %v170_v13 = vadd.f32 %v341_v15, %v96_v5  ;;  %v36_v1 = vld [vmem:[%s630_s0 + $0xb0] sm:$0xff] }
  0x13   :  { %v100_v18 = vmul.f32 %v369_v27, %v26_v0  ;;  %263 = vst [vmem:[%s631_s3 + $0x28] sm:$0xff] %v231_v7  ;;  %v171_v19 = vadd.f32 %v346_v17, %v97_v8  ;;  %v172_v24 = vadd.f32 %v357_v21, %v98_v3  ;;  %v101_v26 = vmul.f32 %v379_v32, %v27_v6 }
  0x14   :  { %v173_v25 = vadd.f32 %v362_v23, %v99_v9  ;;  %264 = vst [vmem:[%s631_s3 + $0x30] sm:$0xff] %v232_v11  ;;  %v201_v29 = vmul.f32 0.01, %v169_v12  ;;  %v202_v30 = vmul.f32 0.01, %v170_v13  ;;  %v102_v34 = vmul.f32 %v390_v38, %v28_v10 }
  0x15   :  { %v174_v31 = vadd.f32 %v372_v28, %v100_v18  ;;  %v203_v37 = vmul.f32 0.01, %v171_v19  ;;  %v204_v39 = vmul.f32 0.01, %v172_v24  ;;  %v175_v41 = vadd.f32 %v382_v33, %v101_v26 }
  0x16   :  { %v205_v40 = vmul.f32 0.01, %v173_v25  ;;  %v233_v43 = vmax.f32 %v169_v12, %v201_v29  ;;  %v234_v44 = vmax.f32 %v170_v13, %v202_v30  ;;  %v176_v46 = vadd.f32 %v396_v42, %v102_v34 }
  0x17   :  { %v206_v45 = vmul.f32 0.01, %v174_v31  ;;  %v235_v50 = vmax.f32 %v171_v19, %v203_v37  ;;  %v236_v52 = vmax.f32 %v172_v24, %v204_v39  ;;  %v207_v54 = vmul.f32 0.01, %v175_v41  ;;  %v37_v19 = vld [vmem:[%s630_s0 + $0xb8] sm:$0xff]  ;;  %v38_v24 = vld [vmem:[%s630_s0 + $0xc0] sm:$0xff] }
  0x18   :  { %v237_v53 = vmax.f32 %v173_v25, %v205_v40  ;;  %265 = vst [vmem:[%s631_s3 + $0x38] sm:$0xff] %v233_v43  ;;  %266 = vst [vmem:[%s631_s3 + $0x40] sm:$0xff] %v234_v44  ;;  %v208_v57 = vmul.f32 0.01, %v176_v46  ;;  %v103_v58 = vmul.f32 %v404_v51, %v29_v35  ;;  %v104_v59 = vmul.f32 %v338_v14, %v30_v36  ;;  %v39_v37 = vld [vmem:[%s630_s0 + $0xc8] sm:$0xff]  ;;  %v40_v39 = vld [vmem:[%s630_s0 + $0xd0] sm:$0xff] }
  0x19   :  { %v238_v56 = vmax.f32 %v174_v31, %v206_v45  ;;  %267 = vst [vmem:[%s631_s3 + $0x48] sm:$0xff] %v235_v50  ;;  %268 = vst [vmem:[%s631_s3 + $0x50] sm:$0xff] %v236_v52  ;;  %v239_v61 = vmax.f32 %v175_v41, %v207_v54  ;;  %v105_v62 = vmul.f32 %v343_v16, %v31_v47  ;;  %v41_v40 = vld [vmem:[%s630_s0 + $0xd8] sm:$0xff]  ;;  %v43_v52 = vld [vmem:[%s630_s0 + $0xe8] sm:$0xff] }
  0x1a   :  { %269 = vst [vmem:[%s631_s3 + $0x58] sm:$0xff] %v237_v53  ;;  %v106_v63 = vmul.f32 %v354_v20, %v32_v48  ;;  %v107_v0 = vmul.f32 %v359_v22, %v33_v49  ;;  %v240_v2 = vmax.f32 %v176_v46, %v208_v57  ;;  %v177_v5 = vadd.f32 %v430_v4, %v103_v58  ;;  %v42_v46 = vld [vmem:[%s630_s0 + $0xe0] sm:$0xff] }
  0x1b   :  { %270 = vst [vmem:[%s631_s3 + $0x60] sm:$0xff] %v238_v56  ;;  %v178_v6 = vadd.f32 %v341_v15, %v104_v59  ;;  %v108_v7 = vmul.f32 %v369_v27, %v34_v55  ;;  %271 = vst [vmem:[%s631_s3 + $0x68] sm:$0xff] %v239_v61  ;;  %v179_v8 = vadd.f32 %v346_v17, %v105_v62  ;;  %v44_v56 = vld [vmem:[%s630_s0 + $0xf0] sm:$0xff] }
  0x1c   :  { %v180_v3 = vadd.f32 %v357_v21, %v106_v63  ;;  %v181_v9 = vadd.f32 %v362_v23, %v107_v0  ;;  %v109_v10 = vmul.f32 %v379_v32, %v35_v60  ;;  %272 = vst [vmem:[%s631_s3 + $0x70] sm:$0xff] %v240_v2  ;;  %v209_v11 = vmul.f32 0.01, %v177_v5 }
  0x1d   :  { %v210_v12 = vmul.f32 0.01, %v178_v6  ;;  %v182_v13 = vadd.f32 %v372_v28, %v108_v7  ;;  %v110_v18 = vmul.f32 %v390_v38, %v36_v1  ;;  %v211_v25 = vmul.f32 0.01, %v179_v8 }
  0x1e   :  { %v212_v26 = vmul.f32 0.01, %v180_v3  ;;  %v213_v29 = vmul.f32 0.01, %v181_v9  ;;  %v183_v30 = vadd.f32 %v382_v33, %v109_v10  ;;  %v241_v31 = vmax.f32 %v177_v5, %v209_v11 }
  0x1f   :  { %v242_v34 = vmax.f32 %v178_v6, %v210_v12  ;;  %v214_v35 = vmul.f32 0.01, %v182_v13  ;;  %v184_v36 = vadd.f32 %v396_v42, %v110_v18  ;;  %v243_v41 = vmax.f32 %v179_v8, %v211_v25 }
  0x20   :  { %v244_v43 = vmax.f32 %v180_v3, %v212_v26  ;;  %v245_v44 = vmax.f32 %v181_v9, %v213_v29  ;;  %v215_v45 = vmul.f32 0.01, %v183_v30  ;;  %273 = vst [vmem:[%s631_s3 + $0x78] sm:$0xff] %v241_v31  ;;  %v111_v49 = vmul.f32 %v404_v51, %v37_v19 }
  0x21   :  { %274 = vst [vmem:[%s631_s3 + $0x80] sm:$0xff] %v242_v34  ;;  %v246_v47 = vmax.f32 %v182_v13, %v214_v35  ;;  %v216_v48 = vmul.f32 0.01, %v184_v36  ;;  %v112_v50 = vmul.f32 %v338_v14, %v38_v24  ;;  %275 = vst [vmem:[%s631_s3 + $0x88] sm:$0xff] %v243_v41  ;;  %v113_v54 = vmul.f32 %v343_v16, %v39_v37 }
  0x22   :  { %276 = vst [vmem:[%s631_s3 + $0x90] sm:$0xff] %v244_v43  ;;  %277 = vst [vmem:[%s631_s3 + $0x98] sm:$0xff] %v245_v44  ;;  %v247_v53 = vmax.f32 %v183_v30, %v215_v45  ;;  %v114_v14 = vmul.f32 %v354_v20, %v40_v39  ;;  %v115_v55 = vmul.f32 %v359_v22, %v41_v40 }
  0x23   :  { %278 = vst [vmem:[%s631_s3 + $0xa0] sm:$0xff] %v246_v47  ;;  %v248_v57 = vmax.f32 %v184_v36, %v216_v48  ;;  %v185_v58 = vadd.f32 %v430_v4, %v111_v49  ;;  %v186_v59 = vadd.f32 %v341_v15, %v112_v50  ;;  %v116_v60 = vmul.f32 %v369_v27, %v42_v46 }
  0x24   :  { %279 = vst [vmem:[%s631_s3 + $0xa8] sm:$0xff] %v247_v53  ;;  %v187_v16 = vadd.f32 %v346_v17, %v113_v54  ;;  %v188_v20 = vadd.f32 %v357_v21, %v114_v14  ;;  %v189_v22 = vadd.f32 %v362_v23, %v115_v55  ;;  %v117_v61 = vmul.f32 %v379_v32, %v43_v52  ;;  %v45_v17 = vld [vmem:[%s630_s0 + $0xf8] sm:$0xff] }
  0x25   :  { %280 = vst [vmem:[%s631_s3 + $0xb0] sm:$0xff] %v248_v57  ;;  %v217_v62 = vmul.f32 0.01, %v185_v58  ;;  %v218_v15 = vmul.f32 0.01, %v186_v59  ;;  %v190_v27 = vadd.f32 %v372_v28, %v116_v60  ;;  %v118_v63 = vmul.f32 %v390_v38, %v44_v56 }
  0x26   :  { %v219_v0 = vmul.f32 0.01, %v187_v16  ;;  %v220_v21 = vmul.f32 0.01, %v188_v20  ;;  %v221_v1 = vmul.f32 0.01, %v189_v22  ;;  %v191_v23 = vadd.f32 %v382_v33, %v117_v61 }
  0x27   :  { %v249_v32 = vmax.f32 %v185_v58, %v217_v62  ;;  %v250_v2 = vmax.f32 %v186_v59, %v218_v15  ;;  %v222_v5 = vmul.f32 0.01, %v190_v27  ;;  %v192_v6 = vadd.f32 %v396_v42, %v118_v63 }
  0x28   :  { %v251_v7 = vmax.f32 %v187_v16, %v219_v0  ;;  %v252_v8 = vmax.f32 %v188_v20, %v220_v21  ;;  %v253_v3 = vmax.f32 %v189_v22, %v221_v1  ;;  %v223_v28 = vmul.f32 0.01, %v191_v23 }
  0x29   :  { %281 = vst [vmem:[%s631_s3 + $0xb8] sm:$0xff] %v249_v32  ;;  %282 = vst [vmem:[%s631_s3 + $0xc0] sm:$0xff] %v250_v2  ;;  %v254_v38 = vmax.f32 %v190_v27, %v222_v5  ;;  %v224_v9 = vmul.f32 0.01, %v192_v6  ;;  %v119_v33 = vmul.f32 %v404_v51, %v45_v17 }
  0x2a   :  { %283 = vst [vmem:[%s631_s3 + $0xc8] sm:$0xff] %v251_v7  ;;  %284 = vst [vmem:[%s631_s3 + $0xd0] sm:$0xff] %v252_v8  ;;  %v255_v42 = vmax.f32 %v191_v23, %v223_v28 }
  0x2b   :  { %285 = vst [vmem:[%s631_s3 + $0xd8] sm:$0xff] %v253_v3  ;;  %286 = vst [vmem:[%s631_s3 + $0xe0] sm:$0xff] %v254_v38  ;;  %v256_v10 = vmax.f32 %v192_v6, %v224_v9  ;;  %v193_v51 = vadd.f32 %v430_v4, %v119_v33 }
  0x2c   :  { %287 = vst [vmem:[%s631_s3 + $0xe8] sm:$0xff] %v255_v42 }
  0x2d   :  { %288 = vst [vmem:[%s631_s3 + $0xf0] sm:$0xff] %v256_v10  ;;  %v225_v11 = vmul.f32 0.01, %v193_v51 }
  0x2f   :  { %v257_v12 = vmax.f32 %v193_v51, %v225_v11 }
  0x31   :  { %289 = vst [vmem:[%s631_s3 + $0xf8] sm:$0xff] %v257_v12 }

// kernel: dwise_forward.2
= control target key start
LH: loop header
LB: loop body
LE: loop exit
PB: predicated region body
PF: predicated region fallthrough
CT: control target
= control target key end

     0   :  { %s3956_s18 = smov 0   ;;  %s3958_s19 = smov 0   ;;  %s7436_s0 = inlined_call_operand.vmem [shape: f32[2,16,16,64], index: 0, kind: input, shape index: {}]   ;;  %s7437_s1 = inlined_call_operand.vmem [shape: f32[2,1,2,16,64], index: 1, kind: input, shape index: {}]   ;;  %s7438_s2 = inlined_call_operand.vmem [shape: f32[27,64], index: 2, kind: input, shape index: {}]   ;;  %s7439_s3 = inlined_call_operand.vmem [shape: f32[2,16,16,64], index: 3, kind: output, shape index: {0}]   ;;  %s7440_s4 = inlined_call_operand.vmem [shape: f32[2,1,64], index: 4, kind: output, shape index: {1}]   ;;  %s7441_s5 = inlined_call_operand.vmem [shape: f32[2,1,64], index: 5, kind: output, shape index: {2}]  }
   0x1   :  { %s3960_s20 = smov 0  }
   0x2 LB: > { %s28_s21 = sadd.s32 1, %s3915_s19  ;;  %p3744_p0 = scmp.ge.s32.totalorder %s3919_s20, 1  ;;  %s3919_s20 = sphi %s3960_s20, %s16_s20   ;;  %s3915_s19 = sphi %s3958_s19, %s8058_s19   ;;  %s3911_s18 = sphi %s3956_s18, %s8057_s18  }
   0x3   : > { %p30_p1 = scmp.ge.s32.totalorder %s28_s21, 2  ;;  %p234_p2 = scmp.lt.s32.totalorder %s3919_s20, 3 }
   0x5   : > { %s8060_s21 = smov (%p30_p1, %s28_s21), 0  ;;  %p235_p3 = pnand %p3744_p0, %p234_p2 }
   0x7   : > { %238 = sbr.rel (%p235_p3) target bundleno = 1180 (0x49c), region = 32 }
   0xe   : > { %p290_p4 = scmp.lt.s32.totalorder %s3911_s18, 1  ;;  %vm330_vm0 = vcmask 588800   ;;  %vm333_vm1 = vcmask 582656   ;;  %v3921_v0 = vmov 0.0   ;;  %s3922_s26 = smov 4   ;;  %v645_v31 = vlaneseq  ;;  %v4113_v37 = vld [vmem:[%s7438_s2 + $0x8] sm:$0xff] }
   0xf   : > { %338 = vst.msk [vmem:[#allocation2 + $0x30] sm:$0xff] %vm330_vm0, %v3921_v0  ;;  %339 = vst.msk [vmem:[#allocation2 + $0x38] sm:$0xff] %vm330_vm0, %v3921_v0  ;;  %v4124_v42 = vld [vmem:[%s7438_s2] sm:$0xff]  ;;  %v4138_v46 = vld [vmem:[%s7438_s2 + $0x10] sm:$0xff]  ;;  %vm551_vm2 = vcmask 556064   ;;  %s3923_s12 = smov 124  }
  0x10   : > { %s8062_s18 = smov (!%p290_p4, %s3911_s18), 1  ;;  %331 = vst.msk [vmem:[#allocation2] sm:$0xff] %vm330_vm0, %v3921_v0  ;;  %332 = vst.msk [vmem:[#allocation2 + $0x8] sm:$0xff] %vm330_vm0, %v3921_v0  ;;  %v4106_v34 = vshrl.u32 %v645_v31, 7  ;;  %s3924_s13 = smov 8   ;;  %vm3361_vm3 = vcmask 523264  }
  0x11   : > { %335 = vst.msk [vmem:[#allocation2 + $0x18] sm:$0xff] %vm330_vm0, %v3921_v0  ;;  %336 = vst.msk [vmem:[#allocation2 + $0x20] sm:$0xff] %vm330_vm0, %v3921_v0  ;;  %s3753_s22 = sshll.u32 %s8062_s18, 8  ;;  %s3754_s27 = sshll.u32 %s8062_s18, 5  ;;  %vm3463_vm4 = vcmask 516096  }
  0x12   : > { %341 = vst.msk [vmem:[#allocation2 + $0x48] sm:$0xff] %vm330_vm0, %v3921_v0  ;;  %342 = vst.msk [vmem:[#allocation2 + $0x50] sm:$0xff] %vm330_vm0, %v3921_v0  ;;  %s4036_s25 = scalar_lea.vmem %s7436_s0, %s3753_s22  ;;  %s308_s30 = scalar_lea.vmem %s7437_s1, %s3754_s27  ;;  %v4116_v38 = vsub.s32 2, %v4106_v34  ;;  %v4119_v39 = vsub.s32 1, %v4106_v34  ;;  %v4133_v45 = vsub.s32 3, %v4106_v34 }
  0x13   : > { %344 = vst.msk [vmem:[#allocation2 + $0x60] sm:$0xff] %vm330_vm0, %v3921_v0  ;;  %345 = vst.msk [vmem:[#allocation2 + $0x68] sm:$0xff] %vm330_vm0, %v3921_v0  ;;  %v388_v1 = vld [vmem:[%s4036_s25 + $0x10] sm:$0xff]  ;;  %v386_v2 = vld [vmem:[%s4036_s25] sm:$0xff]  ;;  %s3925_s14 = smov 120   ;;  %s323_s7 = scalar_lea.vmem %s7440_s4, %s8062_s18 }
  0x14   : > { %347 = vst.msk [vmem:[#allocation2 + $0x78] sm:$0xff] %vm330_vm0, %v3921_v0  ;;  %348 = vst.msk [vmem:[#allocation2 + $0x80] sm:$0xff] %vm330_vm0, %v3921_v0  ;;  %458 = vrot.lane.b32.xlu1 %v388_v1, %s3922_s26  ;;  %454 = vrot.lane.b32.xlu0 %v386_v2, %s3922_s26  ;;  %v389_v3 = vld [vmem:[%s4036_s25 + $0x18] sm:$0xff]  ;;  %v387_v4 = vld [vmem:[%s4036_s25 + $0x8] sm:$0xff]  ;;  %v860_v43 = vrot.slane %v4113_v37, %v4116_v38  ;;  %v820_v44 = vrot.slane %v4124_v42, %v4119_v39  ;;  %s328_s10 = scalar_lea.vmem %s7441_s5, %s8062_s18 }
  0x15   : > { %350 = vst.msk [vmem:[#allocation2 + $0x90] sm:$0xff] %vm330_vm0, %v3921_v0  ;;  %351 = vst.msk [vmem:[#allocation2 + $0x98] sm:$0xff] %vm330_vm0, %v3921_v0  ;;  %v391_v5 = vld [vmem:[%s4036_s25 + $0x28] sm:$0xff]  ;;  %v390_v6 = vld [vmem:[%s4036_s25 + $0x20] sm:$0xff]  ;;  %v932_v47 = vrot.slane %v4138_v46, %v4133_v45 }
  0x16   : > { %353 = vst.msk [vmem:[#allocation2 + $0xa8] sm:$0xff] %vm330_vm0, %v3921_v0  ;;  %354 = vst.msk [vmem:[#allocation2 + $0xb0] sm:$0xff] %vm330_vm0, %v3921_v0  ;;  %v393_v7 = vld [vmem:[%s4036_s25 + $0x38] sm:$0xff]  ;;  %v392_v8 = vld [vmem:[%s4036_s25 + $0x30] sm:$0xff] }
  0x17   : > { %356 = vst.msk [vmem:[#allocation2 + $0xc0] sm:$0xff] %vm330_vm0, %v3921_v0  ;;  %357 = vst.msk [vmem:[#allocation2 + $0xc8] sm:$0xff] %vm330_vm0, %v3921_v0  ;;  %v395_v9 = vld [vmem:[%s4036_s25 + $0x48] sm:$0xff]  ;;  %v394_v10 = vld [vmem:[%s4036_s25 + $0x40] sm:$0xff] }
  0x18   : > { %359 = vst.msk [vmem:[#allocation2 + $0xd8] sm:$0xff] %vm330_vm0, %v3921_v0  ;;  %360 = vst.msk [vmem:[#allocation2 + $0xe0] sm:$0xff] %vm330_vm0, %v3921_v0  ;;  %460 = vrot.lane.b32.xlu1 %v389_v3, %s3922_s26  ;;  %456 = vrot.lane.b32.xlu0 %v387_v4, %s3922_s26  ;;  %v397_v11 = vld [vmem:[%s4036_s25 + $0x58] sm:$0xff]  ;;  %v396_v12 = vld [vmem:[%s4036_s25 + $0x50] sm:$0xff] }
  0x19   : > { %362 = vst.msk [vmem:[#allocation2 + $0xf0] sm:$0xff] %vm330_vm0, %v3921_v0  ;;  %363 = vst.msk [vmem:[#allocation2 + $0xf8] sm:$0xff] %vm330_vm0, %v3921_v0  ;;  %v399_v13 = vld [vmem:[%s4036_s25 + $0x68] sm:$0xff]  ;;  %v398_v14 = vld [vmem:[%s4036_s25 + $0x60] sm:$0xff] }
  0x1a   : > { %365 = vst.msk [vmem:[#allocation2 + $0x108] sm:$0xff] %vm330_vm0, %v3921_v0  ;;  %366 = vst.msk [vmem:[#allocation2 + $0x110] sm:$0xff] %vm330_vm0, %v3921_v0  ;;  %v401_v15 = vld [vmem:[%s4036_s25 + $0x78] sm:$0xff]  ;;  %v400_v16 = vld [vmem:[%s4036_s25 + $0x70] sm:$0xff] }
  0x1b   : > { %368 = vst.msk [vmem:[#allocation2 + $0x120] sm:$0xff] %vm330_vm0, %v3921_v0  ;;  %369 = vst.msk [vmem:[#allocation2 + $0x128] sm:$0xff] %vm330_vm0, %v3921_v0  ;;  %v403_v17 = vld [vmem:[%s4036_s25 + $0x88] sm:$0xff]  ;;  %v402_v18 = vld [vmem:[%s4036_s25 + $0x80] sm:$0xff] }
  0x1c   : > { %371 = vst.msk [vmem:[#allocation2 + $0x138] sm:$0xff] %vm330_vm0, %v3921_v0  ;;  %372 = vst.msk [vmem:[#allocation2 + $0x140] sm:$0xff] %vm330_vm0, %v3921_v0  ;;  %464 = vrot.lane.b32.xlu1 %v391_v5, %s3922_s26  ;;  %462 = vrot.lane.b32.xlu0 %v390_v6, %s3922_s26  ;;  %v405_v19 = vld [vmem:[%s4036_s25 + $0x98] sm:$0xff]  ;;  %v404_v20 = vld [vmem:[%s4036_s25 + $0x90] sm:$0xff] }
  0x1d   : > { %374 = vst.msk [vmem:[#allocation2 + $0x150] sm:$0xff] %vm330_vm0, %v3921_v0  ;;  %375 = vst.msk [vmem:[#allocation2 + $0x158] sm:$0xff] %vm330_vm0, %v3921_v0  ;;  %v407_v21 = vld [vmem:[%s4036_s25 + $0xa8] sm:$0xff]  ;;  %v406_v22 = vld [vmem:[%s4036_s25 + $0xa0] sm:$0xff] }
  0x1e   : > { %377 = vst.msk [vmem:[#allocation2 + $0x168] sm:$0xff] %vm330_vm0, %v3921_v0  ;;  %378 = vst.msk [vmem:[#allocation2 + $0x170] sm:$0xff] %vm330_vm0, %v3921_v0  ;;  %v409_v23 = vld [vmem:[%s4036_s25 + $0xb8] sm:$0xff]  ;;  %v408_v24 = vld [vmem:[%s4036_s25 + $0xb0] sm:$0xff] }
  0x1f   : > { %380 = vst.msk [vmem:[#allocation2 + $0x180] sm:$0xff] %vm330_vm0, %v3921_v0  ;;  %381 = vst.msk [vmem:[#allocation2 + $0x188] sm:$0xff] %vm330_vm0, %v3921_v0  ;;  %v411_v25 = vld [vmem:[%s4036_s25 + $0xc8] sm:$0xff]  ;;  %v410_v26 = vld [vmem:[%s4036_s25 + $0xc0] sm:$0xff] }
  0x20   : > { %383 = vst.msk [vmem:[#allocation2 + $0x198] sm:$0xff] %vm330_vm0, %v3921_v0  ;;  %384 = vst.msk [vmem:[#allocation2 + $0x1a0] sm:$0xff] %vm330_vm0, %v3921_v0  ;;  %468 = vrot.lane.b32.xlu1 %v393_v7, %s3922_s26  ;;  %466 = vrot.lane.b32.xlu0 %v392_v8, %s3922_s26  ;;  %v413_v27 = vld [vmem:[%s4036_s25 + $0xd8] sm:$0xff]  ;;  %v412_v28 = vld [vmem:[%s4036_s25 + $0xd0] sm:$0xff] }
  0x21   : > { %340 = vst.msk [vmem:[#allocation2 + $0x40] sm:$0x3] %vm333_vm1, %v3921_v0  ;;  %334 = vst.msk [vmem:[#allocation2 + $0x10] sm:$0x3] %vm333_vm1, %v3921_v0  ;;  %v415_v29 = vld [vmem:[%s4036_s25 + $0xe8] sm:$0xff]  ;;  %v414_v30 = vld [vmem:[%s4036_s25 + $0xe0] sm:$0xff] }
  0x22   : > { %337 = vst.msk [vmem:[#allocation2 + $0x28] sm:$0x3] %vm333_vm1, %v3921_v0  ;;  %343 = vst.msk [vmem:[#allocation2 + $0x58] sm:$0x3] %vm333_vm1, %v3921_v0  ;;  %v417_v32 = vld [vmem:[%s4036_s25 + $0xf8] sm:$0xff]  ;;  %v416_v33 = vld [vmem:[%s4036_s25 + $0xf0] sm:$0xff] }
  0x23   : > { %346 = vst.msk [vmem:[#allocation2 + $0x70] sm:$0x3] %vm333_vm1, %v3921_v0  ;;  %349 = vst.msk [vmem:[#allocation2 + $0x88] sm:$0x3] %vm333_vm1, %v3921_v0  ;;  %v419_v35 = vld [vmem:[%s308_s30 + $0x8] sm:$0xff]  ;;  %v418_v36 = vld [vmem:[%s308_s30] sm:$0xff] }
  0x24   : > { %352 = vst.msk [vmem:[#allocation2 + $0xa0] sm:$0x3] %vm333_vm1, %v3921_v0  ;;  %355 = vst.msk [vmem:[#allocation2 + $0xb8] sm:$0x3] %vm333_vm1, %v3921_v0  ;;  %472 = vrot.lane.b32.xlu1 %v395_v9, %s3922_s26  ;;  %470 = vrot.lane.b32.xlu0 %v394_v10, %s3922_s26  ;;  %v421_v40 = vld [vmem:[%s308_s30 + $0x18] sm:$0xff]  ;;  %v420_v41 = vld [vmem:[%s308_s30 + $0x10] sm:$0xff]  ;;  %s7024_s30 = scalar_lea.vmem %s7439_s3, %s3753_s22 }
  0x25   : > { %358 = vst.msk [vmem:[#allocation2 + $0xd0] sm:$0x3] %vm333_vm1, %v3921_v0  ;;  %361 = vst.msk [vmem:[#allocation2 + $0xe8] sm:$0x3] %vm333_vm1, %v3921_v0 }
  0x26   : > { %364 = vst.msk [vmem:[#allocation2 + $0x100] sm:$0x3] %vm333_vm1, %v3921_v0  ;;  %367 = vst.msk [vmem:[#allocation2 + $0x118] sm:$0x3] %vm333_vm1, %v3921_v0 }
  0x27   : > { %370 = vst.msk [vmem:[#allocation2 + $0x130] sm:$0x3] %vm333_vm1, %v3921_v0  ;;  %373 = vst.msk [vmem:[#allocation2 + $0x148] sm:$0x3] %vm333_vm1, %v3921_v0 }
  0x28   : > { %376 = vst.msk [vmem:[#allocation2 + $0x160] sm:$0x3] %vm333_vm1, %v3921_v0  ;;  %379 = vst.msk [vmem:[#allocation2 + $0x178] sm:$0x3] %vm333_vm1, %v3921_v0  ;;  %476 = vrot.lane.b32.xlu1 %v397_v11, %s3922_s26  ;;  %474 = vrot.lane.b32.xlu0 %v396_v12, %s3922_s26 }
  0x29   : > { %382 = vst.msk [vmem:[#allocation2 + $0x190] sm:$0x3] %vm333_vm1, %v3921_v0  ;;  %385 = vst.msk [vmem:[#allocation2 + $0x1a8] sm:$0x3] %vm333_vm1, %v3921_v0 }
  0x2a   : > { %7534 = vst [vmem:[#allocation3_spill] sm:$0xff] %v4119_v39 }
  0x2c   : > { %480 = vrot.lane.b32.xlu1 %v399_v13, %s3922_s26  ;;  %478 = vrot.lane.b32.xlu0 %v398_v14, %s3922_s26 }
  0x30   : > { %484 = vrot.lane.b32.xlu1 %v401_v15, %s3922_s26  ;;  %482 = vrot.lane.b32.xlu0 %v400_v16, %s3922_s26 }
  0x34   : > { %488 = vrot.lane.b32.xlu1 %v403_v17, %s3922_s26  ;;  %486 = vrot.lane.b32.xlu0 %v402_v18, %s3922_s26 }
  0x38   : > { %492 = vrot.lane.b32.xlu1 %v405_v19, %s3922_s26  ;;  %490 = vrot.lane.b32.xlu0 %v404_v20, %s3922_s26 }
  0x3c   : > { %496 = vrot.lane.b32.xlu1 %v407_v21, %s3922_s26  ;;  %494 = vrot.lane.b32.xlu0 %v406_v22, %s3922_s26 }
  0x40   : > { %500 = vrot.lane.b32.xlu1 %v409_v23, %s3922_s26  ;;  %498 = vrot.lane.b32.xlu0 %v408_v24, %s3922_s26 }
  0x44   : > { %504 = vrot.lane.b32.xlu1 %v411_v25, %s3922_s26  ;;  %502 = vrot.lane.b32.xlu0 %v410_v26, %s3922_s26 }
  0x48   : > { %508 = vrot.lane.b32.xlu1 %v413_v27, %s3922_s26  ;;  %506 = vrot.lane.b32.xlu0 %v412_v28, %s3922_s26 }
  0x4c   : > { %512 = vrot.lane.b32.xlu1 %v415_v29, %s3922_s26  ;;  %510 = vrot.lane.b32.xlu0 %v414_v30, %s3922_s26 }
  0x50   : > { %516 = vrot.lane.b32.xlu1 %v417_v32, %s3922_s26  ;;  %514 = vrot.lane.b32.xlu0 %v416_v33, %s3922_s26 }
  0x54   : > { %588 = vrot.lane.b32.xlu1 %v419_v35, %s3922_s26  ;;  %586 = vrot.lane.b32.xlu0 %v418_v36, %s3922_s26 }
  0x58   : > { %598 = vrot.lane.b32.xlu1 %v421_v40, %s3922_s26  ;;  %596 = vrot.lane.b32.xlu0 %v420_v41, %s3922_s26 }
  0x5c   : > { %862 = vrot.lane.b32.xlu1 %v860_v43, %s3922_s26  ;;  %822 = vrot.lane.b32.xlu0 %v820_v44, %s3922_s26 }
  0x60   : > { %934 = vrot.lane.b32.xlu0 %v932_v47, %s3922_s26 }
  0x86   : > { %v459_v48 = vpop.permute.xlu1 %458  ;;  %v455_v49 = vpop.permute.xlu0 %454 }
  0x87   : > { %554 = vst.msk [vmem:[#allocation2 + $0x31] sm:$0xff] %vm551_vm2, %v459_v48  ;;  %552 = vst.msk [vmem:[#allocation2 + $0x19] sm:$0xff] %vm551_vm2, %v455_v49 }
  0x8a   : > { %v461_v50 = vpop.permute.xlu1 %460  ;;  %v457_v51 = vpop.permute.xlu0 %456 }
  0x8b   : > { %555 = vst.msk [vmem:[#allocation2 + $0x39] sm:$0xff] %vm551_vm2, %v461_v50  ;;  %553 = vst.msk [vmem:[#allocation2 + $0x21] sm:$0xff] %vm551_vm2, %v457_v51 }
  0x8e   : > { %v465_v52 = vpop.permute.xlu1 %464  ;;  %v463_v53 = vpop.permute.xlu0 %462  ;;  %v4181_v20 = vld [vmem:[#allocation2 + $0x18] sm:$0xff]  ;;  %v4203_v31 = vld [vmem:[#allocation2 + $0x30] sm:$0xff] }
  0x8f   : > { %557 = vst.msk [vmem:[#allocation2 + $0x51] sm:$0xff] %vm551_vm2, %v465_v52  ;;  %556 = vst.msk [vmem:[#allocation2 + $0x49] sm:$0xff] %vm551_vm2, %v463_v53 }
  0x92   : > { %v469_v54 = vpop.permute.xlu1 %468  ;;  %v467_v55 = vpop.permute.xlu0 %466  ;;  %v4189_v24 = vld [vmem:[#allocation2 + $0x20] sm:$0xff]  ;;  %v4201_v30 = vld [vmem:[#allocation2 + $0x38] sm:$0xff] }
  0x93   : > { %559 = vst.msk [vmem:[#allocation2 + $0x69] sm:$0xff] %vm551_vm2, %v469_v54  ;;  %558 = vst.msk [vmem:[#allocation2 + $0x61] sm:$0xff] %vm551_vm2, %v467_v55 }
  0x96   : > { %v473_v56 = vpop.permute.xlu1 %472  ;;  %v471_v57 = vpop.permute.xlu0 %470  ;;  %v4219_v48 = vld [vmem:[#allocation2 + $0x50] sm:$0xff]  ;;  %v4221_v49 = vld [vmem:[#allocation2 + $0x48] sm:$0xff] }
  0x97   : > { %561 = vst.msk [vmem:[#allocation2 + $0x81] sm:$0xff] %vm551_vm2, %v473_v56  ;;  %560 = vst.msk [vmem:[#allocation2 + $0x79] sm:$0xff] %vm551_vm2, %v471_v57 }
  0x9a   : > { %v477_v58 = vpop.permute.xlu1 %476  ;;  %v475_v59 = vpop.permute.xlu0 %474 }
  0x9b   : > { %563 = vst.msk [vmem:[#allocation2 + $0x99] sm:$0xff] %vm551_vm2, %v477_v58  ;;  %562 = vst.msk [vmem:[#allocation2 + $0x91] sm:$0xff] %vm551_vm2, %v475_v59 }
  0x9e   : > { %v481_v60 = vpop.permute.xlu1 %480  ;;  %v479_v61 = vpop.permute.xlu0 %478 }
  0x9f   : > { %565 = vst.msk [vmem:[#allocation2 + $0xb1] sm:$0xff] %vm551_vm2, %v481_v60  ;;  %564 = vst.msk [vmem:[#allocation2 + $0xa9] sm:$0xff] %vm551_vm2, %v479_v61  ;;  %v4237_v60 = vld [vmem:[#allocation2 + $0x68] sm:$0xff]  ;;  %v4239_v61 = vld [vmem:[#allocation2 + $0x60] sm:$0xff] }
  0xa2   : > { %v485_v62 = vpop.permute.xlu1 %484  ;;  %v483_v63 = vpop.permute.xlu0 %482 }
  0xa3   : > { %567 = vst.msk [vmem:[#allocation2 + $0xc9] sm:$0xff] %vm551_vm2, %v485_v62  ;;  %566 = vst.msk [vmem:[#allocation2 + $0xc1] sm:$0xff] %vm551_vm2, %v483_v63 }
  0xa6   : > { %v489_v0 = vpop.permute.xlu1 %488  ;;  %v487_v1 = vpop.permute.xlu0 %486 }
  0xa7   : > { %569 = vst.msk [vmem:[#allocation2 + $0xe1] sm:$0xff] %vm551_vm2, %v489_v0  ;;  %568 = vst.msk [vmem:[#allocation2 + $0xd9] sm:$0xff] %vm551_vm2, %v487_v1 }
  0xaa   : > { %v493_v2 = vpop.permute.xlu1 %492  ;;  %v491_v3 = vpop.permute.xlu0 %490 }
  0xab   : > { %571 = vst.msk [vmem:[#allocation2 + $0xf9] sm:$0xff] %vm551_vm2, %v493_v2  ;;  %570 = vst.msk [vmem:[#allocation2 + $0xf1] sm:$0xff] %vm551_vm2, %v491_v3 }
  0xae   : > { %v497_v4 = vpop.permute.xlu1 %496  ;;  %v495_v5 = vpop.permute.xlu0 %494 }
  0xaf   : > { %573 = vst.msk [vmem:[#allocation2 + $0x111] sm:$0xff] %vm551_vm2, %v497_v4  ;;  %572 = vst.msk [vmem:[#allocation2 + $0x109] sm:$0xff] %vm551_vm2, %v495_v5 }
  0xb2   : > { %v501_v6 = vpop.permute.xlu1 %500  ;;  %v499_v7 = vpop.permute.xlu0 %498 }
  0xb3   : > { %575 = vst.msk [vmem:[#allocation2 + $0x129] sm:$0xff] %vm551_vm2, %v501_v6  ;;  %574 = vst.msk [vmem:[#allocation2 + $0x121] sm:$0xff] %vm551_vm2, %v499_v7 }
  0xb6   : > { %v505_v8 = vpop.permute.xlu1 %504  ;;  %v503_v9 = vpop.permute.xlu0 %502 }
  0xb7   : > { %577 = vst.msk [vmem:[#allocation2 + $0x141] sm:$0xff] %vm551_vm2, %v505_v8  ;;  %576 = vst.msk [vmem:[#allocation2 + $0x139] sm:$0xff] %vm551_vm2, %v503_v9  ;;  %v4255_v8 = vld [vmem:[#allocation2 + $0x80] sm:$0xff]  ;;  %v4257_v9 = vld [vmem:[#allocation2 + $0x78] sm:$0xff] }
  0xba   : > { %v509_v10 = vpop.permute.xlu1 %508  ;;  %v507_v11 = vpop.permute.xlu0 %506 }
  0xbb   : > { %579 = vst.msk [vmem:[#allocation2 + $0x159] sm:$0xff] %vm551_vm2, %v509_v10  ;;  %578 = vst.msk [vmem:[#allocation2 + $0x151] sm:$0xff] %vm551_vm2, %v507_v11 }
  0xbe   : > { %v513_v12 = vpop.permute.xlu1 %512  ;;  %v511_v13 = vpop.permute.xlu0 %510 }
  0xbf   : > { %581 = vst.msk [vmem:[#allocation2 + $0x171] sm:$0xff] %vm551_vm2, %v513_v12  ;;  %580 = vst.msk [vmem:[#allocation2 + $0x169] sm:$0xff] %vm551_vm2, %v511_v13 }
  0xc2   : > { %v517_v14 = vpop.permute.xlu1 %516  ;;  %v515_v15 = vpop.permute.xlu0 %514 }
  0xc3   : > { %583 = vst.msk [vmem:[#allocation2 + $0x189] sm:$0xff] %vm551_vm2, %v517_v14  ;;  %582 = vst.msk [vmem:[#allocation2 + $0x181] sm:$0xff] %vm551_vm2, %v515_v15 }
  0xc6   : > { %v589_v16 = vpop.permute.xlu1 %588  ;;  %v587_v17 = vpop.permute.xlu0 %586 }
  0xc7   : > { %593 = vst.msk [vmem:[#allocation2 + $0x9] sm:$0xff] %vm551_vm2, %v589_v16  ;;  %592 = vst.msk [vmem:[#allocation2 + $0x1] sm:$0xff] %vm551_vm2, %v587_v17 }
  0xca   : > { %v599_v18 = vpop.permute.xlu1 %598  ;;  %v597_v19 = vpop.permute.xlu0 %596 }
  0xcb   : > { %604 = vst.msk [vmem:[#allocation2 + $0x1a1] sm:$0xff] %vm551_vm2, %v599_v18  ;;  %603 = vst.msk [vmem:[#allocation2 + $0x199] sm:$0xff] %vm551_vm2, %v597_v19 }
  0xce   : > { %v4183_v21 = vpop.permute.xlu1 %862  ;;  %v4185_v22 = vpop.permute.xlu0 %822  ;;  %v4187_v23 = vld [vmem:[#allocation2 + $0x8] sm:$0xff]  ;;  %v4191_v25 = vld [vmem:[#allocation2] sm:$0xff] }
  0xcf   : > { %v826_v26 = vmul.f32 %v4185_v22, %v4187_v23  ;;  %v866_v27 = vmul.f32 %v4183_v21, %v4189_v24  ;;  %v825_v28 = vmul.f32 %v4185_v22, %v4191_v25  ;;  %v865_v29 = vmul.f32 %v4183_v21, %v4181_v20 }
  0xd0   : > { %v828_v33 = vmul.f32 %v4185_v22, %v4189_v24  ;;  %v868_v35 = vmul.f32 %v4183_v21, %v4201_v30  ;;  %v827_v36 = vmul.f32 %v4185_v22, %v4181_v20  ;;  %v867_v40 = vmul.f32 %v4183_v21, %v4203_v31 }
  0xd1   : > { %v898_v41 = vadd.f32 %v866_v27, %v826_v26  ;;  %v897_v44 = vadd.f32 %v865_v29, %v825_v28  ;;  %v830_v55 = vmul.f32 %v4185_v22, %v4201_v30  ;;  %v870_v56 = vmul.f32 %v4183_v21, %v4219_v48  ;;  %v4273_v26 = vld [vmem:[#allocation2 + $0x98] sm:$0xff]  ;;  %v4275_v27 = vld [vmem:[#allocation2 + $0x90] sm:$0xff] }
  0xd2   : > { %v4205_v32 = vpop.permute.xlu0 %934  ;;  %v900_v54 = vadd.f32 %v868_v35, %v828_v33  ;;  %v899_v57 = vadd.f32 %v867_v40, %v827_v36  ;;  %v829_v58 = vmul.f32 %v4185_v22, %v4203_v31  ;;  %v869_v59 = vmul.f32 %v4183_v21, %v4221_v49  ;;  %v4461_v39 = vld [vmem:[#allocation2 + $0x1a0] sm:$0xff] }
  0xd3   : > { %v938_v43 = vmul.f32 %v4205_v32, %v4201_v30  ;;  %v937_v47 = vmul.f32 %v4205_v32, %v4203_v31  ;;  %v940_v52 = vmul.f32 %v4205_v32, %v4219_v48  ;;  %v939_v53 = vmul.f32 %v4205_v32, %v4221_v49 }
  0xd4   : > { %v942_v0 = vmul.f32 %v4205_v32, %v4237_v60  ;;  %v941_v1 = vmul.f32 %v4205_v32, %v4239_v61  ;;  %v902_v2 = vadd.f32 %v870_v56, %v830_v55  ;;  %v832_v3 = vmul.f32 %v4185_v22, %v4219_v48 }
  0xd5   : > { %v970_v50 = vadd.f32 %v938_v43, %v898_v41  ;;  %v969_v51 = vadd.f32 %v937_v47, %v897_v44  ;;  %v972_v62 = vadd.f32 %v940_v52, %v900_v54  ;;  %v971_v63 = vadd.f32 %v939_v53, %v899_v57 }
  0xd6   : > { %v872_v4 = vmul.f32 %v4183_v21, %v4237_v60  ;;  %v901_v5 = vadd.f32 %v869_v59, %v829_v58  ;;  %v831_v6 = vmul.f32 %v4185_v22, %v4221_v49  ;;  %v871_v7 = vmul.f32 %v4183_v21, %v4239_v61 }
  0xd7   : > { %1035 = vrot.lane.b32.xlu0 %v970_v50, %s3923_s12  ;;  %1033 = vrot.lane.b32.xlu1 %v969_v51, %s3923_s12  ;;  %v974_v10 = vadd.f32 %v942_v0, %v902_v2  ;;  %v944_v12 = vmul.f32 %v4205_v32, %v4255_v8  ;;  %v943_v13 = vmul.f32 %v4205_v32, %v4257_v9  ;;  %v4291_v50 = vld [vmem:[#allocation2 + $0xb0] sm:$0xff]  ;;  %v4293_v51 = vld [vmem:[#allocation2 + $0xa8] sm:$0xff] }
  0xd8   : > { %v973_v11 = vadd.f32 %v941_v1, %v901_v5  ;;  %v904_v14 = vadd.f32 %v872_v4, %v832_v3  ;;  %v834_v15 = vmul.f32 %v4185_v22, %v4237_v60  ;;  %v874_v16 = vmul.f32 %v4183_v21, %v4255_v8  ;;  %v4309_v0 = vld [vmem:[#allocation2 + $0xc8] sm:$0xff]  ;;  %v4311_v1 = vld [vmem:[#allocation2 + $0xc0] sm:$0xff] }
  0xd9   : > { %v903_v17 = vadd.f32 %v871_v7, %v831_v6  ;;  %v833_v18 = vmul.f32 %v4185_v22, %v4239_v61  ;;  %v873_v19 = vmul.f32 %v4183_v21, %v4257_v9  ;;  %v946_v33 = vmul.f32 %v4205_v32, %v4273_v26 }
  0xda   : > { %v976_v28 = vadd.f32 %v944_v12, %v904_v14  ;;  %v945_v35 = vmul.f32 %v4205_v32, %v4275_v27  ;;  %v906_v36 = vadd.f32 %v874_v16, %v834_v15  ;;  %v836_v40 = vmul.f32 %v4185_v22, %v4255_v8  ;;  %v4327_v14 = vld [vmem:[#allocation2 + $0xe0] sm:$0xff]  ;;  %v4329_v15 = vld [vmem:[#allocation2 + $0xd8] sm:$0xff] }
  0xdb   : > { %1039 = vrot.lane.b32.xlu0 %v972_v62, %s3923_s12  ;;  %1037 = vrot.lane.b32.xlu1 %v971_v63, %s3923_s12  ;;  %v975_v29 = vadd.f32 %v943_v13, %v903_v17  ;;  %v876_v41 = vmul.f32 %v4183_v21, %v4273_v26  ;;  %v905_v43 = vadd.f32 %v873_v19, %v833_v18 }
  0xdc   : > { %v835_v44 = vmul.f32 %v4185_v22, %v4257_v9  ;;  %v875_v47 = vmul.f32 %v4183_v21, %v4275_v27  ;;  %v978_v52 = vadd.f32 %v946_v33, %v906_v36  ;;  %v948_v54 = vmul.f32 %v4205_v32, %v4291_v50 }
  0xdd   : > { %v977_v53 = vadd.f32 %v945_v35, %v905_v43  ;;  %v947_v55 = vmul.f32 %v4205_v32, %v4293_v51  ;;  %v908_v56 = vadd.f32 %v876_v41, %v836_v40  ;;  %v838_v57 = vmul.f32 %v4185_v22, %v4273_v26  ;;  %v4345_v41 = vld [vmem:[#allocation2 + $0xf8] sm:$0xff]  ;;  %v4347_v43 = vld [vmem:[#allocation2 + $0xf0] sm:$0xff] }
  0xde   : > { %v878_v58 = vmul.f32 %v4183_v21, %v4291_v50  ;;  %v907_v59 = vadd.f32 %v875_v47, %v835_v44  ;;  %v837_v62 = vmul.f32 %v4185_v22, %v4275_v27  ;;  %v877_v63 = vmul.f32 %v4183_v21, %v4293_v51 }
  0xdf   : > { %1043 = vrot.lane.b32.xlu0 %v974_v10, %s3923_s12  ;;  %1041 = vrot.lane.b32.xlu1 %v973_v11, %s3923_s12  ;;  %v980_v2 = vadd.f32 %v948_v54, %v908_v56  ;;  %v950_v4 = vmul.f32 %v4205_v32, %v4309_v0  ;;  %v949_v5 = vmul.f32 %v4205_v32, %v4311_v1 }
  0xe0   : > { %v979_v3 = vadd.f32 %v947_v55, %v907_v59  ;;  %v910_v6 = vadd.f32 %v878_v58, %v838_v57  ;;  %v840_v7 = vmul.f32 %v4185_v22, %v4291_v50  ;;  %v880_v10 = vmul.f32 %v4183_v21, %v4309_v0 }
  0xe1   : > { %v909_v11 = vadd.f32 %v877_v63, %v837_v62  ;;  %v839_v12 = vmul.f32 %v4185_v22, %v4293_v51  ;;  %v879_v13 = vmul.f32 %v4183_v21, %v4311_v1  ;;  %v952_v18 = vmul.f32 %v4205_v32, %v4327_v14  ;;  %v4363_v62 = vld [vmem:[#allocation2 + $0x110] sm:$0xff]  ;;  %v4365_v63 = vld [vmem:[#allocation2 + $0x108] sm:$0xff] }
  0xe2   : > { %v982_v16 = vadd.f32 %v950_v4, %v910_v6  ;;  %v951_v19 = vmul.f32 %v4205_v32, %v4329_v15  ;;  %v882_v33 = vmul.f32 %v4183_v21, %v4327_v14  ;;  %v841_v36 = vmul.f32 %v4185_v22, %v4311_v1 }
  0xe3   : > { %1047 = vrot.lane.b32.xlu0 %v976_v28, %s3923_s12  ;;  %1045 = vrot.lane.b32.xlu1 %v975_v29, %s3923_s12  ;;  %v981_v17 = vadd.f32 %v949_v5, %v909_v11  ;;  %v912_v28 = vadd.f32 %v880_v10, %v840_v7  ;;  %v842_v29 = vmul.f32 %v4185_v22, %v4309_v0 }
  0xe4   : > { %v911_v35 = vadd.f32 %v879_v13, %v839_v12  ;;  %v881_v40 = vmul.f32 %v4183_v21, %v4329_v15  ;;  %v844_v55 = vmul.f32 %v4185_v22, %v4327_v14  ;;  %v884_v56 = vmul.f32 %v4183_v21, %v4345_v41 }
  0xe5   : > { %v984_v44 = vadd.f32 %v952_v18, %v912_v28  ;;  %v914_v54 = vadd.f32 %v882_v33, %v842_v29  ;;  %v843_v58 = vmul.f32 %v4185_v22, %v4329_v15  ;;  %v883_v59 = vmul.f32 %v4183_v21, %v4347_v43 }
  0xe6   : > { %v983_v47 = vadd.f32 %v951_v19, %v911_v35  ;;  %v913_v57 = vadd.f32 %v881_v40, %v841_v36  ;;  %v956_v4 = vmul.f32 %v4205_v32, %v4363_v62  ;;  %v955_v5 = vmul.f32 %v4205_v32, %v4365_v63 }
  0xe7   : > { %1051 = vrot.lane.b32.xlu0 %v978_v52, %s3923_s12  ;;  %1049 = vrot.lane.b32.xlu1 %v977_v53, %s3923_s12  ;;  %v954_v52 = vmul.f32 %v4205_v32, %v4345_v41  ;;  %v953_v53 = vmul.f32 %v4205_v32, %v4347_v43  ;;  %v916_v6 = vadd.f32 %v884_v56, %v844_v55 }
  0xe8   : > { %v846_v7 = vmul.f32 %v4185_v22, %v4345_v41  ;;  %v886_v10 = vmul.f32 %v4183_v21, %v4363_v62  ;;  %v915_v11 = vadd.f32 %v883_v59, %v843_v58  ;;  %v845_v12 = vmul.f32 %v4185_v22, %v4347_v43 }
  0xe9   : > { %v885_v13 = vmul.f32 %v4183_v21, %v4365_v63  ;;  %v988_v18 = vadd.f32 %v956_v4, %v916_v6  ;;  %v848_v35 = vmul.f32 %v4185_v22, %v4363_v62  ;;  %v4417_v6 = vld [vmem:[#allocation2 + $0x158] sm:$0xff] }
  0xea   : > { %v987_v19 = vadd.f32 %v955_v5, %v915_v11  ;;  %v918_v33 = vadd.f32 %v886_v10, %v846_v7  ;;  %v4419_v7 = vld [vmem:[#allocation2 + $0x150] sm:$0xff] }
  0xeb   : > { %1055 = vrot.lane.b32.xlu0 %v980_v2, %s3923_s12  ;;  %1053 = vrot.lane.b32.xlu1 %v979_v3, %s3923_s12  ;;  %v986_v2 = vadd.f32 %v954_v52, %v914_v54  ;;  %v985_v3 = vadd.f32 %v953_v53, %v913_v57  ;;  %v917_v40 = vadd.f32 %v885_v13, %v845_v12  ;;  %v4399_v52 = vld [vmem:[#allocation2 + $0x140] sm:$0xff]  ;;  %v4401_v53 = vld [vmem:[#allocation2 + $0x138] sm:$0xff] }
  0xec   : > { %v960_v56 = vmul.f32 %v4205_v32, %v4399_v52  ;;  %v959_v57 = vmul.f32 %v4205_v32, %v4401_v53  ;;  %v889_v5 = vmul.f32 %v4183_v21, %v4401_v53  ;;  %v962_v12 = vmul.f32 %v4205_v32, %v4417_v6 }
  0xed   : > { %v961_v13 = vmul.f32 %v4205_v32, %v4419_v7 }
  0xef   : > { %1059 = vrot.lane.b32.xlu0 %v982_v16, %s3923_s12  ;;  %1057 = vrot.lane.b32.xlu1 %v981_v17, %s3923_s12  ;;  %v4381_v16 = vld [vmem:[#allocation2 + $0x128] sm:$0xff]  ;;  %v4383_v17 = vld [vmem:[#allocation2 + $0x120] sm:$0xff] }
  0xf0   : > { %v958_v28 = vmul.f32 %v4205_v32, %v4381_v16  ;;  %v957_v29 = vmul.f32 %v4205_v32, %v4383_v17  ;;  %v888_v36 = vmul.f32 %v4183_v21, %v4381_v16  ;;  %v850_v59 = vmul.f32 %v4185_v22, %v4381_v16 }
  0xf1   : > { %v849_v4 = vmul.f32 %v4185_v22, %v4383_v17 }
  0xf2   : > { %v990_v54 = vadd.f32 %v958_v28, %v918_v33  ;;  %v989_v55 = vadd.f32 %v957_v29, %v917_v40  ;;  %v920_v58 = vadd.f32 %v888_v36, %v848_v35  ;;  %v892_v28 = vmul.f32 %v4183_v21, %v4417_v6  ;;  %v4435_v36 = vld [vmem:[#allocation2 + $0x170] sm:$0xff]  ;;  %v4437_v40 = vld [vmem:[#allocation2 + $0x168] sm:$0xff] }
  0xf3   : > { %1063 = vrot.lane.b32.xlu0 %v984_v44, %s3923_s12  ;;  %1061 = vrot.lane.b32.xlu1 %v983_v47, %s3923_s12  ;;  %v847_v44 = vmul.f32 %v4185_v22, %v4365_v63  ;;  %v887_v47 = vmul.f32 %v4183_v21, %v4383_v17  ;;  %v921_v29 = vadd.f32 %v889_v5, %v849_v4  ;;  %v4453_v4 = vld [vmem:[#allocation2 + $0x188] sm:$0xff]  ;;  %v4455_v5 = vld [vmem:[#allocation2 + $0x180] sm:$0xff] }
  0xf4   : > { %v992_v10 = vadd.f32 %v960_v56, %v920_v58  ;;  %v851_v33 = vmul.f32 %v4185_v22, %v4401_v53  ;;  %v891_v35 = vmul.f32 %v4183_v21, %v4419_v7  ;;  %v854_v56 = vmul.f32 %v4185_v22, %v4417_v6 }
  0xf5   : > { %v853_v58 = vmul.f32 %v4185_v22, %v4419_v7 }
  0xf7   : > { %1067 = vrot.lane.b32.xlu0 %v986_v2, %s3923_s12  ;;  %1065 = vrot.lane.b32.xlu1 %v985_v3, %s3923_s12  ;;  %v890_v2 = vmul.f32 %v4183_v21, %v4399_v52  ;;  %v919_v3 = vadd.f32 %v887_v47, %v847_v44  ;;  %v993_v47 = vadd.f32 %v961_v13, %v921_v29 }
  0xf8   : > { %v965_v13 = vmul.f32 %v4205_v32, %v4455_v5 }
  0xf9   : > { %v991_v11 = vadd.f32 %v959_v57, %v919_v3  ;;  %v894_v57 = vmul.f32 %v4183_v21, %v4435_v36  ;;  %v923_v3 = vadd.f32 %v891_v35, %v851_v33  ;;  %v896_v33 = vmul.f32 %v4183_v21, %v4453_v4 }
  0xfa   : > { %v855_v35 = vmul.f32 %v4185_v22, %v4437_v40 }
  0xfb   : > { %1071 = vrot.lane.b32.xlu0 %v988_v18, %s3923_s12  ;;  %1069 = vrot.lane.b32.xlu1 %v987_v19, %s3923_s12  ;;  %v922_v18 = vadd.f32 %v890_v2, %v850_v59  ;;  %v852_v19 = vmul.f32 %v4185_v22, %v4399_v52  ;;  %v893_v59 = vmul.f32 %v4183_v21, %v4437_v40 }
  0xfd   : > { %v994_v44 = vadd.f32 %v962_v12, %v922_v18  ;;  %v924_v2 = vadd.f32 %v892_v28, %v852_v19  ;;  %v966_v12 = vmul.f32 %v4205_v32, %v4453_v4  ;;  %v926_v18 = vadd.f32 %v894_v57, %v854_v56  ;;  %v4465_v28 = vld [vmem:[#allocation2 + $0x198] sm:$0xff] }
  0xfe   : > { %v925_v29 = vadd.f32 %v893_v59, %v853_v58  ;;  %v856_v19 = vmul.f32 %v4185_v22, %v4435_v36  ;;  %v967_v56 = vmul.f32 %v4205_v32, %v4465_v28  ;;  %v1164_v22 = vrot.slane %v4124_v42, %v4116_v38 }
  0xff   : > { %1075 = vrot.lane.b32.xlu0 %v990_v54, %s3923_s12  ;;  %1073 = vrot.lane.b32.xlu1 %v989_v55, %s3923_s12  ;;  %v964_v54 = vmul.f32 %v4205_v32, %v4435_v36  ;;  %v963_v55 = vmul.f32 %v4205_v32, %v4437_v40 }
 0x100   : > { %v928_v57 = vadd.f32 %v896_v33, %v856_v19 }
 0x103   : > { %1079 = vrot.lane.b32.xlu0 %v992_v10, %s3923_s12  ;;  %1077 = vrot.lane.b32.xlu1 %v991_v11, %s3923_s12  ;;  %v996_v10 = vadd.f32 %v964_v54, %v924_v2  ;;  %v995_v11 = vadd.f32 %v963_v55, %v923_v3  ;;  %v997_v54 = vadd.f32 %v965_v13, %v925_v29 }
 0x104   : > { %v968_v55 = vmul.f32 %v4205_v32, %v4461_v39  ;;  %v4488_v32 = vsub.s32 4, %v4106_v34 }
 0x106   : > { %v1000_v59 = vadd.f32 %v968_v55, %v928_v57  ;;  %v1276_v3 = vrot.slane %v4138_v46, %v4488_v32 }
 0x107   : > { %1083 = vrot.lane.b32.xlu0 %v994_v44, %s3923_s12  ;;  %1081 = vrot.lane.b32.xlu1 %v993_v47, %s3923_s12  ;;  %v895_v44 = vmul.f32 %v4183_v21, %v4455_v5  ;;  %v998_v47 = vadd.f32 %v966_v12, %v926_v18  ;;  %v1204_v21 = vrot.slane %v4113_v37, %v4133_v45 }
 0x109   : > { %v927_v58 = vadd.f32 %v895_v44, %v855_v35 }
 0x10b   : > { %1087 = vrot.lane.b32.xlu0 %v996_v10, %s3923_s12  ;;  %1085 = vrot.lane.b32.xlu1 %v995_v11, %s3923_s12  ;;  %v999_v2 = vadd.f32 %v967_v56, %v927_v58 }
 0x10f   : > { %1091 = vrot.lane.b32.xlu0 %v998_v47, %s3923_s12  ;;  %1089 = vrot.lane.b32.xlu1 %v997_v54, %s3923_s12 }
 0x113   : > { %1095 = vrot.lane.b32.xlu0 %v1000_v59, %s3923_s12  ;;  %1093 = vrot.lane.b32.xlu1 %v999_v2, %s3923_s12 }
 0x117   : > { %1206 = vrot.lane.b32.xlu0 %v1204_v21, %s3924_s13  ;;  %1166 = vrot.lane.b32.xlu1 %v1164_v22, %s3924_s13 }
 0x11b   : > { %1278 = vrot.lane.b32.xlu1 %v1276_v3, %s3924_s13 }
 0x149   : > { %v4495_v10 = vpop.permute.xlu0 %1035  ;;  %v4497_v11 = vpop.permute.xlu1 %1033 }
 0x14a   : > { %7535 = vst [vmem:[#allocation4_spill] sm:$0xff] %v4495_v10  ;;  %7536 = vst [vmem:[#allocation5_spill] sm:$0xff] %v4497_v11 }
 0x14d   : > { %v4499_v37 = vpop.permute.xlu0 %1039  ;;  %v4501_v42 = vpop.permute.xlu1 %1037 }
 0x14e   : > { %7537 = vst [vmem:[#allocation6_spill] sm:$0xff] %v4499_v37  ;;  %7538 = vst [vmem:[#allocation7_spill] sm:$0xff] %v4501_v42 }
 0x151   : > { %v4503_v12 = vpop.permute.xlu0 %1043  ;;  %v4505_v13 = vpop.permute.xlu1 %1041 }
 0x152   : > { %7539 = vst [vmem:[#allocation8_spill] sm:$0xff] %v4503_v12  ;;  %7540 = vst [vmem:[#allocation9_spill] sm:$0xff] %v4505_v13 }
 0x155   : > { %v4507_v18 = vpop.permute.xlu0 %1047  ;;  %v4509_v29 = vpop.permute.xlu1 %1045 }
 0x156   : > { %7541 = vst [vmem:[#allocation10_spill] sm:$0xff] %v4507_v18  ;;  %7542 = vst [vmem:[#allocation11_spill] sm:$0xff] %v4509_v29 }
 0x159   : > { %v4511_v19 = vpop.permute.xlu0 %1051  ;;  %v4513_v46 = vpop.permute.xlu1 %1049 }
 0x15a   : > { %7543 = vst [vmem:[#allocation12_spill] sm:$0xff] %v4511_v19  ;;  %7544 = vst [vmem:[#allocation13_spill] sm:$0xff] %v4513_v46 }
 0x15d   : > { %v4515_v33 = vpop.permute.xlu0 %1055  ;;  %v4517_v35 = vpop.permute.xlu1 %1053 }
 0x15e   : > { %7545 = vst [vmem:[#allocation14_spill] sm:$0xff] %v4515_v33  ;;  %7546 = vst [vmem:[#allocation15_spill] sm:$0xff] %v4517_v35 }
 0x161   : > { %v4519_v44 = vpop.permute.xlu0 %1059  ;;  %v4521_v47 = vpop.permute.xlu1 %1057 }
 0x162   : > { %7547 = vst [vmem:[#allocation16_spill] sm:$0xff] %v4519_v44  ;;  %7548 = vst [vmem:[#allocation17_spill] sm:$0xff] %v4521_v47 }
 0x165   : > { %v4523_v54 = vpop.permute.xlu0 %1063  ;;  %v4525_v55 = vpop.permute.xlu1 %1061 }
 0x166   : > { %7549 = vst [vmem:[#allocation18_spill] sm:$0xff] %v4523_v54  ;;  %7550 = vst [vmem:[#allocation19_spill] sm:$0xff] %v4525_v55 }
 0x169   : > { %v4527_v56 = vpop.permute.xlu0 %1067  ;;  %v4529_v57 = vpop.permute.xlu1 %1065 }
 0x16a   : > { %7551 = vst [vmem:[#allocation20_spill] sm:$0xff] %v4527_v56  ;;  %7552 = vst [vmem:[#allocation21_spill] sm:$0xff] %v4529_v57 }
 0x16d   : > { %v4531_v58 = vpop.permute.xlu0 %1071  ;;  %v4533_v59 = vpop.permute.xlu1 %1069 }
 0x16e   : > { %7553 = vst [vmem:[#allocation22_spill] sm:$0xff] %v4531_v58  ;;  %7554 = vst [vmem:[#allocation23_spill] sm:$0xff] %v4533_v59 }
 0x171   : > { %v4535_v2 = vpop.permute.xlu0 %1075  ;;  %v4537_v21 = vpop.permute.xlu1 %1073 }
 0x172   : > { %7555 = vst [vmem:[#allocation24_spill] sm:$0xff] %v4535_v2  ;;  %7556 = vst [vmem:[#allocation25_spill] sm:$0xff] %v4537_v21 }
 0x175   : > { %v4539_v22 = vpop.permute.xlu0 %1079  ;;  %v4541_v3 = vpop.permute.xlu1 %1077 }
 0x176   : > { %7557 = vst [vmem:[#allocation26_spill] sm:$0xff] %v4539_v22  ;;  %7558 = vst [vmem:[#allocation27_spill] sm:$0xff] %v4541_v3 }
 0x179   : > { %v4543_v44 = vpop.permute.xlu0 %1083  ;;  %v4545_v54 = vpop.permute.xlu1 %1081 }
 0x17a   : > { %7559 = vst [vmem:[#allocation28_spill] sm:$0xff] %v4543_v44  ;;  %7560 = vst [vmem:[#allocation29_spill] sm:$0xff] %v4545_v54 }
 0x17d   : > { %v4547_v55 = vpop.permute.xlu0 %1087  ;;  %v4549_v47 = vpop.permute.xlu1 %1085 }
 0x17e   : > { %7561 = vst [vmem:[#allocation30_spill] sm:$0xff] %v4547_v55  ;;  %7562 = vst [vmem:[#allocation31_spill] sm:$0xff] %v4549_v47 }
 0x181   : > { %v4551_v57 = vpop.permute.xlu0 %1091  ;;  %v4553_v33 = vpop.permute.xlu1 %1089 }
 0x182   : > { %7563 = vst [vmem:[#allocation32_spill] sm:$0xff] %v4551_v57  ;;  %7564 = vst [vmem:[#allocation33_spill] sm:$0xff] %v4553_v33 }
 0x185   : > { %v4555_v35 = vpop.permute.xlu0 %1095  ;;  %v4557_v19 = vpop.permute.xlu1 %1093 }
 0x186   : > { %7565 = vst [vmem:[#allocation34_spill] sm:$0xff] %v4555_v35  ;;  %7566 = vst [vmem:[#allocation35_spill] sm:$0xff] %v4557_v19 }
 0x189   : > { %v4559_v46 = vpop.permute.xlu0 %1206  ;;  %v4561_v18 = vpop.permute.xlu1 %1166 }
 0x18a   : > { %v1170_v29 = vmul.f32 %v4561_v18, %v4187_v23  ;;  %v1210_v55 = vmul.f32 %v4559_v46, %v4189_v24  ;;  %v1169_v13 = vmul.f32 %v4561_v18, %v4191_v25  ;;  %v1209_v57 = vmul.f32 %v4559_v46, %v4181_v20 }
 0x18b   : > { %v1172_v35 = vmul.f32 %v4561_v18, %v4189_v24  ;;  %v1212_v19 = vmul.f32 %v4559_v46, %v4201_v30  ;;  %v1171_v23 = vmul.f32 %v4561_v18, %v4181_v20  ;;  %v1211_v12 = vmul.f32 %v4559_v46, %v4203_v31 }
 0x18c   : > { %v1242_v37 = vadd.f32 %v1210_v55, %v1170_v29  ;;  %v1241_v42 = vadd.f32 %v1209_v57, %v1169_v13  ;;  %v1174_v44 = vmul.f32 %v4561_v18, %v4201_v30  ;;  %v1214_v29 = vmul.f32 %v4559_v46, %v4219_v48 }
 0x18d   : > { %v4571_v33 = vpop.permute.xlu1 %1278  ;;  %v1244_v20 = vadd.f32 %v1212_v19, %v1172_v35 }
 0x18e   : > { %v1282_v25 = vmul.f32 %v4571_v33, %v4201_v30  ;;  %v1281_v10 = vmul.f32 %v4571_v33, %v4203_v31  ;;  %v1284_v24 = vmul.f32 %v4571_v33, %v4219_v48  ;;  %v1283_v54 = vmul.f32 %v4571_v33, %v4221_v49 }
 0x18f   : > { %v1286_v30 = vmul.f32 %v4571_v33, %v4237_v60  ;;  %v1285_v35 = vmul.f32 %v4571_v33, %v4239_v61  ;;  %v1246_v55 = vadd.f32 %v1214_v29, %v1174_v44  ;;  %v1288_v44 = vmul.f32 %v4571_v33, %v4255_v8 }
 0x190   : > { %v1314_v11 = vadd.f32 %v1282_v25, %v1242_v37  ;;  %v1313_v47 = vadd.f32 %v1281_v10, %v1241_v42  ;;  %v1243_v37 = vadd.f32 %v1211_v12, %v1171_v23  ;;  %v1173_v10 = vmul.f32 %v4561_v18, %v4203_v31 }
 0x191   : > { %v1213_v42 = vmul.f32 %v4559_v46, %v4221_v49  ;;  %v1316_v13 = vadd.f32 %v1284_v24, %v1244_v20  ;;  %v1216_v12 = vmul.f32 %v4559_v46, %v4237_v60  ;;  %v1318_v57 = vadd.f32 %v1286_v30, %v1246_v55 }
 0x192   : > { %1379 = vrot.lane.b32.xlu1 %v1314_v11, %s3925_s14  ;;  %1377 = vrot.lane.b32.xlu0 %v1313_v47, %s3925_s14  ;;  %v1315_v19 = vadd.f32 %v1283_v54, %v1243_v37  ;;  %v1176_v11 = vmul.f32 %v4561_v18, %v4219_v48  ;;  %v1175_v47 = vmul.f32 %v4561_v18, %v4221_v49 }
 0x193   : > { %v1245_v31 = vadd.f32 %v1213_v42, %v1173_v10  ;;  %v1215_v54 = vmul.f32 %v4559_v46, %v4239_v61  ;;  %v1287_v48 = vmul.f32 %v4571_v33, %v4257_v9  ;;  %v1178_v24 = vmul.f32 %v4561_v18, %v4237_v60 }
 0x194   : > { %v1248_v25 = vadd.f32 %v1216_v12, %v1176_v11  ;;  %v1218_v20 = vmul.f32 %v4559_v46, %v4255_v8  ;;  %v1177_v29 = vmul.f32 %v4561_v18, %v4239_v61  ;;  %v1217_v37 = vmul.f32 %v4559_v46, %v4257_v9 }
 0x195   : > { %v1317_v23 = vadd.f32 %v1285_v35, %v1245_v31  ;;  %v1247_v49 = vadd.f32 %v1215_v54, %v1175_v47  ;;  %v1289_v60 = vmul.f32 %v4571_v33, %v4275_v27  ;;  %v1180_v30 = vmul.f32 %v4561_v18, %v4255_v8 }
 0x196   : > { %1383 = vrot.lane.b32.xlu1 %v1316_v13, %s3925_s14  ;;  %1381 = vrot.lane.b32.xlu0 %v1315_v19, %s3925_s14  ;;  %v1320_v10 = vadd.f32 %v1288_v44, %v1248_v25  ;;  %v1290_v13 = vmul.f32 %v4571_v33, %v4273_v26  ;;  %v1250_v19 = vadd.f32 %v1218_v20, %v1178_v24 }
 0x197   : > { %v1319_v42 = vadd.f32 %v1287_v48, %v1247_v49  ;;  %v1220_v35 = vmul.f32 %v4559_v46, %v4273_v26  ;;  %v1249_v61 = vadd.f32 %v1217_v37, %v1177_v29  ;;  %v1179_v55 = vmul.f32 %v4561_v18, %v4257_v9 }
 0x198   : > { %v1219_v11 = vmul.f32 %v4559_v46, %v4275_v27  ;;  %v1322_v12 = vadd.f32 %v1290_v13, %v1250_v19  ;;  %v1292_v47 = vmul.f32 %v4571_v33, %v4291_v50  ;;  %v1291_v8 = vmul.f32 %v4571_v33, %v4293_v51 }
 0x199   : > { %v1321_v31 = vadd.f32 %v1289_v60, %v1249_v61  ;;  %v1252_v54 = vadd.f32 %v1220_v35, %v1180_v30  ;;  %v1181_v44 = vmul.f32 %v4561_v18, %v4275_v27  ;;  %v1221_v48 = vmul.f32 %v4559_v46, %v4293_v51 }
 0x19a   : > { %1387 = vrot.lane.b32.xlu1 %v1318_v57, %s3925_s14  ;;  %1385 = vrot.lane.b32.xlu0 %v1317_v23, %s3925_s14  ;;  %v1182_v57 = vmul.f32 %v4561_v18, %v4273_v26  ;;  %v1222_v23 = vmul.f32 %v4559_v46, %v4291_v50  ;;  %v1251_v9 = vadd.f32 %v1219_v11, %v1179_v55 }
 0x19b   : > { %v1324_v25 = vadd.f32 %v1292_v47, %v1252_v54  ;;  %v1294_v20 = vmul.f32 %v4571_v33, %v4309_v0  ;;  %v1293_v26 = vmul.f32 %v4571_v33, %v4311_v1  ;;  %v1184_v29 = vmul.f32 %v4561_v18, %v4291_v50 }
 0x19c   : > { %v1323_v24 = vadd.f32 %v1291_v8, %v1251_v9  ;;  %v1254_v49 = vadd.f32 %v1222_v23, %v1182_v57  ;;  %v1224_v37 = vmul.f32 %v4559_v46, %v4309_v0  ;;  %v1253_v27 = vadd.f32 %v1221_v48, %v1181_v44 }
 0x19d   : > { %v1296_v19 = vmul.f32 %v4571_v33, %v4327_v14  ;;  %v1295_v50 = vmul.f32 %v4571_v33, %v4329_v15  ;;  %v1186_v35 = vmul.f32 %v4561_v18, %v4309_v0  ;;  %v1226_v61 = vmul.f32 %v4559_v46, %v4327_v14 }
 0x19e   : > { %1391 = vrot.lane.b32.xlu1 %v1320_v10, %s3925_s14  ;;  %1389 = vrot.lane.b32.xlu0 %v1319_v42, %s3925_s14  ;;  %v1183_v10 = vmul.f32 %v4561_v18, %v4293_v51  ;;  %v1223_v42 = vmul.f32 %v4559_v46, %v4311_v1  ;;  %v1326_v13 = vadd.f32 %v1294_v20, %v1254_v49 }
 0x19f   : > { %v1325_v60 = vadd.f32 %v1293_v26, %v1253_v27  ;;  %v1256_v30 = vadd.f32 %v1224_v37, %v1184_v29  ;;  %v1185_v55 = vmul.f32 %v4561_v18, %v4311_v1  ;;  %v1225_v11 = vmul.f32 %v4559_v46, %v4329_v15 }
 0x1a0   : > { %v1255_v51 = vadd.f32 %v1223_v42, %v1183_v10  ;;  %v1298_v47 = vmul.f32 %v4571_v33, %v4345_v41  ;;  %v1297_v0 = vmul.f32 %v4571_v33, %v4347_v43  ;;  %v1258_v8 = vadd.f32 %v1226_v61, %v1186_v35 }
 0x1a1   : > { %v1188_v54 = vmul.f32 %v4561_v18, %v4327_v14  ;;  %v1228_v57 = vmul.f32 %v4559_v46, %v4345_v41  ;;  %v1257_v1 = vadd.f32 %v1225_v11, %v1185_v55  ;;  %v1187_v23 = vmul.f32 %v4561_v18, %v4329_v15 }
 0x1a2   : > { %1395 = vrot.lane.b32.xlu1 %v1322_v12, %s3925_s14  ;;  %1393 = vrot.lane.b32.xlu0 %v1321_v31, %s3925_s14  ;;  %v1328_v12 = vadd.f32 %v1296_v19, %v1256_v30  ;;  %v1327_v31 = vadd.f32 %v1295_v50, %v1255_v51  ;;  %v1227_v9 = vmul.f32 %v4559_v46, %v4347_v43 }
 0x1a3   : > { %v1330_v44 = vadd.f32 %v1298_v47, %v1258_v8  ;;  %v1329_v48 = vadd.f32 %v1297_v0, %v1257_v1  ;;  %v1299_v14 = vmul.f32 %v4571_v33, %v4365_v63  ;;  %v1190_v20 = vmul.f32 %v4561_v18, %v4345_v41 }
 0x1a4   : > { %v1230_v26 = vmul.f32 %v4559_v46, %v4363_v62  ;;  %v1259_v15 = vadd.f32 %v1227_v9, %v1187_v23  ;;  %v1189_v49 = vmul.f32 %v4561_v18, %v4347_v43  ;;  %v1229_v29 = vmul.f32 %v4559_v46, %v4365_v63 }
 0x1a5   : > { %v1302_v10 = vmul.f32 %v4571_v33, %v4381_v16  ;;  %v1301_v41 = vmul.f32 %v4571_v33, %v4383_v17  ;;  %v1191_v19 = vmul.f32 %v4561_v18, %v4365_v63  ;;  %v1231_v50 = vmul.f32 %v4559_v46, %v4383_v17 }
 0x1a6   : > { %1399 = vrot.lane.b32.xlu1 %v1324_v25, %s3925_s14  ;;  %1397 = vrot.lane.b32.xlu0 %v1323_v24, %s3925_s14  ;;  %v1300_v25 = vmul.f32 %v4571_v33, %v4363_v62  ;;  %v1260_v24 = vadd.f32 %v1228_v57, %v1188_v54  ;;  %v1331_v27 = vadd.f32 %v1299_v14, %v1259_v15 }
 0x1a7   : > { %v1262_v42 = vadd.f32 %v1230_v26, %v1190_v20  ;;  %v1261_v43 = vadd.f32 %v1229_v29, %v1189_v49  ;;  %v1304_v61 = vmul.f32 %v4571_v33, %v4399_v52  ;;  %v1194_v55 = vmul.f32 %v4561_v18, %v4381_v16 }
 0x1a8   : > { %v1332_v37 = vadd.f32 %v1300_v25, %v1260_v24  ;;  %v1234_v11 = vmul.f32 %v4559_v46, %v4399_v52  ;;  %v1263_v63 = vadd.f32 %v1231_v50, %v1191_v19  ;;  %v1306_v8 = vmul.f32 %v4571_v33, %v4417_v6 }
 0x1a9   : > { %v1334_v30 = vadd.f32 %v1302_v10, %v1262_v42  ;;  %v1333_v35 = vadd.f32 %v1301_v41, %v1261_v43  ;;  %v1196_v57 = vmul.f32 %v4561_v18, %v4399_v52  ;;  %v1236_v1 = vmul.f32 %v4559_v46, %v4417_v6 }
 0x1aa   : > { %1403 = vrot.lane.b32.xlu1 %v1326_v13, %s3925_s14  ;;  %1401 = vrot.lane.b32.xlu0 %v1325_v60, %s3925_s14  ;;  %v1192_v13 = vmul.f32 %v4561_v18, %v4363_v62  ;;  %v1232_v60 = vmul.f32 %v4559_v46, %v4381_v16  ;;  %v1303_v62 = vmul.f32 %v4571_v33, %v4401_v53 }
 0x1ab   : > { %v1305_v16 = vmul.f32 %v4571_v33, %v4419_v7  ;;  %v1266_v54 = vadd.f32 %v1234_v11, %v1194_v55  ;;  %v1195_v23 = vmul.f32 %v4561_v18, %v4401_v53  ;;  %v1235_v9 = vmul.f32 %v4559_v46, %v4419_v7 }
 0x1ac   : > { %v1264_v51 = vadd.f32 %v1232_v60, %v1192_v13  ;;  %v1335_v0 = vadd.f32 %v1303_v62, %v1263_v63  ;;  %v1308_v25 = vmul.f32 %v4571_v33, %v4435_v36  ;;  %v1307_v52 = vmul.f32 %v4571_v33, %v4437_v40 }
 0x1ad   : > { %v1198_v14 = vmul.f32 %v4561_v18, %v4417_v6  ;;  %v1238_v24 = vmul.f32 %v4559_v46, %v4435_v36  ;;  %v1237_v20 = vmul.f32 %v4559_v46, %v4437_v40  ;;  %v1268_v26 = vadd.f32 %v1236_v1, %v1196_v57 }
 0x1ae   : > { %1407 = vrot.lane.b32.xlu1 %v1328_v12, %s3925_s14  ;;  %1405 = vrot.lane.b32.xlu0 %v1327_v31, %s3925_s14  ;;  %v1193_v12 = vmul.f32 %v4561_v18, %v4383_v17  ;;  %v1233_v31 = vmul.f32 %v4559_v46, %v4401_v53  ;;  %v1336_v47 = vadd.f32 %v1304_v61, %v1264_v51 }
 0x1af   : > { %v1197_v53 = vmul.f32 %v4561_v18, %v4419_v7  ;;  %v1267_v15 = vadd.f32 %v1235_v9, %v1195_v23  ;;  %v1340_v49 = vadd.f32 %v1308_v25, %v1268_v26  ;;  %v1310_v6 = vmul.f32 %v4571_v33, %v4453_v4 }
 0x1b0   : > { %v1265_v17 = vadd.f32 %v1233_v31, %v1193_v12  ;;  %v1200_v7 = vmul.f32 %v4561_v18, %v4435_v36  ;;  %v1240_v41 = vmul.f32 %v4559_v46, %v4453_v4  ;;  %v1199_v42 = vmul.f32 %v4561_v18, %v4437_v40 }
 0x1b1   : > { %v1339_v29 = vadd.f32 %v1307_v52, %v1267_v15  ;;  %v1269_v10 = vadd.f32 %v1237_v20, %v1197_v53  ;;  %v1239_v13 = vmul.f32 %v4559_v46, %v4455_v5  ;;  %v1312_v19 = vmul.f32 %v4571_v33, %v4461_v39  ;;  %v4795_v39 = vld [vmem:[%s7438_s2 + $0x8] sm:$0xff] }
 0x1b2   : > { %1411 = vrot.lane.b32.xlu1 %v1330_v44, %s3925_s14  ;;  %1409 = vrot.lane.b32.xlu0 %v1329_v48, %s3925_s14  ;;  %v1338_v44 = vadd.f32 %v1306_v8, %v1266_v54  ;;  %v1337_v48 = vadd.f32 %v1305_v16, %v1265_v17  ;;  %v1311_v36 = vmul.f32 %v4571_v33, %v4465_v28  ;;  %v4788_v40 = vsub.s32 5, %v4106_v34  ;;  %v4802_v28 = vld [vmem:[%s7438_s2] sm:$0xff] }
 0x1b3   : > { %v1272_v50 = vadd.f32 %v1240_v41, %v1200_v7  ;;  %v1271_v4 = vadd.f32 %v1239_v13, %v1199_v42  ;;  %v1748_v18 = vrot.slane %v4802_v28, %v4488_v32  ;;  %v4807_v46 = vsub.s32 6, %v4106_v34  ;;  %v4889_v42 = vld [vmem:[#allocation2 + $0x9] sm:$0xff]  ;;  %v4891_v13 = vld [vmem:[#allocation2 + $0x21] sm:$0xff] }
 0x1b6   : > { %1415 = vrot.lane.b32.xlu1 %v1332_v37, %s3925_s14  ;;  %1413 = vrot.lane.b32.xlu0 %v1331_v27, %s3925_s14  ;;  %v1309_v37 = vmul.f32 %v4571_v33, %v4455_v5  ;;  %v1270_v27 = vadd.f32 %v1238_v24, %v1198_v14  ;;  %v1788_v5 = vrot.slane %v4795_v39, %v4788_v40  ;;  %v4814_v33 = vld [vmem:[%s7438_s2 + $0x10] sm:$0xff] }
 0x1b7   : > { %v1860_v61 = vrot.slane %v4814_v33, %v4807_v46 }
 0x1b8   : > { %v1342_v60 = vadd.f32 %v1310_v6, %v1270_v27  ;;  %v1341_v43 = vadd.f32 %v1309_v37, %v1269_v10  ;;  %v4883_v10 = vld [vmem:[#allocation2 + $0x19] sm:$0xff] }
 0x1ba   : > { %1419 = vrot.lane.b32.xlu1 %v1334_v30, %s3925_s14  ;;  %1417 = vrot.lane.b32.xlu0 %v1333_v35, %s3925_s14  ;;  %v1344_v30 = vadd.f32 %v1312_v19, %v1272_v50  ;;  %v1343_v35 = vadd.f32 %v1311_v36, %v1271_v4  ;;  %v4903_v4 = vld [vmem:[#allocation2 + $0x39] sm:$0xff] }
 0x1be   : > { %1423 = vrot.lane.b32.xlu1 %v1336_v47, %s3925_s14  ;;  %1421 = vrot.lane.b32.xlu0 %v1335_v0, %s3925_s14 }
 0x1c2   : > { %1427 = vrot.lane.b32.xlu1 %v1338_v44, %s3925_s14  ;;  %1425 = vrot.lane.b32.xlu0 %v1337_v48, %s3925_s14 }
 0x1c6   : > { %1431 = vrot.lane.b32.xlu1 %v1340_v49, %s3925_s14  ;;  %1429 = vrot.lane.b32.xlu0 %v1339_v29, %s3925_s14 }
 0x1ca   : > { %1435 = vrot.lane.b32.xlu1 %v1342_v60, %s3925_s14  ;;  %1433 = vrot.lane.b32.xlu0 %v1341_v43, %s3925_s14  ;;  %v4893_v60 = vld [vmem:[#allocation2 + $0x1] sm:$0xff] }
 0x1ce   : > { %1439 = vrot.lane.b32.xlu1 %v1344_v30, %s3925_s14  ;;  %1437 = vrot.lane.b32.xlu0 %v1343_v35, %s3925_s14  ;;  %v4905_v30 = vld [vmem:[#allocation2 + $0x31] sm:$0xff] }
 0x1d2   : > { %1790 = vrot.lane.b32.xlu1 %v1788_v5, %s3922_s26  ;;  %1750 = vrot.lane.b32.xlu0 %v1748_v18, %s3922_s26 }
 0x1d6   : > { %1862 = vrot.lane.b32.xlu0 %v1860_v61, %s3922_s26 }
 0x204   : > { %v4819_v62 = vpop.permute.xlu1 %1379  ;;  %v4821_v51 = vpop.permute.xlu0 %1377 }
 0x205   : > { %7567 = vst [vmem:[#allocation36_spill] sm:$0xff] %v4819_v62  ;;  %7568 = vst [vmem:[#allocation37_spill] sm:$0xff] %v4821_v51 }
 0x208   : > { %v4823_v55 = vpop.permute.xlu1 %1383  ;;  %v4825_v11 = vpop.permute.xlu0 %1381 }
 0x209   : > { %7569 = vst [vmem:[#allocation38_spill] sm:$0xff] %v4823_v55  ;;  %7570 = vst [vmem:[#allocation39_spill] sm:$0xff] %v4825_v11 }
 0x20c   : > { %v4827_v63 = vpop.permute.xlu1 %1387  ;;  %v4829_v12 = vpop.permute.xlu0 %1385 }
 0x20d   : > { %7571 = vst [vmem:[#allocation40_spill] sm:$0xff] %v4827_v63  ;;  %7572 = vst [vmem:[#allocation41_spill] sm:$0xff] %v4829_v12 }
 0x210   : > { %v4831_v31 = vpop.permute.xlu1 %1391  ;;  %v4833_v47 = vpop.permute.xlu0 %1389 }
 0x211   : > { %7573 = vst [vmem:[#allocation42_spill] sm:$0xff] %v4831_v31  ;;  %7574 = vst [vmem:[#allocation43_spill] sm:$0xff] %v4833_v47 }
 0x214   : > { %v4835_v0 = vpop.permute.xlu1 %1395  ;;  %v4837_v8 = vpop.permute.xlu0 %1393 }
 0x215   : > { %7575 = vst [vmem:[#allocation44_spill] sm:$0xff] %v4835_v0  ;;  %7576 = vst [vmem:[#allocation45_spill] sm:$0xff] %v4837_v8 }
 0x218   : > { %v4839_v16 = vpop.permute.xlu1 %1399  ;;  %v4841_v54 = vpop.permute.xlu0 %1397 }
 0x219   : > { %7577 = vst [vmem:[#allocation46_spill] sm:$0xff] %v4839_v16  ;;  %7578 = vst [vmem:[#allocation47_spill] sm:$0xff] %v4841_v54 }
 0x21c   : > { %v4843_v57 = vpop.permute.xlu1 %1403  ;;  %v4845_v1 = vpop.permute.xlu0 %1401 }
 0x21d   : > { %7579 = vst [vmem:[#allocation48_spill] sm:$0xff] %v4843_v57  ;;  %7580 = vst [vmem:[#allocation49_spill] sm:$0xff] %v4845_v1 }
 0x220   : > { %v4847_v17 = vpop.permute.xlu1 %1407  ;;  %v4849_v23 = vpop.permute.xlu0 %1405 }
 0x221   : > { %7581 = vst [vmem:[#allocation50_spill] sm:$0xff] %v4847_v17  ;;  %7582 = vst [vmem:[#allocation51_spill] sm:$0xff] %v4849_v23  ;;  %v4923_v17 = vld [vmem:[#allocation2 + $0x49] sm:$0xff] }
 0x224   : > { %v4851_v9 = vpop.permute.xlu1 %1411  ;;  %v4853_v44 = vpop.permute.xlu0 %1409 }
 0x225   : > { %7583 = vst [vmem:[#allocation52_spill] sm:$0xff] %v4851_v9  ;;  %7584 = vst [vmem:[#allocation53_spill] sm:$0xff] %v4853_v44  ;;  %v4921_v44 = vld [vmem:[#allocation2 + $0x51] sm:$0xff] }
 0x228   : > { %v4855_v48 = vpop.permute.xlu1 %1415  ;;  %v4857_v25 = vpop.permute.xlu0 %1413 }
 0x229   : > { %7585 = vst [vmem:[#allocation54_spill] sm:$0xff] %v4855_v48  ;;  %7586 = vst [vmem:[#allocation55_spill] sm:$0xff] %v4857_v25 }
 0x22c   : > { %v4859_v52 = vpop.permute.xlu1 %1419  ;;  %v4861_v14 = vpop.permute.xlu0 %1417 }
 0x22d   : > { %7587 = vst [vmem:[#allocation56_spill] sm:$0xff] %v4859_v52  ;;  %7588 = vst [vmem:[#allocation57_spill] sm:$0xff] %v4861_v14 }
 0x230   : > { %v4863_v24 = vpop.permute.xlu1 %1423  ;;  %v4865_v53 = vpop.permute.xlu0 %1421 }
 0x231   : > { %7589 = vst [vmem:[#allocation58_spill] sm:$0xff] %v4863_v24  ;;  %7590 = vst [vmem:[#allocation59_spill] sm:$0xff] %v4865_v53 }
 0x234   : > { %v4867_v20 = vpop.permute.xlu1 %1427  ;;  %v4869_v26 = vpop.permute.xlu0 %1425 }
 0x235   : > { %7591 = vst [vmem:[#allocation60_spill] sm:$0xff] %v4867_v20  ;;  %7592 = vst [vmem:[#allocation61_spill] sm:$0xff] %v4869_v26 }
 0x238   : > { %v4871_v15 = vpop.permute.xlu1 %1431  ;;  %v4873_v49 = vpop.permute.xlu0 %1429 }
 0x239   : > { %7593 = vst [vmem:[#allocation62_spill] sm:$0xff] %v4871_v15  ;;  %7594 = vst [vmem:[#allocation63_spill] sm:$0xff] %v4873_v49 }
 0x23c   : > { %v4875_v29 = vpop.permute.xlu1 %1435  ;;  %v4877_v6 = vpop.permute.xlu0 %1433 }
 0x23d   : > { %7595 = vst [vmem:[#allocation64_spill] sm:$0xff] %v4875_v29  ;;  %7596 = vst [vmem:[#allocation65_spill] sm:$0xff] %v4877_v6 }
 0x240   : > { %v4879_v37 = vpop.permute.xlu1 %1439  ;;  %v4881_v27 = vpop.permute.xlu0 %1437 }
 0x241   : > { %7597 = vst [vmem:[#allocation66_spill] sm:$0xff] %v4879_v37  ;;  %7598 = vst [vmem:[#allocation67_spill] sm:$0xff] %v4881_v27 }
 0x244   : > { %v4885_v7 = vpop.permute.xlu1 %1790  ;;  %v4887_v41 = vpop.permute.xlu0 %1750 }
 0x245   : > { %v1754_v43 = vmul.f32 %v4887_v41, %v4889_v42  ;;  %v1794_v19 = vmul.f32 %v4885_v7, %v4891_v13  ;;  %v1753_v36 = vmul.f32 %v4887_v41, %v4893_v60  ;;  %v1793_v50 = vmul.f32 %v4885_v7, %v4883_v10 }
 0x246   : > { %v1756_v5 = vmul.f32 %v4887_v41, %v4891_v13  ;;  %v1796_v18 = vmul.f32 %v4885_v7, %v4903_v4  ;;  %v1755_v61 = vmul.f32 %v4887_v41, %v4883_v10  ;;  %v1795_v37 = vmul.f32 %v4885_v7, %v4905_v30 }
 0x247   : > { %v1826_v27 = vadd.f32 %v1794_v19, %v1754_v43  ;;  %v1825_v6 = vadd.f32 %v1793_v50, %v1753_v36  ;;  %v1758_v19 = vmul.f32 %v4887_v41, %v4903_v4  ;;  %v1798_v36 = vmul.f32 %v4885_v7, %v4921_v44 }
 0x248   : > { %v4907_v35 = vpop.permute.xlu0 %1862  ;;  %v1828_v43 = vadd.f32 %v1796_v18, %v1756_v5  ;;  %v1827_v50 = vadd.f32 %v1795_v37, %v1755_v61  ;;  %v1760_v37 = vmul.f32 %v4887_v41, %v4921_v44 }
 0x249   : > { %v1866_v29 = vmul.f32 %v4907_v35, %v4903_v4  ;;  %v1865_v15 = vmul.f32 %v4907_v35, %v4905_v30  ;;  %v1868_v1 = vmul.f32 %v4907_v35, %v4921_v44  ;;  %v1867_v16 = vmul.f32 %v4907_v35, %v4923_v17 }
 0x24b   : > { %v1898_v23 = vadd.f32 %v1866_v29, %v1826_v27  ;;  %v1897_v57 = vadd.f32 %v1865_v15, %v1825_v6  ;;  %v1757_v15 = vmul.f32 %v4887_v41, %v4905_v30  ;;  %v1797_v29 = vmul.f32 %v4885_v7, %v4923_v17  ;;  %v4939_v6 = vld [vmem:[#allocation2 + $0x69] sm:$0xff]  ;;  %v4941_v27 = vld [vmem:[#allocation2 + $0x61] sm:$0xff] }
 0x24c   : > { %v1900_v5 = vadd.f32 %v1868_v1, %v1828_v43  ;;  %v1899_v18 = vadd.f32 %v1867_v16, %v1827_v50  ;;  %v1870_v54 = vmul.f32 %v4907_v35, %v4939_v6  ;;  %v1800_v61 = vmul.f32 %v4885_v7, %v4939_v6  ;;  %v4957_v43 = vld [vmem:[#allocation2 + $0x81] sm:$0xff] }
 0x24d   : > { %1963 = vrot.lane.b32.xlu0 %v1898_v23, %s3923_s12  ;;  %1961 = vrot.lane.b32.xlu1 %v1897_v57, %s3923_s12  ;;  %v1869_v23 = vmul.f32 %v4907_v35, %v4941_v27  ;;  %v1830_v57 = vadd.f32 %v1798_v36, %v1758_v19  ;;  %v1829_v0 = vadd.f32 %v1797_v29, %v1757_v15  ;;  %v4959_v19 = vld [vmem:[#allocation2 + $0x79] sm:$0xff] }
 0x24e   : > { %v1759_v16 = vmul.f32 %v4887_v41, %v4923_v17  ;;  %v1799_v1 = vmul.f32 %v4885_v7, %v4941_v27  ;;  %v1872_v8 = vmul.f32 %v4907_v35, %v4957_v43  ;;  %v1762_v15 = vmul.f32 %v4887_v41, %v4939_v6 }
 0x24f   : > { %v1902_v36 = vadd.f32 %v1870_v54, %v1830_v57  ;;  %v1901_v50 = vadd.f32 %v1869_v23, %v1829_v0  ;;  %v1802_v29 = vmul.f32 %v4885_v7, %v4957_v43  ;;  %v1761_v0 = vmul.f32 %v4887_v41, %v4941_v27  ;;  %v4975_v23 = vld [vmem:[#allocation2 + $0x99] sm:$0xff]  ;;  %v4977_v57 = vld [vmem:[#allocation2 + $0x91] sm:$0xff] }
 0x250   : > { %v1831_v31 = vadd.f32 %v1799_v1, %v1759_v16  ;;  %v1801_v54 = vmul.f32 %v4885_v7, %v4959_v19  ;;  %v1874_v47 = vmul.f32 %v4907_v35, %v4975_v23  ;;  %v1764_v16 = vmul.f32 %v4887_v41, %v4957_v43 }
 0x251   : > { %1967 = vrot.lane.b32.xlu0 %v1900_v5, %s3923_s12  ;;  %1965 = vrot.lane.b32.xlu1 %v1899_v18, %s3923_s12  ;;  %v1871_v5 = vmul.f32 %v4907_v35, %v4959_v19  ;;  %v1832_v18 = vadd.f32 %v1800_v61, %v1760_v37  ;;  %v1804_v1 = vmul.f32 %v4885_v7, %v4975_v23 }
 0x252   : > { %v1833_v12 = vadd.f32 %v1801_v54, %v1761_v0  ;;  %v1766_v0 = vmul.f32 %v4887_v41, %v4975_v23 }
 0x253   : > { %v1904_v37 = vadd.f32 %v1872_v8, %v1832_v18  ;;  %v1903_v61 = vadd.f32 %v1871_v5, %v1831_v31  ;;  %v1763_v31 = vmul.f32 %v4887_v41, %v4959_v19  ;;  %v1803_v8 = vmul.f32 %v4885_v7, %v4977_v57  ;;  %v4993_v5 = vld [vmem:[#allocation2 + $0xb1] sm:$0xff]  ;;  %v4995_v18 = vld [vmem:[#allocation2 + $0xa9] sm:$0xff] }
 0x254   : > { %v1876_v63 = vmul.f32 %v4907_v35, %v4993_v5  ;;  %v1806_v54 = vmul.f32 %v4885_v7, %v4993_v5 }
 0x255   : > { %1971 = vrot.lane.b32.xlu0 %v1902_v36, %s3923_s12  ;;  %1969 = vrot.lane.b32.xlu1 %v1901_v50, %s3923_s12  ;;  %v1873_v36 = vmul.f32 %v4907_v35, %v4977_v57  ;;  %v1834_v50 = vadd.f32 %v1802_v29, %v1762_v15  ;;  %v1835_v55 = vadd.f32 %v1803_v8, %v1763_v31 }
 0x256   : > { %v1768_v31 = vmul.f32 %v4887_v41, %v4993_v5 }
 0x257   : > { %v1906_v15 = vadd.f32 %v1874_v47, %v1834_v50  ;;  %v1905_v29 = vadd.f32 %v1873_v36, %v1833_v12  ;;  %v1765_v12 = vmul.f32 %v4887_v41, %v4977_v57  ;;  %v1805_v47 = vmul.f32 %v4885_v7, %v4995_v18  ;;  %v5011_v36 = vld [vmem:[#allocation2 + $0xc9] sm:$0xff]  ;;  %v5013_v50 = vld [vmem:[#allocation2 + $0xc1] sm:$0xff] }
 0x258   : > { %v1878_v11 = vmul.f32 %v4907_v35, %v5011_v36  ;;  %v1808_v8 = vmul.f32 %v4885_v7, %v5011_v36 }
 0x259   : > { %1975 = vrot.lane.b32.xlu0 %v1904_v37, %s3923_s12  ;;  %1973 = vrot.lane.b32.xlu1 %v1903_v61, %s3923_s12  ;;  %v1875_v37 = vmul.f32 %v4907_v35, %v4995_v18  ;;  %v1836_v61 = vadd.f32 %v1804_v1, %v1764_v16  ;;  %v1837_v62 = vadd.f32 %v1805_v47, %v1765_v12 }
 0x25a   : > { %v1770_v12 = vmul.f32 %v4887_v41, %v5011_v36 }
 0x25b   : > { %v1908_v16 = vadd.f32 %v1876_v63, %v1836_v61  ;;  %v1907_v1 = vadd.f32 %v1875_v37, %v1835_v55  ;;  %v1767_v55 = vmul.f32 %v4887_v41, %v4995_v18  ;;  %v1807_v63 = vmul.f32 %v4885_v7, %v5013_v50  ;;  %v5029_v37 = vld [vmem:[#allocation2 + $0xe1] sm:$0xff]  ;;  %v5031_v61 = vld [vmem:[#allocation2 + $0xd9] sm:$0xff] }
 0x25c   : > { %v1880_v51 = vmul.f32 %v4907_v35, %v5029_v37  ;;  %v1810_v47 = vmul.f32 %v4885_v7, %v5029_v37 }
 0x25d   : > { %1979 = vrot.lane.b32.xlu0 %v1906_v15, %s3923_s12  ;;  %1977 = vrot.lane.b32.xlu1 %v1905_v29, %s3923_s12  ;;  %v1877_v15 = vmul.f32 %v4907_v35, %v5013_v50  ;;  %v1838_v29 = vadd.f32 %v1806_v54, %v1766_v0  ;;  %v1839_v49 = vadd.f32 %v1807_v63, %v1767_v55 }
 0x25e   : > { %v1772_v55 = vmul.f32 %v4887_v41, %v5029_v37 }
 0x25f   : > { %v1910_v0 = vadd.f32 %v1878_v11, %v1838_v29  ;;  %v1909_v54 = vadd.f32 %v1877_v15, %v1837_v62  ;;  %v1769_v62 = vmul.f32 %v4887_v41, %v5013_v50  ;;  %v1809_v11 = vmul.f32 %v4885_v7, %v5031_v61  ;;  %v5047_v15 = vld [vmem:[#allocation2 + $0xf9] sm:$0xff]  ;;  %v5049_v29 = vld [vmem:[#allocation2 + $0xf1] sm:$0xff] }
 0x260   : > { %v1882_v26 = vmul.f32 %v4907_v35, %v5047_v15  ;;  %v1812_v63 = vmul.f32 %v4885_v7, %v5047_v15 }
 0x261   : > { %1983 = vrot.lane.b32.xlu0 %v1908_v16, %s3923_s12  ;;  %1981 = vrot.lane.b32.xlu1 %v1907_v1, %s3923_s12  ;;  %v1879_v16 = vmul.f32 %v4907_v35, %v5031_v61  ;;  %v1840_v1 = vadd.f32 %v1808_v8, %v1768_v31  ;;  %v1841_v20 = vadd.f32 %v1809_v11, %v1769_v62 }
 0x262   : > { %v1774_v62 = vmul.f32 %v4887_v41, %v5047_v15 }
 0x263   : > { %v1912_v31 = vadd.f32 %v1880_v51, %v1840_v1  ;;  %v1911_v8 = vadd.f32 %v1879_v16, %v1839_v49  ;;  %v1771_v51 = vmul.f32 %v4887_v41, %v5031_v61  ;;  %v1811_v49 = vmul.f32 %v4885_v7, %v5049_v29  ;;  %v5065_v16 = vld [vmem:[#allocation2 + $0x111] sm:$0xff]  ;;  %v5067_v1 = vld [vmem:[#allocation2 + $0x109] sm:$0xff] }
 0x264   : > { %v1884_v53 = vmul.f32 %v4907_v35, %v5065_v16  ;;  %v1814_v11 = vmul.f32 %v4885_v7, %v5065_v16 }
 0x265   : > { %1987 = vrot.lane.b32.xlu0 %v1910_v0, %s3923_s12  ;;  %1985 = vrot.lane.b32.xlu1 %v1909_v54, %s3923_s12  ;;  %v1881_v0 = vmul.f32 %v4907_v35, %v5049_v29  ;;  %v1842_v54 = vadd.f32 %v1810_v47, %v1770_v12  ;;  %v1843_v24 = vadd.f32 %v1811_v49, %v1771_v51 }
 0x266   : > { %v1776_v51 = vmul.f32 %v4887_v41, %v5065_v16 }
 0x267   : > { %v1914_v12 = vadd.f32 %v1882_v26, %v1842_v54  ;;  %v1913_v47 = vadd.f32 %v1881_v0, %v1841_v20  ;;  %v1773_v20 = vmul.f32 %v4887_v41, %v5049_v29  ;;  %v1813_v26 = vmul.f32 %v4885_v7, %v5067_v1  ;;  %v5083_v0 = vld [vmem:[#allocation2 + $0x129] sm:$0xff]  ;;  %v5085_v54 = vld [vmem:[#allocation2 + $0x121] sm:$0xff] }
 0x268   : > { %7599 = vst [vmem:[#allocation68_spill] sm:$0xff] %v5085_v54  ;;  %v1886_v14 = vmul.f32 %v4907_v35, %v5083_v0  ;;  %v1816_v49 = vmul.f32 %v4885_v7, %v5083_v0 }
 0x269   : > { %1991 = vrot.lane.b32.xlu0 %v1912_v31, %s3923_s12  ;;  %1989 = vrot.lane.b32.xlu1 %v1911_v8, %s3923_s12  ;;  %v1883_v31 = vmul.f32 %v4907_v35, %v5067_v1  ;;  %v1844_v8 = vadd.f32 %v1812_v63, %v1772_v55  ;;  %v1845_v52 = vadd.f32 %v1813_v26, %v1773_v20 }
 0x26a   : > { %v1778_v20 = vmul.f32 %v4887_v41, %v5083_v0 }
 0x26b   : > { %v1916_v55 = vadd.f32 %v1884_v53, %v1844_v8  ;;  %v1915_v63 = vadd.f32 %v1883_v31, %v1843_v24  ;;  %v1775_v24 = vmul.f32 %v4887_v41, %v5067_v1  ;;  %v1815_v53 = vmul.f32 %v4885_v7, %v5085_v54  ;;  %v5101_v31 = vld [vmem:[#allocation2 + $0x141] sm:$0xff]  ;;  %v5103_v8 = vld [vmem:[#allocation2 + $0x139] sm:$0xff] }
 0x26c   : > { %7600 = vst [vmem:[#allocation69_spill] sm:$0xff] %v5103_v8  ;;  %v1888_v25 = vmul.f32 %v4907_v35, %v5101_v31  ;;  %v1818_v26 = vmul.f32 %v4885_v7, %v5101_v31 }
 0x26d   : > { %1995 = vrot.lane.b32.xlu0 %v1914_v12, %s3923_s12  ;;  %1993 = vrot.lane.b32.xlu1 %v1913_v47, %s3923_s12  ;;  %v1885_v12 = vmul.f32 %v4907_v35, %v5085_v54  ;;  %v1846_v47 = vadd.f32 %v1814_v11, %v1774_v62  ;;  %v1847_v48 = vadd.f32 %v1815_v53, %v1775_v24 }
 0x26e   : > { %v1780_v24 = vmul.f32 %v4887_v41, %v5101_v31 }
 0x26f   : > { %v1918_v62 = vadd.f32 %v1886_v14, %v1846_v47  ;;  %v1917_v11 = vadd.f32 %v1885_v12, %v1845_v52  ;;  %v1777_v52 = vmul.f32 %v4887_v41, %v5085_v54  ;;  %v1817_v14 = vmul.f32 %v4885_v7, %v5103_v8  ;;  %v5119_v12 = vld [vmem:[#allocation2 + $0x159] sm:$0xff]  ;;  %v5121_v47 = vld [vmem:[#allocation2 + $0x151] sm:$0xff] }
 0x270   : > { %7601 = vst [vmem:[#allocation70_spill] sm:$0xff] %v5121_v47  ;;  %v1890_v9 = vmul.f32 %v4907_v35, %v5119_v12  ;;  %v1820_v53 = vmul.f32 %v4885_v7, %v5119_v12 }
 0x271   : > { %1999 = vrot.lane.b32.xlu0 %v1916_v55, %s3923_s12  ;;  %1997 = vrot.lane.b32.xlu1 %v1915_v63, %s3923_s12  ;;  %v1887_v55 = vmul.f32 %v4907_v35, %v5103_v8  ;;  %v1848_v63 = vadd.f32 %v1816_v49, %v1776_v51  ;;  %v1849_v3 = vadd.f32 %v1817_v14, %v1777_v52 }
 0x272   : > { %v1781_v14 = vmul.f32 %v4887_v41, %v5121_v47 }
 0x273   : > { %v1920_v51 = vadd.f32 %v1888_v25, %v1848_v63  ;;  %v1919_v49 = vadd.f32 %v1887_v55, %v1847_v48  ;;  %v1779_v48 = vmul.f32 %v4887_v41, %v5103_v8  ;;  %v1819_v25 = vmul.f32 %v4885_v7, %v5121_v47  ;;  %v1536_v55 = vld [vmem:[#allocation2 + $0x171] sm:$0xff]  ;;  %v5137_v63 = vld [vmem:[#allocation2 + $0x169] sm:$0xff] }
 0x274   : > { %v1892_v22 = vmul.f32 %v4907_v35, %v1536_v55  ;;  %v1891_v21 = vmul.f32 %v4907_v35, %v5137_v63  ;;  %v1822_v52 = vmul.f32 %v4885_v7, %v1536_v55 }
 0x275   : > { %2003 = vrot.lane.b32.xlu0 %v1918_v62, %s3923_s12  ;;  %2001 = vrot.lane.b32.xlu1 %v1917_v11, %s3923_s12  ;;  %v1889_v62 = vmul.f32 %v4907_v35, %v5121_v47  ;;  %v1850_v11 = vadd.f32 %v1818_v26, %v1778_v20  ;;  %v1784_v47 = vmul.f32 %v4887_v41, %v1536_v55 }
 0x277   : > { %v1922_v20 = vadd.f32 %v1890_v9, %v1850_v11  ;;  %v1921_v26 = vadd.f32 %v1889_v62, %v1849_v3  ;;  %v1852_v3 = vadd.f32 %v1820_v53, %v1780_v24  ;;  %v1851_v9 = vadd.f32 %v1819_v25, %v1779_v48  ;;  %v1538_v62 = vld [vmem:[#allocation2 + $0x189] sm:$0xff]  ;;  %v1537_v11 = vld [vmem:[#allocation2 + $0x181] sm:$0xff]  ;;  %v1539_v53 = vld [vmem:[#allocation2 + $0x199] sm:$0xff] }
 0x278   : > { %v1894_v58 = vmul.f32 %v4907_v35, %v1538_v62  ;;  %v1893_v56 = vmul.f32 %v4907_v35, %v1537_v11  ;;  %v1783_v24 = vmul.f32 %v4887_v41, %v5137_v63 }
 0x279   : > { %2007 = vrot.lane.b32.xlu0 %v1920_v51, %s3923_s12  ;;  %2005 = vrot.lane.b32.xlu1 %v1919_v49, %s3923_s12  ;;  %v1782_v51 = vmul.f32 %v4887_v41, %v5119_v12  ;;  %v1821_v49 = vmul.f32 %v4885_v7, %v5137_v63  ;;  %v1924_v2 = vadd.f32 %v1892_v22, %v1852_v3 }
 0x27a   : > { %v1923_v59 = vadd.f32 %v1891_v21, %v1851_v9  ;;  %v1823_v22 = vmul.f32 %v4885_v7, %v1537_v11  ;;  %v1540_v21 = vld [vmem:[#allocation2 + $0x1a1] sm:$0xff] }
 0x27b   : > { %v1854_v8 = vadd.f32 %v1822_v52, %v1782_v51  ;;  %v1853_v54 = vadd.f32 %v1821_v49, %v1781_v14  ;;  %v1895_v51 = vmul.f32 %v4907_v35, %v1539_v53 }
 0x27d   : > { %2011 = vrot.lane.b32.xlu0 %v1922_v20, %s3923_s12  ;;  %2009 = vrot.lane.b32.xlu1 %v1921_v26, %s3923_s12  ;;  %v1824_v20 = vmul.f32 %v4885_v7, %v1538_v62  ;;  %v1926_v48 = vadd.f32 %v1894_v58, %v1854_v8  ;;  %v1925_v25 = vadd.f32 %v1893_v56, %v1853_v54  ;;  %v5171_v7 = vsub.s32 7, %v4106_v34  ;;  %v5183_v54 = vld [vmem:[%s7438_s2 + $0x18] sm:$0x7]  ;;  %v7602_v8 = vld [vmem:[#allocation3_spill] sm:$0xff] }
 0x27e   : > { %v1896_v26 = vmul.f32 %v4907_v35, %v1540_v21  ;;  %v2132_v58 = vrot.slane %v4795_v39, %v4807_v46  ;;  %v2092_v56 = vrot.slane %v4802_v28, %v4788_v40  ;;  %v3060_v14 = vrot.slane %v4814_v33, %v7602_v8 }
 0x27f   : > { %v2204_v41 = vrot.slane %v4814_v33, %v5171_v7  ;;  %v2676_v35 = vrot.slane %v4802_v28, %v5171_v7 }
 0x281   : > { %2015 = vrot.lane.b32.xlu0 %v1924_v2, %s3923_s12  ;;  %2013 = vrot.lane.b32.xlu1 %v1923_v59, %s3923_s12  ;;  %v1856_v59 = vadd.f32 %v1824_v20, %v1784_v47  ;;  %v1855_v2 = vadd.f32 %v1823_v22, %v1783_v24  ;;  %v2788_v47 = vrot.slane %v5183_v54, %v7602_v8 }
 0x283   : > { %v1928_v55 = vadd.f32 %v1896_v26, %v1856_v59  ;;  %v1927_v52 = vadd.f32 %v1895_v51, %v1855_v2 }
 0x285   : > { %2019 = vrot.lane.b32.xlu0 %v1926_v48, %s3923_s12  ;;  %2017 = vrot.lane.b32.xlu1 %v1925_v25, %s3923_s12 }
 0x289   : > { %2023 = vrot.lane.b32.xlu0 %v1928_v55, %s3923_s12  ;;  %2021 = vrot.lane.b32.xlu1 %v1927_v52, %s3923_s12 }
 0x28d   : > { %2134 = vrot.lane.b32.xlu0 %v2132_v58, %s3924_s13  ;;  %2094 = vrot.lane.b32.xlu1 %v2092_v56, %s3924_s13 }
 0x291   : > { %2206 = vrot.lane.b32.xlu1 %v2204_v41, %s3924_s13 }
 0x295   : > { %2678 = vrot.lane.b32.xlu1 %v2676_v35, %s3922_s26 }
 0x299   : > { %2790 = vrot.lane.b32.xlu1 %v2788_v47, %s3922_s26 }
 0x29d   : > { %3062 = vrot.lane.b32.xlu1 %v3060_v14, %s3924_s13 }
 0x2bf   : > { %v5192_v49 = vpop.permute.xlu0 %1963  ;;  %v5194_v3 = vpop.permute.xlu1 %1961 }
 0x2c0   : > { %7603 = vst [vmem:[#allocation3_spill] sm:$0xff] %v5192_v49  ;;  %7604 = vst [vmem:[#allocation71_spill] sm:$0xff] %v5194_v3 }
 0x2c3   : > { %v5196_v9 = vpop.permute.xlu0 %1967  ;;  %v5198_v62 = vpop.permute.xlu1 %1965 }
 0x2c4   : > { %7605 = vst [vmem:[#allocation72_spill] sm:$0xff] %v5196_v9  ;;  %7606 = vst [vmem:[#allocation73_spill] sm:$0xff] %v5198_v62 }
 0x2c7   : > { %v5200_v11 = vpop.permute.xlu0 %1971  ;;  %v5202_v20 = vpop.permute.xlu1 %1969 }
 0x2c8   : > { %7607 = vst [vmem:[#allocation74_spill] sm:$0xff] %v5200_v11  ;;  %7608 = vst [vmem:[#allocation75_spill] sm:$0xff] %v5202_v20 }
 0x2cb   : > { %v5204_v24 = vpop.permute.xlu0 %1975  ;;  %v5206_v22 = vpop.permute.xlu1 %1973 }
 0x2cc   : > { %7609 = vst [vmem:[#allocation76_spill] sm:$0xff] %v5204_v24  ;;  %7610 = vst [vmem:[#allocation77_spill] sm:$0xff] %v5206_v22 }
 0x2cf   : > { %v5208_v21 = vpop.permute.xlu0 %1979  ;;  %v5210_v53 = vpop.permute.xlu1 %1977 }
 0x2d0   : > { %7611 = vst [vmem:[#allocation78_spill] sm:$0xff] %v5208_v21  ;;  %7612 = vst [vmem:[#allocation79_spill] sm:$0xff] %v5210_v53 }
 0x2d3   : > { %v5212_v48 = vpop.permute.xlu0 %1983  ;;  %v5214_v25 = vpop.permute.xlu1 %1981 }
 0x2d4   : > { %7613 = vst [vmem:[#allocation80_spill] sm:$0xff] %v5212_v48  ;;  %7614 = vst [vmem:[#allocation81_spill] sm:$0xff] %v5214_v25 }
 0x2d7   : > { %v5216_v26 = vpop.permute.xlu0 %1987  ;;  %v5218_v51 = vpop.permute.xlu1 %1985 }
 0x2d8   : > { %7615 = vst [vmem:[#allocation82_spill] sm:$0xff] %v5216_v26  ;;  %7616 = vst [vmem:[#allocation83_spill] sm:$0xff] %v5218_v51 }
 0x2db   : > { %v5220_v59 = vpop.permute.xlu0 %1991  ;;  %v5222_v2 = vpop.permute.xlu1 %1989 }
 0x2dc   : > { %7617 = vst [vmem:[#allocation84_spill] sm:$0xff] %v5220_v59  ;;  %7618 = vst [vmem:[#allocation85_spill] sm:$0xff] %v5222_v2 }
 0x2df   : > { %v5224_v55 = vpop.permute.xlu0 %1995  ;;  %v5226_v52 = vpop.permute.xlu1 %1993 }
 0x2e0   : > { %7619 = vst [vmem:[#allocation86_spill] sm:$0xff] %v5226_v52 }
 0x2e3   : > { %v5228_v58 = vpop.permute.xlu0 %1999  ;;  %v5230_v56 = vpop.permute.xlu1 %1997 }
 0x2e7   : > { %v5232_v41 = vpop.permute.xlu0 %2003  ;;  %v5234_v35 = vpop.permute.xlu1 %2001 }
 0x2e8   : > { %7620 = vst [vmem:[#allocation87_spill] sm:$0xff] %v5232_v41  ;;  %7621 = vst [vmem:[#allocation88_spill] sm:$0xff] %v5234_v35  ;;  %v3794_v35 = vld [vmem:[#allocation2 + $0x68] sm:$0xff] }
 0x2eb   : > { %v5236_v47 = vpop.permute.xlu0 %2007  ;;  %v5238_v14 = vpop.permute.xlu1 %2005 }
 0x2ec   : > { %7622 = vst [vmem:[#allocation89_spill] sm:$0xff] %v5236_v47  ;;  %7623 = vst [vmem:[#allocation90_spill] sm:$0xff] %v5238_v14 }
 0x2ef   : > { %v5240_v26 = vpop.permute.xlu0 %2011  ;;  %v5242_v59 = vpop.permute.xlu1 %2009 }
 0x2f0   : > { %7624 = vst [vmem:[#allocation91_spill] sm:$0xff] %v5240_v26  ;;  %7625 = vst [vmem:[#allocation92_spill] sm:$0xff] %v5242_v59 }
 0x2f3   : > { %v5244_v2 = vpop.permute.xlu0 %2015  ;;  %v5246_v51 = vpop.permute.xlu1 %2013 }
 0x2f4   : > { %7626 = vst [vmem:[#allocation93_spill] sm:$0xff] %v5244_v2  ;;  %7627 = vst [vmem:[#allocation94_spill] sm:$0xff] %v5246_v51 }
 0x2f7   : > { %v5248_v52 = vpop.permute.xlu0 %2019  ;;  %v5250_v48 = vpop.permute.xlu1 %2017 }
 0x2f8   : > { %7628 = vst [vmem:[#allocation95_spill] sm:$0xff] %v5248_v52  ;;  %7629 = vst [vmem:[#allocation96_spill] sm:$0xff] %v5250_v48 }
 0x2fb   : > { %v5252_v25 = vpop.permute.xlu0 %2023  ;;  %v5254_v21 = vpop.permute.xlu1 %2021 }
 0x2fc   : > { %7630 = vst [vmem:[#allocation97_spill] sm:$0xff] %v5252_v25  ;;  %7631 = vst [vmem:[#allocation98_spill] sm:$0xff] %v5254_v21 }
 0x2ff   : > { %v5256_v53 = vpop.permute.xlu0 %2134  ;;  %v5258_v24 = vpop.permute.xlu1 %2094 }
 0x300   : > { %7632 = vst [vmem:[#allocation99_spill] sm:$0xff] %v5256_v53  ;;  %7633 = vst [vmem:[#allocation100_spill] sm:$0xff] %v5258_v24  ;;  %v2098_v22 = vmul.f32 %v5258_v24, %v4889_v42  ;;  %v2138_v2 = vmul.f32 %v5256_v53, %v4891_v13  ;;  %v2097_v11 = vmul.f32 %v5258_v24, %v4893_v60  ;;  %v5279_v60 = vsub.s32 0, %v4106_v34 }
 0x301   : > { %v2137_v52 = vmul.f32 %v5256_v53, %v4883_v10  ;;  %v2100_v25 = vmul.f32 %v5258_v24, %v4891_v13  ;;  %v2140_v21 = vmul.f32 %v5256_v53, %v4903_v4  ;;  %v2142_v34 = vmul.f32 %v5256_v53, %v4921_v44 }
 0x302   : > { %v2170_v20 = vadd.f32 %v2138_v2, %v2098_v22  ;;  %v2716_v59 = vrot.slane %v4814_v33, %v5279_v60 }
 0x303   : > { %v5268_v48 = vpop.permute.xlu1 %2206  ;;  %v2169_v9 = vadd.f32 %v2137_v52, %v2097_v11  ;;  %v2172_v22 = vadd.f32 %v2140_v21, %v2100_v25  ;;  %v2102_v11 = vmul.f32 %v5258_v24, %v4903_v4  ;;  %v2106_v52 = vmul.f32 %v5258_v24, %v4939_v6 }
 0x304   : > { %7634 = vst [vmem:[#allocation101_spill] sm:$0xff] %v5268_v48  ;;  %v2210_v42 = vmul.f32 %v5268_v48, %v4903_v4  ;;  %v2209_v62 = vmul.f32 %v5268_v48, %v4905_v30  ;;  %v2212_v51 = vmul.f32 %v5268_v48, %v4921_v44  ;;  %v2216_v25 = vmul.f32 %v5268_v48, %v4957_v43 }
 0x306   : > { %v2242_v49 = vadd.f32 %v2210_v42, %v2170_v20  ;;  %v2241_v3 = vadd.f32 %v2209_v62, %v2169_v9  ;;  %v2244_v2 = vadd.f32 %v2212_v51, %v2172_v22  ;;  %v2214_v9 = vmul.f32 %v5268_v48, %v4939_v6 }
 0x307   : > { %v3020_v62 = vrot.slane %v4795_v39, %v5279_v60  ;;  %v2144_v20 = vmul.f32 %v5256_v53, %v4939_v6  ;;  %v3132_v51 = vrot.slane %v5183_v54, %v4116_v38  ;;  %v2099_v22 = vmul.f32 %v5258_v24, %v4883_v10 }
 0x308   : > { %2307 = vrot.lane.b32.xlu1 %v2242_v49, %s3925_s14  ;;  %2305 = vrot.lane.b32.xlu0 %v2241_v3, %s3925_s14  ;;  %v2174_v49 = vadd.f32 %v2142_v34, %v2102_v11  ;;  %v2104_v3 = vmul.f32 %v5258_v24, %v4921_v44  ;;  %v2139_v11 = vmul.f32 %v5256_v53, %v4905_v30 }
 0x30a   : > { %v2246_v21 = vadd.f32 %v2214_v9, %v2174_v49  ;;  %v2176_v42 = vadd.f32 %v2144_v20, %v2104_v3  ;;  %v2211_v9 = vmul.f32 %v5268_v48, %v4923_v17  ;;  %v2171_v3 = vadd.f32 %v2139_v11, %v2099_v22 }
 0x30b   : > { %v2101_v20 = vmul.f32 %v5258_v24, %v4905_v30  ;;  %v2103_v11 = vmul.f32 %v5258_v24, %v4923_v17 }
 0x30c   : > { %2311 = vrot.lane.b32.xlu1 %v2244_v2, %s3925_s14  ;;  %2718 = vrot.lane.b32.xlu0 %v2716_v59, %s3922_s26  ;;  %v2146_v59 = vmul.f32 %v5256_v53, %v4957_v43  ;;  %v2248_v34 = vadd.f32 %v2216_v25, %v2176_v42  ;;  %v2218_v2 = vmul.f32 %v5268_v48, %v4975_v23 }
 0x30d   : > { %v2141_v25 = vmul.f32 %v5256_v53, %v4923_v17  ;;  %v2243_v26 = vadd.f32 %v2211_v9, %v2171_v3  ;;  %v2112_v3 = vmul.f32 %v5258_v24, %v4993_v5 }
 0x30e   : > { %v2178_v49 = vadd.f32 %v2146_v59, %v2106_v52  ;;  %v2220_v52 = vmul.f32 %v5268_v48, %v4993_v5  ;;  %v2213_v59 = vmul.f32 %v5268_v48, %v4941_v27 }
 0x30f   : > { %v2173_v22 = vadd.f32 %v2141_v25, %v2101_v20  ;;  %v2145_v25 = vmul.f32 %v5256_v53, %v4959_v19 }
 0x310   : > { %2315 = vrot.lane.b32.xlu1 %v2246_v21, %s3925_s14  ;;  %3022 = vrot.lane.b32.xlu0 %v3020_v62, %s3924_s13  ;;  %v2108_v21 = vmul.f32 %v5258_v24, %v4957_v43  ;;  %v2148_v62 = vmul.f32 %v5256_v53, %v4975_v23  ;;  %v2250_v42 = vadd.f32 %v2218_v2, %v2178_v49 }
 0x311   : > { %v2143_v2 = vmul.f32 %v5256_v53, %v4941_v27  ;;  %v2245_v49 = vadd.f32 %v2213_v59, %v2173_v22  ;;  %v2224_v59 = vmul.f32 %v5268_v48, %v5029_v37  ;;  %v2154_v22 = vmul.f32 %v5256_v53, %v5029_v37 }
 0x312   : > { %v2180_v14 = vadd.f32 %v2148_v62, %v2108_v21  ;;  %v2222_v21 = vmul.f32 %v5268_v48, %v5011_v36 }
 0x313   : > { %v2175_v20 = vadd.f32 %v2143_v2, %v2103_v11  ;;  %v2107_v2 = vmul.f32 %v5258_v24, %v4959_v19 }
 0x314   : > { %2319 = vrot.lane.b32.xlu1 %v2248_v34, %s3925_s14  ;;  %3134 = vrot.lane.b32.xlu0 %v3132_v51, %s3924_s13  ;;  %v2110_v34 = vmul.f32 %v5258_v24, %v4975_v23  ;;  %v2150_v51 = vmul.f32 %v5256_v53, %v4993_v5  ;;  %v2252_v9 = vadd.f32 %v2220_v52, %v2180_v14 }
 0x315   : > { %v2215_v23 = vmul.f32 %v5268_v48, %v4959_v19  ;;  %v2105_v14 = vmul.f32 %v5258_v24, %v4941_v27  ;;  %v2217_v5 = vmul.f32 %v5268_v48, %v4977_v57 }
 0x316   : > { %v2182_v62 = vadd.f32 %v2150_v51, %v2110_v34  ;;  %v2114_v51 = vmul.f32 %v5258_v24, %v5011_v36 }
 0x317   : > { %v2247_v52 = vadd.f32 %v2215_v23, %v2175_v20  ;;  %v2177_v11 = vadd.f32 %v2145_v25, %v2105_v14  ;;  %v2226_v23 = vmul.f32 %v5268_v48, %v5047_v15  ;;  %v2156_v20 = vmul.f32 %v5256_v53, %v5047_v15 }
 0x318   : > { %2323 = vrot.lane.b32.xlu1 %v2250_v42, %s3925_s14  ;;  %2309 = vrot.lane.b32.xlu0 %v2243_v26, %s3925_s14  ;;  %v2152_v26 = vmul.f32 %v5256_v53, %v5011_v36  ;;  %v2254_v42 = vadd.f32 %v2222_v21, %v2182_v62  ;;  %v2219_v62 = vmul.f32 %v5268_v48, %v4995_v18 }
 0x319   : > { %v2249_v21 = vadd.f32 %v2217_v5, %v2177_v11  ;;  %v2109_v25 = vmul.f32 %v5258_v24, %v4977_v57  ;;  %v2228_v5 = vmul.f32 %v5268_v48, %v5065_v16  ;;  %v2158_v11 = vmul.f32 %v5256_v53, %v5065_v16 }
 0x31a   : > { %v2184_v34 = vadd.f32 %v2152_v26, %v2112_v3  ;;  %v2186_v3 = vadd.f32 %v2154_v22, %v2114_v51  ;;  %v2116_v26 = vmul.f32 %v5258_v24, %v5029_v37  ;;  %v2118_v22 = vmul.f32 %v5258_v24, %v5047_v15 }
 0x31c   : > { %2327 = vrot.lane.b32.xlu1 %v2252_v9, %s3925_s14  ;;  %2313 = vrot.lane.b32.xlu0 %v2245_v49, %s3925_s14  ;;  %v2147_v9 = vmul.f32 %v5256_v53, %v4977_v57  ;;  %v2256_v49 = vadd.f32 %v2224_v59, %v2184_v34  ;;  %v2221_v34 = vmul.f32 %v5268_v48, %v5013_v50 }
 0x31d   : > { %v2188_v51 = vadd.f32 %v2156_v20, %v2116_v26  ;;  %v2230_v26 = vmul.f32 %v5268_v48, %v5083_v0  ;;  %v2223_v20 = vmul.f32 %v5268_v48, %v5031_v61 }
 0x31e   : > { %v2179_v14 = vadd.f32 %v2147_v9, %v2107_v2  ;;  %v2111_v2 = vmul.f32 %v5258_v24, %v4995_v18  ;;  %v2151_v9 = vmul.f32 %v5256_v53, %v5013_v50 }
 0x320   : > { %2331 = vrot.lane.b32.xlu1 %v2254_v42, %s3925_s14  ;;  %2317 = vrot.lane.b32.xlu0 %v2247_v52, %s3925_s14  ;;  %v2149_v42 = vmul.f32 %v5256_v53, %v4995_v18  ;;  %v2258_v52 = vadd.f32 %v2226_v23, %v2186_v3  ;;  %v2251_v59 = vadd.f32 %v2219_v62, %v2179_v14 }
 0x321   : > { %v5409_v23 = vrot.slane %v4802_v28, %v4133_v45  ;;  %v5413_v62 = vrot.slane %v4795_v39, %v4488_v32  ;;  %v2260_v18 = vadd.f32 %v2228_v5, %v2188_v51  ;;  %v2190_v14 = vadd.f32 %v2158_v11, %v2118_v22 }
 0x322   : > { %v2181_v57 = vadd.f32 %v2149_v42, %v2109_v25  ;;  %v2120_v45 = vmul.f32 %v5258_v24, %v5065_v16  ;;  %v2160_v32 = vmul.f32 %v5256_v53, %v5083_v0  ;;  %v2183_v25 = vadd.f32 %v2151_v9, %v2111_v2 }
 0x323   : > { %7637 = vst [vmem:[#allocation104_spill] sm:$0xff] %v5409_v23  ;;  %7638 = vst [vmem:[#allocation105_spill] sm:$0xff] %v5413_v62  ;;  %v2113_v42 = vmul.f32 %v5258_v24, %v5013_v50  ;;  %v5443_v5 = vrot.slane %v4795_v39, %v5171_v7  ;;  %v2262_v50 = vadd.f32 %v2230_v26, %v2190_v14 }
 0x324   : > { %2335 = vrot.lane.b32.xlu1 %v2256_v49, %s3925_s14  ;;  %2321 = vrot.lane.b32.xlu0 %v2249_v21, %s3925_s14  ;;  %v5401_v49 = vrot.slane %v4802_v28, %v5279_v60  ;;  %v5405_v21 = vrot.slane %v4795_v39, %v7602_v8  ;;  %v2253_v3 = vadd.f32 %v2221_v34, %v2181_v57  ;;  %v3789_v57 = vld [vmem:[#allocation2 + $0x30] sm:$0xff] }
 0x325   : > { %v5421_v8 = vrot.slane %v4814_v33, %v4116_v38  ;;  %v5435_v38 = vrot.slane %v4814_v33, %v4788_v40  ;;  %7642 = vst [vmem:[#allocation109_spill] sm:$0xff] %v5443_v5  ;;  %v5447_v34 = vrot.slane %v5183_v54, %v5279_v60  ;;  %v2255_v51 = vadd.f32 %v2223_v20, %v2183_v25  ;;  %v3788_v33 = vld [vmem:[#allocation2 + $0x18] sm:$0xff] }
 0x326   : > { %7635 = vst [vmem:[#allocation102_spill] sm:$0xff] %v5401_v49  ;;  %7636 = vst [vmem:[#allocation103_spill] sm:$0xff] %v5405_v21  ;;  %v2232_v22 = vmul.f32 %v5268_v48, %v5101_v31  ;;  %v2225_v40 = vmul.f32 %v5268_v48, %v5049_v29  ;;  %v2122_v39 = vmul.f32 %v5258_v24, %v5083_v0 }
 0x327   : > { %7639 = vst [vmem:[#allocation106_spill] sm:$0xff] %v5421_v8  ;;  %7640 = vst [vmem:[#allocation107_spill] sm:$0xff] %v5435_v38  ;;  %v2162_v7 = vmul.f32 %v5256_v53, %v5101_v31  ;;  %v2115_v60 = vmul.f32 %v5258_v24, %v5031_v61  ;;  %v2155_v11 = vmul.f32 %v5256_v53, %v5049_v29 }
 0x328   : > { %2339 = vrot.lane.b32.xlu1 %v2258_v52, %s3925_s14  ;;  %2325 = vrot.lane.b32.xlu0 %v2251_v59, %s3925_s14  ;;  %v2153_v52 = vmul.f32 %v5256_v53, %v5031_v61  ;;  %v5439_v59 = vrot.slane %v4802_v28, %v4807_v46  ;;  %7643 = vst [vmem:[#allocation110_spill] sm:$0xff] %v5447_v34 }
 0x329   : > { %v5454_v28 = vmul.f32 %v3788_v33, %v5405_v21  ;;  %v2192_v46 = vadd.f32 %v2160_v32, %v2120_v45  ;;  %v5467_v2 = vmul.f32 %v3789_v57, %v5421_v8  ;;  %v651_v9 = vmul.f32 %v3788_v33, %v5401_v49 }
 0x32a   : > { %7641 = vst [vmem:[#allocation108_spill] sm:$0xff] %v5439_v59  ;;  %v2185_v54 = vadd.f32 %v2153_v52, %v2113_v42  ;;  %v2234_v14 = vmul.f32 %v5268_v48, %v5119_v12  ;;  %v2227_v61 = vmul.f32 %v5268_v48, %v5067_v1  ;;  %v5480_v45 = vmul.f32 %v5413_v62, %v4883_v10 }
 0x32b   : > { %7644 = vst [vmem:[#allocation111_spill] sm:$0xff] %v5454_v28  ;;  %7645 = vst [vmem:[#allocation112_spill] sm:$0xff] %v5467_v2  ;;  %v2264_v26 = vadd.f32 %v2232_v22, %v2192_v46  ;;  %v5484_v32 = vmul.f32 %v5435_v38, %v4905_v30  ;;  %v1547_v25 = vmul.f32 %v5409_v23, %v4883_v10  ;;  %v3790_v22 = vld [vmem:[#allocation2 + $0x20] sm:$0xff] }
 0x32c   : > { %2343 = vrot.lane.b32.xlu1 %v2260_v18, %s3925_s14  ;;  %2329 = vrot.lane.b32.xlu0 %v2253_v3, %s3925_s14  ;;  %v687_v18 = vmul.f32 %v3789_v57, %v5405_v21  ;;  %v5472_v3 = vmul.f32 %v3789_v57, %v5401_v49  ;;  %v2257_v20 = vadd.f32 %v2225_v40, %v2185_v54 }
 0x32d   : > { %7646 = vst [vmem:[#allocation113_spill] sm:$0xff] %v5480_v45  ;;  %7647 = vst [vmem:[#allocation114_spill] sm:$0xff] %v5484_v32  ;;  %v2194_v42 = vadd.f32 %v2162_v7, %v2122_v39  ;;  %v2187_v52 = vadd.f32 %v2155_v11, %v2115_v60  ;;  %v5495_v40 = vmul.f32 %v3790_v22, %v5405_v21  ;;  %v3791_v39 = vld [vmem:[#allocation2 + $0x38] sm:$0xff]  ;;  %v3793_v32 = vld [vmem:[#allocation2 + $0x48] sm:$0xff] }
 0x32e   : > { %v719_v33 = vadd.f32 %v687_v18, %v651_v9  ;;  %v1583_v10 = vmul.f32 %v5413_v62, %v4905_v30  ;;  %v5501_v46 = vmul.f32 %v5409_v23, %v4905_v30  ;;  %v5504_v7 = vmul.f32 %v3791_v39, %v5421_v8  ;;  %v7650_v11 = vld [vmem:[#allocation68_spill] sm:$0xff]  ;;  %v7655_v45 = vld [vmem:[#allocation69_spill] sm:$0xff] }
 0x32f   : > { %7648 = vst [vmem:[#allocation115_spill] sm:$0xff] %v5495_v40  ;;  %v2266_v54 = vadd.f32 %v2234_v14, %v2194_v42  ;;  %v2259_v60 = vadd.f32 %v2227_v61, %v2187_v52  ;;  %v2229_v57 = vmul.f32 %v5268_v48, %v7650_v11  ;;  %v688_v9 = vmul.f32 %v3791_v39, %v5405_v21  ;;  %v5521_v42 = vld [vmem:[#allocation2 + $0x22] sm:$0xff] }
 0x330   : > { %2347 = vrot.lane.b32.xlu1 %v2262_v50, %s3925_s14  ;;  %2333 = vrot.lane.b32.xlu0 %v2255_v51, %s3925_s14  ;;  %v2117_v50 = vmul.f32 %v5258_v24, %v5049_v29  ;;  %v2157_v51 = vmul.f32 %v5256_v53, %v5067_v1  ;;  %7649 = vst [vmem:[#allocation116_spill] sm:$0xff] %v5504_v7  ;;  %7652 = vst [vmem:[#allocation117_spill] sm:$0xff] %v5521_v42 }
 0x331   : > { %v654_v18 = vmul.f32 %v3791_v39, %v5401_v49  ;;  %v2119_v14 = vmul.f32 %v5258_v24, %v5067_v1  ;;  %v2159_v61 = vmul.f32 %v5256_v53, %v7650_v11  ;;  %v5525_v52 = vmul.f32 %v5435_v38, %v4903_v4 }
 0x332   : > { %v2189_v30 = vadd.f32 %v2157_v51, %v2117_v50  ;;  %v1584_v39 = vmul.f32 %v5413_v62, %v4903_v4  ;;  %v5531_v50 = vld [vmem:[#allocation2 + $0x1a] sm:$0xff]  ;;  %v3792_v51 = vld [vmem:[#allocation2 + $0x50] sm:$0xff]  ;;  %v755_v2 = vmul.f32 %v3793_v32, %v5421_v8  ;;  %v758_v41 = vmul.f32 %v3794_v35, %v5421_v8 }
 0x333   : > { %7653 = vst [vmem:[#allocation118_spill] sm:$0xff] %v5525_v52  ;;  %7654 = vst [vmem:[#allocation119_spill] sm:$0xff] %v5531_v50  ;;  %v5537_v52 = vld [vmem:[#allocation2 + $0x3a] sm:$0xff]  ;;  %v656_v40 = vmul.f32 %v3792_v51, %v5401_v49 }
 0x334   : > { %2351 = vrot.lane.b32.xlu1 %v2264_v26, %s3925_s14  ;;  %2337 = vrot.lane.b32.xlu0 %v2257_v20, %s3925_s14  ;;  %v652_v26 = vmul.f32 %v3790_v22, %v5401_v49  ;;  %v5513_v20 = vmul.f32 %v5413_v62, %v4891_v13  ;;  %v1548_v22 = vmul.f32 %v5409_v23, %v4891_v13 }
 0x335   : > { %v2261_v7 = vadd.f32 %v2229_v57, %v2189_v30  ;;  %7656 = vst [vmem:[#allocation69_spill] sm:$0xff] %v5537_v52  ;;  %v1550_v13 = vmul.f32 %v5409_v23, %v4903_v4  ;;  %v2191_v57 = vadd.f32 %v2159_v61, %v2119_v14  ;;  %v2121_v30 = vmul.f32 %v5258_v24, %v7650_v11 }
 0x336   : > { %7651 = vst [vmem:[#allocation68_spill] sm:$0xff] %v5513_v20  ;;  %v2231_v20 = vmul.f32 %v5268_v48, %v7655_v45  ;;  %v720_v28 = vadd.f32 %v688_v9, %v652_v26  ;;  %v2161_v26 = vmul.f32 %v5256_v53, %v7655_v45  ;;  %v5556_v4 = vmul.f32 %v5443_v5, %v5531_v50 }
 0x337   : > { %v690_v9 = vmul.f32 %v3792_v51, %v5405_v21  ;;  %v5564_v14 = vadd.f32 %v755_v2, %v719_v33  ;;  %v1652_v50 = vmul.f32 %v5435_v38, %v4921_v44 }
 0x338   : > { %2355 = vrot.lane.b32.xlu1 %v2266_v54, %s3925_s14  ;;  %2341 = vrot.lane.b32.xlu0 %v2259_v60, %s3925_s14  ;;  %v1615_v54 = vadd.f32 %v1583_v10, %v1547_v25  ;;  %v756_v60 = vmul.f32 %v3792_v51, %v5421_v8  ;;  %v5543_v25 = vmul.f32 %v5443_v5, %v5521_v42  ;;  %v3795_v42 = vld [vmem:[#allocation2 + $0x60] sm:$0xff] }
 0x339   : > { %v5547_v10 = vmul.f32 %v5447_v34, %v5537_v52  ;;  %7659 = vst [vmem:[#allocation122_spill] sm:$0xff] %v5556_v4  ;;  %7661 = vst [vmem:[#allocation124_spill] sm:$0xff] %v5564_v14  ;;  %v2263_v61 = vadd.f32 %v2231_v20, %v2191_v57  ;;  %v7662_v52 = vld [vmem:[#allocation70_spill] sm:$0xff]  ;;  %v1616_v4 = vadd.f32 %v1584_v39, %v1548_v22 }
 0x33a   : > { %7657 = vst [vmem:[#allocation120_spill] sm:$0xff] %v5543_v25  ;;  %v689_v25 = vmul.f32 %v3793_v32, %v5405_v21  ;;  %v2233_v47 = vmul.f32 %v5268_v48, %v7662_v52  ;;  %v1651_v51 = vmul.f32 %v5435_v38, %v4923_v17  ;;  %v2193_v2 = vadd.f32 %v2161_v26, %v2121_v30 }
 0x33b   : > { %7658 = vst [vmem:[#allocation121_spill] sm:$0xff] %v5547_v10  ;;  %v655_v10 = vmul.f32 %v3793_v32, %v5401_v49  ;;  %v2123_v32 = vmul.f32 %v5258_v24, %v7655_v45  ;;  %v2163_v33 = vmul.f32 %v5256_v53, %v7662_v52  ;;  %v722_v20 = vadd.f32 %v690_v9, %v654_v18 }
 0x33c   : > { %2345 = vrot.lane.b32.xlu0 %v2261_v7, %s3925_s14  ;;  %v5562_v7 = vadd.f32 %v756_v60, %v720_v28  ;;  %v757_v28 = vmul.f32 %v3795_v42, %v5421_v8  ;;  %v692_v22 = vmul.f32 %v3794_v35, %v5405_v21  ;;  %v691_v39 = vmul.f32 %v3795_v42, %v5405_v21 }
 0x33d   : > { %v1586_v60 = vmul.f32 %v5413_v62, %v4921_v44  ;;  %v721_v57 = vadd.f32 %v689_v25, %v5472_v3  ;;  %v2235_v30 = vmul.f32 %v5268_v48, %v5137_v63  ;;  %v5587_v26 = vadd.f32 %v758_v41, %v722_v20  ;;  %v3796_v41 = vld [vmem:[#allocation2 + $0x80] sm:$0xff] }
 0x33e   : > { %7660 = vst [vmem:[#allocation123_spill] sm:$0xff] %v5562_v7  ;;  %v658_v7 = vmul.f32 %v3794_v35, %v5401_v49  ;;  %v657_v14 = vmul.f32 %v3795_v42, %v5401_v49  ;;  %v5590_v18 = vadd.f32 %v1652_v50, %v1616_v4  ;;  %v5592_v9 = vadd.f32 %v1651_v51, %v1615_v54  ;;  %v3797_v4 = vld [vmem:[#allocation2 + $0x78] sm:$0xff] }
 0x33f   : > { %7663 = vst [vmem:[#allocation70_spill] sm:$0xff] %v5587_v26  ;;  %v5594_v53 = vadd.f32 %v757_v28, %v721_v57  ;;  %v1654_v24 = vmul.f32 %v5435_v38, %v4939_v6  ;;  %v1585_v35 = vmul.f32 %v5413_v62, %v4923_v17  ;;  %v724_v3 = vadd.f32 %v692_v22, %v656_v40  ;;  %v3817_v26 = vld [vmem:[#allocation2 + $0x168] sm:$0xff] }
 0x340   : > { %2349 = vrot.lane.b32.xlu0 %v2263_v61, %s3925_s14  ;;  %v2265_v61 = vadd.f32 %v2233_v47, %v2193_v2  ;;  %7664 = vst [vmem:[#allocation125_spill] sm:$0xff] %v5590_v18  ;;  %7665 = vst [vmem:[#allocation126_spill] sm:$0xff] %v5592_v9  ;;  %v2195_v47 = vadd.f32 %v2163_v33, %v2123_v32  ;;  %v760_v25 = vmul.f32 %v3796_v41, %v5421_v8  ;;  %v3799_v33 = vld [vmem:[#allocation2 + $0x90] sm:$0xff] }
 0x341   : > { %7666 = vst [vmem:[#allocation127_spill] sm:$0xff] %v5594_v53  ;;  %v723_v42 = vadd.f32 %v691_v39, %v655_v10  ;;  %v1618_v50 = vadd.f32 %v1586_v60, %v1550_v13  ;;  %v759_v54 = vmul.f32 %v3797_v4, %v5421_v8  ;;  %v694_v51 = vmul.f32 %v3796_v41, %v5405_v21  ;;  %v3798_v10 = vld [vmem:[#allocation2 + $0x98] sm:$0xff]  ;;  %v3800_v18 = vld [vmem:[#allocation2 + $0x49] sm:$0xff] }
 0x342   : > { %v693_v28 = vmul.f32 %v3797_v4, %v5405_v21  ;;  %v2267_v2 = vadd.f32 %v2235_v30, %v2195_v47  ;;  %v660_v20 = vmul.f32 %v3796_v41, %v5401_v49  ;;  %v659_v17 = vmul.f32 %v3797_v4, %v5401_v49 }
 0x343   : > { %v1653_v40 = vmul.f32 %v5435_v38, %v4941_v27  ;;  %v1588_v32 = vmul.f32 %v5413_v62, %v4939_v6  ;;  %v762_v13 = vmul.f32 %v3798_v10, %v5421_v8  ;;  %v761_v22 = vmul.f32 %v3799_v33, %v5421_v8 }
 0x344   : > { %2353 = vrot.lane.b32.xlu0 %v2265_v61, %s3925_s14  ;;  %v5613_v39 = vadd.f32 %v1654_v24, %v1618_v50  ;;  %v1617_v60 = vadd.f32 %v1585_v35, %v5501_v46  ;;  %v696_v57 = vmul.f32 %v3798_v10, %v5405_v21  ;;  %v695_v61 = vmul.f32 %v3799_v33, %v5405_v21 }
 0x345   : > { %v1552_v30 = vmul.f32 %v5409_v23, %v4921_v44  ;;  %v1656_v6 = vmul.f32 %v5435_v38, %v4957_v43  ;;  %v5623_v47 = vadd.f32 %v760_v25, %v724_v3  ;;  %v5625_v41 = vadd.f32 %v759_v54, %v723_v42 }
 0x346   : > { %7667 = vst [vmem:[#allocation128_spill] sm:$0xff] %v5613_v39  ;;  %v726_v24 = vadd.f32 %v694_v51, %v658_v7  ;;  %v725_v50 = vadd.f32 %v693_v28, %v657_v14  ;;  %v662_v46 = vmul.f32 %v3798_v10, %v5401_v49  ;;  %v5629_v35 = vmul.f32 %v3799_v33, %v5401_v49  ;;  %v3801_v51 = vld [vmem:[#allocation2 + $0xb0] sm:$0xff]  ;;  %v3805_v33 = vld [vmem:[#allocation2 + $0xf8] sm:$0xff] }
 0x347   : > { %7668 = vst [vmem:[#allocation129_spill] sm:$0xff] %v5623_v47  ;;  %7669 = vst [vmem:[#allocation130_spill] sm:$0xff] %v5625_v41  ;;  %v5631_v4 = vadd.f32 %v1653_v40, %v1617_v60  ;;  %v1551_v3 = vmul.f32 %v3800_v18, %v5409_v23  ;;  %v1587_v25 = vmul.f32 %v5413_v62, %v4941_v27  ;;  %v3802_v40 = vld [vmem:[#allocation2 + $0xa8] sm:$0xff] }
 0x348   : > { %2357 = vrot.lane.b32.xlu0 %v2267_v2, %s3925_s14  ;;  %7670 = vst [vmem:[#allocation131_spill] sm:$0xff] %v5629_v35  ;;  %v1620_v2 = vadd.f32 %v1588_v32, %v1552_v30  ;;  %v5633_v39 = vadd.f32 %v762_v13, %v726_v24  ;;  %v5635_v44 = vadd.f32 %v761_v22, %v725_v50  ;;  %v3803_v18 = vld [vmem:[#allocation2 + $0x69] sm:$0xff] }
 0x349   : > { %7671 = vst [vmem:[#allocation132_spill] sm:$0xff] %v5631_v4  ;;  %v728_v7 = vadd.f32 %v696_v57, %v660_v20  ;;  %v727_v14 = vadd.f32 %v695_v61, %v659_v17  ;;  %v5644_v54 = vmul.f32 %v5435_v38, %v4959_v19  ;;  %v764_v28 = vmul.f32 %v3801_v51, %v5421_v8  ;;  %v3804_v19 = vld [vmem:[#allocation2 + $0xe0] sm:$0xff]  ;;  %v3806_v57 = vld [vmem:[#allocation2 + $0xf0] sm:$0xff]  ;;  %v3807_v24 = vld [vmem:[#allocation2 + $0xc8] sm:$0xff] }
 0x34a   : > { %7672 = vst [vmem:[#allocation133_spill] sm:$0xff] %v5633_v39  ;;  %7673 = vst [vmem:[#allocation134_spill] sm:$0xff] %v5635_v44  ;;  %v5640_v42 = vadd.f32 %v1656_v6, %v1620_v2  ;;  %v763_v32 = vmul.f32 %v3802_v40, %v5421_v8  ;;  %v698_v10 = vmul.f32 %v3801_v51, %v5405_v21 }
 0x34b   : > { %7675 = vst [vmem:[#allocation136_spill] sm:$0xff] %v5644_v54  ;;  %v5650_v13 = vmul.f32 %v3803_v18, %v5409_v23  ;;  %v5653_v27 = vmul.f32 %v3802_v40, %v5405_v21  ;;  %v5656_v20 = vmul.f32 %v3801_v51, %v5401_v49  ;;  %v702_v17 = vmul.f32 %v3804_v19, %v5405_v21  ;;  %v3808_v18 = vld [vmem:[#allocation2 + $0x110] sm:$0xff] }
 0x34c   : > { %7674 = vst [vmem:[#allocation135_spill] sm:$0xff] %v5640_v42  ;;  %v704_v22 = vmul.f32 %v3805_v33, %v5405_v21  ;;  %v5661_v60 = vmul.f32 %v3802_v40, %v5401_v49  ;;  %v703_v61 = vmul.f32 %v3806_v57, %v5405_v21  ;;  %v5664_v30 = vadd.f32 %v1587_v25, %v1551_v3  ;;  %v3809_v42 = vld [vmem:[#allocation2 + $0xd8] sm:$0xff]  ;;  %v3810_v25 = vld [vmem:[#allocation2 + $0x108] sm:$0xff] }
 0x34d   : > { %7676 = vst [vmem:[#allocation137_spill] sm:$0xff] %v5650_v13  ;;  %7677 = vst [vmem:[#allocation138_spill] sm:$0xff] %v5653_v27  ;;  %v5668_v6 = vmul.f32 %v5413_v62, %v4957_v43  ;;  %v666_v50 = vmul.f32 %v3807_v24, %v5401_v49  ;;  %v770_v2 = vmul.f32 %v3805_v33, %v5421_v8 }
 0x34e   : > { %7678 = vst [vmem:[#allocation139_spill] sm:$0xff] %v5656_v20  ;;  %7679 = vst [vmem:[#allocation140_spill] sm:$0xff] %v5661_v60  ;;  %v668_v51 = vmul.f32 %v3804_v19, %v5401_v49  ;;  %v772_v40 = vmul.f32 %v3808_v18, %v5421_v8  ;;  %v5674_v39 = vadd.f32 %v764_v28, %v728_v7 }
 0x34f   : > { %7680 = vst [vmem:[#allocation141_spill] sm:$0xff] %v5664_v30  ;;  %7681 = vst [vmem:[#allocation142_spill] sm:$0xff] %v5668_v6  ;;  %v667_v3 = vmul.f32 %v3809_v42, %v5401_v49  ;;  %v771_v44 = vmul.f32 %v3810_v25, %v5421_v8  ;;  %v706_v43 = vmul.f32 %v3808_v18, %v5405_v21 }
 0x350   : > { %7682 = vst [vmem:[#allocation143_spill] sm:$0xff] %v5674_v39  ;;  %v5679_v47 = vadd.f32 %v763_v32, %v727_v14  ;;  %v734_v24 = vadd.f32 %v702_v17, %v666_v50  ;;  %v736_v4 = vadd.f32 %v704_v22, %v668_v51  ;;  %v705_v41 = vmul.f32 %v3810_v25, %v5405_v21  ;;  %v3811_v22 = vld [vmem:[#allocation2 + $0x128] sm:$0xff] }
 0x351   : > { %v5682_v19 = vadd.f32 %v698_v10, %v662_v46  ;;  %v735_v53 = vadd.f32 %v703_v61, %v667_v3  ;;  %v670_v7 = vmul.f32 %v3805_v33, %v5401_v49  ;;  %v669_v28 = vmul.f32 %v3806_v57, %v5401_v49  ;;  %v3812_v10 = vld [vmem:[#allocation2 + $0x120] sm:$0xff] }
 0x352   : > { %7683 = vst [vmem:[#allocation144_spill] sm:$0xff] %v5679_v47  ;;  %v5686_v39 = vadd.f32 %v770_v2, %v734_v24  ;;  %v5688_v42 = vadd.f32 %v772_v40, %v736_v4  ;;  %v672_v9 = vmul.f32 %v3808_v18, %v5401_v49  ;;  %v671_v14 = vmul.f32 %v3810_v25, %v5401_v49  ;;  %v3813_v4 = vld [vmem:[#allocation2 + $0x140] sm:$0xff]  ;;  %v3814_v18 = vld [vmem:[#allocation2 + $0x138] sm:$0xff] }
 0x353   : > { %7684 = vst [vmem:[#allocation145_spill] sm:$0xff] %v5682_v19  ;;  %v5692_v32 = vadd.f32 %v771_v44, %v735_v53  ;;  %v738_v17 = vadd.f32 %v706_v43, %v670_v7  ;;  %v708_v46 = vmul.f32 %v3811_v22, %v5405_v21  ;;  %v707_v61 = vmul.f32 %v3812_v10, %v5405_v21  ;;  %v3815_v25 = vld [vmem:[#allocation2 + $0x158] sm:$0xff] }
 0x354   : > { %v774_v33 = vmul.f32 %v3811_v22, %v5421_v8  ;;  %v737_v57 = vadd.f32 %v705_v41, %v669_v28  ;;  %v773_v50 = vmul.f32 %v3812_v10, %v5421_v8  ;;  %v710_v2 = vmul.f32 %v3813_v4, %v5405_v21  ;;  %v3816_v41 = vld [vmem:[#allocation2 + $0x150] sm:$0xff] }
 0x355   : > { %v776_v51 = vmul.f32 %v3813_v4, %v5421_v8  ;;  %v674_v53 = vmul.f32 %v3811_v22, %v5401_v49  ;;  %v673_v44 = vmul.f32 %v3812_v10, %v5401_v49  ;;  %v709_v40 = vmul.f32 %v3814_v18, %v5405_v21 }
 0x356   : > { %v775_v3 = vmul.f32 %v3814_v18, %v5421_v8  ;;  %v778_v43 = vmul.f32 %v3815_v25, %v5421_v8  ;;  %v711_v24 = vmul.f32 %v3816_v41, %v5405_v21  ;;  %v1598_v7 = vmul.f32 %v5413_v62, %v5029_v37  ;;  %v5837_v21 = vld [vmem:[#allocation2 + $0x13a] sm:$0xff] }
 0x357   : > { %v740_v28 = vadd.f32 %v708_v46, %v672_v9  ;;  %v739_v4 = vadd.f32 %v707_v61, %v671_v14  ;;  %v777_v22 = vmul.f32 %v3816_v41, %v5421_v8  ;;  %v675_v10 = vmul.f32 %v3814_v18, %v5401_v49  ;;  %v5835_v49 = vld [vmem:[#allocation2 + $0x12a] sm:$0xff]  ;;  %7690 = vst [vmem:[#allocation151_spill] sm:$0xff] %v5837_v21 }
 0x358   : > { %v742_v47 = vadd.f32 %v710_v2, %v674_v53  ;;  %v779_v48 = vmul.f32 %v3817_v26, %v5421_v8  ;;  %v1562_v60 = vmul.f32 %v5409_v23, %v5011_v36  ;;  %v1666_v25 = vmul.f32 %v5435_v38, %v5047_v15  ;;  %7689 = vst [vmem:[#allocation150_spill] sm:$0xff] %v5835_v49  ;;  %v5877_v8 = vld [vmem:[#allocation2 + $0x15a] sm:$0xff] }
 0x359   : > { %v5715_v20 = vadd.f32 %v774_v33, %v738_v17  ;;  %v5717_v19 = vadd.f32 %v773_v50, %v737_v57  ;;  %v5719_v37 = vadd.f32 %v776_v51, %v740_v28  ;;  %v741_v9 = vadd.f32 %v709_v40, %v673_v44  ;;  %v3818_v51 = vld [vmem:[#allocation2 + $0xe1] sm:$0xff]  ;;  %v3819_v44 = vld [vmem:[#allocation2 + $0xd9] sm:$0xff]  ;;  %7697 = vst [vmem:[#allocation158_spill] sm:$0xff] %v5877_v8 }
 0x35a   : > { %v5721_v14 = vadd.f32 %v775_v3, %v739_v4  ;;  %v5723_v46 = vadd.f32 %v778_v43, %v742_v47  ;;  %v743_v61 = vadd.f32 %v711_v24, %v675_v10  ;;  %v1630_v2 = vadd.f32 %v1598_v7, %v1562_v60 }
 0x35b   : > { %v5725_v26 = vadd.f32 %v777_v22, %v741_v9  ;;  %v1600_v36 = vmul.f32 %v5413_v62, %v5047_v15  ;;  %v1599_v17 = vmul.f32 %v5413_v62, %v5049_v29  ;;  %v1602_v33 = vmul.f32 %v5413_v62, %v5065_v16 }
 0x35c   : > { %v5733_v57 = vadd.f32 %v779_v48, %v743_v61  ;;  %v5735_v50 = vadd.f32 %v1666_v25, %v1630_v2  ;;  %v1564_v47 = vmul.f32 %v3818_v51, %v5409_v23  ;;  %v1601_v60 = vmul.f32 %v5413_v62, %v5067_v1 }
 0x35d   : > { %v1668_v53 = vmul.f32 %v5435_v38, %v5065_v16  ;;  %v1563_v18 = vmul.f32 %v3819_v44, %v5409_v23  ;;  %v1667_v40 = vmul.f32 %v5435_v38, %v5067_v1  ;;  %v1566_v48 = vmul.f32 %v5409_v23, %v5047_v15 }
 0x35e   : > { %v1670_v3 = vmul.f32 %v5435_v38, %v5083_v0  ;;  %v1565_v43 = vmul.f32 %v5409_v23, %v5049_v29  ;;  %v1669_v41 = vmul.f32 %v5435_v38, %v7650_v11  ;;  %v1604_v24 = vmul.f32 %v5413_v62, %v5083_v0 }
 0x35f   : > { %v1632_v7 = vadd.f32 %v1600_v36, %v1564_v47  ;;  %v1631_v28 = vadd.f32 %v1599_v17, %v1563_v18  ;;  %v1634_v4 = vadd.f32 %v1602_v33, %v1566_v48  ;;  %v1603_v22 = vmul.f32 %v5413_v62, %v7650_v11  ;;  %v5771_v17 = vld [vmem:[#allocation2 + $0xe2] sm:$0xff]  ;;  %v5779_v47 = vld [vmem:[#allocation2 + $0xf2] sm:$0xff]  ;;  %v5787_v18 = vld [vmem:[#allocation2 + $0xfa] sm:$0xff] }
 0x360   : > { %v1633_v10 = vadd.f32 %v1601_v60, %v1565_v43  ;;  %v1568_v15 = vmul.f32 %v5409_v23, %v5065_v16  ;;  %v1672_v25 = vmul.f32 %v5435_v38, %v5101_v31  ;;  %v1606_v29 = vmul.f32 %v5413_v62, %v5101_v31  ;;  %v5795_v43 = vld [vmem:[#allocation2 + $0x10a] sm:$0xff] }
 0x361   : > { %v5763_v9 = vadd.f32 %v1668_v53, %v1632_v7  ;;  %v5765_v61 = vadd.f32 %v1667_v40, %v1631_v28  ;;  %v1567_v2 = vmul.f32 %v5409_v23, %v5067_v1  ;;  %v1671_v36 = vmul.f32 %v5435_v38, %v7655_v45  ;;  %7685 = vst [vmem:[#allocation146_spill] sm:$0xff] %v5795_v43  ;;  %v5805_v7 = vld [vmem:[#allocation2 + $0xca] sm:$0xff] }
 0x362   : > { %v5773_v33 = vadd.f32 %v1670_v3, %v1634_v4  ;;  %v5775_v16 = vadd.f32 %v1669_v41, %v1633_v10  ;;  %v1636_v51 = vadd.f32 %v1604_v24, %v1568_v15  ;;  %v1570_v31 = vmul.f32 %v5409_v23, %v5083_v0  ;;  %v5793_v3 = vld [vmem:[#allocation2 + $0xda] sm:$0xff] }
 0x363   : > { %v1635_v60 = vadd.f32 %v1603_v22, %v1567_v2  ;;  %v1674_v53 = vmul.f32 %v5435_v38, %v5119_v12  ;;  %v1569_v1 = vmul.f32 %v5409_v23, %v7650_v11  ;;  %v1605_v44 = vmul.f32 %v5413_v62, %v7655_v45  ;;  %v5811_v22 = vld [vmem:[#allocation2 + $0x112] sm:$0xff] }
 0x364   : > { %v5789_v40 = vadd.f32 %v1672_v25, %v1636_v51  ;;  %v1638_v48 = vadd.f32 %v1606_v29, %v1570_v31  ;;  %v1607_v0 = vmul.f32 %v5413_v62, %v7662_v52  ;;  %v2526_v12 = vmul.f32 %v5443_v5, %v5771_v17  ;;  %7686 = vst [vmem:[#allocation147_spill] sm:$0xff] %v5811_v22  ;;  %v5819_v25 = vpop.permute.xlu1 %2678  ;;  %v5829_v31 = vld [vmem:[#allocation2 + $0x122] sm:$0xff] }
 0x365   : > { %v5799_v41 = vadd.f32 %v1671_v36, %v1635_v60  ;;  %v1673_v11 = vmul.f32 %v5435_v38, %v7662_v52  ;;  %v1571_v24 = vmul.f32 %v5409_v23, %v7655_v45  ;;  %v2527_v28 = vmul.f32 %v5443_v5, %v5779_v47  ;;  %7687 = vst [vmem:[#allocation148_spill] sm:$0xff] %v5819_v25 }
 0x366   : > { %v1675_v4 = vmul.f32 %v5435_v38, %v5137_v63  ;;  %v2490_v10 = vmul.f32 %v5439_v59, %v5805_v7  ;;  %v2594_v15 = vmul.f32 %v5447_v34, %v5787_v18  ;;  %v2528_v52 = vmul.f32 %v5443_v5, %v5787_v18  ;;  %7688 = vst [vmem:[#allocation149_spill] sm:$0xff] %v5829_v31  ;;  %v5879_v38 = vld [vmem:[#allocation2 + $0x16a] sm:$0xff] }
 0x367   : > { %v1637_v45 = vadd.f32 %v1605_v44, %v1569_v1  ;;  %v2491_v29 = vmul.f32 %v5439_v59, %v5793_v3  ;;  %v2595_v63 = vmul.f32 %v5447_v34, %v5795_v43  ;;  %v2529_v2 = vmul.f32 %v5443_v5, %v5795_v43  ;;  %7698 = vst [vmem:[#allocation159_spill] sm:$0xff] %v5879_v38 }
 0x368   : > { %v5827_v36 = vadd.f32 %v1674_v53, %v1638_v48  ;;  %v1639_v51 = vadd.f32 %v1607_v0, %v1571_v24  ;;  %v2558_v60 = vadd.f32 %v2526_v12, %v2490_v10  ;;  %v2492_v1 = vmul.f32 %v5439_v59, %v5771_v17  ;;  %v5845_v0 = vld [vmem:[#allocation2 + $0x142] sm:$0xff]  ;;  %v5847_v12 = vld [vmem:[#allocation2 + $0x152] sm:$0xff] }
 0x369   : > { %v5833_v44 = vadd.f32 %v1673_v11, %v1637_v45  ;;  %v2559_v62 = vadd.f32 %v2527_v28, %v2491_v29  ;;  %v2596_v23 = vmul.f32 %v5447_v34, %v5811_v22  ;;  %v2493_v53 = vmul.f32 %v5439_v59, %v5779_v47  ;;  %7691 = vst [vmem:[#allocation152_spill] sm:$0xff] %v5845_v0 }
 0x36a   : > { %v5843_v48 = vadd.f32 %v1675_v4, %v1639_v51  ;;  %7692 = vst [vmem:[#allocation153_spill] sm:$0xff] %v5847_v12  ;;  %v5849_v24 = vadd.f32 %v2594_v15, %v2558_v60  ;;  %v2560_v11 = vadd.f32 %v2528_v52, %v2492_v1  ;;  %v2530_v10 = vmul.f32 %v5443_v5, %v5811_v22 }
 0x36b   : > { %v5853_v45 = vadd.f32 %v2595_v63, %v2559_v62  ;;  %v2561_v28 = vadd.f32 %v2529_v2, %v2493_v53  ;;  %v2597_v29 = vmul.f32 %v5447_v34, %v5829_v31  ;;  %v2494_v4 = vmul.f32 %v5439_v59, %v5787_v18  ;;  %v5867_v63 = vpop.permute.xlu1 %2790 }
 0x36c   : > { %7693 = vst [vmem:[#allocation154_spill] sm:$0xff] %v5849_v24  ;;  %v2598_v51 = vmul.f32 %v5447_v34, %v5835_v49  ;;  %v2531_v15 = vmul.f32 %v5443_v5, %v5829_v31  ;;  %v2532_v52 = vmul.f32 %v5443_v5, %v5835_v49  ;;  %v2533_v62 = vmul.f32 %v5443_v5, %v5837_v21  ;;  %v7700_v24 = vld [vmem:[#allocation20_spill] sm:$0xff] }
 0x36d   : > { %7694 = vst [vmem:[#allocation155_spill] sm:$0xff] %v5853_v45  ;;  %7695 = vst [vmem:[#allocation156_spill] sm:$0xff] %v5867_v63  ;;  %v5869_v2 = vadd.f32 %v2596_v23, %v2560_v11  ;;  %v2495_v60 = vmul.f32 %v5439_v59, %v5795_v43  ;;  %v2534_v1 = vmul.f32 %v5443_v5, %v5845_v0  ;;  %v7719_v43 = vld [vmem:[#allocation63_spill] sm:$0xff] }
 0x36e   : > { %v2535_v53 = vmul.f32 %v5443_v5, %v5847_v12  ;;  %v2562_v6 = vadd.f32 %v2530_v10, %v2494_v4  ;;  %v2599_v13 = vmul.f32 %v5447_v34, %v5837_v21  ;;  %v2496_v23 = vmul.f32 %v5439_v59, %v5811_v22 }
 0x36f   : > { %7696 = vst [vmem:[#allocation157_spill] sm:$0xff] %v5869_v2  ;;  %v2497_v11 = vmul.f32 %v5439_v59, %v5829_v31  ;;  %v5887_v54 = vadd.f32 %v2597_v29, %v2561_v28  ;;  %v2600_v30 = vmul.f32 %v5447_v34, %v5845_v0  ;;  %v2498_v5 = vmul.f32 %v5439_v59, %v5835_v49  ;;  %v7701_v49 = vld [vmem:[#allocation22_spill] sm:$0xff]  ;;  %v7717_v31 = vld [vmem:[#allocation60_spill] sm:$0xff] }
 0x370   : > { %v2499_v10 = vmul.f32 %v5439_v59, %v5837_v21  ;;  %v2563_v4 = vadd.f32 %v2531_v15, %v2495_v60  ;;  %v2564_v27 = vadd.f32 %v2532_v52, %v2496_v23  ;;  %v2601_v2 = vmul.f32 %v5447_v34, %v5847_v12  ;;  %v7702_v15 = vld [vmem:[#allocation23_spill] sm:$0xff]  ;;  %v7715_v12 = vld [vmem:[#allocation58_spill] sm:$0xff] }
 0x371   : > { %7699 = vst [vmem:[#allocation160_spill] sm:$0xff] %v5887_v54  ;;  %v2565_v35 = vadd.f32 %v2533_v62, %v2497_v11  ;;  %v2566_v45 = vadd.f32 %v2534_v1, %v2498_v5  ;;  %v2602_v28 = vmul.f32 %v5447_v34, %v5877_v8  ;;  %v2603_v54 = vmul.f32 %v5447_v34, %v5879_v38  ;;  %v7703_v62 = vld [vmem:[#allocation24_spill] sm:$0xff]  ;;  %v7704_v5 = vld [vmem:[#allocation25_spill] sm:$0xff]  ;;  %v7706_v11 = vld [vmem:[#allocation27_spill] sm:$0xff]  ;;  %v5917_v34 = vpop.permute.xlu1 %3062 }
 0x372   : > { %v2567_v29 = vadd.f32 %v2535_v53, %v2499_v10  ;;  %v1146_v0 = vadd.f32 %v7700_v24, %v5686_v39  ;;  %v1148_v59 = vadd.f32 %v7701_v49, %v5688_v42  ;;  %v1147_v52 = vadd.f32 %v7702_v15, %v5692_v32  ;;  %v7705_v53 = vld [vmem:[#allocation26_spill] sm:$0xff]  ;;  %v7707_v39 = vld [vmem:[#allocation28_spill] sm:$0xff]  ;;  %v7708_v49 = vld [vmem:[#allocation29_spill] sm:$0xff] }
 0x373   : > { %v1150_v60 = vadd.f32 %v7703_v62, %v5715_v20  ;;  %v1149_v1 = vadd.f32 %v7704_v5, %v5717_v19  ;;  %v1152_v23 = vadd.f32 %v7705_v53, %v5719_v37  ;;  %v1151_v10 = vadd.f32 %v7706_v11, %v5721_v14  ;;  %v7709_v32 = vld [vmem:[#allocation31_spill] sm:$0xff]  ;;  %v7710_v15 = vld [vmem:[#allocation52_spill] sm:$0xff]  ;;  %v7711_v19 = vld [vmem:[#allocation54_spill] sm:$0xff] }
 0x374   : > { %v1154_v24 = vadd.f32 %v7707_v39, %v5723_v46  ;;  %v1153_v42 = vadd.f32 %v7708_v49, %v5725_v26  ;;  %v1155_v20 = vadd.f32 %v7709_v32, %v5733_v57  ;;  %v1490_v62 = vadd.f32 %v7710_v15, %v1146_v0  ;;  %v7712_v38 = vld [vmem:[#allocation55_spill] sm:$0xff]  ;;  %v7713_v53 = vld [vmem:[#allocation56_spill] sm:$0xff]  ;;  %v7714_v14 = vld [vmem:[#allocation57_spill] sm:$0xff] }
 0x375   : > { %v1492_v5 = vadd.f32 %v7711_v19, %v1148_v59  ;;  %v1491_v37 = vadd.f32 %v7712_v38, %v1147_v52  ;;  %v1494_v8 = vadd.f32 %v7713_v53, %v1150_v60  ;;  %v1493_v11 = vadd.f32 %v7714_v14, %v1149_v1  ;;  %v7716_v39 = vld [vmem:[#allocation59_spill] sm:$0xff]  ;;  %v7718_v26 = vld [vmem:[#allocation61_spill] sm:$0xff]  ;;  %v7740_v19 = vld [vmem:[#allocation90_spill] sm:$0xff] }
 0x376   : > { %v1496_v46 = vadd.f32 %v7715_v12, %v1152_v23  ;;  %v1495_v21 = vadd.f32 %v7716_v39, %v1151_v10  ;;  %v1498_v22 = vadd.f32 %v7717_v31, %v1154_v24  ;;  %v1497_v49 = vadd.f32 %v7718_v26, %v1153_v42  ;;  %v7744_v14 = vld [vmem:[#allocation92_spill] sm:$0xff] }
 0x377   : > { %v1499_v57 = vadd.f32 %v7719_v43, %v1155_v20  ;;  %v5937_v59 = vadd.f32 %v2598_v51, %v2562_v6  ;;  %v5939_v38 = vadd.f32 %v2599_v13, %v2563_v4  ;;  %v5941_v52 = vadd.f32 %v2600_v30, %v2564_v27  ;;  %v7736_v51 = vld [vmem:[#allocation88_spill] sm:$0xff]  ;;  %v7738_v4 = vld [vmem:[#allocation89_spill] sm:$0xff] }
 0x378   : > { %v5943_v60 = vadd.f32 %v2601_v2, %v2565_v35  ;;  %v1730_v12 = vadd.f32 %v5735_v50, %v1490_v62  ;;  %v1732_v31 = vadd.f32 %v5763_v9, %v1492_v5  ;;  %v5947_v1 = vadd.f32 %v2602_v28, %v2566_v45  ;;  %v5959_v9 = vld [vmem:[#allocation2 + $0xa] sm:$0xff] }
 0x379   : > { %7722 = vst [vmem:[#allocation23_spill] sm:$0xff] %v5937_v59  ;;  %7723 = vst [vmem:[#allocation24_spill] sm:$0xff] %v5939_v38  ;;  %v5949_v23 = vadd.f32 %v2603_v54, %v2567_v29  ;;  %v1731_v43 = vadd.f32 %v5765_v61, %v1491_v37  ;;  %v1734_v10 = vadd.f32 %v5773_v33, %v1494_v8  ;;  %v7739_v29 = vld [vmem:[#allocation69_spill] sm:$0xff]  ;;  %v7742_v37 = vld [vmem:[#allocation91_spill] sm:$0xff] }
 0x37a   : > { %v5933_v32 = vpop.permute.xlu0 %2305  ;;  %v5935_v0 = vpop.permute.xlu1 %2307  ;;  %7724 = vst [vmem:[#allocation25_spill] sm:$0xff] %v5941_v52  ;;  %7725 = vst [vmem:[#allocation26_spill] sm:$0xff] %v5943_v60  ;;  %v1733_v6 = vadd.f32 %v5775_v16, %v1493_v11  ;;  %v1736_v13 = vadd.f32 %v5789_v40, %v1496_v46  ;;  %v1735_v27 = vadd.f32 %v5799_v41, %v1495_v21  ;;  %v5976_v40 = vld [vmem:[#allocation2 + $0x2] sm:$0xff]  ;;  %v5978_v41 = vld [vmem:[#allocation2 + $0x32] sm:$0xff] }
 0x37b   : > { %7720 = vst [vmem:[#allocation20_spill] sm:$0xff] %v5933_v32  ;;  %7721 = vst [vmem:[#allocation22_spill] sm:$0xff] %v5935_v0  ;;  %v1738_v35 = vadd.f32 %v5827_v36, %v1498_v22  ;;  %v1737_v30 = vadd.f32 %v5833_v44, %v1497_v49  ;;  %v1739_v50 = vadd.f32 %v5843_v48, %v1499_v57  ;;  %v7733_v22 = vld [vmem:[#allocation117_spill] sm:$0xff]  ;;  %v7734_v36 = vld [vmem:[#allocation119_spill] sm:$0xff] }
 0x37c   : > { %7726 = vst [vmem:[#allocation27_spill] sm:$0xff] %v5947_v1  ;;  %7727 = vst [vmem:[#allocation28_spill] sm:$0xff] %v5949_v23  ;;  %v5962_v54 = vadd.f32 %v5224_v55, %v1730_v12  ;;  %v5965_v61 = vadd.f32 %v5228_v58, %v1732_v31  ;;  %v5968_v8 = vadd.f32 %v5230_v56, %v1731_v43  ;;  %v7735_v48 = vld [vmem:[#allocation87_spill] sm:$0xff]  ;;  %v7746_v46 = vld [vmem:[#allocation94_spill] sm:$0xff] }
 0x37d   : > { %7728 = vst [vmem:[#allocation29_spill] sm:$0xff] %v5959_v9  ;;  %v2682_v16 = vmul.f32 %v5819_v25, %v5959_v9  ;;  %7731 = vst [vmem:[#allocation54_spill] sm:$0xff] %v5976_v40  ;;  %v2681_v58 = vmul.f32 %v5819_v25, %v5976_v40  ;;  %v5989_v45 = vadd.f32 %v7735_v48, %v1734_v10  ;;  %v6019_v57 = vld [vmem:[#allocation2 + $0x4a] sm:$0xff]  ;;  %v6128_v23 = vld [vmem:[#allocation2 + $0x9a] sm:$0xff] }
 0x37e   : > { %7729 = vst [vmem:[#allocation31_spill] sm:$0xff] %v5968_v8  ;;  %v5970_v33 = vpop.permute.xlu0 %2718  ;;  %v5972_v21 = vpop.permute.xlu1 %2311  ;;  %7732 = vst [vmem:[#allocation55_spill] sm:$0xff] %v5978_v41  ;;  %v5992_v2 = vadd.f32 %v7736_v51, %v1733_v6  ;;  %v5995_v28 = vadd.f32 %v7738_v4, %v1736_v13  ;;  %v2794_v24 = vmul.f32 %v5867_v63, %v7739_v29 }
 0x37f   : > { %7730 = vst [vmem:[#allocation52_spill] sm:$0xff] %v5972_v21  ;;  %v2722_v55 = vmul.f32 %v5970_v33, %v7733_v22  ;;  %v2721_v56 = vmul.f32 %v5970_v33, %v7734_v36  ;;  %v2723_v44 = vmul.f32 %v5970_v33, %v5978_v41  ;;  %v2793_v15 = vmul.f32 %v5867_v63, %v5978_v41 }
 0x380   : > { %7737 = vst [vmem:[#allocation56_spill] sm:$0xff] %v5992_v2  ;;  %v2683_v62 = vmul.f32 %v5819_v25, %v7734_v36  ;;  %v6004_v5 = vadd.f32 %v7740_v19, %v1735_v27  ;;  %v6007_v53 = vadd.f32 %v7742_v37, %v1738_v35  ;;  %v6010_v11 = vadd.f32 %v7744_v14, %v1737_v30  ;;  %v6029_v35 = vld [vmem:[#allocation2 + $0x52] sm:$0xff]  ;;  %v6059_v19 = vld [vmem:[#allocation2 + $0x6a] sm:$0xff] }
 0x381   : > { %v2754_v42 = vadd.f32 %v2722_v55, %v2682_v16  ;;  %v2753_v20 = vadd.f32 %v2721_v56, %v2681_v58  ;;  %v6013_v39 = vadd.f32 %v7746_v46, %v1739_v50  ;;  %7749 = vst [vmem:[#allocation63_spill] sm:$0xff] %v6019_v57  ;;  %v2795_v10 = vmul.f32 %v5867_v63, %v6019_v57  ;;  %v6041_v58 = vld [vmem:[#allocation2 + $0x62] sm:$0xff] }
 0x382   : > { %7741 = vst [vmem:[#allocation57_spill] sm:$0xff] %v6004_v5  ;;  %7743 = vst [vmem:[#allocation58_spill] sm:$0xff] %v6007_v53  ;;  %v6015_v26 = vpop.permute.xlu0 %3022  ;;  %v6017_v49 = vpop.permute.xlu1 %2315  ;;  %v2755_v43 = vadd.f32 %v2723_v44, %v2683_v62  ;;  %v3065_v13 = vmul.f32 %v5917_v34, %v7734_v36  ;;  %v3066_v27 = vmul.f32 %v5917_v34, %v7733_v22 }
 0x383   : > { %7745 = vst [vmem:[#allocation59_spill] sm:$0xff] %v6010_v11  ;;  %7747 = vst [vmem:[#allocation60_spill] sm:$0xff] %v6013_v39  ;;  %v2826_v12 = vadd.f32 %v2794_v24, %v2754_v42  ;;  %v2825_v31 = vadd.f32 %v2793_v15, %v2753_v20  ;;  %v3025_v6 = vmul.f32 %v6015_v26, %v5976_v40  ;;  %v6182_v11 = vld [vmem:[#allocation2 + $0xc2] sm:$0xff] }
 0x384   : > { %7748 = vst [vmem:[#allocation61_spill] sm:$0xff] %v6017_v49  ;;  %7750 = vst [vmem:[#allocation117_spill] sm:$0xff] %v6029_v35  ;;  %v2684_v30 = vmul.f32 %v5819_v25, %v7733_v22  ;;  %v3026_v50 = vmul.f32 %v6015_v26, %v5959_v9  ;;  %v2724_v16 = vmul.f32 %v5970_v33, %v7739_v29 }
 0x385   : > { %2891 = vrot.lane.b32.xlu0 %v2826_v12, %s3923_s12  ;;  %2889 = vrot.lane.b32.xlu1 %v2825_v31, %s3923_s12  ;;  %v2796_v55 = vmul.f32 %v5867_v63, %v6029_v35  ;;  %7751 = vst [vmem:[#allocation119_spill] sm:$0xff] %v6041_v58  ;;  %v3067_v48 = vmul.f32 %v5917_v34, %v5978_v41  ;;  %7753 = vst [vmem:[#allocation88_spill] sm:$0xff] %v6059_v19 }
 0x386   : > { %v6043_v56 = vpop.permute.xlu0 %3134  ;;  %v6045_v44 = vpop.permute.xlu1 %2319  ;;  %v2685_v51 = vmul.f32 %v5819_v25, %v5978_v41  ;;  %v2797_v4 = vmul.f32 %v5867_v63, %v6041_v58  ;;  %v3068_v24 = vmul.f32 %v5917_v34, %v7739_v29  ;;  %v2827_v42 = vadd.f32 %v2795_v10, %v2755_v43  ;;  %7757 = vst [vmem:[#allocation91_spill] sm:$0xff] %v6128_v23 }
 0x387   : > { %7752 = vst [vmem:[#allocation87_spill] sm:$0xff] %v6045_v44  ;;  %v3097_v20 = vadd.f32 %v3065_v13, %v3025_v6  ;;  %v3137_v15 = vmul.f32 %v6043_v56, %v5978_v41  ;;  %v3138_v62 = vmul.f32 %v6043_v56, %v7739_v29  ;;  %v2725_v37 = vmul.f32 %v5970_v33, %v6019_v57  ;;  %v6076_v13 = vld [vmem:[#allocation2 + $0x7a] sm:$0xff] }
 0x388   : > { %v2686_v14 = vmul.f32 %v5819_v25, %v7739_v29  ;;  %v6067_v46 = vmul.f32 %v5867_v63, %v6059_v19  ;;  %v6071_v12 = vmul.f32 %v5917_v34, %v6019_v57  ;;  %v3098_v43 = vadd.f32 %v3066_v27, %v3026_v50  ;;  %7754 = vst [vmem:[#allocation89_spill] sm:$0xff] %v6076_v13 }
 0x389   : > { %2893 = vrot.lane.b32.xlu1 %v2827_v42, %s3923_s12  ;;  %v3169_v31 = vadd.f32 %v3137_v15, %v3097_v20  ;;  %v2756_v10 = vadd.f32 %v2724_v16, %v2684_v30  ;;  %v3027_v6 = vmul.f32 %v6015_v26, %v7734_v36  ;;  %v2687_v21 = vmul.f32 %v5819_v25, %v6019_v57  ;;  %v6092_v30 = vld [vmem:[#allocation2 + $0x82] sm:$0xff]  ;;  %v6109_v15 = vld [vmem:[#allocation2 + $0x92] sm:$0xff] }
 0x38a   : > { %v6078_v44 = vpop.permute.xlu0 %2309  ;;  %v6080_v49 = vpop.permute.xlu1 %2323  ;;  %v6086_v0 = vmul.f32 %v5867_v63, %v6076_v13  ;;  %v6090_v27 = vmul.f32 %v5917_v34, %v6029_v35  ;;  %v6096_v36 = vmul.f32 %v5819_v25, %v6029_v35  ;;  %v3170_v50 = vadd.f32 %v3138_v62, %v3098_v43  ;;  %7761 = vst [vmem:[#allocation162_spill] sm:$0xff] %v6182_v11 }
 0x38b   : > { %7755 = vst [vmem:[#allocation69_spill] sm:$0xff] %v6078_v44  ;;  %7756 = vst [vmem:[#allocation90_spill] sm:$0xff] %v6080_v49  ;;  %3233 = vrot.lane.b32.xlu0 %v3169_v31, %s3925_s14  ;;  %v3139_v16 = vmul.f32 %v6043_v56, %v6019_v57  ;;  %v6103_v42 = vmul.f32 %v5867_v63, %v6092_v30  ;;  %v6107_v20 = vmul.f32 %v5917_v34, %v6041_v58 }
 0x38c   : > { %v2726_v49 = vmul.f32 %v5970_v33, %v6029_v35  ;;  %v6115_v31 = vmul.f32 %v5819_v25, %v6041_v58  ;;  %v6119_v62 = vmul.f32 %v5867_v63, %v6109_v15  ;;  %v6123_v43 = vmul.f32 %v5917_v34, %v6059_v19 }
 0x38d   : > { %3235 = vrot.lane.b32.xlu1 %v3170_v50, %s3925_s14  ;;  %v2828_v44 = vadd.f32 %v2796_v55, %v2756_v10  ;;  %v3099_v32 = vadd.f32 %v3067_v48, %v3027_v6  ;;  %v2757_v40 = vadd.f32 %v2725_v37, %v2685_v51  ;;  %v3028_v9 = vmul.f32 %v6015_v26, %v7733_v22  ;;  %v6146_v48 = vld [vmem:[#allocation2 + $0xaa] sm:$0xff]  ;;  %v6163_v50 = vld [vmem:[#allocation2 + $0xb2] sm:$0xff] }
 0x38e   : > { %v6130_v1 = vpop.permute.xlu0 %2313  ;;  %v6132_v60 = vpop.permute.xlu1 %2327  ;;  %v6136_v52 = vmul.f32 %v5819_v25, %v6059_v19  ;;  %v6140_v38 = vmul.f32 %v5867_v63, %v6128_v23  ;;  %v6144_v55 = vmul.f32 %v5917_v34, %v6076_v13  ;;  %v6150_v22 = vmul.f32 %v5819_v25, %v6076_v13 }
 0x38f   : > { %7758 = vst [vmem:[#allocation92_spill] sm:$0xff] %v6130_v1  ;;  %7759 = vst [vmem:[#allocation94_spill] sm:$0xff] %v6132_v60  ;;  %2895 = vrot.lane.b32.xlu0 %v2828_v44, %s3923_s12  ;;  %v3171_v51 = vadd.f32 %v3139_v16, %v3099_v32  ;;  %v3140_v37 = vmul.f32 %v6043_v56, %v6029_v35  ;;  %v6157_v10 = vmul.f32 %v5867_v63, %v6146_v48 }
 0x390   : > { %v6161_v6 = vmul.f32 %v5917_v34, %v6092_v30  ;;  %v2727_v60 = vmul.f32 %v5970_v33, %v6041_v58  ;;  %v6169_v44 = vmul.f32 %v5819_v25, %v6092_v30  ;;  %v6173_v32 = vmul.f32 %v5867_v63, %v6163_v50 }
 0x391   : > { %v6177_v16 = vmul.f32 %v5917_v34, %v6109_v15  ;;  %3237 = vrot.lane.b32.xlu1 %v3171_v51, %s3925_s14  ;;  %v2829_v1 = vadd.f32 %v2797_v4, %v2757_v40  ;;  %v3100_v59 = vadd.f32 %v3068_v24, %v3028_v9  ;;  %v2758_v53 = vadd.f32 %v2726_v49, %v2686_v14 }
 0x392   : > { %7760 = vst [vmem:[#allocation161_spill] sm:$0xff] %v6173_v32  ;;  %v3029_v39 = vmul.f32 %v6015_v26, %v5978_v41  ;;  %v6184_v5 = vpop.permute.xlu0 %2317  ;;  %v6186_v2 = vpop.permute.xlu1 %2331  ;;  %v6190_v32 = vmul.f32 %v5819_v25, %v6109_v15  ;;  %v6194_v8 = vmul.f32 %v5867_v63, %v6182_v11  ;;  %v6198_v9 = vmul.f32 %v5917_v34, %v6128_v23 }
 0x393   : > { %7762 = vst [vmem:[#allocation163_spill] sm:$0xff] %v6184_v5  ;;  %7763 = vst [vmem:[#allocation164_spill] sm:$0xff] %v6186_v2  ;;  %v6202_v40 = vmul.f32 %v5819_v25, %v6128_v23  ;;  %2897 = vrot.lane.b32.xlu0 %v2829_v1, %s3923_s12  ;;  %v3172_v49 = vadd.f32 %v3140_v37, %v3100_v59  ;;  %v3141_v4 = vmul.f32 %v6043_v56, %v6041_v58 }
 0x394   : > { %7764 = vst [vmem:[#allocation165_spill] sm:$0xff] %v6194_v8  ;;  %v6209_v24 = vmul.f32 %v5867_v63, %v5805_v7  ;;  %v6213_v14 = vmul.f32 %v5917_v34, %v6146_v48  ;;  %v2728_v51 = vmul.f32 %v5970_v33, %v6059_v19  ;;  %v6219_v2 = vmul.f32 %v5819_v25, %v6146_v48 }
 0x395   : > { %v6223_v59 = vmul.f32 %v5867_v63, %v5793_v3  ;;  %v6227_v1 = vmul.f32 %v5917_v34, %v6163_v50  ;;  %3239 = vrot.lane.b32.xlu1 %v3172_v49, %s3925_s14  ;;  %v2830_v37 = vadd.f32 %v6067_v46, %v2758_v53  ;;  %v3101_v5 = vadd.f32 %v6071_v12, %v3029_v39 }
 0x396   : > { %7765 = vst [vmem:[#allocation166_spill] sm:$0xff] %v6209_v24  ;;  %7766 = vst [vmem:[#allocation167_spill] sm:$0xff] %v6213_v14  ;;  %v2759_v41 = vadd.f32 %v2727_v60, %v2687_v21  ;;  %v3030_v14 = vmul.f32 %v6015_v26, %v7739_v29  ;;  %v6234_v24 = vpop.permute.xlu0 %2321  ;;  %v6248_v53 = vmul.f32 %v5917_v34, %v6182_v11 }
 0x397   : > { %7767 = vst [vmem:[#allocation168_spill] sm:$0xff] %v6219_v2  ;;  %7768 = vst [vmem:[#allocation169_spill] sm:$0xff] %v6223_v59  ;;  %v6236_v2 = vpop.permute.xlu1 %2335  ;;  %v6240_v59 = vmul.f32 %v5819_v25, %v6163_v50  ;;  %v6252_v60 = vmul.f32 %v5819_v25, %v6182_v11  ;;  %2899 = vrot.lane.b32.xlu0 %v2830_v37, %s3923_s12  ;;  %v3173_v21 = vadd.f32 %v3141_v4, %v3101_v5  ;;  %v6350_v11 = vld [vmem:[#allocation2 + $0x182] sm:$0xff] }
 0x398   : > { %7769 = vst [vmem:[#allocation170_spill] sm:$0xff] %v6227_v1  ;;  %7770 = vst [vmem:[#allocation171_spill] sm:$0xff] %v6234_v24  ;;  %v6244_v1 = vmul.f32 %v5867_v63, %v5771_v17  ;;  %v3142_v29 = vmul.f32 %v6043_v56, %v6059_v19  ;;  %v6259_v39 = vmul.f32 %v5867_v63, %v5779_v47 }
 0x399   : > { %7771 = vst [vmem:[#allocation172_spill] sm:$0xff] %v6236_v2  ;;  %7772 = vst [vmem:[#allocation173_spill] sm:$0xff] %v6240_v59  ;;  %v6263_v46 = vmul.f32 %v5917_v34, %v5805_v7  ;;  %v2729_v12 = vmul.f32 %v5970_v33, %v6076_v13  ;;  %v6269_v49 = vmul.f32 %v5819_v25, %v5805_v7  ;;  %3241 = vrot.lane.b32.xlu1 %v3173_v21, %s3925_s14  ;;  %v7781_v21 = vld [vmem:[#allocation146_spill] sm:$0xff]  ;;  %v7789_v59 = vld [vmem:[#allocation152_spill] sm:$0xff] }
 0x39a   : > { %7773 = vst [vmem:[#allocation174_spill] sm:$0xff] %v6244_v1  ;;  %7774 = vst [vmem:[#allocation175_spill] sm:$0xff] %v6248_v53  ;;  %v6273_v5 = vmul.f32 %v5867_v63, %v5787_v18  ;;  %v3082_v4 = vmul.f32 %v5917_v34, %v5771_v17  ;;  %v2831_v37 = vadd.f32 %v6086_v0, %v2759_v41  ;;  %v7782_v41 = vld [vmem:[#allocation147_spill] sm:$0xff]  ;;  %v7784_v1 = vld [vmem:[#allocation149_spill] sm:$0xff] }
 0x39b   : > { %7775 = vst [vmem:[#allocation176_spill] sm:$0xff] %v6252_v60  ;;  %7776 = vst [vmem:[#allocation177_spill] sm:$0xff] %v6259_v39  ;;  %v3102_v2 = vadd.f32 %v6090_v27, %v3030_v14  ;;  %v2760_v24 = vadd.f32 %v2728_v51, %v6096_v36  ;;  %v3031_v39 = vmul.f32 %v6015_v26, %v6019_v57 }
 0x39c   : > { %7777 = vst [vmem:[#allocation178_spill] sm:$0xff] %v6263_v46  ;;  %7778 = vst [vmem:[#allocation179_spill] sm:$0xff] %v6269_v49  ;;  %v6283_v46 = vpop.permute.xlu0 %2325  ;;  %v2340_v49 = vpop.permute.xlu1 %2339  ;;  %v3083_v63 = vmul.f32 %v5917_v34, %v5779_v47  ;;  %v6293_v0 = vmul.f32 %v5917_v34, %v7781_v21  ;;  %v6297_v27 = vmul.f32 %v5917_v34, %v7782_v41  ;;  %2901 = vrot.lane.b32.xlu0 %v2831_v37, %s3923_s12 }
 0x39d   : > { %7779 = vst [vmem:[#allocation180_spill] sm:$0xff] %v6273_v5  ;;  %7780 = vst [vmem:[#allocation181_spill] sm:$0xff] %v6283_v46  ;;  %v6289_v5 = vmul.f32 %v5917_v34, %v5787_v18  ;;  %v6300_v36 = vadd.f32 %v2340_v49, %v5962_v54  ;;  %v3174_v14 = vadd.f32 %v3142_v29, %v3102_v2  ;;  %v7785_v54 = vld [vmem:[#allocation150_spill] sm:$0xff] }
 0x39e   : > { %v3143_v51 = vmul.f32 %v6043_v56, %v6076_v13  ;;  %v3032_v46 = vmul.f32 %v6015_v26, %v6029_v35  ;;  %v2761_v57 = vadd.f32 %v2729_v12, %v6115_v31  ;;  %v2730_v25 = vmul.f32 %v5970_v33, %v6092_v30  ;;  %v7786_v12 = vld [vmem:[#allocation151_spill] sm:$0xff] }
 0x39f   : > { %7783 = vst [vmem:[#allocation146_spill] sm:$0xff] %v6300_v36  ;;  %v6312_v60 = vmul.f32 %v5917_v34, %v7784_v1  ;;  %v6316_v49 = vmul.f32 %v5917_v34, %v7785_v54  ;;  %3243 = vrot.lane.b32.xlu1 %v3174_v14, %s3925_s14  ;;  %v2832_v2 = vadd.f32 %v6103_v42, %v2760_v24  ;;  %v7791_v42 = vld [vmem:[#allocation153_spill] sm:$0xff]  ;;  %v7793_v24 = vld [vmem:[#allocation158_spill] sm:$0xff] }
 0x3a0   : > { %v3103_v29 = vadd.f32 %v6107_v20, %v3031_v39  ;;  %v3144_v31 = vmul.f32 %v6043_v56, %v6092_v30  ;;  %v6325_v37 = vmul.f32 %v5917_v34, %v7786_v12  ;;  %v6327_v35 = vpop.permute.xlu0 %2329  ;;  %v2344_v36 = vpop.permute.xlu1 %2343  ;;  %v3033_v53 = vmul.f32 %v6015_v26, %v6041_v58 }
 0x3a1   : > { %7788 = vst [vmem:[#allocation149_spill] sm:$0xff] %v6327_v35  ;;  %v6333_v14 = vmul.f32 %v5917_v34, %v7789_v59  ;;  %v6337_v20 = vmul.f32 %v5917_v34, %v7791_v42  ;;  %v6341_v39 = vmul.f32 %v5917_v34, %v7793_v24  ;;  %v6344_v8 = vadd.f32 %v2344_v36, %v5965_v61 }
 0x3a2   : > { %7787 = vst [vmem:[#allocation147_spill] sm:$0xff] %v6325_v37  ;;  %2903 = vrot.lane.b32.xlu0 %v2832_v2, %s3923_s12  ;;  %v3175_v35 = vadd.f32 %v3143_v51, %v3103_v29  ;;  %v3104_v58 = vadd.f32 %v6123_v43, %v3032_v46  ;;  %v6348_v37 = vld [vmem:[#allocation2 + $0x172] sm:$0xff]  ;;  %v6364_v36 = vmul.f32 %v5917_v34, %v6350_v11 }
 0x3a3   : > { %7790 = vst [vmem:[#allocation150_spill] sm:$0xff] %v6333_v14  ;;  %7792 = vst [vmem:[#allocation151_spill] sm:$0xff] %v6337_v20  ;;  %v7796_v14 = vld [vmem:[#allocation159_spill] sm:$0xff]  ;;  %v2833_v20 = vadd.f32 %v6119_v62, %v2761_v57  ;;  %v6360_v61 = vmul.f32 %v5917_v34, %v6348_v37  ;;  %v2731_v46 = vmul.f32 %v5970_v33, %v6109_v15 }
 0x3a4   : > { %7794 = vst [vmem:[#allocation152_spill] sm:$0xff] %v6341_v39  ;;  %7795 = vst [vmem:[#allocation158_spill] sm:$0xff] %v6344_v8  ;;  %v6354_v42 = vmul.f32 %v5917_v34, %v7796_v14  ;;  %v2762_v39 = vadd.f32 %v2730_v25, %v6136_v52  ;;  %3245 = vrot.lane.b32.xlu1 %v3175_v35, %s3925_s14  ;;  %v3176_v43 = vadd.f32 %v3144_v31, %v3104_v58  ;;  %v6373_v52 = vpop.permute.xlu0 %2333  ;;  %v2348_v57 = vpop.permute.xlu1 %2347 }
 0x3a5   : > { %7797 = vst [vmem:[#allocation159_spill] sm:$0xff] %v6364_v36  ;;  %v3042_v51 = vmul.f32 %v6015_v26, %v5805_v7  ;;  %v3154_v25 = vmul.f32 %v6043_v56, %v5787_v18  ;;  %7798 = vst [vmem:[#allocation182_spill] sm:$0xff] %v6373_v52  ;;  %v3105_v62 = vadd.f32 %v6144_v55, %v3033_v53 }
 0x3a6   : > { %v3145_v2 = vmul.f32 %v6043_v56, %v6109_v15  ;;  %v3034_v35 = vmul.f32 %v6015_v26, %v6059_v19  ;;  %v3043_v58 = vmul.f32 %v6015_v26, %v5793_v3  ;;  %v6383_v29 = vadd.f32 %v2348_v57, %v5989_v45  ;;  %2905 = vrot.lane.b32.xlu0 %v2833_v20, %s3923_s12 }
 0x3a7   : > { %v2732_v31 = vmul.f32 %v5970_v33, %v6128_v23  ;;  %v3114_v52 = vadd.f32 %v3082_v4, %v3042_v51  ;;  %v3155_v55 = vmul.f32 %v6043_v56, %v7781_v21  ;;  %v2834_v53 = vadd.f32 %v6140_v38, %v2762_v39 }
 0x3a8   : > { %v3146_v19 = vmul.f32 %v6043_v56, %v6128_v23  ;;  %v3035_v8 = vmul.f32 %v6015_v26, %v6076_v13  ;;  %v3115_v36 = vadd.f32 %v3083_v63, %v3043_v58  ;;  %3247 = vrot.lane.b32.xlu1 %v3176_v43, %s3925_s14  ;;  %v2763_v45 = vadd.f32 %v2731_v46, %v6150_v22  ;;  %v6403_v38 = vpop.permute.xlu0 %2337  ;;  %v2352_v39 = vpop.permute.xlu1 %2351 }
 0x3a9   : > { %v6397_v20 = vadd.f32 %v3154_v25, %v3114_v52  ;;  %v3044_v4 = vmul.f32 %v6015_v26, %v5771_v17  ;;  %v3156_v51 = vmul.f32 %v6043_v56, %v7782_v41  ;;  %7799 = vst [vmem:[#allocation183_spill] sm:$0xff] %v6403_v38  ;;  %v3177_v57 = vadd.f32 %v3145_v2, %v3105_v62 }
 0x3aa   : > { %v3147_v13 = vmul.f32 %v6043_v56, %v6146_v48  ;;  %v6407_v63 = vadd.f32 %v3155_v55, %v3115_v36  ;;  %v3045_v22 = vmul.f32 %v6015_v26, %v5779_v47  ;;  %v6412_v43 = vadd.f32 %v2352_v39, %v5995_v28  ;;  %2907 = vrot.lane.b32.xlu0 %v2834_v53, %s3923_s12 }
 0x3ab   : > { %v3106_v46 = vadd.f32 %v6161_v6, %v3034_v35  ;;  %v2764_v25 = vadd.f32 %v2732_v31, %v6169_v44  ;;  %v3116_v52 = vadd.f32 %v6289_v5, %v3044_v4  ;;  %v3107_v62 = vadd.f32 %v6177_v16, %v3035_v8  ;;  %v7800_v35 = vld [vmem:[#allocation31_spill] sm:$0xff] }
 0x3ac   : > { %v2733_v36 = vmul.f32 %v5970_v33, %v6146_v48  ;;  %v3117_v2 = vadd.f32 %v6293_v0, %v3045_v22  ;;  %v3157_v58 = vmul.f32 %v6043_v56, %v7784_v1  ;;  %3249 = vrot.lane.b32.xlu1 %v3177_v57, %s3925_s14  ;;  %v2835_v28 = vadd.f32 %v6157_v10, %v2763_v45  ;;  %v2342_v44 = vpop.permute.xlu0 %2341 }
 0x3ad   : > { %v6426_v55 = vadd.f32 %v3156_v51, %v3116_v52  ;;  %v3046_v6 = vmul.f32 %v6015_v26, %v5787_v18  ;;  %v3158_v8 = vmul.f32 %v6043_v56, %v7785_v54  ;;  %v3036_v16 = vmul.f32 %v6015_v26, %v6092_v30  ;;  %v7801_v51 = vld [vmem:[#allocation161_spill] sm:$0xff] }
 0x3ae   : > { %v2734_v5 = vmul.f32 %v5970_v33, %v6163_v50  ;;  %v6436_v0 = vadd.f32 %v3157_v58, %v3117_v2  ;;  %v3047_v10 = vmul.f32 %v6015_v26, %v7781_v21  ;;  %v6441_v31 = vadd.f32 %v2342_v44, %v7800_v35  ;;  %2909 = vrot.lane.b32.xlu0 %v2835_v28, %s3923_s12  ;;  %v7802_v28 = vld [vmem:[#allocation56_spill] sm:$0xff]  ;;  %v6474_v44 = vld [vmem:[#allocation2 + $0x18a] sm:$0xff] }
 0x3af   : > { %v3178_v53 = vadd.f32 %v3146_v19, %v3106_v46  ;;  %v3118_v45 = vadd.f32 %v6297_v27, %v3046_v6  ;;  %v3159_v4 = vmul.f32 %v6043_v56, %v7786_v12  ;;  %v2836_v39 = vadd.f32 %v7801_v51, %v2764_v25 }
 0x3b0   : > { %v3179_v57 = vadd.f32 %v3147_v13, %v3107_v62  ;;  %v3148_v22 = vmul.f32 %v6043_v56, %v6163_v50  ;;  %v3119_v52 = vadd.f32 %v6312_v60, %v3047_v10  ;;  %v2765_v2 = vadd.f32 %v2733_v36, %v6190_v32  ;;  %v2346_v46 = vpop.permute.xlu0 %2345 }
 0x3b1   : > { %3251 = vrot.lane.b32.xlu1 %v3178_v53, %s3925_s14  ;;  %v6453_v58 = vadd.f32 %v3158_v8, %v3118_v45  ;;  %v3048_v19 = vmul.f32 %v6015_v26, %v7782_v41  ;;  %v3160_v27 = vmul.f32 %v6043_v56, %v7789_v59  ;;  %v3108_v13 = vadd.f32 %v6198_v9, %v3036_v16  ;;  %v7803_v8 = vld [vmem:[#allocation153_spill] sm:$0xff] }
 0x3b2   : > { %v2766_v25 = vadd.f32 %v2734_v5, %v6202_v40  ;;  %v6461_v62 = vadd.f32 %v3159_v4, %v3119_v52  ;;  %v3049_v60 = vmul.f32 %v6015_v26, %v7784_v1  ;;  %v6466_v32 = vadd.f32 %v2346_v46, %v7802_v28  ;;  %2911 = vrot.lane.b32.xlu0 %v2836_v39, %s3923_s12  ;;  %v7804_v40 = vld [vmem:[#allocation162_spill] sm:$0xff]  ;;  %v7805_v5 = vld [vmem:[#allocation147_spill] sm:$0xff] }
 0x3b3   : > { %v3037_v36 = vmul.f32 %v6015_v26, %v6109_v15  ;;  %v3120_v6 = vadd.f32 %v6316_v49, %v3048_v19  ;;  %v3161_v9 = vmul.f32 %v6043_v56, %v7803_v8  ;;  %v2735_v16 = vmul.f32 %v5970_v33, %v7804_v40  ;;  %v7806_v49 = vld [vmem:[#allocation165_spill] sm:$0xff] }
 0x3b4   : > { %v3121_v10 = vadd.f32 %v7805_v5, %v3049_v60  ;;  %v3050_v35 = vmul.f32 %v6015_v26, %v7785_v54  ;;  %v6483_v53 = vmul.f32 %v5917_v34, %v6474_v44  ;;  %v2837_v45 = vadd.f32 %v7806_v49, %v2765_v2  ;;  %v2350_v52 = vpop.permute.xlu0 %2349  ;;  %v7807_v60 = vld [vmem:[#allocation150_spill] sm:$0xff]  ;;  %v7811_v49 = vld [vmem:[#allocation168_spill] sm:$0xff] }
 0x3b5   : > { %3253 = vrot.lane.b32.xlu1 %v3179_v57, %s3925_s14  ;;  %v3180_v4 = vadd.f32 %v3148_v22, %v3108_v13  ;;  %v6487_v51 = vadd.f32 %v3160_v27, %v3120_v6  ;;  %v3162_v39 = vmul.f32 %v6043_v56, %v7793_v24  ;;  %v3149_v19 = vmul.f32 %v6043_v56, %v7804_v40  ;;  %v7808_v57 = vld [vmem:[#allocation57_spill] sm:$0xff]  ;;  %v7809_v22 = vld [vmem:[#allocation166_spill] sm:$0xff]  ;;  %v7810_v27 = vld [vmem:[#allocation167_spill] sm:$0xff] }
 0x3b6   : > { %v6493_v46 = vadd.f32 %v3161_v9, %v3121_v10  ;;  %v3122_v28 = vadd.f32 %v7807_v60, %v3050_v35  ;;  %v3051_v5 = vmul.f32 %v6015_v26, %v7786_v12  ;;  %v6499_v38 = vadd.f32 %v2350_v52, %v7808_v57  ;;  %2913 = vrot.lane.b32.xlu0 %v2837_v45, %s3923_s12  ;;  %v7813_v12 = vld [vmem:[#allocation151_spill] sm:$0xff] }
 0x3b7   : > { %v2838_v2 = vadd.f32 %v7809_v22, %v2766_v25  ;;  %v3109_v13 = vadd.f32 %v7810_v27, %v3037_v36  ;;  %v3163_v6 = vmul.f32 %v6043_v56, %v7796_v14  ;;  %v2767_v9 = vadd.f32 %v2735_v16, %v7811_v49  ;;  %v7814_v57 = vld [vmem:[#allocation59_spill] sm:$0xff]  ;;  %v7815_v22 = vld [vmem:[#allocation152_spill] sm:$0xff] }
 0x3b8   : > { %v3038_v10 = vmul.f32 %v6015_v26, %v6128_v23  ;;  %v6509_v35 = vadd.f32 %v3162_v39, %v3122_v28  ;;  %v3123_v60 = vadd.f32 %v7813_v12, %v3051_v5  ;;  %v3150_v45 = vmul.f32 %v6043_v56, %v5805_v7  ;;  %v2354_v52 = vpop.permute.xlu0 %2353  ;;  %v7816_v12 = vld [vmem:[#allocation169_spill] sm:$0xff]  ;;  %v7817_v23 = vld [vmem:[#allocation170_spill] sm:$0xff] }
 0x3b9   : > { %3255 = vrot.lane.b32.xlu1 %v3180_v4, %s3925_s14  ;;  %v2736_v25 = vmul.f32 %v5970_v33, %v5805_v7  ;;  %v3052_v36 = vmul.f32 %v6015_v26, %v7789_v59  ;;  %v3164_v16 = vmul.f32 %v6043_v56, %v6348_v37  ;;  %v3039_v39 = vmul.f32 %v6015_v26, %v6146_v48 }
 0x3ba   : > { %7812 = vst [vmem:[#allocation31_spill] sm:$0xff] %v6509_v35  ;;  %v3151_v28 = vmul.f32 %v6043_v56, %v5793_v3  ;;  %v6525_v4 = vadd.f32 %v3163_v6, %v3123_v60  ;;  %v3053_v5 = vmul.f32 %v6015_v26, %v7803_v8  ;;  %v2425_v7 = vadd.f32 %v2354_v52, %v7814_v57  ;;  %v7818_v8 = vld [vmem:[#allocation173_spill] sm:$0xff] }
 0x3bb   : > { %2915 = vrot.lane.b32.xlu0 %v2838_v2, %s3923_s12  ;;  %v3181_v59 = vadd.f32 %v3149_v19, %v3109_v13  ;;  %v3124_v27 = vadd.f32 %v7815_v22, %v3052_v36  ;;  %v3165_v49 = vmul.f32 %v6043_v56, %v6350_v11  ;;  %v2839_v48 = vadd.f32 %v7816_v12, %v2767_v9  ;;  %v6559_v22 = vld [vmem:[#allocation2 + $0x1a2] sm:$0xff] }
 0x3bc   : > { %v3110_v35 = vadd.f32 %v7817_v23, %v3038_v10  ;;  %v2737_v6 = vmul.f32 %v5970_v33, %v5793_v3  ;;  %v3125_v60 = vadd.f32 %v6354_v42, %v3053_v5  ;;  %v2768_v52 = vadd.f32 %v2736_v25, %v7818_v8  ;;  %v2358_v9 = vpop.permute.xlu0 %2357  ;;  %v7819_v23 = vld [vmem:[#allocation175_spill] sm:$0xff]  ;;  %v7820_v5 = vld [vmem:[#allocation60_spill] sm:$0xff]  ;;  %7821 = vst [vmem:[#allocation161_spill] sm:$0xff] %v6559_v22 }
 0x3bd   : > { %3257 = vrot.lane.b32.xlu1 %v3181_v59, %s3925_s14  ;;  %v6541_v2 = vadd.f32 %v3164_v16, %v3124_v27  ;;  %v3054_v19 = vmul.f32 %v6015_v26, %v7793_v24  ;;  %v3166_v13 = vmul.f32 %v6043_v56, %v6474_v44  ;;  %v3111_v10 = vadd.f32 %v7819_v23, %v3039_v39  ;;  %v6556_v24 = vld [vmem:[#allocation2 + $0x19a] sm:$0xff]  ;;  %v7824_v8 = vld [vmem:[#allocation159_spill] sm:$0xff] }
 0x3be   : > { %v3182_v36 = vadd.f32 %v3150_v45, %v3110_v35  ;;  %v3040_v57 = vmul.f32 %v6015_v26, %v6163_v50  ;;  %v6550_v42 = vadd.f32 %v3165_v49, %v3125_v60  ;;  %v2427_v59 = vadd.f32 %v2358_v9, %v7820_v5  ;;  %v2356_v45 = vpop.permute.xlu1 %2355  ;;  %v7822_v50 = vld [vmem:[#allocation176_spill] sm:$0xff] }
 0x3bf   : > { %2917 = vrot.lane.b32.xlu0 %v2839_v48, %s3923_s12  ;;  %v2738_v25 = vmul.f32 %v5970_v33, %v5771_v17  ;;  %v3126_v16 = vadd.f32 %v6360_v61, %v3054_v19  ;;  %v3055_v35 = vmul.f32 %v6015_v26, %v7796_v14  ;;  %v2769_v39 = vadd.f32 %v2737_v6, %v7822_v50  ;;  %v7823_v61 = vld [vmem:[#allocation174_spill] sm:$0xff]  ;;  %v7825_v23 = vld [vmem:[#allocation148_spill] sm:$0xff] }
 0x3c0   : > { %v3167_v27 = vmul.f32 %v6043_v56, %v6556_v24  ;;  %v3056_v49 = vmul.f32 %v6015_v26, %v6348_v37  ;;  %v3168_v12 = vmul.f32 %v6043_v56, %v6559_v22  ;;  %v2840_v48 = vadd.f32 %v7823_v61, %v2768_v52  ;;  %v7826_v22 = vld [vmem:[#allocation58_spill] sm:$0xff] }
 0x3c1   : > { %3259 = vrot.lane.b32.xlu1 %v3182_v36, %s3925_s14  ;;  %v3081_v60 = vmul.f32 %v5917_v34, %v5793_v3  ;;  %v6574_v14 = vadd.f32 %v3166_v13, %v3126_v16  ;;  %v3127_v6 = vadd.f32 %v7824_v8, %v3055_v35  ;;  %v3183_v19 = vadd.f32 %v3151_v28, %v3111_v10  ;;  %v7827_v52 = vld [vmem:[#allocation178_spill] sm:$0xff]  ;;  %v7829_v28 = vld [vmem:[#allocation177_spill] sm:$0xff]  ;;  %v7830_v16 = vld [vmem:[#allocation179_spill] sm:$0xff] }
 0x3c2   : > { %v3152_v9 = vmul.f32 %v6043_v56, %v5771_v17  ;;  %v2699_v5 = vmul.f32 %v7825_v23, %v5793_v3  ;;  %v3128_v50 = vadd.f32 %v6483_v53, %v3056_v49  ;;  %v2426_v36 = vadd.f32 %v2356_v45, %v7826_v22  ;;  %v7833_v22 = vld [vmem:[#allocation154_spill] sm:$0xff] }
 0x3c3   : > { %2919 = vrot.lane.b32.xlu0 %v2840_v48, %s3923_s12  ;;  %v3112_v61 = vadd.f32 %v7827_v52, %v3040_v57  ;;  %v3041_v34 = vmul.f32 %v6015_v26, %v7804_v40  ;;  %v6587_v13 = vadd.f32 %v3167_v27, %v3127_v6  ;;  %v2841_v10 = vadd.f32 %v7829_v28, %v2769_v39  ;;  %v7832_v57 = vld [vmem:[#allocation146_spill] sm:$0xff]  ;;  %v7835_v26 = vld [vmem:[#allocation155_spill] sm:$0xff]  ;;  %v7844_v6 = vld [vmem:[#allocation24_spill] sm:$0xff] }
 0x3c4   : > { %v2770_v35 = vadd.f32 %v2738_v25, %v7830_v16  ;;  %v3153_v3 = vmul.f32 %v6043_v56, %v5779_v47  ;;  %v6593_v8 = vadd.f32 %v3168_v12, %v3128_v50  ;;  %v2739_v53 = vmul.f32 %v5970_v33, %v5779_v47  ;;  %v7837_v39 = vld [vmem:[#allocation158_spill] sm:$0xff]  ;;  %v7838_v25 = vld [vmem:[#allocation157_spill] sm:$0xff]  ;;  %v7840_v56 = vld [vmem:[#allocation160_spill] sm:$0xff] }
 0x3c5   : > { %7828 = vst [vmem:[#allocation56_spill] sm:$0xff] %v6587_v13  ;;  %3261 = vrot.lane.b32.xlu1 %v3183_v19, %s3925_s14  ;;  %v6600_v45 = vadd.f32 %v7833_v22, %v7832_v57  ;;  %v6604_v40 = vadd.f32 %v7835_v26, %v6441_v31  ;;  %v6608_v27 = vadd.f32 %v7838_v25, %v7837_v39  ;;  %v7842_v12 = vld [vmem:[#allocation23_spill] sm:$0xff]  ;;  %v7846_v50 = vld [vmem:[#allocation25_spill] sm:$0xff]  ;;  %v7848_v28 = vld [vmem:[#allocation26_spill] sm:$0xff] }
 0x3c6   : > { %7831 = vst [vmem:[#allocation153_spill] sm:$0xff] %v6593_v8  ;;  %v6612_v49 = vadd.f32 %v7840_v56, %v6466_v32  ;;  %v6616_v48 = vadd.f32 %v7842_v12, %v6383_v29  ;;  %v6620_v19 = vadd.f32 %v7844_v6, %v6499_v38  ;;  %v6624_v31 = vadd.f32 %v7846_v50, %v6412_v43  ;;  %v7850_v32 = vld [vmem:[#allocation27_spill] sm:$0xff]  ;;  %v7852_v22 = vld [vmem:[#allocation28_spill] sm:$0xff]  ;;  %v7855_v39 = vld [vmem:[#allocation138_spill] sm:$0xff] }
 0x3c7   : > { %7834 = vst [vmem:[#allocation162_spill] sm:$0xff] %v6600_v45  ;;  %7836 = vst [vmem:[#allocation147_spill] sm:$0xff] %v6604_v40  ;;  %2921 = vrot.lane.b32.xlu0 %v2841_v10, %s3923_s12  ;;  %v3184_v52 = vadd.f32 %v3152_v9, %v3112_v61  ;;  %v6628_v16 = vadd.f32 %v7848_v28, %v2425_v7  ;;  %v6631_v57 = vadd.f32 %v7850_v32, %v2426_v36  ;;  %v7854_v26 = vld [vmem:[#allocation131_spill] sm:$0xff]  ;;  %v7856_v25 = vld [vmem:[#allocation141_spill] sm:$0xff] }
 0x3c8   : > { %7839 = vst [vmem:[#allocation165_spill] sm:$0xff] %v6608_v27  ;;  %7841 = vst [vmem:[#allocation150_spill] sm:$0xff] %v6612_v49  ;;  %v6634_v29 = vadd.f32 %v7852_v22, %v2427_v59  ;;  %v729_v38 = vadd.f32 %v7855_v39, %v7854_v26  ;;  %v7857_v56 = vld [vmem:[#allocation136_spill] sm:$0xff]  ;;  %v7858_v43 = vld [vmem:[#allocation137_spill] sm:$0xff]  ;;  %v3113_v50 = vadd.f32 %v3081_v60, %v3041_v34 }
 0x3c9   : > { %7843 = vst [vmem:[#allocation57_spill] sm:$0xff] %v6616_v48  ;;  %7845 = vst [vmem:[#allocation166_spill] sm:$0xff] %v6620_v19  ;;  %v6640_v12 = vadd.f32 %v7857_v56, %v7856_v25  ;;  %v7859_v6 = vld [vmem:[#allocation142_spill] sm:$0xff]  ;;  %v6644_v9 = vld [vmem:[#allocation2 + $0x99] sm:$0xff]  ;;  %3263 = vrot.lane.b32.xlu1 %v3184_v52, %s3925_s14  ;;  %v2771_v28 = vadd.f32 %v2739_v53, %v2699_v5  ;;  %v2740_v32 = vmul.f32 %v5970_v33, %v5787_v18 }
 0x3ca   : > { %7847 = vst [vmem:[#allocation167_spill] sm:$0xff] %v6624_v31  ;;  %7849 = vst [vmem:[#allocation168_spill] sm:$0xff] %v6628_v16  ;;  %v1622_v10 = vadd.f32 %v7859_v6, %v7858_v43  ;;  %v7860_v7 = vld [vmem:[#allocation107_spill] sm:$0xff]  ;;  %v7861_v36 = vld [vmem:[#allocation180_spill] sm:$0xff]  ;;  %v3185_v60 = vadd.f32 %v3153_v3, %v3113_v50  ;;  %v2700_v34 = vmul.f32 %v7825_v23, %v5771_v17 }
 0x3cb   : > { %7851 = vst [vmem:[#allocation151_spill] sm:$0xff] %v6631_v57  ;;  %7853 = vst [vmem:[#allocation59_spill] sm:$0xff] %v6634_v29  ;;  %v1658_v61 = vmul.f32 %v6644_v9, %v7860_v7  ;;  %v2842_v59 = vadd.f32 %v7861_v36, %v2770_v35  ;;  %v3821_v22 = vld [vmem:[#allocation2 + $0xc8] sm:$0xff]  ;;  %v3822_v25 = vld [vmem:[#allocation2 + $0xc0] sm:$0xff]  ;;  %v2741_v17 = vmul.f32 %v5970_v33, %v7781_v21 }
 0x3cc   : > { %v7862_v26 = vld [vmem:[#allocation106_spill] sm:$0xff]  ;;  %v7863_v6 = vld [vmem:[#allocation104_spill] sm:$0xff]  ;;  %v7864_v16 = vld [vmem:[#allocation105_spill] sm:$0xff]  ;;  %v2772_v50 = vadd.f32 %v2740_v32, %v2700_v34 }
 0x3cd   : > { %v766_v39 = vmul.f32 %v3821_v22, %v7862_v26  ;;  %v765_v56 = vmul.f32 %v3822_v25, %v7862_v26  ;;  %v3823_v43 = vld [vmem:[#allocation2 + $0x61] sm:$0xff]  ;;  %v3824_v57 = vld [vmem:[#allocation2 + $0x79] sm:$0xff]  ;;  %v7865_v52 = vld [vmem:[#allocation103_spill] sm:$0xff]  ;;  %2923 = vrot.lane.b32.xlu0 %v2842_v59, %s3923_s12  ;;  %v6664_v48 = vadd.f32 %v1658_v61, %v1622_v10  ;;  %v1592_v3 = vmul.f32 %v6644_v9, %v7864_v16 }
 0x3ce   : > { %v1553_v29 = vmul.f32 %v3823_v43, %v7863_v6  ;;  %v1589_v31 = vmul.f32 %v3824_v57, %v7864_v16  ;;  %v700_v19 = vmul.f32 %v3821_v22, %v7865_v52  ;;  %v7866_v5 = vld [vmem:[#allocation156_spill] sm:$0xff]  ;;  %v699_v35 = vmul.f32 %v3822_v25, %v7865_v52  ;;  %v7867_v53 = vld [vmem:[#allocation102_spill] sm:$0xff]  ;;  %3265 = vrot.lane.b32.xlu1 %v3185_v60, %s3925_s14  ;;  %v7869_v49 = vld [vmem:[#allocation145_spill] sm:$0xff] }
 0x3cf   : > { %v2811_v18 = vmul.f32 %v7866_v5, %v7781_v21  ;;  %v665_v36 = vmul.f32 %v3822_v25, %v7867_v53  ;;  %7868 = vst [vmem:[#allocation152_spill] sm:$0xff] %v6664_v48  ;;  %v6666_v43 = vld [vmem:[#allocation2 + $0x91] sm:$0xff]  ;;  %v6676_v27 = vadd.f32 %v766_v39, %v7869_v49  ;;  %v3826_v10 = vld [vmem:[#allocation2 + $0xe0] sm:$0xff]  ;;  %v6680_v48 = vadd.f32 %v765_v56, %v729_v38 }
 0x3d0   : > { %v1657_v22 = vmul.f32 %v6666_v43, %v7860_v7  ;;  %v768_v61 = vmul.f32 %v3826_v10, %v7862_v26  ;;  %v3827_v25 = vld [vmem:[#allocation2 + $0xd8] sm:$0xff]  ;;  %v1621_v45 = vadd.f32 %v1589_v31, %v1553_v29  ;;  %v3828_v8 = vld [vmem:[#allocation2 + $0x81] sm:$0xff]  ;;  %v2812_v21 = vmul.f32 %v7866_v5, %v7782_v41  ;;  %v3832_v10 = vld [vmem:[#allocation2 + $0xa9] sm:$0xff] }
 0x3d1   : > { %v2843_v59 = vadd.f32 %v2811_v18, %v2771_v28  ;;  %7870 = vst [vmem:[#allocation169_spill] sm:$0xff] %v6676_v27  ;;  %v767_v40 = vmul.f32 %v3827_v25, %v7862_v26  ;;  %7871 = vst [vmem:[#allocation170_spill] sm:$0xff] %v6680_v48  ;;  %v1556_v60 = vmul.f32 %v3828_v8, %v7863_v6  ;;  %v7872_v28 = vld [vmem:[#allocation139_spill] sm:$0xff]  ;;  %v7873_v39 = vld [vmem:[#allocation140_spill] sm:$0xff] }
 0x3d2   : > { %v2701_v49 = vmul.f32 %v7825_v23, %v5779_v47  ;;  %v732_v32 = vadd.f32 %v700_v19, %v7872_v28  ;;  %v731_v18 = vadd.f32 %v699_v35, %v7873_v39  ;;  %v701_v34 = vmul.f32 %v3827_v25, %v7865_v52  ;;  %3267 = vrot.lane.b32.xlu1 %v6397_v20, %s3925_s14  ;;  %v3829_v35 = vld [vmem:[#allocation2 + $0xb1] sm:$0xff] }
 0x3d3   : > { %2925 = vrot.lane.b32.xlu0 %v2843_v59, %s3923_s12  ;;  %v6691_v31 = vadd.f32 %v1657_v22, %v1621_v45  ;;  %v1624_v29 = vadd.f32 %v1592_v3, %v1556_v60  ;;  %v2844_v8 = vadd.f32 %v2812_v21, %v2772_v50  ;;  %v2742_v56 = vmul.f32 %v5970_v33, %v7782_v41  ;;  %v3830_v22 = vld [vmem:[#allocation2 + $0xf0] sm:$0xff]  ;;  %v3831_v50 = vld [vmem:[#allocation2 + $0xfa] sm:$0xff] }
 0x3d4   : > { %v2773_v38 = vadd.f32 %v2741_v17, %v2701_v49  ;;  %v6697_v59 = vadd.f32 %v768_v61, %v732_v32  ;;  %v6699_v47 = vadd.f32 %v767_v40, %v731_v18  ;;  %v1591_v19 = vmul.f32 %v6666_v43, %v7864_v16  ;;  %v3833_v60 = vld [vmem:[#allocation2 + $0xc9] sm:$0xff] }
 0x3d5   : > { %7874 = vst [vmem:[#allocation173_spill] sm:$0xff] %v6691_v31  ;;  %v1594_v45 = vmul.f32 %v3829_v35, %v7864_v16  ;;  %v769_v3 = vmul.f32 %v3830_v22, %v7862_v26  ;;  %v1660_v20 = vmul.f32 %v3829_v35, %v7860_v7  ;;  %v2813_v41 = vmul.f32 %v7866_v5, %v7784_v1  ;;  %v7883_v26 = vld [vmem:[#allocation108_spill] sm:$0xff] }
 0x3d6   : > { %7875 = vst [vmem:[#allocation175_spill] sm:$0xff] %v6697_v59  ;;  %7876 = vst [vmem:[#allocation60_spill] sm:$0xff] %v6699_v47  ;;  %v2702_v40 = vmul.f32 %v3831_v50, %v7825_v23  ;;  %v1555_v17 = vmul.f32 %v3824_v57, %v7863_v6  ;;  %v1659_v61 = vmul.f32 %v3832_v10, %v7860_v7  ;;  %3269 = vrot.lane.b32.xlu1 %v6407_v63, %s3925_s14  ;;  %v7918_v31 = vld [vmem:[#allocation36_spill] sm:$0xff] }
 0x3d7   : > { %2927 = vrot.lane.b32.xlu0 %v2844_v8, %s3923_s12  ;;  %v1558_v25 = vmul.f32 %v6644_v9, %v7863_v6  ;;  %v1662_v21 = vmul.f32 %v3833_v60, %v7860_v7  ;;  %v733_v49 = vadd.f32 %v701_v34, %v665_v36  ;;  %v2845_v28 = vadd.f32 %v2813_v41, %v2773_v38  ;;  %v3834_v36 = vld [vmem:[#allocation2 + $0x10a] sm:$0xff] }
 0x3d8   : > { %v2774_v32 = vadd.f32 %v2742_v56, %v2702_v40  ;;  %v2743_v39 = vmul.f32 %v5970_v33, %v7784_v1  ;;  %v1623_v18 = vadd.f32 %v1591_v19, %v1555_v17  ;;  %v1593_v8 = vmul.f32 %v3832_v10, %v7864_v16  ;;  %v3837_v40 = vld [vmem:[#allocation2 + $0x8] sm:$0xff] }
 0x3d9   : > { %v1626_v57 = vadd.f32 %v1594_v45, %v1558_v25  ;;  %v1596_v22 = vmul.f32 %v3833_v60, %v7864_v16  ;;  %v6721_v50 = vadd.f32 %v769_v3, %v733_v49  ;;  %v6723_v9 = vadd.f32 %v1660_v20, %v1624_v29  ;;  %v3835_v45 = vld [vmem:[#allocation2 + $0xc1] sm:$0xff]  ;;  %v6739_v20 = vld [vmem:[#allocation2 + $0x12a] sm:$0xff] }
 0x3da   : > { %v2814_v63 = vmul.f32 %v7866_v5, %v7785_v54  ;;  %v2703_v34 = vmul.f32 %v3834_v36, %v7825_v23  ;;  %v6729_v38 = vadd.f32 %v1659_v61, %v1623_v18  ;;  %v1557_v56 = vmul.f32 %v6666_v43, %v7863_v6  ;;  %3271 = vrot.lane.b32.xlu1 %v6426_v55, %s3925_s14  ;;  %v3838_v25 = vld [vmem:[#allocation2 + $0xe1] sm:$0xff] }
 0x3db   : > { %7877 = vst [vmem:[#allocation176_spill] sm:$0xff] %v6721_v50  ;;  %7878 = vst [vmem:[#allocation174_spill] sm:$0xff] %v6723_v9  ;;  %2929 = vrot.lane.b32.xlu0 %v2845_v28, %s3923_s12  ;;  %v6731_v1 = vadd.f32 %v1662_v21, %v1626_v57  ;;  %v1560_v19 = vmul.f32 %v3829_v35, %v7863_v6  ;;  %v1661_v29 = vmul.f32 %v3835_v45, %v7860_v7  ;;  %v3839_v21 = vld [vmem:[#allocation2 + $0xd9] sm:$0xff]  ;;  %v7907_v50 = vld [vmem:[#allocation63_spill] sm:$0xff] }
 0x3dc   : > { %7879 = vst [vmem:[#allocation159_spill] sm:$0xff] %v6729_v38  ;;  %v2846_v3 = vadd.f32 %v2814_v63, %v2774_v32  ;;  %v2775_v54 = vadd.f32 %v2743_v39, %v2703_v34  ;;  %v2744_v41 = vmul.f32 %v6739_v20, %v5970_v33  ;;  %v650_v17 = vmul.f32 %v3837_v40, %v7867_v53  ;;  %v6748_v49 = vld [vmem:[#allocation2 + $0x13a] sm:$0xff]  ;;  %v3841_v32 = vld [vmem:[#allocation2 + $0x112] sm:$0xff]  ;;  %v6883_v38 = vld [vmem:[#allocation2 + $0x16a] sm:$0xff] }
 0x3dd   : > { %7880 = vst [vmem:[#allocation148_spill] sm:$0xff] %v6731_v1  ;;  %v1625_v61 = vadd.f32 %v1593_v8, %v1557_v56  ;;  %v1628_v43 = vadd.f32 %v1596_v22, %v1560_v19  ;;  %v1664_v35 = vmul.f32 %v3838_v25, %v7860_v7  ;;  %v1595_v60 = vmul.f32 %v3835_v45, %v7864_v16  ;;  %v3842_v18 = vld [vmem:[#allocation2] sm:$0xff]  ;;  %v3843_v8 = vld [vmem:[#allocation2 + $0x9] sm:$0xff] }
 0x3de   : > { %v1597_v55 = vmul.f32 %v3839_v21, %v7864_v16  ;;  %v2815_v28 = vmul.f32 %v6748_v49, %v7866_v5  ;;  %v2704_v39 = vmul.f32 %v3841_v32, %v7825_v23  ;;  %v649_v57 = vmul.f32 %v3842_v18, %v7867_v53  ;;  %v3844_v63 = vld [vmem:[#allocation2 + $0x1] sm:$0xff]  ;;  %3273 = vrot.lane.b32.xlu1 %v6436_v0, %s3925_s14  ;;  %v7881_v25 = vld [vmem:[#allocation115_spill] sm:$0xff] }
 0x3df   : > { %2931 = vrot.lane.b32.xlu0 %v2846_v3, %s3923_s12  ;;  %v1546_v22 = vmul.f32 %v3843_v8, %v7863_v6  ;;  %v1545_v36 = vmul.f32 %v3844_v63, %v7863_v6  ;;  %v1559_v34 = vmul.f32 %v3832_v10, %v7863_v6  ;;  %v1561_v56 = vmul.f32 %v3835_v45, %v7863_v6  ;;  %v3845_v8 = vld [vmem:[#allocation2 + $0xf1] sm:$0xff]  ;;  %v7882_v63 = vld [vmem:[#allocation29_spill] sm:$0xff]  ;;  %v7887_v6 = vld [vmem:[#allocation54_spill] sm:$0xff] }
 0x3e0   : > { %v2847_v19 = vadd.f32 %v2815_v28, %v2775_v54  ;;  %v2776_v3 = vadd.f32 %v2744_v41, %v2704_v39  ;;  %v2745_v40 = vmul.f32 %v6748_v49, %v5970_v33  ;;  %v718_v32 = vadd.f32 %v7881_v25, %v650_v17  ;;  %v6768_v0 = vld [vmem:[#allocation2 + $0x142] sm:$0xff]  ;;  %v7884_v28 = vld [vmem:[#allocation111_spill] sm:$0xff]  ;;  %v7885_v39 = vld [vmem:[#allocation68_spill] sm:$0xff] }
 0x3e1   : > { %v1663_v18 = vmul.f32 %v3839_v21, %v7860_v7  ;;  %v1665_v16 = vmul.f32 %v3845_v8, %v7860_v7  ;;  %v2474_v10 = vmul.f32 %v7883_v26, %v7882_v63  ;;  %v1627_v53 = vadd.f32 %v1595_v60, %v1559_v34  ;;  %v3847_v41 = vld [vmem:[#allocation2 + $0x122] sm:$0xff]  ;;  %v7890_v63 = vld [vmem:[#allocation116_spill] sm:$0xff]  ;;  %v7911_v9 = vld [vmem:[#allocation119_spill] sm:$0xff] }
 0x3e2   : > { %v1629_v45 = vadd.f32 %v1597_v55, %v1561_v56  ;;  %v2816_v54 = vmul.f32 %v6768_v0, %v7866_v5  ;;  %v2705_v17 = vmul.f32 %v3847_v41, %v7825_v23  ;;  %v717_v21 = vadd.f32 %v7884_v28, %v649_v57  ;;  %v7886_v8 = vld [vmem:[#allocation113_spill] sm:$0xff]  ;;  %3275 = vrot.lane.b32.xlu1 %v6453_v58, %s3925_s14  ;;  %v7895_v58 = vld [vmem:[#allocation100_spill] sm:$0xff] }
 0x3e3   : > { %2933 = vrot.lane.b32.xlu0 %v2847_v19, %s3923_s12  ;;  %v1614_v25 = vadd.f32 %v7885_v39, %v1546_v22  ;;  %v1613_v7 = vadd.f32 %v7886_v8, %v1545_v36  ;;  %v2473_v60 = vmul.f32 %v7883_v26, %v7887_v6  ;;  %v6778_v55 = vadd.f32 %v1661_v29, %v1625_v61  ;;  %v7893_v36 = vld [vmem:[#allocation120_spill] sm:$0xff]  ;;  %v6797_v61 = vld [vmem:[#allocation2 + $0x141] sm:$0xff] }
 0x3e4   : > { %v6780_v34 = vadd.f32 %v1664_v35, %v1628_v43  ;;  %v2848_v56 = vadd.f32 %v2816_v54, %v2776_v3  ;;  %v2777_v19 = vadd.f32 %v2745_v40, %v2705_v17  ;;  %v6785_v41 = vadd.f32 %v7890_v63, %v718_v32  ;;  %v6793_v6 = vld [vmem:[#allocation2 + $0x152] sm:$0xff]  ;;  %7894 = vst [vmem:[#allocation146_spill] sm:$0xff] %v6797_v61  ;;  %v7901_v17 = vld [vmem:[#allocation122_spill] sm:$0xff]  ;;  %v7902_v63 = vld [vmem:[#allocation101_spill] sm:$0xff] }
 0x3e5   : > { %7888 = vst [vmem:[#allocation58_spill] sm:$0xff] %v6778_v55  ;;  %v6787_v57 = vadd.f32 %v1663_v18, %v1627_v53  ;;  %v6789_v22 = vadd.f32 %v1665_v16, %v1629_v45  ;;  %v2542_v28 = vadd.f32 %v7893_v36, %v2474_v10  ;;  %v2817_v29 = vmul.f32 %v6793_v6, %v7866_v5  ;;  %v6801_v35 = vld [vmem:[#allocation2 + $0x159] sm:$0xff]  ;;  %v7897_v53 = vld [vmem:[#allocation99_spill] sm:$0xff]  ;;  %v7899_v18 = vld [vmem:[#allocation118_spill] sm:$0xff] }
 0x3e6   : > { %7889 = vst [vmem:[#allocation178_spill] sm:$0xff] %v6780_v34  ;;  %v2124_v43 = vmul.f32 %v6797_v61, %v7895_v58  ;;  %7896 = vst [vmem:[#allocation154_spill] sm:$0xff] %v6801_v35  ;;  %v2164_v16 = vmul.f32 %v6801_v35, %v7897_v53  ;;  %v2746_v3 = vmul.f32 %v6768_v0, %v5970_v33  ;;  %v7898_v40 = vld [vmem:[#allocation112_spill] sm:$0xff]  ;;  %v7900_v45 = vld [vmem:[#allocation114_spill] sm:$0xff]  ;;  %3277 = vrot.lane.b32.xlu1 %v6461_v62, %s3925_s14 }
 0x3e7   : > { %7891 = vst [vmem:[#allocation177_spill] sm:$0xff] %v6787_v57  ;;  %7892 = vst [vmem:[#allocation179_spill] sm:$0xff] %v6789_v22  ;;  %2935 = vrot.lane.b32.xlu0 %v2848_v56, %s3923_s12  ;;  %v6808_v32 = vadd.f32 %v7898_v40, %v717_v21  ;;  %v6811_v10 = vadd.f32 %v7899_v18, %v1614_v25  ;;  %v6814_v54 = vadd.f32 %v7900_v45, %v1613_v7  ;;  %v6819_v56 = vld [vmem:[#allocation2 + $0x171] sm:$0xff]  ;;  %v7904_v25 = vld [vmem:[#allocation110_spill] sm:$0xff] }
 0x3e8   : > { %v2541_v39 = vadd.f32 %v7901_v17, %v2473_v60  ;;  %v2849_v8 = vadd.f32 %v2817_v29, %v2777_v19  ;;  %v2236_v36 = vmul.f32 %v6819_v56, %v7902_v63  ;;  %v2706_v21 = vmul.f32 %v6739_v20, %v7825_v23  ;;  %v7903_v40 = vld [vmem:[#allocation55_spill] sm:$0xff]  ;;  %v3852_v61 = vld [vmem:[#allocation2 + $0x1a] sm:$0xff]  ;;  %v3853_v17 = vld [vmem:[#allocation2 + $0x22] sm:$0xff] }
 0x3e9   : > { %v2577_v18 = vmul.f32 %v7904_v25, %v7903_v40  ;;  %v2475_v7 = vmul.f32 %v3852_v61, %v7883_v26  ;;  %v7905_v60 = vld [vmem:[#allocation109_spill] sm:$0xff]  ;;  %v2476_v62 = vmul.f32 %v3853_v17, %v7883_v26  ;;  %v2196_v52 = vadd.f32 %v2164_v16, %v2124_v43  ;;  %v6850_v16 = vld [vmem:[#allocation2 + $0x151] sm:$0xff] }
 0x3ea   : > { %v2511_v45 = vmul.f32 %v7905_v60, %v7903_v40  ;;  %v3854_v19 = vld [vmem:[#allocation2 + $0x3a] sm:$0xff]  ;;  %v2778_v22 = vadd.f32 %v2746_v3, %v2706_v21  ;;  %v2579_v57 = vmul.f32 %v7904_v25, %v7907_v50  ;;  %v2513_v43 = vmul.f32 %v7905_v60, %v7907_v50  ;;  %3279 = vrot.lane.b32.xlu1 %v6487_v51, %s3925_s14 }
 0x3eb   : > { %v2512_v29 = vmul.f32 %v3854_v19, %v7905_v60  ;;  %2937 = vrot.lane.b32.xlu0 %v2849_v8, %s3923_s12  ;;  %v7906_v20 = vld [vmem:[#allocation121_spill] sm:$0xff]  ;;  %v6842_v1 = vadd.f32 %v2577_v18, %v2541_v39  ;;  %7909 = vst [vmem:[#allocation155_spill] sm:$0xff] %v6850_v16  ;;  %v2125_v3 = vmul.f32 %v6850_v16, %v7895_v58  ;;  %v6854_v8 = vld [vmem:[#allocation2 + $0x169] sm:$0xff] }
 0x3ec   : > { %v6834_v34 = vadd.f32 %v7906_v20, %v2542_v28  ;;  %v6838_v61 = vld [vmem:[#allocation2 + $0x15a] sm:$0xff]  ;;  %v2268_v28 = vadd.f32 %v2236_v36, %v2196_v52  ;;  %v2165_v39 = vmul.f32 %v6854_v8, %v7897_v53  ;;  %v2747_v21 = vmul.f32 %v6793_v6, %v5970_v33 }
 0x3ed   : > { %v2818_v59 = vmul.f32 %v6838_v61, %v7866_v5  ;;  %v7908_v17 = vld [vmem:[#allocation117_spill] sm:$0xff]  ;;  %v2543_v18 = vadd.f32 %v2511_v45, %v2475_v7  ;;  %v2544_v20 = vadd.f32 %v2512_v29, %v2476_v62  ;;  %v2477_v55 = vmul.f32 %v7883_v26, %v7903_v40  ;;  %v7912_v29 = vld [vmem:[#allocation88_spill] sm:$0xff] }
 0x3ee   : > { %v2580_v47 = vmul.f32 %v7904_v25, %v7908_v17  ;;  %v2514_v51 = vmul.f32 %v7905_v60, %v7908_v17  ;;  %v6865_v36 = vld [vmem:[#allocation2 + $0x181] sm:$0xff]  ;;  %v2707_v27 = vmul.f32 %v6748_v49, %v7825_v23  ;;  %v2581_v7 = vmul.f32 %v7904_v25, %v7911_v9 }
 0x3ef   : > { %2359 = vrot.lane.b32.xlu0 %v2268_v28, %s3925_s14  ;;  %v2850_v52 = vadd.f32 %v2818_v59, %v2778_v22  ;;  %7910 = vst [vmem:[#allocation158_spill] sm:$0xff] %v6865_v36  ;;  %v2237_v16 = vmul.f32 %v6865_v36, %v7902_v63  ;;  %v6873_v45 = vadd.f32 %v2579_v57, %v2543_v18  ;;  %v7913_v18 = vld [vmem:[#allocation89_spill] sm:$0xff] }
 0x3f0   : > { %v6875_v40 = vadd.f32 %v2580_v47, %v2544_v20  ;;  %v2478_v62 = vmul.f32 %v3854_v19, %v7883_v26  ;;  %v2582_v59 = vmul.f32 %v7904_v25, %v7912_v29  ;;  %v2197_v22 = vadd.f32 %v2165_v39, %v2125_v3  ;;  %v7914_v3 = vld [vmem:[#allocation5_spill] sm:$0xff] }
 0x3f1   : > { %2939 = vrot.lane.b32.xlu1 %v2850_v52, %s3923_s12  ;;  %v2779_v28 = vadd.f32 %v2747_v21, %v2707_v27  ;;  %v2545_v48 = vadd.f32 %v2513_v43, %v2477_v55  ;;  %v2479_v49 = vmul.f32 %v7883_v26, %v7907_v50  ;;  %v2819_v57 = vmul.f32 %v6883_v38, %v7866_v5  ;;  %v6908_v52 = vld [vmem:[#allocation2 + $0x189] sm:$0xff] }
 0x3f2   : > { %v2546_v47 = vadd.f32 %v2514_v51, %v2478_v62  ;;  %v2515_v19 = vmul.f32 %v7905_v60, %v7911_v9  ;;  %v2583_v20 = vmul.f32 %v7904_v25, %v7913_v18  ;;  %v2269_v27 = vadd.f32 %v2237_v16, %v2197_v22  ;;  %7915 = vst [vmem:[#allocation157_spill] sm:$0xff] %v6908_v52 }
 0x3f3   : > { %3281 = vrot.lane.b32.xlu0 %v6493_v46, %s3925_s14  ;;  %v2126_v55 = vmul.f32 %v6801_v35, %v7895_v58  ;;  %v2166_v50 = vmul.f32 %v6819_v56, %v7897_v53  ;;  %v2748_v43 = vmul.f32 %v6838_v61, %v5970_v33  ;;  %v1129_v39 = vadd.f32 %v7914_v3, %v6808_v32  ;;  %v7916_v32 = vld [vmem:[#allocation4_spill] sm:$0xff] }
 0x3f4   : > { %v6901_v21 = vadd.f32 %v2581_v7, %v2545_v48  ;;  %v2480_v51 = vmul.f32 %v7883_v26, %v7908_v17  ;;  %v2516_v46 = vmul.f32 %v7905_v60, %v7912_v29  ;;  %v2851_v16 = vadd.f32 %v2819_v57, %v2779_v28  ;;  %v7917_v7 = vld [vmem:[#allocation37_spill] sm:$0xff] }
 0x3f5   : > { %2361 = vrot.lane.b32.xlu1 %v2269_v27, %s3925_s14  ;;  %v2238_v62 = vmul.f32 %v6908_v52, %v7902_v63  ;;  %v2708_v22 = vmul.f32 %v6768_v0, %v7825_v23  ;;  %v6916_v48 = vmul.f32 %v7904_v25, %v6092_v30  ;;  %v1130_v17 = vadd.f32 %v7916_v32, %v6785_v41 }
 0x3f6   : > { %v1473_v29 = vadd.f32 %v7917_v7, %v1129_v39  ;;  %v6921_v3 = vadd.f32 %v2582_v59, %v2546_v47  ;;  %v2481_v28 = vmul.f32 %v7883_v26, %v7911_v9  ;;  %v2198_v57 = vadd.f32 %v2166_v50, %v2126_v55  ;;  %v7919_v9 = vld [vmem:[#allocation31_spill] sm:$0xff] }
 0x3f7   : > { %2941 = vrot.lane.b32.xlu0 %v2851_v16, %s3923_s12  ;;  %v2780_v27 = vadd.f32 %v2748_v43, %v2708_v22  ;;  %v2547_v35 = vadd.f32 %v2515_v19, %v2479_v49  ;;  %v2517_v0 = vmul.f32 %v7905_v60, %v7913_v18  ;;  %v1474_v13 = vadd.f32 %v7918_v31, %v1130_v17  ;;  %v7920_v18 = vld [vmem:[#allocation124_spill] sm:$0xff]  ;;  %v7921_v55 = vld [vmem:[#allocation7_spill] sm:$0xff] }
 0x3f8   : > { %v2820_v41 = vmul.f32 %v7866_v5, %v6348_v37  ;;  %v6931_v32 = vadd.f32 %v2516_v46, %v2480_v51  ;;  %v6935_v59 = vmul.f32 %v7904_v25, %v6109_v15  ;;  %v2270_v47 = vadd.f32 %v2238_v62, %v2198_v57  ;;  %v3861_v15 = vld [vmem:[#allocation2 + $0x6a] sm:$0xff]  ;;  %v6956_v16 = vld [vmem:[#allocation2 + $0x199] sm:$0xff] }
 0x3f9   : > { %3283 = vrot.lane.b32.xlu1 %v7919_v9, %s3925_s14  ;;  %v2127_v49 = vmul.f32 %v6854_v8, %v7895_v58  ;;  %v2167_v19 = vmul.f32 %v6865_v36, %v7897_v53  ;;  %v2749_v31 = vmul.f32 %v6883_v38, %v5970_v33  ;;  %v1131_v50 = vadd.f32 %v7921_v55, %v7920_v18  ;;  %v7923_v17 = vld [vmem:[#allocation39_spill] sm:$0xff]  ;;  %v3863_v55 = vld [vmem:[#allocation2 + $0x7a] sm:$0xff] }
 0x3fa   : > { %v1713_v43 = vadd.f32 %v6814_v54, %v1473_v29  ;;  %v6949_v39 = vmul.f32 %v3861_v15, %v7883_v26  ;;  %v6953_v51 = vmul.f32 %v7905_v60, %v6092_v30  ;;  %v2852_v46 = vadd.f32 %v2820_v41, %v2780_v27  ;;  %7922 = vst [vmem:[#allocation160_spill] sm:$0xff] %v6956_v16  ;;  %v7924_v57 = vld [vmem:[#allocation71_spill] sm:$0xff]  ;;  %v7944_v36 = vld [vmem:[#allocation69_spill] sm:$0xff] }
 0x3fb   : > { %2363 = vrot.lane.b32.xlu0 %v2270_v47, %s3925_s14  ;;  %v2239_v62 = vmul.f32 %v6956_v16, %v7902_v63  ;;  %v2709_v22 = vmul.f32 %v6793_v6, %v7825_v23  ;;  %v6962_v54 = vadd.f32 %v2583_v20, %v2547_v35  ;;  %v1475_v7 = vadd.f32 %v7923_v17, %v1131_v50  ;;  %v7925_v47 = vld [vmem:[#allocation91_spill] sm:$0xff]  ;;  %v7927_v20 = vld [vmem:[#allocation6_spill] sm:$0xff]  ;;  %v7931_v17 = vld [vmem:[#allocation8_spill] sm:$0xff] }
 0x3fc   : > { %v1714_v29 = vadd.f32 %v6811_v10, %v1474_v13  ;;  %v2057_v30 = vadd.f32 %v7924_v57, %v1713_v43  ;;  %v6967_v9 = vadd.f32 %v2517_v0, %v2481_v28  ;;  %v2199_v27 = vadd.f32 %v2167_v19, %v2127_v49  ;;  %v7926_v35 = vld [vmem:[#allocation123_spill] sm:$0xff]  ;;  %v7929_v43 = vld [vmem:[#allocation20_spill] sm:$0xff]  ;;  %v2890_v49 = vpop.permute.xlu1 %2889  ;;  %v7932_v57 = vld [vmem:[#allocation38_spill] sm:$0xff] }
 0x3fd   : > { %2943 = vrot.lane.b32.xlu1 %v2852_v46, %s3923_s12  ;;  %v2781_v41 = vadd.f32 %v2749_v31, %v2709_v22  ;;  %v6972_v18 = vmul.f32 %v7904_v25, %v7925_v47  ;;  %v6975_v6 = vmul.f32 %v3863_v55, %v7883_v26  ;;  %v1132_v50 = vadd.f32 %v7927_v20, %v7926_v35  ;;  %v7928_v13 = vld [vmem:[#allocation3_spill] sm:$0xff]  ;;  %v7930_v22 = vld [vmem:[#allocation70_spill] sm:$0xff]  ;;  %v7943_v16 = vld [vmem:[#allocation125_spill] sm:$0xff] }
 0x3fe   : > { %v2058_v10 = vadd.f32 %v7928_v13, %v1714_v29  ;;  %v2401_v28 = vadd.f32 %v7929_v43, %v2057_v30  ;;  %v2821_v0 = vmul.f32 %v7866_v5, %v6350_v11  ;;  %v2271_v19 = vadd.f32 %v2239_v62, %v2199_v27  ;;  %v7933_v47 = vld [vmem:[#allocation126_spill] sm:$0xff]  ;;  %v7935_v20 = vld [vmem:[#allocation127_spill] sm:$0xff]  ;;  %v7936_v62 = vld [vmem:[#allocation9_spill] sm:$0xff]  ;;  %v2892_v13 = vpop.permute.xlu0 %2891 }
 0x3ff   : > { %3285 = vrot.lane.b32.xlu0 %v6525_v4, %s3925_s14  ;;  %v2128_v31 = vmul.f32 %v6819_v56, %v7895_v58  ;;  %v2168_v15 = vmul.f32 %v6908_v52, %v7897_v53  ;;  %v2750_v46 = vmul.f32 %v5970_v33, %v6348_v37  ;;  %v1134_v29 = vadd.f32 %v7931_v17, %v7930_v22  ;;  %v7934_v35 = vld [vmem:[#allocation22_spill] sm:$0xff]  ;;  %v7939_v17 = vld [vmem:[#allocation11_spill] sm:$0xff] }
 0x400   : > { %v1476_v30 = vadd.f32 %v7932_v57, %v1132_v50  ;;  %v1715_v55 = vadd.f32 %v7933_v47, %v1475_v7  ;;  %v2402_v4 = vadd.f32 %v7934_v35, %v2058_v10  ;;  %v1133_v27 = vadd.f32 %v7936_v62, %v7935_v20  ;;  %v6999_v53 = vld [vmem:[#allocation2 + $0x1a1] sm:$0xff]  ;;  %v7940_v10 = vld [vmem:[#allocation40_spill] sm:$0xff] }
 0x401   : > { %2365 = vrot.lane.b32.xlu1 %v2271_v19, %s3925_s14  ;;  %v2853_v58 = vadd.f32 %v2821_v0, %v2781_v41  ;;  %7937 = vst [vmem:[#allocation23_spill] sm:$0xff] %v6999_v53  ;;  %v2240_v43 = vmul.f32 %v6999_v53, %v7902_v63  ;;  %v2710_v22 = vmul.f32 %v6838_v61, %v7825_v23  ;;  %v7938_v50 = vld [vmem:[#allocation130_spill] sm:$0xff]  ;;  %v7941_v47 = vld [vmem:[#allocation73_spill] sm:$0xff]  ;;  %v2894_v0 = vpop.permute.xlu1 %2893 }
 0x402   : > { %v1135_v7 = vadd.f32 %v7939_v17, %v7938_v50  ;;  %v1478_v57 = vadd.f32 %v7940_v10, %v1134_v29  ;;  %v2059_v35 = vadd.f32 %v7941_v47, %v1715_v55  ;;  %v2641_v20 = vadd.f32 %v6842_v1, %v2401_v28  ;;  %v7942_v19 = vld [vmem:[#allocation41_spill] sm:$0xff]  ;;  %v3234_v1 = vpop.permute.xlu0 %3233 }
 0x403   : > { %v1477_v41 = vadd.f32 %v7942_v19, %v1133_v27  ;;  %2945 = vrot.lane.b32.xlu0 %v2853_v58, %s3923_s12  ;;  %v2200_v62 = vadd.f32 %v2168_v15, %v2128_v31  ;;  %v2782_v63 = vadd.f32 %v2750_v46, %v2710_v22  ;;  %v2751_v53 = vmul.f32 %v5970_v33, %v6350_v11  ;;  %v7947_v46 = vld [vmem:[#allocation132_spill] sm:$0xff] }
 0x404   : > { %v1716_v52 = vadd.f32 %v7943_v16, %v1476_v30  ;;  %v2403_v50 = vadd.f32 %v7944_v36, %v2059_v35  ;;  %v2642_v29 = vadd.f32 %v6834_v34, %v2402_v4  ;;  %v2985_v17 = vadd.f32 %v2890_v49, %v2641_v20  ;;  %v7945_v36 = vld [vmem:[#allocation72_spill] sm:$0xff]  ;;  %v7950_v35 = vld [vmem:[#allocation75_spill] sm:$0xff] }
 0x405   : > { %3287 = vrot.lane.b32.xlu1 %v6541_v2, %s3925_s14  ;;  %v2272_v11 = vadd.f32 %v2240_v43, %v2200_v62  ;;  %v2822_v16 = vmul.f32 %v7866_v5, %v6474_v44  ;;  %v2711_v34 = vmul.f32 %v6883_v38, %v7825_v23  ;;  %v7946_v49 = vld [vmem:[#allocation128_spill] sm:$0xff]  ;;  %v1717_v30 = vadd.f32 %v7947_v46, %v1477_v41  ;;  %v3236_v55 = vpop.permute.xlu1 %3235 }
 0x406   : > { %v2060_v28 = vadd.f32 %v7945_v36, %v1716_v52  ;;  %v1718_v2 = vadd.f32 %v7946_v49, %v1478_v57  ;;  %v2986_v31 = vadd.f32 %v2892_v13, %v2642_v29  ;;  %v3329_v15 = vadd.f32 %v3234_v1, %v2985_v17  ;;  %v7948_v43 = vld [vmem:[#allocation52_spill] sm:$0xff]  ;;  %v7949_v57 = vld [vmem:[#allocation43_spill] sm:$0xff]  ;;  %v2896_v19 = vpop.permute.xlu0 %2895  ;;  %v7954_v49 = vld [vmem:[#allocation161_spill] sm:$0xff] }
 0x407   : > { %2367 = vrot.lane.b32.xlu0 %v2272_v11, %s3925_s14  ;;  %v2854_v4 = vadd.f32 %v2822_v16, %v2782_v63  ;;  %v2783_v27 = vadd.f32 %v2751_v53, %v2711_v34  ;;  %v2752_v58 = vmul.f32 %v5970_v33, %v6474_v44  ;;  %v2643_v10 = vadd.f32 %v6873_v45, %v2403_v50  ;;  %v7952_v11 = vld [vmem:[#allocation129_spill] sm:$0xff]  ;;  %v7953_v16 = vld [vmem:[#allocation10_spill] sm:$0xff] }
 0x408   : > { %v2404_v22 = vadd.f32 %v7948_v43, %v2060_v28  ;;  %3362 = vst.msk [vmem:[%s7024_s30] sm:$0xff] %vm3361_vm3, %v3329_v15  ;;  %v3465_v52 = vmul.f32 %v3329_v15, %v3329_v15  ;;  %v3330_v13 = vadd.f32 %v3236_v55, %v2986_v31  ;;  %v1479_v47 = vadd.f32 %v7949_v57, %v1135_v7  ;;  %v7951_v7 = vld [vmem:[#allocation92_spill] sm:$0xff]  ;;  %v7959_v57 = vld [vmem:[#allocation13_spill] sm:$0xff] }
 0x409   : > { %v2061_v20 = vadd.f32 %v7950_v35, %v1717_v30  ;;  %2947 = vrot.lane.b32.xlu1 %v2854_v4, %s3923_s12  ;;  %v2823_v53 = vmul.f32 %v7866_v5, %v6556_v24  ;;  %v2712_v33 = vmul.f32 %v7825_v23, %v6348_v37  ;;  %v2987_v44 = vadd.f32 %v2894_v0, %v2643_v10  ;;  %v3238_v29 = vpop.permute.xlu1 %3237  ;;  %v7956_v4 = vld [vmem:[#allocation42_spill] sm:$0xff] }
 0x40a   : > { %v3394_v45 = vsel %vm3361_vm3, %v3329_v15, 0.0  ;;  %3363 = vst.msk [vmem:[%s7024_s30 + $0x8] sm:$0xff] %vm3361_vm3, %v3330_v13  ;;  %v3395_v41 = vsel %vm3361_vm3, %v3330_v13, 0.0  ;;  %v3466_v62 = vmul.f32 %v3330_v13, %v3330_v13  ;;  %v3497_v37 = vsel %vm3361_vm3, %v3465_v52, 0.0  ;;  %v2898_v28 = vpop.permute.xlu0 %2897  ;;  %v7955_v15 = vld [vmem:[#allocation74_spill] sm:$0xff] }
 0x40b   : > { %v2405_v63 = vadd.f32 %v7951_v7, %v2061_v20  ;;  %v3396_v50 = vadd.f32 %v3395_v41, %v3394_v45  ;;  %3289 = vrot.lane.b32.xlu0 %v6550_v42, %s3925_s14  ;;  %v2855_v24 = vadd.f32 %v2823_v53, %v2783_v27  ;;  %v2784_v17 = vadd.f32 %v2752_v58, %v2712_v33  ;;  %v7958_v13 = vld [vmem:[#allocation134_spill] sm:$0xff]  ;;  %v7960_v53 = vld [vmem:[#allocation77_spill] sm:$0xff]  ;;  %v7962_v7 = vld [vmem:[#allocation135_spill] sm:$0xff] }
 0x40c   : > { %v3498_v23 = vsel %vm3361_vm3, %v3466_v62, 0.0  ;;  %v2644_v0 = vadd.f32 %v6875_v40, %v2404_v22  ;;  %v3331_v1 = vadd.f32 %v3238_v29, %v2987_v44  ;;  %v1136_v34 = vadd.f32 %v7953_v16, %v7952_v11  ;;  %v7961_v41 = vld [vmem:[#allocation45_spill] sm:$0xff]  ;;  %v7963_v29 = vld [vmem:[#allocation56_spill] sm:$0xff] }
 0x40d   : > { %v3499_v36 = vadd.f32 %v3498_v23, %v3497_v37  ;;  %2949 = vrot.lane.b32.xlu1 %v2855_v24, %s3923_s12  ;;  %v2824_v42 = vmul.f32 %v7866_v5, %v7954_v49  ;;  %v7064_v31 = vadd.f32 %v6916_v48, %v6931_v32  ;;  %v2062_v46 = vadd.f32 %v7955_v15, %v1718_v2  ;;  %v3240_v5 = vpop.permute.xlu1 %3239  ;;  %v7957_v32 = vld [vmem:[#allocation61_spill] sm:$0xff]  ;;  %v7966_v16 = vld [vmem:[#allocation12_spill] sm:$0xff] }
 0x40e   : > { %v2988_v30 = vadd.f32 %v2896_v19, %v2644_v0  ;;  %3364 = vst.msk [vmem:[%s7024_s30 + $0x10] sm:$0xff] %vm3361_vm3, %v3331_v1  ;;  %v3397_v40 = vsel %vm3361_vm3, %v3331_v1, 0.0  ;;  %v3467_v55 = vmul.f32 %v3331_v1, %v3331_v1  ;;  %v1480_v27 = vadd.f32 %v7956_v4, %v1136_v34  ;;  %v7965_v11 = vld [vmem:[#allocation133_spill] sm:$0xff] }
 0x40f   : > { %v1719_v58 = vadd.f32 %v6640_v12, %v1479_v47  ;;  %v3398_v43 = vadd.f32 %v3397_v40, %v3396_v50  ;;  %3291 = vrot.lane.b32.xlu0 %v6574_v14, %s3925_s14  ;;  %v2856_v48 = vadd.f32 %v2824_v42, %v2784_v17  ;;  %v2406_v22 = vadd.f32 %v7957_v32, %v2062_v46  ;;  %v2900_v12 = vpop.permute.xlu0 %2899  ;;  %v3865_v47 = vld [vmem:[#allocation2 + $0x92] sm:$0xff]  ;;  %v3867_v15 = vld [vmem:[#allocation2 + $0x82] sm:$0xff]  ;;  %v3868_v4 = vld [vmem:[#allocation2 + $0x9a] sm:$0xff] }
 0x410   : > { %v3500_v2 = vsel %vm3361_vm3, %v3467_v55, 0.0  ;;  %v2645_v10 = vadd.f32 %v6901_v21, %v2405_v63  ;;  %v3332_v52 = vadd.f32 %v3240_v5, %v2988_v30  ;;  %v1137_v35 = vadd.f32 %v7959_v57, %v7958_v13  ;;  %v7964_v17 = vld [vmem:[#allocation163_spill] sm:$0xff]  ;;  %v7968_v30 = vld [vmem:[#allocation76_spill] sm:$0xff]  ;;  %v7970_v5 = vld [vmem:[#allocation173_spill] sm:$0xff] }
 0x411   : > { %v3501_v20 = vadd.f32 %v3500_v2, %v3499_v36  ;;  %2951 = vrot.lane.b32.xlu1 %v2856_v48, %s3923_s12  ;;  %v2550_v14 = vadd.f32 %v6953_v51, %v6949_v39  ;;  %v2519_v19 = vmul.f32 %v3865_v47, %v7905_v60  ;;  %v2063_v33 = vadd.f32 %v7960_v53, %v1719_v58  ;;  %v3242_v39 = vpop.permute.xlu1 %3241  ;;  %v7091_v51 = vld [vmem:[#allocation2 + $0xaa] sm:$0xff]  ;;  %v7969_v58 = vld [vmem:[#allocation44_spill] sm:$0xff] }
 0x412   : > { %v2989_v44 = vadd.f32 %v2898_v28, %v2645_v10  ;;  %3365 = vst.msk [vmem:[%s7024_s30 + $0x18] sm:$0xff] %vm3361_vm3, %v3332_v52  ;;  %v3399_v21 = vsel %vm3361_vm3, %v3332_v52, 0.0  ;;  %v3468_v45 = vmul.f32 %v3332_v52, %v3332_v52  ;;  %v1481_v62 = vadd.f32 %v7961_v41, %v1137_v35  ;;  %v7967_v28 = vld [vmem:[#allocation153_spill] sm:$0xff]  ;;  %v7971_v2 = vld [vmem:[#allocation87_spill] sm:$0xff]  ;;  %v7972_v35 = vld [vmem:[#allocation144_spill] sm:$0xff] }
 0x413   : > { %v1720_v63 = vadd.f32 %v7962_v7, %v1480_v27  ;;  %v3400_v50 = vadd.f32 %v3399_v21, %v3398_v43  ;;  %3293 = vrot.lane.b32.xlu0 %v7963_v29, %s3925_s14  ;;  %v7095_v24 = vmul.f32 %v7091_v51, %v7904_v25  ;;  %v2407_v37 = vadd.f32 %v7964_v17, %v2063_v33  ;;  %v2902_v49 = vpop.permute.xlu0 %2901  ;;  %v7974_v53 = vld [vmem:[#allocation79_spill] sm:$0xff] }
 0x414   : > { %v3502_v23 = vsel %vm3361_vm3, %v3468_v45, 0.0  ;;  %v2646_v0 = vadd.f32 %v6921_v3, %v2406_v22  ;;  %v3333_v1 = vadd.f32 %v3242_v39, %v2989_v44  ;;  %v1138_v34 = vadd.f32 %v7966_v16, %v7965_v11  ;;  %v7979_v11 = vld [vmem:[#allocation14_spill] sm:$0xff] }
 0x415   : > { %v3503_v36 = vadd.f32 %v3502_v23, %v3501_v20  ;;  %3295 = vrot.lane.b32.xlu1 %v7967_v28, %s3925_s14  ;;  %v2617_v42 = vadd.f32 %v6935_v59, %v6967_v9  ;;  %v2484_v46 = vmul.f32 %v3867_v15, %v7883_v26  ;;  %v2064_v40 = vadd.f32 %v7968_v30, %v1720_v63  ;;  %v3244_v32 = vpop.permute.xlu1 %3243  ;;  %v7116_v9 = vld [vmem:[#allocation2 + $0xb2] sm:$0xff]  ;;  %v7980_v30 = vld [vmem:[#allocation78_spill] sm:$0xff] }
 0x416   : > { %v2990_v55 = vadd.f32 %v2900_v12, %v2646_v0  ;;  %3366 = vst.msk [vmem:[%s7024_s30 + $0x20] sm:$0xff] %vm3361_vm3, %v3333_v1  ;;  %v3469_v3 = vmul.f32 %v3333_v1, %v3333_v1  ;;  %v2520_v27 = vmul.f32 %v3868_v4, %v7905_v60  ;;  %v1482_v43 = vadd.f32 %v7969_v58, %v1138_v34  ;;  %v7973_v20 = vld [vmem:[#allocation15_spill] sm:$0xff]  ;;  %v7976_v63 = vld [vmem:[#allocation152_spill] sm:$0xff]  ;;  %v7981_v58 = vld [vmem:[#allocation46_spill] sm:$0xff] }
 0x417   : > { %v1721_v48 = vadd.f32 %v7970_v5, %v1481_v62  ;;  %v7114_v59 = vadd.f32 %v6972_v18, %v2550_v14  ;;  %v7120_v22 = vmul.f32 %v7116_v9, %v7904_v25  ;;  %v2408_v10 = vadd.f32 %v7971_v2, %v2064_v40  ;;  %v2904_v18 = vpop.permute.xlu0 %2903  ;;  %v7982_v5 = vld [vmem:[#allocation159_spill] sm:$0xff] }
 0x418   : > { %v3401_v52 = vsel %vm3361_vm3, %v3333_v1, 0.0  ;;  %v2647_v13 = vadd.f32 %v6962_v54, %v2407_v37  ;;  %v3334_v57 = vadd.f32 %v3244_v32, %v2990_v55  ;;  %v1139_v12 = vadd.f32 %v7973_v20, %v7972_v35  ;;  %v7975_v54 = vld [vmem:[#allocation47_spill] sm:$0xff] }
 0x419   : > { %v2065_v33 = vadd.f32 %v7974_v53, %v1721_v48  ;;  %v2551_v14 = vadd.f32 %v2519_v19, %v6975_v6  ;;  %v2485_v44 = vmul.f32 %v3865_v47, %v7883_v26  ;;  %v3504_v21 = vsel %vm3361_vm3, %v3469_v3, 0.0  ;;  %v3246_v17 = vpop.permute.xlu1 %3245  ;;  %v7977_v19 = vld [vmem:[#allocation171_spill] sm:$0xff]  ;;  %v7153_v53 = vld [vmem:[#allocation2 + $0xc2] sm:$0xff] }
 0x41a   : > { %v2991_v45 = vadd.f32 %v2902_v49, %v2647_v13  ;;  %3367 = vst.msk [vmem:[%s7024_s30 + $0x28] sm:$0xff] %vm3361_vm3, %v3334_v57  ;;  %v3403_v41 = vsel %vm3361_vm3, %v3334_v57, 0.0  ;;  %v3470_v62 = vmul.f32 %v3334_v57, %v3334_v57  ;;  %v1483_v7 = vadd.f32 %v7975_v54, %v1139_v12  ;;  %v7978_v1 = vld [vmem:[#allocation143_spill] sm:$0xff]  ;;  %v7984_v13 = vld [vmem:[#allocation170_spill] sm:$0xff]  ;;  %v7985_v57 = vld [vmem:[#allocation17_spill] sm:$0xff] }
 0x41b   : > { %v1722_v29 = vadd.f32 %v7976_v63, %v1482_v43  ;;  %v3402_v39 = vadd.f32 %v3401_v52, %v3400_v50  ;;  %v2521_v6 = vmul.f32 %v7091_v51, %v7905_v60  ;;  %v2409_v47 = vadd.f32 %v7977_v19, %v2065_v33  ;;  %v2906_v49 = vpop.permute.xlu0 %2905  ;;  %v7987_v54 = vld [vmem:[#allocation49_spill] sm:$0xff]  ;;  %v7988_v63 = vld [vmem:[#allocation174_spill] sm:$0xff] }
 0x41c   : > { %v3506_v37 = vsel %vm3361_vm3, %v3470_v62, 0.0  ;;  %v2648_v23 = vadd.f32 %v7064_v31, %v2408_v10  ;;  %v3335_v0 = vadd.f32 %v3246_v17, %v2991_v45  ;;  %v1140_v16 = vadd.f32 %v7979_v11, %v7978_v1  ;;  %v7990_v1 = vld [vmem:[#allocation169_spill] sm:$0xff]  ;;  %v7991_v11 = vld [vmem:[#allocation16_spill] sm:$0xff] }
 0x41d   : > { %v3505_v34 = vadd.f32 %v3504_v21, %v3503_v36  ;;  %v3404_v28 = vadd.f32 %v3403_v41, %v3402_v39  ;;  %v2552_v15 = vadd.f32 %v2520_v27, %v2484_v46  ;;  %v2066_v50 = vadd.f32 %v7980_v30, %v1722_v29  ;;  %v3248_v2 = vpop.permute.xlu1 %3247  ;;  %v7983_v36 = vld [vmem:[#allocation90_spill] sm:$0xff]  ;;  %v7986_v21 = vld [vmem:[#allocation81_spill] sm:$0xff] }
 0x41e   : > { %v2992_v40 = vadd.f32 %v2904_v18, %v2648_v23  ;;  %3368 = vst.msk [vmem:[%s7024_s30 + $0x30] sm:$0xff] %vm3361_vm3, %v3335_v0  ;;  %v3405_v55 = vsel %vm3361_vm3, %v3335_v0, 0.0  ;;  %v3471_v3 = vmul.f32 %v3335_v0, %v3335_v0  ;;  %v1484_v43 = vadd.f32 %v7981_v58, %v1140_v16 }
 0x41f   : > { %v1723_v31 = vadd.f32 %v7982_v5, %v1483_v7  ;;  %v3507_v48 = vadd.f32 %v3506_v37, %v3505_v34  ;;  %v3406_v32 = vadd.f32 %v3405_v55, %v3404_v28  ;;  %v2410_v10 = vadd.f32 %v7983_v36, %v2066_v50  ;;  %v2908_v12 = vpop.permute.xlu0 %2907  ;;  %v7992_v50 = vld [vmem:[#allocation80_spill] sm:$0xff] }
 0x420   : > { %v3508_v46 = vsel %vm3361_vm3, %v3471_v3, 0.0  ;;  %v2649_v27 = vadd.f32 %v2617_v42, %v2409_v47  ;;  %v3336_v52 = vadd.f32 %v3248_v2, %v2992_v40  ;;  %v1141_v35 = vadd.f32 %v7985_v57, %v7984_v13  ;;  %v7989_v47 = vld [vmem:[#allocation181_spill] sm:$0xff]  ;;  %v3871_v2 = vld [vmem:[#allocation2 + $0xca] sm:$0xff] }
 0x421   : > { %v3509_v20 = vadd.f32 %v3508_v46, %v3507_v48  ;;  %v2589_v33 = vmul.f32 %v7153_v53, %v7904_v25  ;;  %v2486_v18 = vmul.f32 %v3868_v4, %v7883_v26  ;;  %v2067_v45 = vadd.f32 %v7986_v21, %v1723_v31  ;;  %v3250_v17 = vpop.permute.xlu1 %3249  ;;  %v7996_v46 = vld [vmem:[#allocation60_spill] sm:$0xff] }
 0x422   : > { %v2993_v41 = vadd.f32 %v2906_v49, %v2649_v27  ;;  %3369 = vst.msk [vmem:[%s7024_s30 + $0x38] sm:$0xff] %vm3361_vm3, %v3336_v52  ;;  %v3407_v42 = vsel %vm3361_vm3, %v3336_v52, 0.0  ;;  %v3472_v62 = vmul.f32 %v3336_v52, %v3336_v52  ;;  %v1485_v7 = vadd.f32 %v7987_v54, %v1141_v35  ;;  %v7997_v27 = vld [vmem:[#allocation19_spill] sm:$0xff] }
 0x423   : > { %v1724_v29 = vadd.f32 %v7988_v63, %v1484_v43  ;;  %v3408_v39 = vadd.f32 %v3407_v42, %v3406_v32  ;;  %v2522_v19 = vmul.f32 %v7116_v9, %v7905_v60  ;;  %v2411_v4 = vadd.f32 %v7989_v47, %v2067_v45  ;;  %v2910_v49 = vpop.permute.xlu0 %2909  ;;  %v7993_v43 = vld [vmem:[#allocation48_spill] sm:$0xff] }
 0x424   : > { %v3510_v37 = vsel %vm3361_vm3, %v3472_v62, 0.0  ;;  %v2650_v23 = vadd.f32 %v7114_v59, %v2410_v10  ;;  %v3337_v0 = vadd.f32 %v3250_v17, %v2993_v41  ;;  %v1142_v16 = vadd.f32 %v7991_v11, %v7990_v1  ;;  %v7994_v59 = vld [vmem:[#allocation58_spill] sm:$0xff]  ;;  %v7999_v62 = vld [vmem:[#allocation51_spill] sm:$0xff] }
 0x425   : > { %v3511_v34 = vadd.f32 %v3510_v37, %v3509_v20  ;;  %v2619_v28 = vadd.f32 %v7095_v24, %v2551_v14  ;;  %v2553_v30 = vadd.f32 %v2521_v6, %v2485_v44  ;;  %v2068_v40 = vadd.f32 %v7992_v50, %v1724_v29  ;;  %v3252_v32 = vpop.permute.xlu1 %3251  ;;  %v7995_v14 = vld [vmem:[#allocation94_spill] sm:$0xff]  ;;  %v8002_v37 = vld [vmem:[#allocation175_spill] sm:$0xff] }
 0x426   : > { %v2994_v55 = vadd.f32 %v2908_v12, %v2650_v23  ;;  %3370 = vst.msk [vmem:[%s7024_s30 + $0x40] sm:$0xff] %vm3361_vm3, %v3337_v0  ;;  %v3409_v3 = vsel %vm3361_vm3, %v3337_v0, 0.0  ;;  %v3473_v58 = vmul.f32 %v3337_v0, %v3337_v0  ;;  %v1486_v5 = vadd.f32 %v7993_v43, %v1142_v16  ;;  %v7998_v12 = vld [vmem:[#allocation83_spill] sm:$0xff]  ;;  %v8003_v23 = vld [vmem:[#allocation18_spill] sm:$0xff] }
 0x427   : > { %v1725_v31 = vadd.f32 %v7994_v59, %v1485_v7  ;;  %v3410_v48 = vadd.f32 %v3409_v3, %v3408_v39  ;;  %v2590_v24 = vmul.f32 %v3871_v2, %v7904_v25  ;;  %v2412_v44 = vadd.f32 %v7995_v14, %v2068_v40  ;;  %v2912_v35 = vpop.permute.xlu0 %2911  ;;  %v8000_v7 = vld [vmem:[#allocation148_spill] sm:$0xff]  ;;  %v8005_v40 = vld [vmem:[#allocation50_spill] sm:$0xff]  ;;  %v8006_v3 = vld [vmem:[#allocation177_spill] sm:$0xff] }
 0x428   : > { %v3512_v6 = vsel %vm3361_vm3, %v3473_v58, 0.0  ;;  %v2651_v36 = vadd.f32 %v2619_v28, %v2411_v4  ;;  %v3338_v10 = vadd.f32 %v3252_v32, %v2994_v55  ;;  %v1143_v52 = vadd.f32 %v7997_v27, %v7996_v46  ;;  %v8004_v28 = vld [vmem:[#allocation82_spill] sm:$0xff]  ;;  %v8007_v59 = vld [vmem:[#allocation164_spill] sm:$0xff] }
 0x429   : > { %v3513_v13 = vadd.f32 %v3512_v6, %v3511_v34  ;;  %v2620_v57 = vadd.f32 %v7120_v22, %v2552_v15  ;;  %v2487_v20 = vmul.f32 %v7091_v51, %v7883_v26  ;;  %v2069_v21 = vadd.f32 %v7998_v12, %v1725_v31  ;;  %v3254_v39 = vpop.permute.xlu1 %3253  ;;  %v8001_v15 = vld [vmem:[#allocation149_spill] sm:$0xff] }
 0x42a   : > { %v2995_v45 = vadd.f32 %v2910_v49, %v2651_v36  ;;  %3371 = vst.msk [vmem:[%s7024_s30 + $0x48] sm:$0xff] %vm3361_vm3, %v3338_v10  ;;  %v3411_v41 = vsel %vm3361_vm3, %v3338_v10, 0.0  ;;  %v3474_v42 = vmul.f32 %v3338_v10, %v3338_v10  ;;  %v1487_v54 = vadd.f32 %v7999_v62, %v1143_v52  ;;  %v8009_v6 = vld [vmem:[#allocation21_spill] sm:$0xff] }
 0x42b   : > { %v1726_v63 = vadd.f32 %v8000_v7, %v1486_v5  ;;  %v3412_v29 = vadd.f32 %v3411_v41, %v3410_v48  ;;  %v2554_v22 = vadd.f32 %v2522_v19, %v2486_v18  ;;  %v2413_v17 = vadd.f32 %v8001_v15, %v2069_v21  ;;  %v2914_v16 = vpop.permute.xlu0 %2913 }
 0x42c   : > { %v3514_v51 = vsel %vm3361_vm3, %v3474_v42, 0.0  ;;  %v2652_v47 = vadd.f32 %v2620_v57, %v2412_v44  ;;  %v3339_v4 = vadd.f32 %v3254_v39, %v2995_v45  ;;  %v1144_v0 = vadd.f32 %v8003_v23, %v8002_v37  ;;  %v8008_v44 = vld [vmem:[#allocation176_spill] sm:$0xff]  ;;  %v8011_v45 = vld [vmem:[#allocation53_spill] sm:$0xff]  ;;  %v8012_v42 = vld [vmem:[#allocation178_spill] sm:$0xff] }
 0x42d   : > { %v3515_v1 = vadd.f32 %v3514_v51, %v3513_v13  ;;  %v2621_v11 = vadd.f32 %v2589_v33, %v2553_v30  ;;  %v2523_v34 = vmul.f32 %v7153_v53, %v7905_v60  ;;  %v2070_v49 = vadd.f32 %v8004_v28, %v1726_v63  ;;  %v3256_v5 = vpop.permute.xlu1 %3255  ;;  %v3872_v33 = vld [vmem:[#allocation2 + $0xda] sm:$0xff] }
 0x42e   : > { %v2996_v50 = vadd.f32 %v2912_v35, %v2652_v47  ;;  %3372 = vst.msk [vmem:[%s7024_s30 + $0x50] sm:$0xff] %vm3361_vm3, %v3339_v4  ;;  %v3413_v18 = vsel %vm3361_vm3, %v3339_v4, 0.0  ;;  %v3475_v19 = vmul.f32 %v3339_v4, %v3339_v4  ;;  %v1488_v55 = vadd.f32 %v8005_v40, %v1144_v0  ;;  %v8010_v13 = vld [vmem:[#allocation85_spill] sm:$0xff]  ;;  %v8014_v23 = vld [vmem:[#allocation84_spill] sm:$0xff] }
 0x42f   : > { %v1727_v58 = vadd.f32 %v8006_v3, %v1487_v54  ;;  %v3414_v43 = vadd.f32 %v3413_v18, %v3412_v29  ;;  %v2591_v30 = vmul.f32 %v3872_v33, %v7904_v25  ;;  %v2414_v31 = vadd.f32 %v8007_v59, %v2070_v49  ;;  %v2916_v27 = vpop.permute.xlu0 %2915  ;;  %v3873_v4 = vld [vmem:[#allocation2 + $0xe2] sm:$0xff]  ;;  %v3874_v59 = vld [vmem:[#allocation2 + $0xf2] sm:$0xff] }
 0x430   : > { %v3516_v48 = vsel %vm3361_vm3, %v3475_v19, 0.0  ;;  %v2653_v32 = vadd.f32 %v2621_v11, %v2413_v17  ;;  %v3340_v14 = vadd.f32 %v3256_v5, %v2996_v50  ;;  %v1145_v36 = vadd.f32 %v8009_v6, %v8008_v44 }
 0x431   : > { %v3517_v10 = vadd.f32 %v3516_v48, %v3515_v1  ;;  %v2622_v46 = vadd.f32 %v2590_v24, %v2554_v22  ;;  %v2524_v52 = vmul.f32 %v3871_v2, %v7905_v60  ;;  %v2071_v57 = vadd.f32 %v8010_v13, %v1727_v58  ;;  %v3258_v7 = vpop.permute.xlu1 %3257  ;;  %v8013_v24 = vld [vmem:[#allocation182_spill] sm:$0xff] }
 0x432   : > { %v2997_v35 = vadd.f32 %v2914_v16, %v2653_v32  ;;  %3373 = vst.msk [vmem:[%s7024_s30 + $0x58] sm:$0xff] %vm3361_vm3, %v3340_v14  ;;  %v3415_v12 = vsel %vm3361_vm3, %v3340_v14, 0.0  ;;  %v3476_v21 = vmul.f32 %v3340_v14, %v3340_v14  ;;  %v1489_v41 = vadd.f32 %v8011_v45, %v1145_v36  ;;  %v8015_v16 = vld [vmem:[#allocation179_spill] sm:$0xff]  ;;  %v8017_v48 = vld [vmem:[#allocation86_spill] sm:$0xff] }
 0x433   : > { %v1728_v62 = vadd.f32 %v8012_v42, %v1488_v55  ;;  %v3416_v54 = vadd.f32 %v3415_v12, %v3414_v43  ;;  %v2555_v63 = vadd.f32 %v2523_v34, %v2487_v20  ;;  %v2415_v29 = vadd.f32 %v8013_v24, %v2071_v57  ;;  %v2918_v51 = vpop.permute.xlu0 %2917 }
 0x434   : > { %v3518_v2 = vsel %vm3361_vm3, %v3476_v21, 0.0  ;;  %v2654_v39 = vadd.f32 %v2622_v46, %v2414_v31  ;;  %v3341_v22 = vadd.f32 %v3258_v7, %v2997_v35  ;;  %v2488_v47 = vmul.f32 %v7116_v9, %v7883_v26  ;;  %v8016_v9 = vld [vmem:[#allocation172_spill] sm:$0xff]  ;;  %v8018_v46 = vld [vmem:[#allocation183_spill] sm:$0xff] }
 0x435   : > { %v3519_v15 = vadd.f32 %v3518_v2, %v3517_v10  ;;  %v2623_v17 = vadd.f32 %v2591_v30, %v2555_v63  ;;  %v2592_v37 = vmul.f32 %v3873_v4, %v7904_v25  ;;  %v2072_v0 = vadd.f32 %v8014_v23, %v1728_v62  ;;  %v3260_v49 = vpop.permute.xlu1 %3259  ;;  %v8019_v23 = vld [vmem:[#allocation162_spill] sm:$0xff] }
 0x436   : > { %v2998_v1 = vadd.f32 %v2916_v27, %v2654_v39  ;;  %3374 = vst.msk [vmem:[%s7024_s30 + $0x60] sm:$0xff] %vm3361_vm3, %v3341_v22  ;;  %v3417_v20 = vsel %vm3361_vm3, %v3341_v22, 0.0  ;;  %v3477_v11 = vmul.f32 %v3341_v22, %v3341_v22  ;;  %v1729_v34 = vadd.f32 %v8015_v16, %v1489_v41 }
 0x437   : > { %v3418_v28 = vadd.f32 %v3417_v20, %v3416_v54  ;;  %v2556_v50 = vadd.f32 %v2524_v52, %v2488_v47  ;;  %v2525_v18 = vmul.f32 %v3872_v33, %v7905_v60  ;;  %v2416_v19 = vadd.f32 %v8016_v9, %v2072_v0  ;;  %v2920_v5 = vpop.permute.xlu0 %2919 }
 0x438   : > { %v3520_v40 = vsel %vm3361_vm3, %v3477_v11, 0.0  ;;  %v2655_v55 = vadd.f32 %v2623_v17, %v2415_v29  ;;  %v3342_v3 = vadd.f32 %v3260_v49, %v2998_v1  ;;  %v2489_v30 = vmul.f32 %v7153_v53, %v7883_v26 }
 0x439   : > { %v3521_v58 = vadd.f32 %v3520_v40, %v3519_v15  ;;  %v2624_v43 = vadd.f32 %v2592_v37, %v2556_v50  ;;  %v2593_v31 = vmul.f32 %v3874_v59, %v7904_v25  ;;  %v2073_v32 = vadd.f32 %v8017_v48, %v1729_v34  ;;  %v3262_v36 = vpop.permute.xlu1 %3261  ;;  %v8022_v48 = vld [vmem:[#allocation102_spill] sm:$0xff] }
 0x43a   : > { %v2999_v14 = vadd.f32 %v2918_v51, %v2655_v55  ;;  %3375 = vst.msk [vmem:[%s7024_s30 + $0x68] sm:$0xff] %vm3361_vm3, %v3342_v3  ;;  %v3419_v33 = vsel %vm3361_vm3, %v3342_v3, 0.0  ;;  %v3478_v44 = vmul.f32 %v3342_v3, %v3342_v3  ;;  %v2557_v10 = vadd.f32 %v2525_v18, %v2489_v30  ;;  %v8020_v18 = vld [vmem:[#allocation147_spill] sm:$0xff] }
 0x43b   : > { %v3420_v6 = vadd.f32 %v3419_v33, %v3418_v28  ;;  %v2417_v27 = vadd.f32 %v8018_v46, %v2073_v32  ;;  %v2656_v53 = vadd.f32 %v2624_v43, %v2416_v19  ;;  %v2922_v35 = vpop.permute.xlu0 %2921  ;;  %v8021_v43 = vld [vmem:[#allocation103_spill] sm:$0xff] }
 0x43c   : > { %v3522_v52 = vsel %vm3361_vm3, %v3478_v44, 0.0  ;;  %v3343_v13 = vadd.f32 %v3262_v36, %v2999_v14  ;;  %v2625_v41 = vadd.f32 %v2593_v31, %v2557_v10  ;;  %v3876_v31 = vld [vmem:[#allocation2 + $0x140] sm:$0xff] }
 0x43d   : > { %v3523_v57 = vadd.f32 %v3522_v52, %v3521_v58  ;;  %v3000_v12 = vadd.f32 %v2920_v5, %v2656_v53  ;;  %v3264_v62 = vpop.permute.xlu1 %3263  ;;  %v3875_v58 = vld [vmem:[#allocation2 + $0x158] sm:$0xff]  ;;  %v676_v32 = vmul.f32 %v3876_v31, %v8022_v48  ;;  %v3878_v53 = vld [vmem:[#allocation2 + $0x150] sm:$0xff] }
 0x43e   : > { %3376 = vst.msk [vmem:[%s7024_s30 + $0x70] sm:$0xff] %vm3361_vm3, %v3343_v13  ;;  %v3421_v21 = vsel %vm3361_vm3, %v3343_v13, 0.0  ;;  %v3479_v45 = vmul.f32 %v3343_v13, %v3343_v13  ;;  %v2657_v7 = vadd.f32 %v2625_v41, %v2417_v27  ;;  %v712_v5 = vmul.f32 %v3875_v58, %v8021_v43  ;;  %v3877_v27 = vld [vmem:[#allocation2 + $0x170] sm:$0xff]  ;;  %v8024_v41 = vld [vmem:[#allocation106_spill] sm:$0xff]  ;;  %v8029_v31 = vld [vmem:[#allocation104_spill] sm:$0xff] }
 0x43f   : > { %v3422_v42 = vadd.f32 %v3421_v21, %v3420_v6  ;;  %v3344_v63 = vadd.f32 %v3264_v62, %v3000_v12  ;;  %v2924_v29 = vpop.permute.xlu0 %2923  ;;  %v678_v44 = vmul.f32 %v3875_v58, %v8022_v48  ;;  %v8023_v6 = vld [vmem:[#allocation165_spill] sm:$0xff]  ;;  %v714_v52 = vmul.f32 %v3877_v27, %v8021_v43 }
 0x440   : > { %v3524_v54 = vsel %vm3361_vm3, %v3479_v45, 0.0  ;;  %v3001_v2 = vadd.f32 %v2922_v35, %v2657_v7  ;;  %v3002_v0 = vadd.f32 %v2924_v29, %v8019_v23  ;;  %v677_v13 = vmul.f32 %v3878_v53, %v8022_v48  ;;  %v3880_v7 = vld [vmem:[#allocation2 + $0x188] sm:$0xff]  ;;  %v8028_v58 = vld [vmem:[#allocation57_spill] sm:$0xff] }
 0x441   : > { %v3525_v24 = vadd.f32 %v3524_v54, %v3523_v57  ;;  %3377 = vst.msk [vmem:[%s7024_s30 + $0x78] sm:$0xff] %vm3361_vm3, %v3344_v63  ;;  %v3423_v39 = vsel %vm3361_vm3, %v3344_v63, 0.0  ;;  %v3480_v22 = vmul.f32 %v3344_v63, %v3344_v63  ;;  %v3266_v17 = vpop.permute.xlu1 %3265  ;;  %v3879_v57 = vld [vmem:[#allocation2 + $0x168] sm:$0xff]  ;;  %v744_v45 = vadd.f32 %v712_v5, %v676_v32 }
 0x442   : > { %v3424_v15 = vadd.f32 %v3423_v39, %v3422_v42  ;;  %v3345_v47 = vadd.f32 %v3266_v17, %v3001_v2  ;;  %v713_v35 = vmul.f32 %v3879_v57, %v8021_v43  ;;  %v780_v42 = vmul.f32 %v3877_v27, %v8024_v41  ;;  %v8025_v17 = vld [vmem:[#allocation150_spill] sm:$0xff] }
 0x443   : > { %v3526_v51 = vsel %vm3361_vm3, %v3480_v22, 0.0  ;;  %v782_v63 = vmul.f32 %v3880_v7, %v8024_v41  ;;  %v680_v2 = vmul.f32 %v3877_v27, %v8022_v48 }
 0x444   : > { %v3527_v4 = vadd.f32 %v3526_v51, %v3525_v24  ;;  %3378 = vst.msk [vmem:[%s7024_s30 + $0x80] sm:$0xff] %vm3361_vm3, %v3345_v47  ;;  %v3425_v1 = vsel %vm3361_vm3, %v3345_v47, 0.0  ;;  %v3481_v20 = vmul.f32 %v3345_v47, %v3345_v47  ;;  %v3881_v24 = vld [vmem:[#allocation2 + $0x180] sm:$0xff]  ;;  %v745_v23 = vadd.f32 %v713_v35, %v677_v13  ;;  %v3883_v13 = vld [vmem:[#allocation2 + $0x198] sm:$0xff] }
 0x445   : > { %v2926_v37 = vpop.permute.xlu0 %2925  ;;  %v3426_v11 = vadd.f32 %v3425_v1, %v3424_v15  ;;  %v3268_v16 = vpop.permute.xlu1 %3267  ;;  %v781_v29 = vmul.f32 %v3881_v24, %v8024_v41  ;;  %v716_v15 = vmul.f32 %v3880_v7, %v8021_v43 }
 0x446   : > { %v3528_v34 = vsel %vm3361_vm3, %v3481_v20, 0.0  ;;  %v3346_v28 = vadd.f32 %v3268_v16, %v3002_v0  ;;  %v3003_v9 = vadd.f32 %v2926_v37, %v8020_v18  ;;  %v746_v37 = vadd.f32 %v714_v52, %v678_v44  ;;  %v8026_v18 = vld [vmem:[#allocation105_spill] sm:$0xff] }
 0x447   : > { %v3529_v49 = vadd.f32 %v3528_v34, %v3527_v4  ;;  %v715_v0 = vmul.f32 %v3881_v24, %v8021_v43  ;;  %v679_v16 = vmul.f32 %v3879_v57, %v8022_v48  ;;  %v8030_v48 = vld [vmem:[#allocation146_spill] sm:$0xff]  ;;  %v783_v57 = vmul.f32 %v3883_v13, %v8024_v41 }
 0x448   : > { %3379 = vst.msk [vmem:[%s7024_s30 + $0x88] sm:$0xff] %vm3361_vm3, %v3346_v28  ;;  %v3427_v19 = vsel %vm3361_vm3, %v3346_v28, 0.0  ;;  %v3482_v40 = vmul.f32 %v3346_v28, %v3346_v28  ;;  %v1572_v32 = vmul.f32 %v8030_v48, %v8029_v31  ;;  %v2537_v13 = vmul.f32 %v6883_v38, %v7905_v60  ;;  %v8043_v38 = vld [vmem:[#allocation168_spill] sm:$0xff] }
 0x449   : > { %v2928_v50 = vpop.permute.xlu0 %2927  ;;  %v3428_v55 = vadd.f32 %v3427_v19, %v3426_v11  ;;  %v3270_v3 = vpop.permute.xlu1 %3269  ;;  %v812_v11 = vadd.f32 %v780_v42, %v744_v45  ;;  %v8033_v45 = vld [vmem:[#allocation62_spill] sm:$0xff] }
 0x44a   : > { %v3530_v30 = vsel %vm3361_vm3, %v3482_v40, 0.0  ;;  %v3347_v59 = vadd.f32 %v3270_v3, %v3003_v9  ;;  %v3004_v36 = vadd.f32 %v2928_v50, %v8023_v6  ;;  %v813_v50 = vadd.f32 %v781_v29, %v745_v23  ;;  %v8027_v9 = vld [vmem:[#allocation154_spill] sm:$0xff] }
 0x44b   : > { %v3531_v14 = vadd.f32 %v3530_v30, %v3529_v49  ;;  %v7279_v49 = vadd.f32 %v782_v63, %v746_v37  ;;  %v1608_v19 = vmul.f32 %v8027_v9, %v8026_v18  ;;  %v7283_v3 = vadd.f32 %v716_v15, %v680_v2  ;;  %v8037_v37 = vld [vmem:[#allocation33_spill] sm:$0xff] }
 0x44c   : > { %3380 = vst.msk [vmem:[%s7024_s30 + $0x90] sm:$0xff] %vm3361_vm3, %v3347_v59  ;;  %v3429_v10 = vsel %vm3361_vm3, %v3347_v59, 0.0  ;;  %v3483_v46 = vmul.f32 %v3347_v59, %v3347_v59  ;;  %v7289_v59 = vadd.f32 %v715_v0, %v679_v16  ;;  %v1609_v29 = vmul.f32 %v6854_v8, %v8026_v18  ;;  %v3884_v8 = vld [vmem:[#allocation2 + $0x142] sm:$0xff] }
 0x44d   : > { %v2930_v33 = vpop.permute.xlu0 %2929  ;;  %v3430_v12 = vadd.f32 %v3429_v10, %v3428_v55  ;;  %v3272_v21 = vpop.permute.xlu1 %3271  ;;  %v1640_v35 = vadd.f32 %v1608_v19, %v1572_v32  ;;  %v1157_v23 = vadd.f32 %v8037_v37, %v813_v50  ;;  %v7327_v50 = vld [vmem:[#allocation2 + $0x171] sm:$0xff]  ;;  %v8040_v32 = vld [vmem:[#allocation93_spill] sm:$0xff] }
 0x44e   : > { %v3532_v62 = vsel %vm3361_vm3, %v3483_v46, 0.0  ;;  %v3348_v54 = vadd.f32 %v3272_v21, %v3004_v36  ;;  %v3005_v51 = vadd.f32 %v2930_v33, %v8025_v17  ;;  %v8032_v36 = vld [vmem:[#allocation30_spill] sm:$0xff]  ;;  %v3882_v46 = vld [vmem:[#allocation2 + $0x1a0] sm:$0xff] }
 0x44f   : > { %v3533_v39 = vadd.f32 %v3532_v62, %v3531_v14  ;;  %v8031_v14 = vld [vmem:[#allocation107_spill] sm:$0xff]  ;;  %v1156_v10 = vadd.f32 %v8032_v36, %v812_v11  ;;  %v7297_v27 = vmul.f32 %v3882_v46, %v8024_v41  ;;  %v8034_v62 = vld [vmem:[#allocation166_spill] sm:$0xff]  ;;  %v8041_v36 = vld [vmem:[#allocation157_spill] sm:$0xff] }
 0x450   : > { %3381 = vst.msk [vmem:[%s7024_s30 + $0x98] sm:$0xff] %vm3361_vm3, %v3348_v54  ;;  %v3431_v47 = vsel %vm3361_vm3, %v3348_v54, 0.0  ;;  %v3484_v4 = vmul.f32 %v3348_v54, %v3348_v54  ;;  %v1676_v33 = vmul.f32 %v6819_v56, %v8031_v14  ;;  %v8036_v17 = vld [vmem:[#allocation158_spill] sm:$0xff]  ;;  %v7319_v11 = vld [vmem:[#allocation2 + $0x172] sm:$0xff] }
 0x451   : > { %v2932_v22 = vpop.permute.xlu0 %2931  ;;  %v3432_v1 = vadd.f32 %v3431_v47, %v3430_v12  ;;  %v3274_v20 = vpop.permute.xlu1 %3273  ;;  %v1574_v12 = vmul.f32 %v8027_v9, %v8029_v31  ;;  %v1500_v42 = vadd.f32 %v8033_v45, %v1156_v10  ;;  %v1678_v10 = vmul.f32 %v8041_v36, %v8031_v14 }
 0x452   : > { %v3534_v34 = vsel %vm3361_vm3, %v3484_v4, 0.0  ;;  %v3349_v28 = vadd.f32 %v3274_v20, %v3005_v51  ;;  %v3006_v43 = vadd.f32 %v2932_v22, %v8028_v58  ;;  %v1708_v24 = vadd.f32 %v1676_v33, %v1640_v35  ;;  %v8035_v22 = vld [vmem:[#allocation155_spill] sm:$0xff] }
 0x453   : > { %v3535_v40 = vadd.f32 %v3534_v34, %v3533_v39  ;;  %v2536_v39 = vmul.f32 %v6838_v61, %v7905_v60  ;;  %v1573_v15 = vmul.f32 %v8035_v22, %v8029_v31  ;;  %v1677_v51 = vmul.f32 %v8036_v17, %v8031_v14  ;;  %v8038_v34 = vld [vmem:[#allocation167_spill] sm:$0xff] }
 0x454   : > { %3382 = vst.msk [vmem:[%s7024_s30 + $0xa0] sm:$0xff] %vm3361_vm3, %v3349_v28  ;;  %v3433_v5 = vsel %vm3361_vm3, %v3349_v28, 0.0  ;;  %v3485_v30 = vmul.f32 %v3349_v28, %v3349_v28  ;;  %v2500_v20 = vmul.f32 %v3884_v8, %v7883_v26  ;;  %v2604_v61 = vmul.f32 %v7319_v11, %v7904_v25  ;;  %v8045_v8 = vld [vmem:[#allocation96_spill] sm:$0xff] }
 0x455   : > { %v2934_v55 = vpop.permute.xlu0 %2933  ;;  %v3434_v44 = vadd.f32 %v3433_v5, %v3432_v1  ;;  %v3276_v6 = vpop.permute.xlu1 %3275  ;;  %v1740_v16 = vadd.f32 %v1708_v24, %v1500_v42  ;;  %v8042_v42 = vld [vmem:[#allocation32_spill] sm:$0xff]  ;;  %v815_v17 = vadd.f32 %v783_v57, %v7289_v59 }
 0x456   : > { %v3536_v52 = vsel %vm3361_vm3, %v3485_v30, 0.0  ;;  %v3350_v53 = vadd.f32 %v3276_v6, %v3006_v43  ;;  %v3007_v54 = vadd.f32 %v2934_v55, %v8034_v62  ;;  %v1641_v55 = vadd.f32 %v1609_v29, %v1573_v15  ;;  %v8039_v30 = vld [vmem:[#allocation65_spill] sm:$0xff] }
 0x457   : > { %v3537_v56 = vadd.f32 %v3536_v52, %v3535_v40  ;;  %v1610_v40 = vmul.f32 %v7327_v50, %v8026_v18  ;;  %v2568_v5 = vadd.f32 %v2536_v39, %v2500_v20  ;;  %v1501_v48 = vadd.f32 %v8039_v30, %v1157_v23  ;;  %v3888_v29 = vld [vmem:[#allocation2 + $0x182] sm:$0xff]  ;;  %v8044_v23 = vld [vmem:[#allocation64_spill] sm:$0xff] }
 0x458   : > { %3383 = vst.msk [vmem:[%s7024_s30 + $0xa8] sm:$0xff] %vm3361_vm3, %v3350_v53  ;;  %v3435_v7 = vsel %vm3361_vm3, %v3350_v53, 0.0  ;;  %v3486_v63 = vmul.f32 %v3350_v53, %v3350_v53  ;;  %v2084_v33 = vadd.f32 %v8040_v32, %v1740_v16  ;;  %v1709_v46 = vadd.f32 %v1677_v51, %v1641_v55  ;;  %v3891_v32 = vld [vmem:[#allocation2 + $0x15a] sm:$0xff] }
 0x459   : > { %v2936_v21 = vpop.permute.xlu0 %2935  ;;  %v3436_v41 = vadd.f32 %v3435_v7, %v3434_v44  ;;  %v3278_v2 = vpop.permute.xlu1 %3277  ;;  %v2636_v45 = vadd.f32 %v2604_v61, %v2568_v5  ;;  %v1158_v62 = vadd.f32 %v8042_v42, %v7279_v49  ;;  %v1642_v51 = vadd.f32 %v1610_v40, %v1574_v12  ;;  %v3889_v49 = vld [vmem:[#allocation2 + $0x169] sm:$0xff] }
 0x45a   : > { %v3538_v47 = vsel %vm3361_vm3, %v3486_v63, 0.0  ;;  %v3351_v4 = vadd.f32 %v3278_v2, %v3007_v54  ;;  %v3008_v28 = vadd.f32 %v2936_v21, %v8038_v34  ;;  %v3887_v63 = vld [vmem:[#allocation2 + $0x152] sm:$0xff]  ;;  %v1741_v2 = vadd.f32 %v1709_v46, %v1501_v48  ;;  %v3890_v34 = vld [vmem:[#allocation2 + $0x181] sm:$0xff] }
 0x45b   : > { %v3539_v0 = vadd.f32 %v3538_v47, %v3537_v56  ;;  %v2501_v24 = vmul.f32 %v3887_v63, %v7883_v26  ;;  %v1575_v47 = vmul.f32 %v3889_v49, %v8029_v31  ;;  %v2538_v12 = vmul.f32 %v7319_v11, %v7905_v60  ;;  %v8049_v42 = vld [vmem:[#allocation67_spill] sm:$0xff]  ;;  %v8052_v49 = vld [vmem:[#allocation34_spill] sm:$0xff] }
 0x45c   : > { %3384 = vst.msk [vmem:[%s7024_s30 + $0xb0] sm:$0xff] %vm3361_vm3, %v3351_v4  ;;  %v3437_v9 = vsel %vm3361_vm3, %v3351_v4, 0.0  ;;  %v3487_v19 = vmul.f32 %v3351_v4, %v3351_v4  ;;  %v2085_v20 = vadd.f32 %v8045_v8, %v1741_v2 }
 0x45d   : > { %v2938_v1 = vpop.permute.xlu0 %2937  ;;  %v3438_v58 = vadd.f32 %v3437_v9, %v3436_v41  ;;  %v3280_v43 = vpop.permute.xlu1 %3279  ;;  %v2605_v41 = vmul.f32 %v3888_v29, %v7904_v25  ;;  %v2569_v16 = vadd.f32 %v2537_v13, %v2501_v24  ;;  %v8046_v9 = vld [vmem:[#allocation160_spill] sm:$0xff]  ;;  %v816_v13 = vadd.f32 %v7297_v27, %v7283_v3 }
 0x45e   : > { %v3540_v44 = vsel %vm3361_vm3, %v3487_v19, 0.0  ;;  %v3352_v6 = vadd.f32 %v3280_v43, %v3008_v28  ;;  %v3009_v39 = vadd.f32 %v2938_v1, %v8043_v38  ;;  %v1710_v1 = vadd.f32 %v1678_v10, %v1642_v51  ;;  %v8047_v43 = vld [vmem:[#allocation35_spill] sm:$0xff] }
 0x45f   : > { %v3541_v52 = vadd.f32 %v3540_v44, %v3539_v0  ;;  %v1502_v0 = vadd.f32 %v8044_v23, %v1158_v62  ;;  %v1611_v28 = vmul.f32 %v3890_v34, %v8026_v18  ;;  %v1679_v59 = vmul.f32 %v8046_v9, %v8031_v14  ;;  %v3892_v44 = vld [vmem:[#allocation2 + $0x18a] sm:$0xff] }
 0x460   : > { %3385 = vst.msk [vmem:[%s7024_s30 + $0xb8] sm:$0xff] %vm3361_vm3, %v3352_v6  ;;  %v3439_v35 = vsel %vm3361_vm3, %v3352_v6, 0.0  ;;  %v3488_v56 = vmul.f32 %v3352_v6, %v3352_v6  ;;  %v1159_v5 = vadd.f32 %v8047_v43, %v815_v17  ;;  %v2606_v6 = vmul.f32 %v3892_v44, %v7904_v25  ;;  %v8048_v10 = vld [vmem:[#allocation151_spill] sm:$0xff]  ;;  %v8054_v9 = vld [vmem:[#allocation66_spill] sm:$0xff] }
 0x461   : > { %v2360_v53 = vpop.permute.xlu0 %2359  ;;  %v3440_v54 = vadd.f32 %v3439_v35, %v3438_v58  ;;  %v2637_v58 = vadd.f32 %v2605_v41, %v2569_v16  ;;  %v1742_v36 = vadd.f32 %v1710_v1, %v1502_v0  ;;  %v1576_v35 = vmul.f32 %v7327_v50, %v8029_v31  ;;  %v3893_v41 = vld [vmem:[#allocation2 + $0x189] sm:$0xff]  ;;  %v3895_v0 = vld [vmem:[#allocation2 + $0x19a] sm:$0xff] }
 0x462   : > { %v2428_v21 = vadd.f32 %v2360_v53, %v2084_v33  ;;  %v3542_v22 = vsel %vm3361_vm3, %v3488_v56, 0.0  ;;  %v2502_v33 = vmul.f32 %v3891_v32, %v7883_v26  ;;  %v1643_v56 = vadd.f32 %v1611_v28, %v1575_v47  ;;  %v8051_v38 = vld [vmem:[#allocation23_spill] sm:$0xff] }
 0x463   : > { %v2940_v7 = vpop.permute.xlu1 %2939  ;;  %v3543_v4 = vadd.f32 %v3542_v22, %v3541_v52  ;;  %v1503_v62 = vadd.f32 %v8049_v42, %v1159_v5  ;;  %v1612_v2 = vmul.f32 %v3893_v41, %v8026_v18  ;;  %v2539_v27 = vmul.f32 %v3888_v29, %v7905_v60  ;;  %v3894_v23 = vld [vmem:[#allocation2 + $0x16a] sm:$0xff] }
 0x464   : > { %v7347_v15 = vadd.f32 %v2636_v45, %v2428_v21  ;;  %v3010_v46 = vadd.f32 %v2940_v7, %v8048_v10  ;;  %v2570_v7 = vadd.f32 %v2538_v12, %v2502_v33  ;;  %v1711_v22 = vadd.f32 %v1679_v59, %v1643_v56  ;;  %v8053_v29 = vld [vmem:[#allocation59_spill] sm:$0xff]  ;;  %v3896_v10 = vld [vmem:[#allocation2 + $0x1a2] sm:$0xff] }
 0x465   : > { %v3282_v37 = vpop.permute.xlu0 %3281  ;;  %v1160_v47 = vadd.f32 %v8052_v49, %v816_v13  ;;  %v2503_v18 = vmul.f32 %v3894_v23, %v7883_v26  ;;  %v1644_v1 = vadd.f32 %v1612_v2, %v1576_v35  ;;  %v2540_v43 = vmul.f32 %v3892_v44, %v7905_v60 }
 0x466   : > { %v3353_v61 = vadd.f32 %v3282_v37, %v3009_v39  ;;  %v1680_v39 = vmul.f32 %v8051_v38, %v8031_v14  ;;  %v2638_v51 = vadd.f32 %v2606_v6, %v2570_v7  ;;  %v2607_v14 = vmul.f32 %v3895_v0, %v7904_v25 }
 0x467   : > { %v2362_v57 = vpop.permute.xlu1 %2361  ;;  %v1743_v8 = vadd.f32 %v1711_v22, %v1503_v62  ;;  %v1504_v59 = vadd.f32 %v8054_v9, %v1160_v47 }
 0x468   : > { %3386 = vst.msk [vmem:[%s7024_s30 + $0xc0] sm:$0xff] %vm3361_vm3, %v3353_v61  ;;  %v3441_v19 = vsel %vm3361_vm3, %v3353_v61, 0.0  ;;  %v3489_v40 = vmul.f32 %v3353_v61, %v3353_v61  ;;  %v2429_v55 = vadd.f32 %v2362_v57, %v2085_v20  ;;  %v8055_v57 = vld [vmem:[#allocation98_spill] sm:$0xff] }
 0x469   : > { %v3442_v30 = vadd.f32 %v3441_v19, %v3440_v54  ;;  %v2942_v48 = vpop.permute.xlu0 %2941  ;;  %v8050_v54 = vld [vmem:[#allocation95_spill] sm:$0xff]  ;;  %v2087_v12 = vadd.f32 %v8055_v57, %v1743_v8 }
 0x46a   : > { %v3544_v52 = vsel %vm3361_vm3, %v3489_v40, 0.0  ;;  %v7366_v53 = vadd.f32 %v2637_v58, %v2429_v55  ;;  %v2086_v63 = vadd.f32 %v8050_v54, %v1742_v36  ;;  %v3011_v20 = vadd.f32 %v2942_v48, %v8053_v29 }
 0x46b   : > { %v3545_v21 = vadd.f32 %v3544_v52, %v3543_v4  ;;  %v3284_v45 = vpop.permute.xlu1 %3283  ;;  %v2571_v40 = vadd.f32 %v2539_v27, %v2503_v18  ;;  %v1712_v55 = vadd.f32 %v1680_v39, %v1644_v1  ;;  %v2504_v36 = vmul.f32 %v7319_v11, %v7883_v26 }
 0x46c   : > { %v3354_v24 = vadd.f32 %v3284_v45, %v3010_v46  ;;  %v2608_v46 = vmul.f32 %v3896_v10, %v7904_v25 }
 0x46d   : > { %v2364_v3 = vpop.permute.xlu0 %2363  ;;  %v2639_v32 = vadd.f32 %v2607_v14, %v2571_v40  ;;  %v1744_v52 = vadd.f32 %v1712_v55, %v1504_v59  ;;  %v2572_v62 = vadd.f32 %v2540_v43, %v2504_v36 }
 0x46e   : > { %3387 = vst.msk [vmem:[%s7024_s30 + $0xc8] sm:$0xff] %vm3361_vm3, %v3354_v24  ;;  %v3443_v31 = vsel %vm3361_vm3, %v3354_v24, 0.0  ;;  %v3490_v50 = vmul.f32 %v3354_v24, %v3354_v24  ;;  %v2430_v17 = vadd.f32 %v2364_v3, %v2086_v63 }
 0x46f   : > { %v3444_v4 = vadd.f32 %v3443_v31, %v3442_v30  ;;  %v2944_v37 = vpop.permute.xlu1 %2943  ;;  %v2640_v63 = vadd.f32 %v2608_v46, %v2572_v62 }
 0x470   : > { %v3546_v61 = vsel %vm3361_vm3, %v3490_v50, 0.0  ;;  %v2670_v16 = vadd.f32 %v2638_v51, %v2430_v17  ;;  %v3012_v13 = vadd.f32 %v2944_v37, %v7347_v15 }
 0x471   : > { %v3547_v34 = vadd.f32 %v3546_v61, %v3545_v21  ;;  %v3286_v28 = vpop.permute.xlu0 %3285  ;;  %v8056_v21 = vld [vmem:[#allocation97_spill] sm:$0xff] }
 0x472   : > { %v3355_v19 = vadd.f32 %v3286_v28, %v3011_v20  ;;  %v2088_v45 = vadd.f32 %v8056_v21, %v1744_v52 }
 0x473   : > { %v2366_v58 = vpop.permute.xlu1 %2365 }
 0x474   : > { %3388 = vst.msk [vmem:[%s7024_s30 + $0xd0] sm:$0xff] %vm3361_vm3, %v3355_v19  ;;  %v3445_v5 = vsel %vm3361_vm3, %v3355_v19, 0.0  ;;  %v3491_v30 = vmul.f32 %v3355_v19, %v3355_v19  ;;  %v2431_v48 = vadd.f32 %v2366_v58, %v2087_v12 }
 0x475   : > { %v3446_v33 = vadd.f32 %v3445_v5, %v3444_v4  ;;  %v2946_v6 = vpop.permute.xlu0 %2945 }
 0x476   : > { %v3548_v60 = vsel %vm3361_vm3, %v3491_v30, 0.0  ;;  %v2671_v44 = vadd.f32 %v2639_v32, %v2431_v48  ;;  %v3013_v7 = vadd.f32 %v2946_v6, %v7366_v53 }
 0x477   : > { %v3549_v35 = vadd.f32 %v3548_v60, %v3547_v34  ;;  %v3288_v56 = vpop.permute.xlu1 %3287 }
 0x478   : > { %v3356_v42 = vadd.f32 %v3288_v56, %v3012_v13 }
 0x479   : > { %v2368_v54 = vpop.permute.xlu0 %2367 }
 0x47a   : > { %3389 = vst.msk [vmem:[%s7024_s30 + $0xd8] sm:$0xff] %vm3361_vm3, %v3356_v42  ;;  %v3447_v26 = vsel %vm3361_vm3, %v3356_v42, 0.0  ;;  %v3492_v11 = vmul.f32 %v3356_v42, %v3356_v42  ;;  %v2432_v25 = vadd.f32 %v2368_v54, %v2088_v45 }
 0x47b   : > { %v3448_v24 = vadd.f32 %v3447_v26, %v3446_v33  ;;  %v2948_v15 = vpop.permute.xlu1 %2947 }
 0x47c   : > { %v3550_v41 = vsel %vm3361_vm3, %v3492_v11, 0.0  ;;  %v2672_v2 = vadd.f32 %v2640_v63, %v2432_v25  ;;  %v3014_v27 = vadd.f32 %v2948_v15, %v2670_v16 }
 0x47d   : > { %v3551_v38 = vadd.f32 %v3550_v41, %v3549_v35  ;;  %v3290_v39 = vpop.permute.xlu0 %3289 }
 0x47e   : > { %v3357_v22 = vadd.f32 %v3290_v39, %v3013_v7 }
 0x47f   : > { %v2950_v3 = vpop.permute.xlu1 %2949 }
 0x480   : > { %3390 = vst.msk [vmem:[%s7024_s30 + $0xe0] sm:$0xff] %vm3361_vm3, %v3357_v22  ;;  %v3449_v31 = vsel %vm3361_vm3, %v3357_v22, 0.0  ;;  %v3493_v50 = vmul.f32 %v3357_v22, %v3357_v22  ;;  %v3015_v37 = vadd.f32 %v2950_v3, %v2671_v44 }
 0x481   : > { %v3450_v17 = vadd.f32 %v3449_v31, %v3448_v24  ;;  %v3292_v51 = vpop.permute.xlu0 %3291 }
 0x482   : > { %v3552_v49 = vsel %vm3361_vm3, %v3493_v50, 0.0  ;;  %v3358_v53 = vadd.f32 %v3292_v51, %v3014_v27 }
 0x483   : > { %v3553_v47 = vadd.f32 %v3552_v49, %v3551_v38  ;;  %v2952_v4 = vpop.permute.xlu1 %2951 }
 0x484   : > { %3391 = vst.msk [vmem:[%s7024_s30 + $0xe8] sm:$0xff] %vm3361_vm3, %v3358_v53  ;;  %v3451_v23 = vsel %vm3361_vm3, %v3358_v53, 0.0  ;;  %v3494_v18 = vmul.f32 %v3358_v53, %v3358_v53  ;;  %v3016_v29 = vadd.f32 %v2952_v4, %v2672_v2 }
 0x485   : > { %v3452_v0 = vadd.f32 %v3451_v23, %v3450_v17  ;;  %v3294_v14 = vpop.permute.xlu0 %3293 }
 0x486   : > { %v3554_v8 = vsel %vm3361_vm3, %v3494_v18, 0.0  ;;  %v3359_v20 = vadd.f32 %v3294_v14, %v3015_v37 }
 0x487   : > { %v3555_v61 = vadd.f32 %v3554_v8, %v3553_v47  ;;  %v3296_v16 = vpop.permute.xlu1 %3295 }
 0x488   : > { %3392 = vst.msk [vmem:[%s7024_s30 + $0xf0] sm:$0xff] %vm3361_vm3, %v3359_v20  ;;  %v3453_v1 = vsel %vm3361_vm3, %v3359_v20, 0.0  ;;  %v3495_v34 = vmul.f32 %v3359_v20, %v3359_v20  ;;  %v3360_v28 = vadd.f32 %v3296_v16, %v3016_v29 }
 0x489   : > { %v3454_v9 = vadd.f32 %v3453_v1, %v3452_v0 }
 0x48a   : > { %v3556_v59 = vsel %vm3361_vm3, %v3495_v34, 0.0  ;;  %3393 = vst.msk [vmem:[%s7024_s30 + $0xf8] sm:$0xff] %vm3361_vm3, %v3360_v28  ;;  %v3455_v57 = vsel %vm3361_vm3, %v3360_v28, 0.0  ;;  %v3496_v12 = vmul.f32 %v3360_v28, %v3360_v28 }
 0x48b   : > { %v3557_v19 = vadd.f32 %v3556_v59, %v3555_v61  ;;  %v3456_v40 = vadd.f32 %v3455_v57, %v3454_v9 }
 0x48c   : > { %v3558_v55 = vsel %vm3361_vm3, %v3496_v12, 0.0 }
 0x48d   : > { %v3457_v58 = vrot.slane %v3456_v40, 4  ;;  %v3559_v43 = vadd.f32 %v3558_v55, %v3557_v19 }
 0x48f   : > { %v3458_v5 = vadd.f32 %v3457_v58, %v3456_v40  ;;  %v3560_v30 = vrot.slane %v3559_v43, 4 }
 0x491   : > { %v3459_v48 = vrot.slane %v3458_v5, 2  ;;  %v3561_v32 = vadd.f32 %v3560_v30, %v3559_v43 }
 0x493   : > { %v3460_v33 = vadd.f32 %v3459_v48, %v3458_v5  ;;  %v3562_v6 = vrot.slane %v3561_v32, 2 }
 0x495   : > { %v3461_v36 = vrot.slane %v3460_v33, 1  ;;  %v3563_v10 = vadd.f32 %v3562_v6, %v3561_v32 }
 0x497   : > { %v3462_v46 = vadd.f32 %v3461_v36, %v3460_v33  ;;  %v3564_v52 = vrot.slane %v3563_v10, 1 }
 0x499   : > { %3464 = vst.msk [vmem:[%s323_s7] sm:$0x1] %vm3463_vm4, %v3462_v46  ;;  %v3565_v13 = vadd.f32 %v3564_v52, %v3563_v10 }
 0x49b   : > { %3566 = vst.msk [vmem:[%s328_s10] sm:$0x1] %vm3463_vm4, %v3565_v13 }
 0x49c PF: > { %s16_s20 = sadd.s32 1, %s3919_s20   ;;  %s8057_s18 = smov %s3915_s19 }
 0x49d   : > { %p13_p5 = scmp.ge.s32.totalorder %s16_s20, 4   ;;  %s8058_s19 = smov %s8060_s21 }
 0x49f   :  { %15 = sbr.rel (!%p13_p5) target bundleno = 2 (0x2), region = 91 }

</bundles_post_ra>
